<compile_context>
chip_gen: v6e
topology: v6e:2x2x1
jax: 0.10.0
libtpu: 0.0.40
codegen_flags: <defaults>
</compile_context>

<pallas_src>
import functools
import math

import jax
import jax.numpy as jnp
from jax import lax
from jax.experimental import pallas as pl
from jax.experimental.pallas import tpu as pltpu

NEG_INF = -1e30
LN_EPS = 1e-5
BF16 = jnp.bfloat16


# ----------------------------------------------------------------------------
# The single fused kernel (whole forward pass)
# ----------------------------------------------------------------------------

def _transformer_kernel(*refs, treedef, batch, s_src, s_tgt, d_model, heads):
    *in_refs, o_ref = refs
    # Reconstruct the parameter/input pytree from the flat VMEM refs.
    a = jax.tree_util.tree_unflatten(treedef, [r[...] for r in in_refs])

    B, D, H = batch, d_model, heads
    dk = D // H
    scale = 1.0 / math.sqrt(dk)

    def mm(x_bf, w_bf):  # bf16 x bf16 -> f32 accumulation on the MXU
        return jnp.dot(x_bf, w_bf, preferred_element_type=jnp.float32)

    def ln(x, g, b):     # f32 LayerNorm (PyTorch semantics, biased variance)
        mu = jnp.mean(x, axis=-1, keepdims=True)
        xc = x - mu
        var = jnp.mean(xc * xc, axis=-1, keepdims=True)
        return xc * lax.rsqrt(var + LN_EPS) * g + b

    def attn_core(q3, k3, v3, bias, wo, bo, sq):
        # q3: [B,sq,D] bf16, k3/v3: [B,sk,D] bf16, bias: [B,sq,sk] additive f32.
        outs = []
        for h in range(H):                       # static unroll; no scratch writes
            c = h * dk
            s = jnp.einsum("bqd,bkd->bqk", q3[:, :, c:c + dk], k3[:, :, c:c + dk],
                           preferred_element_type=jnp.float32) * scale + bias
            s = s - jnp.max(s, axis=-1, keepdims=True)
            p = jnp.exp(s)
            # approx reciprocal runs on the EUP slot; tiny deviation vs exact divide
            p = p * pl.reciprocal(jnp.sum(p, axis=-1, keepdims=True), approx=True)
            outs.append(jnp.einsum("bqk,bkd->bqd", p.astype(BF16), v3[:, :, c:c + dk],
                                   preferred_element_type=jnp.float32))
        o = jnp.concatenate(outs, axis=-1).astype(BF16).reshape(B * sq, D)
        return mm(o, wo) + bo                    # single output-projection matmul

    def self_attn(xn_bf, bias, p, sq):
        qkv = (mm(xn_bf, p["wqkv"]) + p["bqkv"]).astype(BF16)      # [B*sq, 3D]
        q3 = qkv[:, :D].reshape(B, sq, D)
        k3 = qkv[:, D:2 * D].reshape(B, sq, D)
        v3 = qkv[:, 2 * D:].reshape(B, sq, D)
        return attn_core(q3, k3, v3, bias, p["wo"], p["bo"], sq)

    def cross_attn(xn_bf, mem_bf, bias, p, sq, sk):
        q3 = (mm(xn_bf, p["wq"]) + p["bq"]).astype(BF16).reshape(B, sq, D)
        kv = (mm(mem_bf, p["wkv"]) + p["bkv"]).astype(BF16)        # [B*sk, 2D]
        k3 = kv[:, :D].reshape(B, sk, D)
        v3 = kv[:, D:].reshape(B, sk, D)
        return attn_core(q3, k3, v3, bias, p["wo"], p["bo"], sq)

    def ffn(xn_bf, p):   # plain ReLU FFN (is_gated=False module default)
        h = jnp.maximum(mm(xn_bf, p["w1"]) + p["b1"], 0.0)
        return mm(h.astype(BF16), p["w2"]) + p["b2"]

    def embed(tok, table_bf, pe):
        # in-kernel embedding gather via one-hot matmul (no dynamic gather)
        n_vocab = table_bf.shape[0]
        onehot = tok == lax.broadcasted_iota(jnp.int32, (tok.shape[0], n_vocab), 1)
        e = mm(onehot.astype(BF16), table_bf)                      # [B*S, D] f32
        return e * math.sqrt(D) + pe

    # ---------------- encoder ----------------
    x = embed(a["src_tok"], a["src_embed"], a["pe_src"])           # [B*Ss, D] f32
    for lp in a["enc_layers"]:
        xn = ln(x, lp["ln1_g"], lp["ln1_b"]).astype(BF16)
        x = x + self_attn(xn, a["enc_bias"], lp["self_attn"], s_src)
        xn = ln(x, lp["ln2_g"], lp["ln2_b"]).astype(BF16)
        x = x + ffn(xn, lp["ff"])
    # final encoder LayerNorm; memory stays in VMEM/vregs (never leaves the kernel)
    mem_bf = ln(x, a["enc_norm_g"], a["enc_norm_b"]).astype(BF16)

    # ---------------- decoder ----------------
    y = embed(a["tgt_tok"], a["tgt_embed"], a["pe_tgt"])           # [B*St, D] f32
    for lp in a["dec_layers"]:
        yn = ln(y, lp["ln1_g"], lp["ln1_b"]).astype(BF16)
        y = y + self_attn(yn, a["dec_self_bias"], lp["self_attn"], s_tgt)
        yn = ln(y, lp["ln2_g"], lp["ln2_b"]).astype(BF16)
        y = y + cross_attn(yn, mem_bf, a["dec_cross_bias"], lp["src_attn"], s_tgt, s_src)
        yn = ln(y, lp["ln3_g"], lp["ln3_b"]).astype(BF16)
        y = y + ffn(yn, lp["ff"])
    y = ln(y, a["dec_norm_g"], a["dec_norm_b"])                    # final decoder norm

    o_ref[...] = y.astype(o_ref.dtype)


# ----------------------------------------------------------------------------
# Wrapper: one pallas_call for the whole forward
# ----------------------------------------------------------------------------

def _prep_bias(mask, seq_q, seq_k, batch):
    """labml mask [mq, Sk, mb] (1 = keep) -> additive bias [B, Sq, Sk] (0 / -1e30)."""
    m = jnp.broadcast_to(jnp.asarray(mask, jnp.float32), (seq_q, seq_k, batch))
    m = m.transpose(2, 0, 1)
    return jnp.where(m > 0, 0.0, NEG_INF).astype(jnp.float32)


def transformer_forward(params, pe_src, pe_tgt, src, tgt, src_mask, tgt_mask,
                        *, heads, d_model):
    S_src, B = src.shape
    S_tgt = tgt.shape[0]
    # [S, B] token ids -> batch-major [B*S, 1] (matches in-kernel row layout)
    src_tok = src.T.reshape(B * S_src, 1).astype(jnp.int32)
    tgt_tok = tgt.T.reshape(B * S_tgt, 1).astype(jnp.int32)

    args = dict(
        src_tok=src_tok, tgt_tok=tgt_tok, pe_src=pe_src, pe_tgt=pe_tgt,
        enc_bias=_prep_bias(src_mask, S_src, S_src, B),
        dec_self_bias=_prep_bias(tgt_mask, S_tgt, S_tgt, B),
        dec_cross_bias=_prep_bias(src_mask, S_tgt, S_src, B),
        src_embed=params["src_embed"], tgt_embed=params["tgt_embed"],
        enc_layers=params["enc_layers"],
        enc_norm_g=params["enc_norm_g"], enc_norm_b=params["enc_norm_b"],
        dec_layers=params["dec_layers"],
        dec_norm_g=params["dec_norm_g"], dec_norm_b=params["dec_norm_b"],
    )
    leaves, treedef = jax.tree_util.tree_flatten(args)

    kernel = functools.partial(_transformer_kernel, treedef=treedef, batch=B,
                               s_src=S_src, s_tgt=S_tgt, d_model=d_model, heads=heads)
    y = pl.pallas_call(
        kernel,
        out_shape=jax.ShapeDtypeStruct((B * S_tgt, d_model), jnp.float32),
        # no grid: single invocation, whole arrays VMEM-resident (total << 1 MiB)
        compiler_params=pltpu.CompilerParams(vmem_limit_bytes=32 * 1024 * 1024),
    )(*leaves)
    # back to the module's [S_tgt, B, D] layout (one tiny XLA transpose)
    return y.reshape(B, S_tgt, d_model).transpose(1, 0, 2)


# ----------------------------------------------------------------------------
# Positional encoding + deterministic parameter init (xavier-uniform, bf16 weights)
# ----------------------------------------------------------------------------

def positional_encoding(d_model, max_len):
    pos = jnp.arange(max_len, dtype=jnp.float32)[:, None]
    two_i = jnp.arange(0, d_model, 2, dtype=jnp.float32)
    div = jnp.exp(two_i * -(math.log(10000.0) / d_model))
    pe = jnp.zeros((max_len, d_model), jnp.float32)
    pe = pe.at[:, 0::2].set(jnp.sin(pos * div))
    pe = pe.at[:, 1::2].set(jnp.cos(pos * div))
    return pe                                                     # [max_len, D]


def pe_slab(pe, seq, batch):
    # batch-major slab: row b*S + s -> pe[s]
    return jnp.tile(pe[:seq], (batch, 1))                         # [B*S, D]


def init_params(key, d_model, d_ff, heads, n_vocab, n_layers):
    keys = iter(jax.random.split(key, 4096))

    def xavier(shape, dtype=jnp.float32):
        limit = math.sqrt(6.0 / (shape[0] + shape[1]))
        return jax.random.uniform(next(keys), shape, jnp.float32, -limit, limit).astype(dtype)

    zeros = lambda s: jnp.zeros(s, jnp.float32)
    ones = lambda s: jnp.ones(s, jnp.float32)

    def self_attn_params():
        wq = xavier((d_model, d_model))
        wk = xavier((d_model, d_model))
        wv = xavier((d_model, d_model))
        return dict(wqkv=jnp.concatenate([wq, wk, wv], axis=1).astype(BF16),
                    bqkv=zeros((1, 3 * d_model)),
                    wo=xavier((d_model, d_model), BF16), bo=zeros((1, d_model)))

    def cross_attn_params():
        wk, wv = xavier((d_model, d_model)), xavier((d_model, d_model))
        return dict(wq=xavier((d_model, d_model), BF16), bq=zeros((1, d_model)),
                    wkv=jnp.concatenate([wk, wv], axis=1).astype(BF16),
                    bkv=zeros((1, 2 * d_model)),
                    wo=xavier((d_model, d_model), BF16), bo=zeros((1, d_model)))

    def ff_params():
        return dict(w1=xavier((d_model, d_ff), BF16), b1=zeros((1, d_ff)),
                    w2=xavier((d_ff, d_model), BF16), b2=zeros((1, d_model)))

    enc_layers = [dict(ln1_g=ones((1, d_model)), ln1_b=zeros((1, d_model)),
                       ln2_g=ones((1, d_model)), ln2_b=zeros((1, d_model)),
                       self_attn=self_attn_params(), ff=ff_params())
                  for _ in range(n_layers)]
    dec_layers = [dict(ln1_g=ones((1, d_model)), ln1_b=zeros((1, d_model)),
                       ln2_g=ones((1, d_model)), ln2_b=zeros((1, d_model)),
                       ln3_g=ones((1, d_model)), ln3_b=zeros((1, d_model)),
                       self_attn=self_attn_params(), src_attn=cross_attn_params(),
                       ff=ff_params())
                  for _ in range(n_layers)]
    return dict(src_embed=xavier((n_vocab, d_model), BF16),
                tgt_embed=xavier((n_vocab, d_model), BF16),
                enc_layers=enc_layers,
                enc_norm_g=ones((1, d_model)), enc_norm_b=zeros((1, d_model)),
                dec_layers=dec_layers,
                dec_norm_g=ones((1, d_model)), dec_norm_b=zeros((1, d_model)))


# ----------------------------------------------------------------------------
# Main
# ----------------------------------------------------------------------------

if __name__ == "__main__":
    d_model, d_ff, heads, n_vocab, n_layers = 32, 64, 4, 50, 2
    max_len = 64
    B, S_src, S_tgt = 2, 8, 8

    key = jax.random.PRNGKey(0)
    kp, ks, kt = jax.random.split(key, 3)

    params = init_params(kp, d_model, d_ff, heads, n_vocab, n_layers)
    pe = positional_encoding(d_model, max_len)
    pe_src = pe_slab(pe, S_src, B)
    pe_tgt = pe_slab(pe, S_tgt, B)

    src = jax.random.randint(ks, (S_src, B), 0, n_vocab, dtype=jnp.int32)
    tgt = jax.random.randint(kt, (S_tgt, B), 0, n_vocab, dtype=jnp.int32)
    src_mask = jnp.ones((1, S_src, B), jnp.float32)                          # attend to all src
    tgt_mask = jnp.tril(jnp.ones((S_tgt, S_tgt), jnp.float32))[:, :, None]   # causal mask

    fwd = jax.jit(functools.partial(transformer_forward, heads=heads, d_model=d_model))
    out = fwd(params, pe_src, pe_tgt, src, tgt, src_mask, tgt_mask)
    out = jax.block_until_ready(out)
    assert out.shape == (S_tgt, B, d_model)
    assert bool(jnp.all(jnp.isfinite(out)))
    print("KERNEL_OK")
</pallas_src>

<mosaic_0001>
module attributes {stable_mosaic.version = 11 : i64} {
  func.func @_transformer_kernel(%arg0: memref<2x8x8xf32, #tpu.memory_space<vmem>>, %arg1: memref<1x64xf32, #tpu.memory_space<vmem>>, %arg2: memref<1x32xf32, #tpu.memory_space<vmem>>, %arg3: memref<32x64xbf16, #tpu.memory_space<vmem>>, %arg4: memref<64x32xbf16, #tpu.memory_space<vmem>>, %arg5: memref<1x32xf32, #tpu.memory_space<vmem>>, %arg6: memref<1x32xf32, #tpu.memory_space<vmem>>, %arg7: memref<1x32xf32, #tpu.memory_space<vmem>>, %arg8: memref<1x32xf32, #tpu.memory_space<vmem>>, %arg9: memref<1x32xf32, #tpu.memory_space<vmem>>, %arg10: memref<1x32xf32, #tpu.memory_space<vmem>>, %arg11: memref<1x32xf32, #tpu.memory_space<vmem>>, %arg12: memref<1x96xf32, #tpu.memory_space<vmem>>, %arg13: memref<32x32xbf16, #tpu.memory_space<vmem>>, %arg14: memref<32x96xbf16, #tpu.memory_space<vmem>>, %arg15: memref<1x64xf32, #tpu.memory_space<vmem>>, %arg16: memref<1x32xf32, #tpu.memory_space<vmem>>, %arg17: memref<1x32xf32, #tpu.memory_space<vmem>>, %arg18: memref<32x64xbf16, #tpu.memory_space<vmem>>, %arg19: memref<32x32xbf16, #tpu.memory_space<vmem>>, %arg20: memref<32x32xbf16, #tpu.memory_space<vmem>>, %arg21: memref<1x64xf32, #tpu.memory_space<vmem>>, %arg22: memref<1x32xf32, #tpu.memory_space<vmem>>, %arg23: memref<32x64xbf16, #tpu.memory_space<vmem>>, %arg24: memref<64x32xbf16, #tpu.memory_space<vmem>>, %arg25: memref<1x32xf32, #tpu.memory_space<vmem>>, %arg26: memref<1x32xf32, #tpu.memory_space<vmem>>, %arg27: memref<1x32xf32, #tpu.memory_space<vmem>>, %arg28: memref<1x32xf32, #tpu.memory_space<vmem>>, %arg29: memref<1x32xf32, #tpu.memory_space<vmem>>, %arg30: memref<1x32xf32, #tpu.memory_space<vmem>>, %arg31: memref<1x32xf32, #tpu.memory_space<vmem>>, %arg32: memref<1x96xf32, #tpu.memory_space<vmem>>, %arg33: memref<32x32xbf16, #tpu.memory_space<vmem>>, %arg34: memref<32x96xbf16, #tpu.memory_space<vmem>>, %arg35: memref<1x64xf32, #tpu.memory_space<vmem>>, %arg36: memref<1x32xf32, #tpu.memory_space<vmem>>, %arg37: memref<1x32xf32, #tpu.memory_space<vmem>>, %arg38: memref<32x64xbf16, #tpu.memory_space<vmem>>, %arg39: memref<32x32xbf16, #tpu.memory_space<vmem>>, %arg40: memref<32x32xbf16, #tpu.memory_space<vmem>>, %arg41: memref<1x32xf32, #tpu.memory_space<vmem>>, %arg42: memref<1x32xf32, #tpu.memory_space<vmem>>, %arg43: memref<2x8x8xf32, #tpu.memory_space<vmem>>, %arg44: memref<2x8x8xf32, #tpu.memory_space<vmem>>, %arg45: memref<1x64xf32, #tpu.memory_space<vmem>>, %arg46: memref<1x32xf32, #tpu.memory_space<vmem>>, %arg47: memref<32x64xbf16, #tpu.memory_space<vmem>>, %arg48: memref<64x32xbf16, #tpu.memory_space<vmem>>, %arg49: memref<1x32xf32, #tpu.memory_space<vmem>>, %arg50: memref<1x32xf32, #tpu.memory_space<vmem>>, %arg51: memref<1x32xf32, #tpu.memory_space<vmem>>, %arg52: memref<1x32xf32, #tpu.memory_space<vmem>>, %arg53: memref<1x32xf32, #tpu.memory_space<vmem>>, %arg54: memref<1x96xf32, #tpu.memory_space<vmem>>, %arg55: memref<32x32xbf16, #tpu.memory_space<vmem>>, %arg56: memref<32x96xbf16, #tpu.memory_space<vmem>>, %arg57: memref<1x64xf32, #tpu.memory_space<vmem>>, %arg58: memref<1x32xf32, #tpu.memory_space<vmem>>, %arg59: memref<32x64xbf16, #tpu.memory_space<vmem>>, %arg60: memref<64x32xbf16, #tpu.memory_space<vmem>>, %arg61: memref<1x32xf32, #tpu.memory_space<vmem>>, %arg62: memref<1x32xf32, #tpu.memory_space<vmem>>, %arg63: memref<1x32xf32, #tpu.memory_space<vmem>>, %arg64: memref<1x32xf32, #tpu.memory_space<vmem>>, %arg65: memref<1x32xf32, #tpu.memory_space<vmem>>, %arg66: memref<1x96xf32, #tpu.memory_space<vmem>>, %arg67: memref<32x32xbf16, #tpu.memory_space<vmem>>, %arg68: memref<32x96xbf16, #tpu.memory_space<vmem>>, %arg69: memref<1x32xf32, #tpu.memory_space<vmem>>, %arg70: memref<1x32xf32, #tpu.memory_space<vmem>>, %arg71: memref<16x32xf32, #tpu.memory_space<vmem>>, %arg72: memref<16x32xf32, #tpu.memory_space<vmem>>, %arg73: memref<50x32xbf16, #tpu.memory_space<vmem>>, %arg74: memref<16x1xi32, #tpu.memory_space<vmem>>, %arg75: memref<50x32xbf16, #tpu.memory_space<vmem>>, %arg76: memref<16x1xi32, #tpu.memory_space<vmem>>, %arg77: memref<16x32xf32, #tpu.memory_space<vmem>>) attributes {dimension_semantics = [], scalar_prefetch = 0 : i64, scratch_operands = 0 : i64, tpu.core_type = #tpu.core_type<tc>} {
    %c0 = arith.constant 0 : index
    %c0_0 = arith.constant 0 : index
    %c0_1 = arith.constant 0 : index
    %0 = vector.load %arg0[%c0, %c0_0, %c0_1] : memref<2x8x8xf32, #tpu.memory_space<vmem>>, vector<2x8x8xf32>
    %c0_2 = arith.constant 0 : index
    %c0_3 = arith.constant 0 : index
    %1 = vector.load %arg1[%c0_2, %c0_3] : memref<1x64xf32, #tpu.memory_space<vmem>>, vector<1x64xf32>
    %c0_4 = arith.constant 0 : index
    %c0_5 = arith.constant 0 : index
    %2 = vector.load %arg2[%c0_4, %c0_5] : memref<1x32xf32, #tpu.memory_space<vmem>>, vector<1x32xf32>
    %c0_6 = arith.constant 0 : index
    %c0_7 = arith.constant 0 : index
    %3 = vector.load %arg3[%c0_6, %c0_7] : memref<32x64xbf16, #tpu.memory_space<vmem>>, vector<32x64xbf16>
    %c0_8 = arith.constant 0 : index
    %c0_9 = arith.constant 0 : index
    %4 = vector.load %arg4[%c0_8, %c0_9] : memref<64x32xbf16, #tpu.memory_space<vmem>>, vector<64x32xbf16>
    %c0_10 = arith.constant 0 : index
    %c0_11 = arith.constant 0 : index
    %5 = vector.load %arg5[%c0_10, %c0_11] : memref<1x32xf32, #tpu.memory_space<vmem>>, vector<1x32xf32>
    %c0_12 = arith.constant 0 : index
    %c0_13 = arith.constant 0 : index
    %6 = vector.load %arg6[%c0_12, %c0_13] : memref<1x32xf32, #tpu.memory_space<vmem>>, vector<1x32xf32>
    %c0_14 = arith.constant 0 : index
    %c0_15 = arith.constant 0 : index
    %7 = vector.load %arg7[%c0_14, %c0_15] : memref<1x32xf32, #tpu.memory_space<vmem>>, vector<1x32xf32>
    %c0_16 = arith.constant 0 : index
    %c0_17 = arith.constant 0 : index
    %8 = vector.load %arg8[%c0_16, %c0_17] : memref<1x32xf32, #tpu.memory_space<vmem>>, vector<1x32xf32>
    %c0_18 = arith.constant 0 : index
    %c0_19 = arith.constant 0 : index
    %9 = vector.load %arg9[%c0_18, %c0_19] : memref<1x32xf32, #tpu.memory_space<vmem>>, vector<1x32xf32>
    %c0_20 = arith.constant 0 : index
    %c0_21 = arith.constant 0 : index
    %10 = vector.load %arg10[%c0_20, %c0_21] : memref<1x32xf32, #tpu.memory_space<vmem>>, vector<1x32xf32>
    %c0_22 = arith.constant 0 : index
    %c0_23 = arith.constant 0 : index
    %11 = vector.load %arg11[%c0_22, %c0_23] : memref<1x32xf32, #tpu.memory_space<vmem>>, vector<1x32xf32>
    %c0_24 = arith.constant 0 : index
    %c0_25 = arith.constant 0 : index
    %12 = vector.load %arg12[%c0_24, %c0_25] : memref<1x96xf32, #tpu.memory_space<vmem>>, vector<1x96xf32>
    %c0_26 = arith.constant 0 : index
    %c0_27 = arith.constant 0 : index
    %13 = vector.load %arg13[%c0_26, %c0_27] : memref<32x32xbf16, #tpu.memory_space<vmem>>, vector<32x32xbf16>
    %c0_28 = arith.constant 0 : index
    %c0_29 = arith.constant 0 : index
    %14 = vector.load %arg14[%c0_28, %c0_29] : memref<32x96xbf16, #tpu.memory_space<vmem>>, vector<32x96xbf16>
    %c0_30 = arith.constant 0 : index
    %c0_31 = arith.constant 0 : index
    %15 = vector.load %arg15[%c0_30, %c0_31] : memref<1x64xf32, #tpu.memory_space<vmem>>, vector<1x64xf32>
    %c0_32 = arith.constant 0 : index
    %c0_33 = arith.constant 0 : index
    %16 = vector.load %arg16[%c0_32, %c0_33] : memref<1x32xf32, #tpu.memory_space<vmem>>, vector<1x32xf32>
    %c0_34 = arith.constant 0 : index
    %c0_35 = arith.constant 0 : index
    %17 = vector.load %arg17[%c0_34, %c0_35] : memref<1x32xf32, #tpu.memory_space<vmem>>, vector<1x32xf32>
    %c0_36 = arith.constant 0 : index
    %c0_37 = arith.constant 0 : index
    %18 = vector.load %arg18[%c0_36, %c0_37] : memref<32x64xbf16, #tpu.memory_space<vmem>>, vector<32x64xbf16>
    %c0_38 = arith.constant 0 : index
    %c0_39 = arith.constant 0 : index
    %19 = vector.load %arg19[%c0_38, %c0_39] : memref<32x32xbf16, #tpu.memory_space<vmem>>, vector<32x32xbf16>
    %c0_40 = arith.constant 0 : index
    %c0_41 = arith.constant 0 : index
    %20 = vector.load %arg20[%c0_40, %c0_41] : memref<32x32xbf16, #tpu.memory_space<vmem>>, vector<32x32xbf16>
    %c0_42 = arith.constant 0 : index
    %c0_43 = arith.constant 0 : index
    %21 = vector.load %arg21[%c0_42, %c0_43] : memref<1x64xf32, #tpu.memory_space<vmem>>, vector<1x64xf32>
    %c0_44 = arith.constant 0 : index
    %c0_45 = arith.constant 0 : index
    %22 = vector.load %arg22[%c0_44, %c0_45] : memref<1x32xf32, #tpu.memory_space<vmem>>, vector<1x32xf32>
    %c0_46 = arith.constant 0 : index
    %c0_47 = arith.constant 0 : index
    %23 = vector.load %arg23[%c0_46, %c0_47] : memref<32x64xbf16, #tpu.memory_space<vmem>>, vector<32x64xbf16>
    %c0_48 = arith.constant 0 : index
    %c0_49 = arith.constant 0 : index
    %24 = vector.load %arg24[%c0_48, %c0_49] : memref<64x32xbf16, #tpu.memory_space<vmem>>, vector<64x32xbf16>
    %c0_50 = arith.constant 0 : index
    %c0_51 = arith.constant 0 : index
    %25 = vector.load %arg25[%c0_50, %c0_51] : memref<1x32xf32, #tpu.memory_space<vmem>>, vector<1x32xf32>
    %c0_52 = arith.constant 0 : index
    %c0_53 = arith.constant 0 : index
    %26 = vector.load %arg26[%c0_52, %c0_53] : memref<1x32xf32, #tpu.memory_space<vmem>>, vector<1x32xf32>
    %c0_54 = arith.constant 0 : index
    %c0_55 = arith.constant 0 : index
    %27 = vector.load %arg27[%c0_54, %c0_55] : memref<1x32xf32, #tpu.memory_space<vmem>>, vector<1x32xf32>
    %c0_56 = arith.constant 0 : index
    %c0_57 = arith.constant 0 : index
    %28 = vector.load %arg28[%c0_56, %c0_57] : memref<1x32xf32, #tpu.memory_space<vmem>>, vector<1x32xf32>
    %c0_58 = arith.constant 0 : index
    %c0_59 = arith.constant 0 : index
    %29 = vector.load %arg29[%c0_58, %c0_59] : memref<1x32xf32, #tpu.memory_space<vmem>>, vector<1x32xf32>
    %c0_60 = arith.constant 0 : index
    %c0_61 = arith.constant 0 : index
    %30 = vector.load %arg30[%c0_60, %c0_61] : memref<1x32xf32, #tpu.memory_space<vmem>>, vector<1x32xf32>
    %c0_62 = arith.constant 0 : index
    %c0_63 = arith.constant 0 : index
    %31 = vector.load %arg31[%c0_62, %c0_63] : memref<1x32xf32, #tpu.memory_space<vmem>>, vector<1x32xf32>
    %c0_64 = arith.constant 0 : index
    %c0_65 = arith.constant 0 : index
    %32 = vector.load %arg32[%c0_64, %c0_65] : memref<1x96xf32, #tpu.memory_space<vmem>>, vector<1x96xf32>
    %c0_66 = arith.constant 0 : index
    %c0_67 = arith.constant 0 : index
    %33 = vector.load %arg33[%c0_66, %c0_67] : memref<32x32xbf16, #tpu.memory_space<vmem>>, vector<32x32xbf16>
    %c0_68 = arith.constant 0 : index
    %c0_69 = arith.constant 0 : index
    %34 = vector.load %arg34[%c0_68, %c0_69] : memref<32x96xbf16, #tpu.memory_space<vmem>>, vector<32x96xbf16>
    %c0_70 = arith.constant 0 : index
    %c0_71 = arith.constant 0 : index
    %35 = vector.load %arg35[%c0_70, %c0_71] : memref<1x64xf32, #tpu.memory_space<vmem>>, vector<1x64xf32>
    %c0_72 = arith.constant 0 : index
    %c0_73 = arith.constant 0 : index
    %36 = vector.load %arg36[%c0_72, %c0_73] : memref<1x32xf32, #tpu.memory_space<vmem>>, vector<1x32xf32>
    %c0_74 = arith.constant 0 : index
    %c0_75 = arith.constant 0 : index
    %37 = vector.load %arg37[%c0_74, %c0_75] : memref<1x32xf32, #tpu.memory_space<vmem>>, vector<1x32xf32>
    %c0_76 = arith.constant 0 : index
    %c0_77 = arith.constant 0 : index
    %38 = vector.load %arg38[%c0_76, %c0_77] : memref<32x64xbf16, #tpu.memory_space<vmem>>, vector<32x64xbf16>
    %c0_78 = arith.constant 0 : index
    %c0_79 = arith.constant 0 : index
    %39 = vector.load %arg39[%c0_78, %c0_79] : memref<32x32xbf16, #tpu.memory_space<vmem>>, vector<32x32xbf16>
    %c0_80 = arith.constant 0 : index
    %c0_81 = arith.constant 0 : index
    %40 = vector.load %arg40[%c0_80, %c0_81] : memref<32x32xbf16, #tpu.memory_space<vmem>>, vector<32x32xbf16>
    %c0_82 = arith.constant 0 : index
    %c0_83 = arith.constant 0 : index
    %41 = vector.load %arg41[%c0_82, %c0_83] : memref<1x32xf32, #tpu.memory_space<vmem>>, vector<1x32xf32>
    %c0_84 = arith.constant 0 : index
    %c0_85 = arith.constant 0 : index
    %42 = vector.load %arg42[%c0_84, %c0_85] : memref<1x32xf32, #tpu.memory_space<vmem>>, vector<1x32xf32>
    %c0_86 = arith.constant 0 : index
    %c0_87 = arith.constant 0 : index
    %c0_88 = arith.constant 0 : index
    %43 = vector.load %arg43[%c0_86, %c0_87, %c0_88] : memref<2x8x8xf32, #tpu.memory_space<vmem>>, vector<2x8x8xf32>
    %c0_89 = arith.constant 0 : index
    %c0_90 = arith.constant 0 : index
    %c0_91 = arith.constant 0 : index
    %44 = vector.load %arg44[%c0_89, %c0_90, %c0_91] : memref<2x8x8xf32, #tpu.memory_space<vmem>>, vector<2x8x8xf32>
    %c0_92 = arith.constant 0 : index
    %c0_93 = arith.constant 0 : index
    %45 = vector.load %arg45[%c0_92, %c0_93] : memref<1x64xf32, #tpu.memory_space<vmem>>, vector<1x64xf32>
    %c0_94 = arith.constant 0 : index
    %c0_95 = arith.constant 0 : index
    %46 = vector.load %arg46[%c0_94, %c0_95] : memref<1x32xf32, #tpu.memory_space<vmem>>, vector<1x32xf32>
    %c0_96 = arith.constant 0 : index
    %c0_97 = arith.constant 0 : index
    %47 = vector.load %arg47[%c0_96, %c0_97] : memref<32x64xbf16, #tpu.memory_space<vmem>>, vector<32x64xbf16>
    %c0_98 = arith.constant 0 : index
    %c0_99 = arith.constant 0 : index
    %48 = vector.load %arg48[%c0_98, %c0_99] : memref<64x32xbf16, #tpu.memory_space<vmem>>, vector<64x32xbf16>
    %c0_100 = arith.constant 0 : index
    %c0_101 = arith.constant 0 : index
    %49 = vector.load %arg49[%c0_100, %c0_101] : memref<1x32xf32, #tpu.memory_space<vmem>>, vector<1x32xf32>
    %c0_102 = arith.constant 0 : index
    %c0_103 = arith.constant 0 : index
    %50 = vector.load %arg50[%c0_102, %c0_103] : memref<1x32xf32, #tpu.memory_space<vmem>>, vector<1x32xf32>
    %c0_104 = arith.constant 0 : index
    %c0_105 = arith.constant 0 : index
    %51 = vector.load %arg51[%c0_104, %c0_105] : memref<1x32xf32, #tpu.memory_space<vmem>>, vector<1x32xf32>
    %c0_106 = arith.constant 0 : index
    %c0_107 = arith.constant 0 : index
    %52 = vector.load %arg52[%c0_106, %c0_107] : memref<1x32xf32, #tpu.memory_space<vmem>>, vector<1x32xf32>
    %c0_108 = arith.constant 0 : index
    %c0_109 = arith.constant 0 : index
    %53 = vector.load %arg53[%c0_108, %c0_109] : memref<1x32xf32, #tpu.memory_space<vmem>>, vector<1x32xf32>
    %c0_110 = arith.constant 0 : index
    %c0_111 = arith.constant 0 : index
    %54 = vector.load %arg54[%c0_110, %c0_111] : memref<1x96xf32, #tpu.memory_space<vmem>>, vector<1x96xf32>
    %c0_112 = arith.constant 0 : index
    %c0_113 = arith.constant 0 : index
    %55 = vector.load %arg55[%c0_112, %c0_113] : memref<32x32xbf16, #tpu.memory_space<vmem>>, vector<32x32xbf16>
    %c0_114 = arith.constant 0 : index
    %c0_115 = arith.constant 0 : index
    %56 = vector.load %arg56[%c0_114, %c0_115] : memref<32x96xbf16, #tpu.memory_space<vmem>>, vector<32x96xbf16>
    %c0_116 = arith.constant 0 : index
    %c0_117 = arith.constant 0 : index
    %57 = vector.load %arg57[%c0_116, %c0_117] : memref<1x64xf32, #tpu.memory_space<vmem>>, vector<1x64xf32>
    %c0_118 = arith.constant 0 : index
    %c0_119 = arith.constant 0 : index
    %58 = vector.load %arg58[%c0_118, %c0_119] : memref<1x32xf32, #tpu.memory_space<vmem>>, vector<1x32xf32>
    %c0_120 = arith.constant 0 : index
    %c0_121 = arith.constant 0 : index
    %59 = vector.load %arg59[%c0_120, %c0_121] : memref<32x64xbf16, #tpu.memory_space<vmem>>, vector<32x64xbf16>
    %c0_122 = arith.constant 0 : index
    %c0_123 = arith.constant 0 : index
    %60 = vector.load %arg60[%c0_122, %c0_123] : memref<64x32xbf16, #tpu.memory_space<vmem>>, vector<64x32xbf16>
    %c0_124 = arith.constant 0 : index
    %c0_125 = arith.constant 0 : index
    %61 = vector.load %arg61[%c0_124, %c0_125] : memref<1x32xf32, #tpu.memory_space<vmem>>, vector<1x32xf32>
    %c0_126 = arith.constant 0 : index
    %c0_127 = arith.constant 0 : index
    %62 = vector.load %arg62[%c0_126, %c0_127] : memref<1x32xf32, #tpu.memory_space<vmem>>, vector<1x32xf32>
    %c0_128 = arith.constant 0 : index
    %c0_129 = arith.constant 0 : index
    %63 = vector.load %arg63[%c0_128, %c0_129] : memref<1x32xf32, #tpu.memory_space<vmem>>, vector<1x32xf32>
    %c0_130 = arith.constant 0 : index
    %c0_131 = arith.constant 0 : index
    %64 = vector.load %arg64[%c0_130, %c0_131] : memref<1x32xf32, #tpu.memory_space<vmem>>, vector<1x32xf32>
    %c0_132 = arith.constant 0 : index
    %c0_133 = arith.constant 0 : index
    %65 = vector.load %arg65[%c0_132, %c0_133] : memref<1x32xf32, #tpu.memory_space<vmem>>, vector<1x32xf32>
    %c0_134 = arith.constant 0 : index
    %c0_135 = arith.constant 0 : index
    %66 = vector.load %arg66[%c0_134, %c0_135] : memref<1x96xf32, #tpu.memory_space<vmem>>, vector<1x96xf32>
    %c0_136 = arith.constant 0 : index
    %c0_137 = arith.constant 0 : index
    %67 = vector.load %arg67[%c0_136, %c0_137] : memref<32x32xbf16, #tpu.memory_space<vmem>>, vector<32x32xbf16>
    %c0_138 = arith.constant 0 : index
    %c0_139 = arith.constant 0 : index
    %68 = vector.load %arg68[%c0_138, %c0_139] : memref<32x96xbf16, #tpu.memory_space<vmem>>, vector<32x96xbf16>
    %c0_140 = arith.constant 0 : index
    %c0_141 = arith.constant 0 : index
    %69 = vector.load %arg69[%c0_140, %c0_141] : memref<1x32xf32, #tpu.memory_space<vmem>>, vector<1x32xf32>
    %c0_142 = arith.constant 0 : index
    %c0_143 = arith.constant 0 : index
    %70 = vector.load %arg70[%c0_142, %c0_143] : memref<1x32xf32, #tpu.memory_space<vmem>>, vector<1x32xf32>
    %c0_144 = arith.constant 0 : index
    %c0_145 = arith.constant 0 : index
    %71 = vector.load %arg71[%c0_144, %c0_145] : memref<16x32xf32, #tpu.memory_space<vmem>>, vector<16x32xf32>
    %c0_146 = arith.constant 0 : index
    %c0_147 = arith.constant 0 : index
    %72 = vector.load %arg72[%c0_146, %c0_147] : memref<16x32xf32, #tpu.memory_space<vmem>>, vector<16x32xf32>
    %c0_148 = arith.constant 0 : index
    %c0_149 = arith.constant 0 : index
    %73 = vector.load %arg73[%c0_148, %c0_149] : memref<50x32xbf16, #tpu.memory_space<vmem>>, vector<50x32xbf16>
    %c0_150 = arith.constant 0 : index
    %c0_151 = arith.constant 0 : index
    %74 = vector.load %arg74[%c0_150, %c0_151] : memref<16x1xi32, #tpu.memory_space<vmem>>, vector<16x1xi32>
    %c0_152 = arith.constant 0 : index
    %c0_153 = arith.constant 0 : index
    %75 = vector.load %arg75[%c0_152, %c0_153] : memref<50x32xbf16, #tpu.memory_space<vmem>>, vector<50x32xbf16>
    %c0_154 = arith.constant 0 : index
    %c0_155 = arith.constant 0 : index
    %76 = vector.load %arg76[%c0_154, %c0_155] : memref<16x1xi32, #tpu.memory_space<vmem>>, vector<16x1xi32>
    %77 = tpu.iota {dimensions = array<i32: 1>} : vector<16x50xi32>
    %78 = vector.broadcast %74 : vector<16x1xi32> to vector<16x50xi32>
    %79 = arith.cmpi eq, %78, %77 : vector<16x50xi32>
    %80 = arith.extui %79 : vector<16x50xi1> to vector<16x50xi32>
    %81 = arith.sitofp %80 : vector<16x50xi32> to vector<16x50xf32>
    %82 = arith.truncf %81 : vector<16x50xf32> to vector<16x50xbf16>
    %cst = arith.constant dense<0.000000e+00> : vector<16x32xf32>
    %83 = tpu.matmul %82, %73, %cst {dimension_numbers = #tpu.dot_dimension_numbers<[1], [0], [0], [1], [0, 0, 1, 1], [], []>} : vector<16x50xbf16>, vector<50x32xbf16>, vector<16x32xf32> -> vector<16x32xf32>
    %cst_156 = arith.constant 5.65685415 : f32
    %84 = vector.broadcast %cst_156 : f32 to vector<16x32xf32>
    %85 = arith.mulf %83, %84 : vector<16x32xf32>
    %86 = arith.addf %85, %71 : vector<16x32xf32>
    %cst_157 = arith.constant dense<0.000000e+00> : vector<16xf32>
    %87 = vector.multi_reduction <add>, %86, %cst_157 [1] : vector<16x32xf32> to vector<16xf32>
    %88 = vector.shape_cast %87 : vector<16xf32> to vector<16x1xf32>
    %cst_158 = arith.constant 3.200000e+01 : f32
    %89 = vector.broadcast %cst_158 : f32 to vector<16x1xf32>
    %90 = arith.divf %88, %89 : vector<16x1xf32>
    %91 = vector.broadcast %90 : vector<16x1xf32> to vector<16x32xf32>
    %92 = arith.subf %86, %91 : vector<16x32xf32>
    %93 = arith.mulf %92, %92 : vector<16x32xf32>
    %cst_159 = arith.constant dense<0.000000e+00> : vector<16xf32>
    %94 = vector.multi_reduction <add>, %93, %cst_159 [1] : vector<16x32xf32> to vector<16xf32>
    %95 = vector.shape_cast %94 : vector<16xf32> to vector<16x1xf32>
    %cst_160 = arith.constant 3.200000e+01 : f32
    %96 = vector.broadcast %cst_160 : f32 to vector<16x1xf32>
    %97 = arith.divf %95, %96 : vector<16x1xf32>
    %cst_161 = arith.constant 9.99999974E-6 : f32
    %98 = vector.broadcast %cst_161 : f32 to vector<16x1xf32>
    %99 = arith.addf %97, %98 : vector<16x1xf32>
    %100 = math.rsqrt %99 : vector<16x1xf32>
    %101 = vector.broadcast %100 : vector<16x1xf32> to vector<16x32xf32>
    %102 = arith.mulf %92, %101 : vector<16x32xf32>
    %103 = vector.broadcast %50 : vector<1x32xf32> to vector<16x32xf32>
    %104 = arith.mulf %102, %103 : vector<16x32xf32>
    %105 = vector.broadcast %49 : vector<1x32xf32> to vector<16x32xf32>
    %106 = arith.addf %104, %105 : vector<16x32xf32>
    %107 = arith.truncf %106 : vector<16x32xf32> to vector<16x32xbf16>
    %cst_162 = arith.constant dense<0.000000e+00> : vector<16x96xf32>
    %108 = tpu.matmul %107, %56, %cst_162 {dimension_numbers = #tpu.dot_dimension_numbers<[1], [0], [0], [1], [0, 0, 1, 1], [], []>} : vector<16x32xbf16>, vector<32x96xbf16>, vector<16x96xf32> -> vector<16x96xf32>
    %109 = vector.broadcast %54 : vector<1x96xf32> to vector<16x96xf32>
    %110 = arith.addf %108, %109 : vector<16x96xf32>
    %111 = arith.truncf %110 : vector<16x96xf32> to vector<16x96xbf16>
    %112 = vector.extract_strided_slice %111 {offsets = [0, 0], sizes = [16, 32], strides = [1, 1]} : vector<16x96xbf16> to vector<16x32xbf16>
    %113 = vector.shape_cast %112 : vector<16x32xbf16> to vector<2x8x32xbf16>
    %114 = vector.extract_strided_slice %111 {offsets = [0, 32], sizes = [16, 32], strides = [1, 1]} : vector<16x96xbf16> to vector<16x32xbf16>
    %115 = vector.shape_cast %114 : vector<16x32xbf16> to vector<2x8x32xbf16>
    %116 = vector.extract_strided_slice %111 {offsets = [0, 64], sizes = [16, 32], strides = [1, 1]} : vector<16x96xbf16> to vector<16x32xbf16>
    %117 = vector.shape_cast %116 : vector<16x32xbf16> to vector<2x8x32xbf16>
    %118 = vector.extract_strided_slice %113 {offsets = [0, 0, 0], sizes = [2, 8, 8], strides = [1, 1, 1]} : vector<2x8x32xbf16> to vector<2x8x8xbf16>
    %119 = vector.extract_strided_slice %115 {offsets = [0, 0, 0], sizes = [2, 8, 8], strides = [1, 1, 1]} : vector<2x8x32xbf16> to vector<2x8x8xbf16>
    "tpu.trace_start"() <{level = 10 : i32, message = "bqd,bkd->bqk"}> : () -> ()
    %cst_163 = arith.constant dense<0.000000e+00> : vector<2x8x8xf32>
    %120 = tpu.matmul %118, %119, %cst_163 {dimension_numbers = #tpu.dot_dimension_numbers<[2], [2], [1], [1], [0, 0, 0, 1, 1, 1], [0], [0]>} : vector<2x8x8xbf16>, vector<2x8x8xbf16>, vector<2x8x8xf32> -> vector<2x8x8xf32>
    "tpu.trace_stop"() : () -> ()
    %cst_164 = arith.constant 0.353553385 : f32
    %121 = vector.broadcast %cst_164 : f32 to vector<2x8x8xf32>
    %122 = arith.mulf %120, %121 : vector<2x8x8xf32>
    %123 = arith.addf %122, %44 : vector<2x8x8xf32>
    %cst_165 = arith.constant dense<0xFF800000> : vector<2x8xf32>
    %124 = vector.multi_reduction <maximumf>, %123, %cst_165 [2] : vector<2x8x8xf32> to vector<2x8xf32>
    %125 = vector.shape_cast %124 : vector<2x8xf32> to vector<2x8x1xf32>
    %126 = vector.broadcast %125 : vector<2x8x1xf32> to vector<2x8x8xf32>
    %127 = arith.subf %123, %126 : vector<2x8x8xf32>
    %128 = math.exp %127 : vector<2x8x8xf32>
    %cst_166 = arith.constant dense<0.000000e+00> : vector<2x8xf32>
    %129 = vector.multi_reduction <add>, %128, %cst_166 [2] : vector<2x8x8xf32> to vector<2x8xf32>
    %130 = vector.shape_cast %129 : vector<2x8xf32> to vector<2x8x1xf32>
    %131 = tpu.reciprocal %130 {approx = true} : vector<2x8x1xf32> -> vector<2x8x1xf32>
    %132 = vector.broadcast %131 : vector<2x8x1xf32> to vector<2x8x8xf32>
    %133 = arith.mulf %128, %132 : vector<2x8x8xf32>
    %134 = arith.truncf %133 : vector<2x8x8xf32> to vector<2x8x8xbf16>
    %135 = vector.extract_strided_slice %117 {offsets = [0, 0, 0], sizes = [2, 8, 8], strides = [1, 1, 1]} : vector<2x8x32xbf16> to vector<2x8x8xbf16>
    "tpu.trace_start"() <{level = 10 : i32, message = "bqk,bkd->bqd"}> : () -> ()
    %cst_167 = arith.constant dense<0.000000e+00> : vector<2x8x8xf32>
    %136 = tpu.matmul %134, %135, %cst_167 {dimension_numbers = #tpu.dot_dimension_numbers<[2], [1], [1], [2], [0, 0, 0, 1, 1, 2], [0], [0]>} : vector<2x8x8xbf16>, vector<2x8x8xbf16>, vector<2x8x8xf32> -> vector<2x8x8xf32>
    "tpu.trace_stop"() : () -> ()
    %137 = vector.extract_strided_slice %113 {offsets = [0, 0, 8], sizes = [2, 8, 8], strides = [1, 1, 1]} : vector<2x8x32xbf16> to vector<2x8x8xbf16>
    %138 = vector.extract_strided_slice %115 {offsets = [0, 0, 8], sizes = [2, 8, 8], strides = [1, 1, 1]} : vector<2x8x32xbf16> to vector<2x8x8xbf16>
    "tpu.trace_start"() <{level = 10 : i32, message = "bqd,bkd->bqk"}> : () -> ()
    %cst_168 = arith.constant dense<0.000000e+00> : vector<2x8x8xf32>
    %139 = tpu.matmul %137, %138, %cst_168 {dimension_numbers = #tpu.dot_dimension_numbers<[2], [2], [1], [1], [0, 0, 0, 1, 1, 1], [0], [0]>} : vector<2x8x8xbf16>, vector<2x8x8xbf16>, vector<2x8x8xf32> -> vector<2x8x8xf32>
    "tpu.trace_stop"() : () -> ()
    %cst_169 = arith.constant 0.353553385 : f32
    %140 = vector.broadcast %cst_169 : f32 to vector<2x8x8xf32>
    %141 = arith.mulf %139, %140 : vector<2x8x8xf32>
    %142 = arith.addf %141, %44 : vector<2x8x8xf32>
    %cst_170 = arith.constant dense<0xFF800000> : vector<2x8xf32>
    %143 = vector.multi_reduction <maximumf>, %142, %cst_170 [2] : vector<2x8x8xf32> to vector<2x8xf32>
    %144 = vector.shape_cast %143 : vector<2x8xf32> to vector<2x8x1xf32>
    %145 = vector.broadcast %144 : vector<2x8x1xf32> to vector<2x8x8xf32>
    %146 = arith.subf %142, %145 : vector<2x8x8xf32>
    %147 = math.exp %146 : vector<2x8x8xf32>
    %cst_171 = arith.constant dense<0.000000e+00> : vector<2x8xf32>
    %148 = vector.multi_reduction <add>, %147, %cst_171 [2] : vector<2x8x8xf32> to vector<2x8xf32>
    %149 = vector.shape_cast %148 : vector<2x8xf32> to vector<2x8x1xf32>
    %150 = tpu.reciprocal %149 {approx = true} : vector<2x8x1xf32> -> vector<2x8x1xf32>
    %151 = vector.broadcast %150 : vector<2x8x1xf32> to vector<2x8x8xf32>
    %152 = arith.mulf %147, %151 : vector<2x8x8xf32>
    %153 = arith.truncf %152 : vector<2x8x8xf32> to vector<2x8x8xbf16>
    %154 = vector.extract_strided_slice %117 {offsets = [0, 0, 8], sizes = [2, 8, 8], strides = [1, 1, 1]} : vector<2x8x32xbf16> to vector<2x8x8xbf16>
    "tpu.trace_start"() <{level = 10 : i32, message = "bqk,bkd->bqd"}> : () -> ()
    %cst_172 = arith.constant dense<0.000000e+00> : vector<2x8x8xf32>
    %155 = tpu.matmul %153, %154, %cst_172 {dimension_numbers = #tpu.dot_dimension_numbers<[2], [1], [1], [2], [0, 0, 0, 1, 1, 2], [0], [0]>} : vector<2x8x8xbf16>, vector<2x8x8xbf16>, vector<2x8x8xf32> -> vector<2x8x8xf32>
    "tpu.trace_stop"() : () -> ()
    %156 = vector.extract_strided_slice %113 {offsets = [0, 0, 16], sizes = [2, 8, 8], strides = [1, 1, 1]} : vector<2x8x32xbf16> to vector<2x8x8xbf16>
    %157 = vector.extract_strided_slice %115 {offsets = [0, 0, 16], sizes = [2, 8, 8], strides = [1, 1, 1]} : vector<2x8x32xbf16> to vector<2x8x8xbf16>
    "tpu.trace_start"() <{level = 10 : i32, message = "bqd,bkd->bqk"}> : () -> ()
    %cst_173 = arith.constant dense<0.000000e+00> : vector<2x8x8xf32>
    %158 = tpu.matmul %156, %157, %cst_173 {dimension_numbers = #tpu.dot_dimension_numbers<[2], [2], [1], [1], [0, 0, 0, 1, 1, 1], [0], [0]>} : vector<2x8x8xbf16>, vector<2x8x8xbf16>, vector<2x8x8xf32> -> vector<2x8x8xf32>
    "tpu.trace_stop"() : () -> ()
    %cst_174 = arith.constant 0.353553385 : f32
    %159 = vector.broadcast %cst_174 : f32 to vector<2x8x8xf32>
    %160 = arith.mulf %158, %159 : vector<2x8x8xf32>
    %161 = arith.addf %160, %44 : vector<2x8x8xf32>
    %cst_175 = arith.constant dense<0xFF800000> : vector<2x8xf32>
    %162 = vector.multi_reduction <maximumf>, %161, %cst_175 [2] : vector<2x8x8xf32> to vector<2x8xf32>
    %163 = vector.shape_cast %162 : vector<2x8xf32> to vector<2x8x1xf32>
    %164 = vector.broadcast %163 : vector<2x8x1xf32> to vector<2x8x8xf32>
    %165 = arith.subf %161, %164 : vector<2x8x8xf32>
    %166 = math.exp %165 : vector<2x8x8xf32>
    %cst_176 = arith.constant dense<0.000000e+00> : vector<2x8xf32>
    %167 = vector.multi_reduction <add>, %166, %cst_176 [2] : vector<2x8x8xf32> to vector<2x8xf32>
    %168 = vector.shape_cast %167 : vector<2x8xf32> to vector<2x8x1xf32>
    %169 = tpu.reciprocal %168 {approx = true} : vector<2x8x1xf32> -> vector<2x8x1xf32>
    %170 = vector.broadcast %169 : vector<2x8x1xf32> to vector<2x8x8xf32>
    %171 = arith.mulf %166, %170 : vector<2x8x8xf32>
    %172 = arith.truncf %171 : vector<2x8x8xf32> to vector<2x8x8xbf16>
    %173 = vector.extract_strided_slice %117 {offsets = [0, 0, 16], sizes = [2, 8, 8], strides = [1, 1, 1]} : vector<2x8x32xbf16> to vector<2x8x8xbf16>
    "tpu.trace_start"() <{level = 10 : i32, message = "bqk,bkd->bqd"}> : () -> ()
    %cst_177 = arith.constant dense<0.000000e+00> : vector<2x8x8xf32>
    %174 = tpu.matmul %172, %173, %cst_177 {dimension_numbers = #tpu.dot_dimension_numbers<[2], [1], [1], [2], [0, 0, 0, 1, 1, 2], [0], [0]>} : vector<2x8x8xbf16>, vector<2x8x8xbf16>, vector<2x8x8xf32> -> vector<2x8x8xf32>
    "tpu.trace_stop"() : () -> ()
    %175 = vector.extract_strided_slice %113 {offsets = [0, 0, 24], sizes = [2, 8, 8], strides = [1, 1, 1]} : vector<2x8x32xbf16> to vector<2x8x8xbf16>
    %176 = vector.extract_strided_slice %115 {offsets = [0, 0, 24], sizes = [2, 8, 8], strides = [1, 1, 1]} : vector<2x8x32xbf16> to vector<2x8x8xbf16>
    "tpu.trace_start"() <{level = 10 : i32, message = "bqd,bkd->bqk"}> : () -> ()
    %cst_178 = arith.constant dense<0.000000e+00> : vector<2x8x8xf32>
    %177 = tpu.matmul %175, %176, %cst_178 {dimension_numbers = #tpu.dot_dimension_numbers<[2], [2], [1], [1], [0, 0, 0, 1, 1, 1], [0], [0]>} : vector<2x8x8xbf16>, vector<2x8x8xbf16>, vector<2x8x8xf32> -> vector<2x8x8xf32>
    "tpu.trace_stop"() : () -> ()
    %cst_179 = arith.constant 0.353553385 : f32
    %178 = vector.broadcast %cst_179 : f32 to vector<2x8x8xf32>
    %179 = arith.mulf %177, %178 : vector<2x8x8xf32>
    %180 = arith.addf %179, %44 : vector<2x8x8xf32>
    %cst_180 = arith.constant dense<0xFF800000> : vector<2x8xf32>
    %181 = vector.multi_reduction <maximumf>, %180, %cst_180 [2] : vector<2x8x8xf32> to vector<2x8xf32>
    %182 = vector.shape_cast %181 : vector<2x8xf32> to vector<2x8x1xf32>
    %183 = vector.broadcast %182 : vector<2x8x1xf32> to vector<2x8x8xf32>
    %184 = arith.subf %180, %183 : vector<2x8x8xf32>
    %185 = math.exp %184 : vector<2x8x8xf32>
    %cst_181 = arith.constant dense<0.000000e+00> : vector<2x8xf32>
    %186 = vector.multi_reduction <add>, %185, %cst_181 [2] : vector<2x8x8xf32> to vector<2x8xf32>
    %187 = vector.shape_cast %186 : vector<2x8xf32> to vector<2x8x1xf32>
    %188 = tpu.reciprocal %187 {approx = true} : vector<2x8x1xf32> -> vector<2x8x1xf32>
    %189 = vector.broadcast %188 : vector<2x8x1xf32> to vector<2x8x8xf32>
    %190 = arith.mulf %185, %189 : vector<2x8x8xf32>
    %191 = arith.truncf %190 : vector<2x8x8xf32> to vector<2x8x8xbf16>
    %192 = vector.extract_strided_slice %117 {offsets = [0, 0, 24], sizes = [2, 8, 8], strides = [1, 1, 1]} : vector<2x8x32xbf16> to vector<2x8x8xbf16>
    "tpu.trace_start"() <{level = 10 : i32, message = "bqk,bkd->bqd"}> : () -> ()
    %cst_182 = arith.constant dense<0.000000e+00> : vector<2x8x8xf32>
    %193 = tpu.matmul %191, %192, %cst_182 {dimension_numbers = #tpu.dot_dimension_numbers<[2], [1], [1], [2], [0, 0, 0, 1, 1, 2], [0], [0]>} : vector<2x8x8xbf16>, vector<2x8x8xbf16>, vector<2x8x8xf32> -> vector<2x8x8xf32>
    "tpu.trace_stop"() : () -> ()
    %194 = tpu.concatenate %136, %155, %174, %193 in 2 : vector<2x8x8xf32>, vector<2x8x8xf32>, vector<2x8x8xf32>, vector<2x8x8xf32> -> vector<2x8x32xf32>
    %195 = arith.truncf %194 : vector<2x8x32xf32> to vector<2x8x32xbf16>
    %196 = vector.shape_cast %195 : vector<2x8x32xbf16> to vector<16x32xbf16>
    %cst_183 = arith.constant dense<0.000000e+00> : vector<16x32xf32>
    %197 = tpu.matmul %196, %55, %cst_183 {dimension_numbers = #tpu.dot_dimension_numbers<[1], [0], [0], [1], [0, 0, 1, 1], [], []>} : vector<16x32xbf16>, vector<32x32xbf16>, vector<16x32xf32> -> vector<16x32xf32>
    %198 = vector.broadcast %53 : vector<1x32xf32> to vector<16x32xf32>
    %199 = arith.addf %197, %198 : vector<16x32xf32>
    %200 = arith.addf %86, %199 : vector<16x32xf32>
    %cst_184 = arith.constant dense<0.000000e+00> : vector<16xf32>
    %201 = vector.multi_reduction <add>, %200, %cst_184 [1] : vector<16x32xf32> to vector<16xf32>
    %202 = vector.shape_cast %201 : vector<16xf32> to vector<16x1xf32>
    %cst_185 = arith.constant 3.200000e+01 : f32
    %203 = vector.broadcast %cst_185 : f32 to vector<16x1xf32>
    %204 = arith.divf %202, %203 : vector<16x1xf32>
    %205 = vector.broadcast %204 : vector<16x1xf32> to vector<16x32xf32>
    %206 = arith.subf %200, %205 : vector<16x32xf32>
    %207 = arith.mulf %206, %206 : vector<16x32xf32>
    %cst_186 = arith.constant dense<0.000000e+00> : vector<16xf32>
    %208 = vector.multi_reduction <add>, %207, %cst_186 [1] : vector<16x32xf32> to vector<16xf32>
    %209 = vector.shape_cast %208 : vector<16xf32> to vector<16x1xf32>
    %cst_187 = arith.constant 3.200000e+01 : f32
    %210 = vector.broadcast %cst_187 : f32 to vector<16x1xf32>
    %211 = arith.divf %209, %210 : vector<16x1xf32>
    %cst_188 = arith.constant 9.99999974E-6 : f32
    %212 = vector.broadcast %cst_188 : f32 to vector<16x1xf32>
    %213 = arith.addf %211, %212 : vector<16x1xf32>
    %214 = math.rsqrt %213 : vector<16x1xf32>
    %215 = vector.broadcast %214 : vector<16x1xf32> to vector<16x32xf32>
    %216 = arith.mulf %206, %215 : vector<16x32xf32>
    %217 = vector.broadcast %52 : vector<1x32xf32> to vector<16x32xf32>
    %218 = arith.mulf %216, %217 : vector<16x32xf32>
    %219 = vector.broadcast %51 : vector<1x32xf32> to vector<16x32xf32>
    %220 = arith.addf %218, %219 : vector<16x32xf32>
    %221 = arith.truncf %220 : vector<16x32xf32> to vector<16x32xbf16>
    %cst_189 = arith.constant dense<0.000000e+00> : vector<16x64xf32>
    %222 = tpu.matmul %221, %47, %cst_189 {dimension_numbers = #tpu.dot_dimension_numbers<[1], [0], [0], [1], [0, 0, 1, 1], [], []>} : vector<16x32xbf16>, vector<32x64xbf16>, vector<16x64xf32> -> vector<16x64xf32>
    %223 = vector.broadcast %45 : vector<1x64xf32> to vector<16x64xf32>
    %224 = arith.addf %222, %223 : vector<16x64xf32>
    %cst_190 = arith.constant 0.000000e+00 : f32
    %225 = vector.broadcast %cst_190 : f32 to vector<16x64xf32>
    %226 = arith.maximumf %224, %225 : vector<16x64xf32>
    %227 = arith.truncf %226 : vector<16x64xf32> to vector<16x64xbf16>
    %cst_191 = arith.constant dense<0.000000e+00> : vector<16x32xf32>
    %228 = tpu.matmul %227, %48, %cst_191 {dimension_numbers = #tpu.dot_dimension_numbers<[1], [0], [0], [1], [0, 0, 1, 1], [], []>} : vector<16x64xbf16>, vector<64x32xbf16>, vector<16x32xf32> -> vector<16x32xf32>
    %229 = vector.broadcast %46 : vector<1x32xf32> to vector<16x32xf32>
    %230 = arith.addf %228, %229 : vector<16x32xf32>
    %231 = arith.addf %200, %230 : vector<16x32xf32>
    %cst_192 = arith.constant dense<0.000000e+00> : vector<16xf32>
    %232 = vector.multi_reduction <add>, %231, %cst_192 [1] : vector<16x32xf32> to vector<16xf32>
    %233 = vector.shape_cast %232 : vector<16xf32> to vector<16x1xf32>
    %cst_193 = arith.constant 3.200000e+01 : f32
    %234 = vector.broadcast %cst_193 : f32 to vector<16x1xf32>
    %235 = arith.divf %233, %234 : vector<16x1xf32>
    %236 = vector.broadcast %235 : vector<16x1xf32> to vector<16x32xf32>
    %237 = arith.subf %231, %236 : vector<16x32xf32>
    %238 = arith.mulf %237, %237 : vector<16x32xf32>
    %cst_194 = arith.constant dense<0.000000e+00> : vector<16xf32>
    %239 = vector.multi_reduction <add>, %238, %cst_194 [1] : vector<16x32xf32> to vector<16xf32>
    %240 = vector.shape_cast %239 : vector<16xf32> to vector<16x1xf32>
    %cst_195 = arith.constant 3.200000e+01 : f32
    %241 = vector.broadcast %cst_195 : f32 to vector<16x1xf32>
    %242 = arith.divf %240, %241 : vector<16x1xf32>
    %cst_196 = arith.constant 9.99999974E-6 : f32
    %243 = vector.broadcast %cst_196 : f32 to vector<16x1xf32>
    %244 = arith.addf %242, %243 : vector<16x1xf32>
    %245 = math.rsqrt %244 : vector<16x1xf32>
    %246 = vector.broadcast %245 : vector<16x1xf32> to vector<16x32xf32>
    %247 = arith.mulf %237, %246 : vector<16x32xf32>
    %248 = vector.broadcast %62 : vector<1x32xf32> to vector<16x32xf32>
    %249 = arith.mulf %247, %248 : vector<16x32xf32>
    %250 = vector.broadcast %61 : vector<1x32xf32> to vector<16x32xf32>
    %251 = arith.addf %249, %250 : vector<16x32xf32>
    %252 = arith.truncf %251 : vector<16x32xf32> to vector<16x32xbf16>
    %cst_197 = arith.constant dense<0.000000e+00> : vector<16x96xf32>
    %253 = tpu.matmul %252, %68, %cst_197 {dimension_numbers = #tpu.dot_dimension_numbers<[1], [0], [0], [1], [0, 0, 1, 1], [], []>} : vector<16x32xbf16>, vector<32x96xbf16>, vector<16x96xf32> -> vector<16x96xf32>
    %254 = vector.broadcast %66 : vector<1x96xf32> to vector<16x96xf32>
    %255 = arith.addf %253, %254 : vector<16x96xf32>
    %256 = arith.truncf %255 : vector<16x96xf32> to vector<16x96xbf16>
    %257 = vector.extract_strided_slice %256 {offsets = [0, 0], sizes = [16, 32], strides = [1, 1]} : vector<16x96xbf16> to vector<16x32xbf16>
    %258 = vector.shape_cast %257 : vector<16x32xbf16> to vector<2x8x32xbf16>
    %259 = vector.extract_strided_slice %256 {offsets = [0, 32], sizes = [16, 32], strides = [1, 1]} : vector<16x96xbf16> to vector<16x32xbf16>
    %260 = vector.shape_cast %259 : vector<16x32xbf16> to vector<2x8x32xbf16>
    %261 = vector.extract_strided_slice %256 {offsets = [0, 64], sizes = [16, 32], strides = [1, 1]} : vector<16x96xbf16> to vector<16x32xbf16>
    %262 = vector.shape_cast %261 : vector<16x32xbf16> to vector<2x8x32xbf16>
    %263 = vector.extract_strided_slice %258 {offsets = [0, 0, 0], sizes = [2, 8, 8], strides = [1, 1, 1]} : vector<2x8x32xbf16> to vector<2x8x8xbf16>
    %264 = vector.extract_strided_slice %260 {offsets = [0, 0, 0], sizes = [2, 8, 8], strides = [1, 1, 1]} : vector<2x8x32xbf16> to vector<2x8x8xbf16>
    "tpu.trace_start"() <{level = 10 : i32, message = "bqd,bkd->bqk"}> : () -> ()
    %cst_198 = arith.constant dense<0.000000e+00> : vector<2x8x8xf32>
    %265 = tpu.matmul %263, %264, %cst_198 {dimension_numbers = #tpu.dot_dimension_numbers<[2], [2], [1], [1], [0, 0, 0, 1, 1, 1], [0], [0]>} : vector<2x8x8xbf16>, vector<2x8x8xbf16>, vector<2x8x8xf32> -> vector<2x8x8xf32>
    "tpu.trace_stop"() : () -> ()
    %cst_199 = arith.constant 0.353553385 : f32
    %266 = vector.broadcast %cst_199 : f32 to vector<2x8x8xf32>
    %267 = arith.mulf %265, %266 : vector<2x8x8xf32>
    %268 = arith.addf %267, %44 : vector<2x8x8xf32>
    %cst_200 = arith.constant dense<0xFF800000> : vector<2x8xf32>
    %269 = vector.multi_reduction <maximumf>, %268, %cst_200 [2] : vector<2x8x8xf32> to vector<2x8xf32>
    %270 = vector.shape_cast %269 : vector<2x8xf32> to vector<2x8x1xf32>
    %271 = vector.broadcast %270 : vector<2x8x1xf32> to vector<2x8x8xf32>
    %272 = arith.subf %268, %271 : vector<2x8x8xf32>
    %273 = math.exp %272 : vector<2x8x8xf32>
    %cst_201 = arith.constant dense<0.000000e+00> : vector<2x8xf32>
    %274 = vector.multi_reduction <add>, %273, %cst_201 [2] : vector<2x8x8xf32> to vector<2x8xf32>
    %275 = vector.shape_cast %274 : vector<2x8xf32> to vector<2x8x1xf32>
    %276 = tpu.reciprocal %275 {approx = true} : vector<2x8x1xf32> -> vector<2x8x1xf32>
    %277 = vector.broadcast %276 : vector<2x8x1xf32> to vector<2x8x8xf32>
    %278 = arith.mulf %273, %277 : vector<2x8x8xf32>
    %279 = arith.truncf %278 : vector<2x8x8xf32> to vector<2x8x8xbf16>
    %280 = vector.extract_strided_slice %262 {offsets = [0, 0, 0], sizes = [2, 8, 8], strides = [1, 1, 1]} : vector<2x8x32xbf16> to vector<2x8x8xbf16>
    "tpu.trace_start"() <{level = 10 : i32, message = "bqk,bkd->bqd"}> : () -> ()
    %cst_202 = arith.constant dense<0.000000e+00> : vector<2x8x8xf32>
    %281 = tpu.matmul %279, %280, %cst_202 {dimension_numbers = #tpu.dot_dimension_numbers<[2], [1], [1], [2], [0, 0, 0, 1, 1, 2], [0], [0]>} : vector<2x8x8xbf16>, vector<2x8x8xbf16>, vector<2x8x8xf32> -> vector<2x8x8xf32>
    "tpu.trace_stop"() : () -> ()
    %282 = vector.extract_strided_slice %258 {offsets = [0, 0, 8], sizes = [2, 8, 8], strides = [1, 1, 1]} : vector<2x8x32xbf16> to vector<2x8x8xbf16>
    %283 = vector.extract_strided_slice %260 {offsets = [0, 0, 8], sizes = [2, 8, 8], strides = [1, 1, 1]} : vector<2x8x32xbf16> to vector<2x8x8xbf16>
    "tpu.trace_start"() <{level = 10 : i32, message = "bqd,bkd->bqk"}> : () -> ()
    %cst_203 = arith.constant dense<0.000000e+00> : vector<2x8x8xf32>
    %284 = tpu.matmul %282, %283, %cst_203 {dimension_numbers = #tpu.dot_dimension_numbers<[2], [2], [1], [1], [0, 0, 0, 1, 1, 1], [0], [0]>} : vector<2x8x8xbf16>, vector<2x8x8xbf16>, vector<2x8x8xf32> -> vector<2x8x8xf32>
    "tpu.trace_stop"() : () -> ()
    %cst_204 = arith.constant 0.353553385 : f32
    %285 = vector.broadcast %cst_204 : f32 to vector<2x8x8xf32>
    %286 = arith.mulf %284, %285 : vector<2x8x8xf32>
    %287 = arith.addf %286, %44 : vector<2x8x8xf32>
    %cst_205 = arith.constant dense<0xFF800000> : vector<2x8xf32>
    %288 = vector.multi_reduction <maximumf>, %287, %cst_205 [2] : vector<2x8x8xf32> to vector<2x8xf32>
    %289 = vector.shape_cast %288 : vector<2x8xf32> to vector<2x8x1xf32>
    %290 = vector.broadcast %289 : vector<2x8x1xf32> to vector<2x8x8xf32>
    %291 = arith.subf %287, %290 : vector<2x8x8xf32>
    %292 = math.exp %291 : vector<2x8x8xf32>
    %cst_206 = arith.constant dense<0.000000e+00> : vector<2x8xf32>
    %293 = vector.multi_reduction <add>, %292, %cst_206 [2] : vector<2x8x8xf32> to vector<2x8xf32>
    %294 = vector.shape_cast %293 : vector<2x8xf32> to vector<2x8x1xf32>
    %295 = tpu.reciprocal %294 {approx = true} : vector<2x8x1xf32> -> vector<2x8x1xf32>
    %296 = vector.broadcast %295 : vector<2x8x1xf32> to vector<2x8x8xf32>
    %297 = arith.mulf %292, %296 : vector<2x8x8xf32>
    %298 = arith.truncf %297 : vector<2x8x8xf32> to vector<2x8x8xbf16>
    %299 = vector.extract_strided_slice %262 {offsets = [0, 0, 8], sizes = [2, 8, 8], strides = [1, 1, 1]} : vector<2x8x32xbf16> to vector<2x8x8xbf16>
    "tpu.trace_start"() <{level = 10 : i32, message = "bqk,bkd->bqd"}> : () -> ()
    %cst_207 = arith.constant dense<0.000000e+00> : vector<2x8x8xf32>
    %300 = tpu.matmul %298, %299, %cst_207 {dimension_numbers = #tpu.dot_dimension_numbers<[2], [1], [1], [2], [0, 0, 0, 1, 1, 2], [0], [0]>} : vector<2x8x8xbf16>, vector<2x8x8xbf16>, vector<2x8x8xf32> -> vector<2x8x8xf32>
    "tpu.trace_stop"() : () -> ()
    %301 = vector.extract_strided_slice %258 {offsets = [0, 0, 16], sizes = [2, 8, 8], strides = [1, 1, 1]} : vector<2x8x32xbf16> to vector<2x8x8xbf16>
    %302 = vector.extract_strided_slice %260 {offsets = [0, 0, 16], sizes = [2, 8, 8], strides = [1, 1, 1]} : vector<2x8x32xbf16> to vector<2x8x8xbf16>
    "tpu.trace_start"() <{level = 10 : i32, message = "bqd,bkd->bqk"}> : () -> ()
    %cst_208 = arith.constant dense<0.000000e+00> : vector<2x8x8xf32>
    %303 = tpu.matmul %301, %302, %cst_208 {dimension_numbers = #tpu.dot_dimension_numbers<[2], [2], [1], [1], [0, 0, 0, 1, 1, 1], [0], [0]>} : vector<2x8x8xbf16>, vector<2x8x8xbf16>, vector<2x8x8xf32> -> vector<2x8x8xf32>
    "tpu.trace_stop"() : () -> ()
    %cst_209 = arith.constant 0.353553385 : f32
    %304 = vector.broadcast %cst_209 : f32 to vector<2x8x8xf32>
    %305 = arith.mulf %303, %304 : vector<2x8x8xf32>
    %306 = arith.addf %305, %44 : vector<2x8x8xf32>
    %cst_210 = arith.constant dense<0xFF800000> : vector<2x8xf32>
    %307 = vector.multi_reduction <maximumf>, %306, %cst_210 [2] : vector<2x8x8xf32> to vector<2x8xf32>
    %308 = vector.shape_cast %307 : vector<2x8xf32> to vector<2x8x1xf32>
    %309 = vector.broadcast %308 : vector<2x8x1xf32> to vector<2x8x8xf32>
    %310 = arith.subf %306, %309 : vector<2x8x8xf32>
    %311 = math.exp %310 : vector<2x8x8xf32>
    %cst_211 = arith.constant dense<0.000000e+00> : vector<2x8xf32>
    %312 = vector.multi_reduction <add>, %311, %cst_211 [2] : vector<2x8x8xf32> to vector<2x8xf32>
    %313 = vector.shape_cast %312 : vector<2x8xf32> to vector<2x8x1xf32>
    %314 = tpu.reciprocal %313 {approx = true} : vector<2x8x1xf32> -> vector<2x8x1xf32>
    %315 = vector.broadcast %314 : vector<2x8x1xf32> to vector<2x8x8xf32>
    %316 = arith.mulf %311, %315 : vector<2x8x8xf32>
    %317 = arith.truncf %316 : vector<2x8x8xf32> to vector<2x8x8xbf16>
    %318 = vector.extract_strided_slice %262 {offsets = [0, 0, 16], sizes = [2, 8, 8], strides = [1, 1, 1]} : vector<2x8x32xbf16> to vector<2x8x8xbf16>
    "tpu.trace_start"() <{level = 10 : i32, message = "bqk,bkd->bqd"}> : () -> ()
    %cst_212 = arith.constant dense<0.000000e+00> : vector<2x8x8xf32>
    %319 = tpu.matmul %317, %318, %cst_212 {dimension_numbers = #tpu.dot_dimension_numbers<[2], [1], [1], [2], [0, 0, 0, 1, 1, 2], [0], [0]>} : vector<2x8x8xbf16>, vector<2x8x8xbf16>, vector<2x8x8xf32> -> vector<2x8x8xf32>
    "tpu.trace_stop"() : () -> ()
    %320 = vector.extract_strided_slice %258 {offsets = [0, 0, 24], sizes = [2, 8, 8], strides = [1, 1, 1]} : vector<2x8x32xbf16> to vector<2x8x8xbf16>
    %321 = vector.extract_strided_slice %260 {offsets = [0, 0, 24], sizes = [2, 8, 8], strides = [1, 1, 1]} : vector<2x8x32xbf16> to vector<2x8x8xbf16>
    "tpu.trace_start"() <{level = 10 : i32, message = "bqd,bkd->bqk"}> : () -> ()
    %cst_213 = arith.constant dense<0.000000e+00> : vector<2x8x8xf32>
    %322 = tpu.matmul %320, %321, %cst_213 {dimension_numbers = #tpu.dot_dimension_numbers<[2], [2], [1], [1], [0, 0, 0, 1, 1, 1], [0], [0]>} : vector<2x8x8xbf16>, vector<2x8x8xbf16>, vector<2x8x8xf32> -> vector<2x8x8xf32>
    "tpu.trace_stop"() : () -> ()
    %cst_214 = arith.constant 0.353553385 : f32
    %323 = vector.broadcast %cst_214 : f32 to vector<2x8x8xf32>
    %324 = arith.mulf %322, %323 : vector<2x8x8xf32>
    %325 = arith.addf %324, %44 : vector<2x8x8xf32>
    %cst_215 = arith.constant dense<0xFF800000> : vector<2x8xf32>
    %326 = vector.multi_reduction <maximumf>, %325, %cst_215 [2] : vector<2x8x8xf32> to vector<2x8xf32>
    %327 = vector.shape_cast %326 : vector<2x8xf32> to vector<2x8x1xf32>
    %328 = vector.broadcast %327 : vector<2x8x1xf32> to vector<2x8x8xf32>
    %329 = arith.subf %325, %328 : vector<2x8x8xf32>
    %330 = math.exp %329 : vector<2x8x8xf32>
    %cst_216 = arith.constant dense<0.000000e+00> : vector<2x8xf32>
    %331 = vector.multi_reduction <add>, %330, %cst_216 [2] : vector<2x8x8xf32> to vector<2x8xf32>
    %332 = vector.shape_cast %331 : vector<2x8xf32> to vector<2x8x1xf32>
    %333 = tpu.reciprocal %332 {approx = true} : vector<2x8x1xf32> -> vector<2x8x1xf32>
    %334 = vector.broadcast %333 : vector<2x8x1xf32> to vector<2x8x8xf32>
    %335 = arith.mulf %330, %334 : vector<2x8x8xf32>
    %336 = arith.truncf %335 : vector<2x8x8xf32> to vector<2x8x8xbf16>
    %337 = vector.extract_strided_slice %262 {offsets = [0, 0, 24], sizes = [2, 8, 8], strides = [1, 1, 1]} : vector<2x8x32xbf16> to vector<2x8x8xbf16>
    "tpu.trace_start"() <{level = 10 : i32, message = "bqk,bkd->bqd"}> : () -> ()
    %cst_217 = arith.constant dense<0.000000e+00> : vector<2x8x8xf32>
    %338 = tpu.matmul %336, %337, %cst_217 {dimension_numbers = #tpu.dot_dimension_numbers<[2], [1], [1], [2], [0, 0, 0, 1, 1, 2], [0], [0]>} : vector<2x8x8xbf16>, vector<2x8x8xbf16>, vector<2x8x8xf32> -> vector<2x8x8xf32>
    "tpu.trace_stop"() : () -> ()
    %339 = tpu.concatenate %281, %300, %319, %338 in 2 : vector<2x8x8xf32>, vector<2x8x8xf32>, vector<2x8x8xf32>, vector<2x8x8xf32> -> vector<2x8x32xf32>
    %340 = arith.truncf %339 : vector<2x8x32xf32> to vector<2x8x32xbf16>
    %341 = vector.shape_cast %340 : vector<2x8x32xbf16> to vector<16x32xbf16>
    %cst_218 = arith.constant dense<0.000000e+00> : vector<16x32xf32>
    %342 = tpu.matmul %341, %67, %cst_218 {dimension_numbers = #tpu.dot_dimension_numbers<[1], [0], [0], [1], [0, 0, 1, 1], [], []>} : vector<16x32xbf16>, vector<32x32xbf16>, vector<16x32xf32> -> vector<16x32xf32>
    %343 = vector.broadcast %65 : vector<1x32xf32> to vector<16x32xf32>
    %344 = arith.addf %342, %343 : vector<16x32xf32>
    %345 = arith.addf %231, %344 : vector<16x32xf32>
    %cst_219 = arith.constant dense<0.000000e+00> : vector<16xf32>
    %346 = vector.multi_reduction <add>, %345, %cst_219 [1] : vector<16x32xf32> to vector<16xf32>
    %347 = vector.shape_cast %346 : vector<16xf32> to vector<16x1xf32>
    %cst_220 = arith.constant 3.200000e+01 : f32
    %348 = vector.broadcast %cst_220 : f32 to vector<16x1xf32>
    %349 = arith.divf %347, %348 : vector<16x1xf32>
    %350 = vector.broadcast %349 : vector<16x1xf32> to vector<16x32xf32>
    %351 = arith.subf %345, %350 : vector<16x32xf32>
    %352 = arith.mulf %351, %351 : vector<16x32xf32>
    %cst_221 = arith.constant dense<0.000000e+00> : vector<16xf32>
    %353 = vector.multi_reduction <add>, %352, %cst_221 [1] : vector<16x32xf32> to vector<16xf32>
    %354 = vector.shape_cast %353 : vector<16xf32> to vector<16x1xf32>
    %cst_222 = arith.constant 3.200000e+01 : f32
    %355 = vector.broadcast %cst_222 : f32 to vector<16x1xf32>
    %356 = arith.divf %354, %355 : vector<16x1xf32>
    %cst_223 = arith.constant 9.99999974E-6 : f32
    %357 = vector.broadcast %cst_223 : f32 to vector<16x1xf32>
    %358 = arith.addf %356, %357 : vector<16x1xf32>
    %359 = math.rsqrt %358 : vector<16x1xf32>
    %360 = vector.broadcast %359 : vector<16x1xf32> to vector<16x32xf32>
    %361 = arith.mulf %351, %360 : vector<16x32xf32>
    %362 = vector.broadcast %64 : vector<1x32xf32> to vector<16x32xf32>
    %363 = arith.mulf %361, %362 : vector<16x32xf32>
    %364 = vector.broadcast %63 : vector<1x32xf32> to vector<16x32xf32>
    %365 = arith.addf %363, %364 : vector<16x32xf32>
    %366 = arith.truncf %365 : vector<16x32xf32> to vector<16x32xbf16>
    %cst_224 = arith.constant dense<0.000000e+00> : vector<16x64xf32>
    %367 = tpu.matmul %366, %59, %cst_224 {dimension_numbers = #tpu.dot_dimension_numbers<[1], [0], [0], [1], [0, 0, 1, 1], [], []>} : vector<16x32xbf16>, vector<32x64xbf16>, vector<16x64xf32> -> vector<16x64xf32>
    %368 = vector.broadcast %57 : vector<1x64xf32> to vector<16x64xf32>
    %369 = arith.addf %367, %368 : vector<16x64xf32>
    %cst_225 = arith.constant 0.000000e+00 : f32
    %370 = vector.broadcast %cst_225 : f32 to vector<16x64xf32>
    %371 = arith.maximumf %369, %370 : vector<16x64xf32>
    %372 = arith.truncf %371 : vector<16x64xf32> to vector<16x64xbf16>
    %cst_226 = arith.constant dense<0.000000e+00> : vector<16x32xf32>
    %373 = tpu.matmul %372, %60, %cst_226 {dimension_numbers = #tpu.dot_dimension_numbers<[1], [0], [0], [1], [0, 0, 1, 1], [], []>} : vector<16x64xbf16>, vector<64x32xbf16>, vector<16x32xf32> -> vector<16x32xf32>
    %374 = vector.broadcast %58 : vector<1x32xf32> to vector<16x32xf32>
    %375 = arith.addf %373, %374 : vector<16x32xf32>
    %376 = arith.addf %345, %375 : vector<16x32xf32>
    %cst_227 = arith.constant dense<0.000000e+00> : vector<16xf32>
    %377 = vector.multi_reduction <add>, %376, %cst_227 [1] : vector<16x32xf32> to vector<16xf32>
    %378 = vector.shape_cast %377 : vector<16xf32> to vector<16x1xf32>
    %cst_228 = arith.constant 3.200000e+01 : f32
    %379 = vector.broadcast %cst_228 : f32 to vector<16x1xf32>
    %380 = arith.divf %378, %379 : vector<16x1xf32>
    %381 = vector.broadcast %380 : vector<16x1xf32> to vector<16x32xf32>
    %382 = arith.subf %376, %381 : vector<16x32xf32>
    %383 = arith.mulf %382, %382 : vector<16x32xf32>
    %cst_229 = arith.constant dense<0.000000e+00> : vector<16xf32>
    %384 = vector.multi_reduction <add>, %383, %cst_229 [1] : vector<16x32xf32> to vector<16xf32>
    %385 = vector.shape_cast %384 : vector<16xf32> to vector<16x1xf32>
    %cst_230 = arith.constant 3.200000e+01 : f32
    %386 = vector.broadcast %cst_230 : f32 to vector<16x1xf32>
    %387 = arith.divf %385, %386 : vector<16x1xf32>
    %cst_231 = arith.constant 9.99999974E-6 : f32
    %388 = vector.broadcast %cst_231 : f32 to vector<16x1xf32>
    %389 = arith.addf %387, %388 : vector<16x1xf32>
    %390 = math.rsqrt %389 : vector<16x1xf32>
    %391 = vector.broadcast %390 : vector<16x1xf32> to vector<16x32xf32>
    %392 = arith.mulf %382, %391 : vector<16x32xf32>
    %393 = vector.broadcast %70 : vector<1x32xf32> to vector<16x32xf32>
    %394 = arith.mulf %392, %393 : vector<16x32xf32>
    %395 = vector.broadcast %69 : vector<1x32xf32> to vector<16x32xf32>
    %396 = arith.addf %394, %395 : vector<16x32xf32>
    %397 = arith.truncf %396 : vector<16x32xf32> to vector<16x32xbf16>
    %398 = tpu.iota {dimensions = array<i32: 1>} : vector<16x50xi32>
    %399 = vector.broadcast %76 : vector<16x1xi32> to vector<16x50xi32>
    %400 = arith.cmpi eq, %399, %398 : vector<16x50xi32>
    %401 = arith.extui %400 : vector<16x50xi1> to vector<16x50xi32>
    %402 = arith.sitofp %401 : vector<16x50xi32> to vector<16x50xf32>
    %403 = arith.truncf %402 : vector<16x50xf32> to vector<16x50xbf16>
    %cst_232 = arith.constant dense<0.000000e+00> : vector<16x32xf32>
    %404 = tpu.matmul %403, %75, %cst_232 {dimension_numbers = #tpu.dot_dimension_numbers<[1], [0], [0], [1], [0, 0, 1, 1], [], []>} : vector<16x50xbf16>, vector<50x32xbf16>, vector<16x32xf32> -> vector<16x32xf32>
    %cst_233 = arith.constant 5.65685415 : f32
    %405 = vector.broadcast %cst_233 : f32 to vector<16x32xf32>
    %406 = arith.mulf %404, %405 : vector<16x32xf32>
    %407 = arith.addf %406, %72 : vector<16x32xf32>
    %cst_234 = arith.constant dense<0.000000e+00> : vector<16xf32>
    %408 = vector.multi_reduction <add>, %407, %cst_234 [1] : vector<16x32xf32> to vector<16xf32>
    %409 = vector.shape_cast %408 : vector<16xf32> to vector<16x1xf32>
    %cst_235 = arith.constant 3.200000e+01 : f32
    %410 = vector.broadcast %cst_235 : f32 to vector<16x1xf32>
    %411 = arith.divf %409, %410 : vector<16x1xf32>
    %412 = vector.broadcast %411 : vector<16x1xf32> to vector<16x32xf32>
    %413 = arith.subf %407, %412 : vector<16x32xf32>
    %414 = arith.mulf %413, %413 : vector<16x32xf32>
    %cst_236 = arith.constant dense<0.000000e+00> : vector<16xf32>
    %415 = vector.multi_reduction <add>, %414, %cst_236 [1] : vector<16x32xf32> to vector<16xf32>
    %416 = vector.shape_cast %415 : vector<16xf32> to vector<16x1xf32>
    %cst_237 = arith.constant 3.200000e+01 : f32
    %417 = vector.broadcast %cst_237 : f32 to vector<16x1xf32>
    %418 = arith.divf %416, %417 : vector<16x1xf32>
    %cst_238 = arith.constant 9.99999974E-6 : f32
    %419 = vector.broadcast %cst_238 : f32 to vector<16x1xf32>
    %420 = arith.addf %418, %419 : vector<16x1xf32>
    %421 = math.rsqrt %420 : vector<16x1xf32>
    %422 = vector.broadcast %421 : vector<16x1xf32> to vector<16x32xf32>
    %423 = arith.mulf %413, %422 : vector<16x32xf32>
    %424 = vector.broadcast %6 : vector<1x32xf32> to vector<16x32xf32>
    %425 = arith.mulf %423, %424 : vector<16x32xf32>
    %426 = vector.broadcast %5 : vector<1x32xf32> to vector<16x32xf32>
    %427 = arith.addf %425, %426 : vector<16x32xf32>
    %428 = arith.truncf %427 : vector<16x32xf32> to vector<16x32xbf16>
    %cst_239 = arith.constant dense<0.000000e+00> : vector<16x96xf32>
    %429 = tpu.matmul %428, %14, %cst_239 {dimension_numbers = #tpu.dot_dimension_numbers<[1], [0], [0], [1], [0, 0, 1, 1], [], []>} : vector<16x32xbf16>, vector<32x96xbf16>, vector<16x96xf32> -> vector<16x96xf32>
    %430 = vector.broadcast %12 : vector<1x96xf32> to vector<16x96xf32>
    %431 = arith.addf %429, %430 : vector<16x96xf32>
    %432 = arith.truncf %431 : vector<16x96xf32> to vector<16x96xbf16>
    %433 = vector.extract_strided_slice %432 {offsets = [0, 0], sizes = [16, 32], strides = [1, 1]} : vector<16x96xbf16> to vector<16x32xbf16>
    %434 = vector.shape_cast %433 : vector<16x32xbf16> to vector<2x8x32xbf16>
    %435 = vector.extract_strided_slice %432 {offsets = [0, 32], sizes = [16, 32], strides = [1, 1]} : vector<16x96xbf16> to vector<16x32xbf16>
    %436 = vector.shape_cast %435 : vector<16x32xbf16> to vector<2x8x32xbf16>
    %437 = vector.extract_strided_slice %432 {offsets = [0, 64], sizes = [16, 32], strides = [1, 1]} : vector<16x96xbf16> to vector<16x32xbf16>
    %438 = vector.shape_cast %437 : vector<16x32xbf16> to vector<2x8x32xbf16>
    %439 = vector.extract_strided_slice %434 {offsets = [0, 0, 0], sizes = [2, 8, 8], strides = [1, 1, 1]} : vector<2x8x32xbf16> to vector<2x8x8xbf16>
    %440 = vector.extract_strided_slice %436 {offsets = [0, 0, 0], sizes = [2, 8, 8], strides = [1, 1, 1]} : vector<2x8x32xbf16> to vector<2x8x8xbf16>
    "tpu.trace_start"() <{level = 10 : i32, message = "bqd,bkd->bqk"}> : () -> ()
    %cst_240 = arith.constant dense<0.000000e+00> : vector<2x8x8xf32>
    %441 = tpu.matmul %439, %440, %cst_240 {dimension_numbers = #tpu.dot_dimension_numbers<[2], [2], [1], [1], [0, 0, 0, 1, 1, 1], [0], [0]>} : vector<2x8x8xbf16>, vector<2x8x8xbf16>, vector<2x8x8xf32> -> vector<2x8x8xf32>
    "tpu.trace_stop"() : () -> ()
    %cst_241 = arith.constant 0.353553385 : f32
    %442 = vector.broadcast %cst_241 : f32 to vector<2x8x8xf32>
    %443 = arith.mulf %441, %442 : vector<2x8x8xf32>
    %444 = arith.addf %443, %43 : vector<2x8x8xf32>
    %cst_242 = arith.constant dense<0xFF800000> : vector<2x8xf32>
    %445 = vector.multi_reduction <maximumf>, %444, %cst_242 [2] : vector<2x8x8xf32> to vector<2x8xf32>
    %446 = vector.shape_cast %445 : vector<2x8xf32> to vector<2x8x1xf32>
    %447 = vector.broadcast %446 : vector<2x8x1xf32> to vector<2x8x8xf32>
    %448 = arith.subf %444, %447 : vector<2x8x8xf32>
    %449 = math.exp %448 : vector<2x8x8xf32>
    %cst_243 = arith.constant dense<0.000000e+00> : vector<2x8xf32>
    %450 = vector.multi_reduction <add>, %449, %cst_243 [2] : vector<2x8x8xf32> to vector<2x8xf32>
    %451 = vector.shape_cast %450 : vector<2x8xf32> to vector<2x8x1xf32>
    %452 = tpu.reciprocal %451 {approx = true} : vector<2x8x1xf32> -> vector<2x8x1xf32>
    %453 = vector.broadcast %452 : vector<2x8x1xf32> to vector<2x8x8xf32>
    %454 = arith.mulf %449, %453 : vector<2x8x8xf32>
    %455 = arith.truncf %454 : vector<2x8x8xf32> to vector<2x8x8xbf16>
    %456 = vector.extract_strided_slice %438 {offsets = [0, 0, 0], sizes = [2, 8, 8], strides = [1, 1, 1]} : vector<2x8x32xbf16> to vector<2x8x8xbf16>
    "tpu.trace_start"() <{level = 10 : i32, message = "bqk,bkd->bqd"}> : () -> ()
    %cst_244 = arith.constant dense<0.000000e+00> : vector<2x8x8xf32>
    %457 = tpu.matmul %455, %456, %cst_244 {dimension_numbers = #tpu.dot_dimension_numbers<[2], [1], [1], [2], [0, 0, 0, 1, 1, 2], [0], [0]>} : vector<2x8x8xbf16>, vector<2x8x8xbf16>, vector<2x8x8xf32> -> vector<2x8x8xf32>
    "tpu.trace_stop"() : () -> ()
    %458 = vector.extract_strided_slice %434 {offsets = [0, 0, 8], sizes = [2, 8, 8], strides = [1, 1, 1]} : vector<2x8x32xbf16> to vector<2x8x8xbf16>
    %459 = vector.extract_strided_slice %436 {offsets = [0, 0, 8], sizes = [2, 8, 8], strides = [1, 1, 1]} : vector<2x8x32xbf16> to vector<2x8x8xbf16>
    "tpu.trace_start"() <{level = 10 : i32, message = "bqd,bkd->bqk"}> : () -> ()
    %cst_245 = arith.constant dense<0.000000e+00> : vector<2x8x8xf32>
    %460 = tpu.matmul %458, %459, %cst_245 {dimension_numbers = #tpu.dot_dimension_numbers<[2], [2], [1], [1], [0, 0, 0, 1, 1, 1], [0], [0]>} : vector<2x8x8xbf16>, vector<2x8x8xbf16>, vector<2x8x8xf32> -> vector<2x8x8xf32>
    "tpu.trace_stop"() : () -> ()
    %cst_246 = arith.constant 0.353553385 : f32
    %461 = vector.broadcast %cst_246 : f32 to vector<2x8x8xf32>
    %462 = arith.mulf %460, %461 : vector<2x8x8xf32>
    %463 = arith.addf %462, %43 : vector<2x8x8xf32>
    %cst_247 = arith.constant dense<0xFF800000> : vector<2x8xf32>
    %464 = vector.multi_reduction <maximumf>, %463, %cst_247 [2] : vector<2x8x8xf32> to vector<2x8xf32>
    %465 = vector.shape_cast %464 : vector<2x8xf32> to vector<2x8x1xf32>
    %466 = vector.broadcast %465 : vector<2x8x1xf32> to vector<2x8x8xf32>
    %467 = arith.subf %463, %466 : vector<2x8x8xf32>
    %468 = math.exp %467 : vector<2x8x8xf32>
    %cst_248 = arith.constant dense<0.000000e+00> : vector<2x8xf32>
    %469 = vector.multi_reduction <add>, %468, %cst_248 [2] : vector<2x8x8xf32> to vector<2x8xf32>
    %470 = vector.shape_cast %469 : vector<2x8xf32> to vector<2x8x1xf32>
    %471 = tpu.reciprocal %470 {approx = true} : vector<2x8x1xf32> -> vector<2x8x1xf32>
    %472 = vector.broadcast %471 : vector<2x8x1xf32> to vector<2x8x8xf32>
    %473 = arith.mulf %468, %472 : vector<2x8x8xf32>
    %474 = arith.truncf %473 : vector<2x8x8xf32> to vector<2x8x8xbf16>
    %475 = vector.extract_strided_slice %438 {offsets = [0, 0, 8], sizes = [2, 8, 8], strides = [1, 1, 1]} : vector<2x8x32xbf16> to vector<2x8x8xbf16>
    "tpu.trace_start"() <{level = 10 : i32, message = "bqk,bkd->bqd"}> : () -> ()
    %cst_249 = arith.constant dense<0.000000e+00> : vector<2x8x8xf32>
    %476 = tpu.matmul %474, %475, %cst_249 {dimension_numbers = #tpu.dot_dimension_numbers<[2], [1], [1], [2], [0, 0, 0, 1, 1, 2], [0], [0]>} : vector<2x8x8xbf16>, vector<2x8x8xbf16>, vector<2x8x8xf32> -> vector<2x8x8xf32>
    "tpu.trace_stop"() : () -> ()
    %477 = vector.extract_strided_slice %434 {offsets = [0, 0, 16], sizes = [2, 8, 8], strides = [1, 1, 1]} : vector<2x8x32xbf16> to vector<2x8x8xbf16>
    %478 = vector.extract_strided_slice %436 {offsets = [0, 0, 16], sizes = [2, 8, 8], strides = [1, 1, 1]} : vector<2x8x32xbf16> to vector<2x8x8xbf16>
    "tpu.trace_start"() <{level = 10 : i32, message = "bqd,bkd->bqk"}> : () -> ()
    %cst_250 = arith.constant dense<0.000000e+00> : vector<2x8x8xf32>
    %479 = tpu.matmul %477, %478, %cst_250 {dimension_numbers = #tpu.dot_dimension_numbers<[2], [2], [1], [1], [0, 0, 0, 1, 1, 1], [0], [0]>} : vector<2x8x8xbf16>, vector<2x8x8xbf16>, vector<2x8x8xf32> -> vector<2x8x8xf32>
    "tpu.trace_stop"() : () -> ()
    %cst_251 = arith.constant 0.353553385 : f32
    %480 = vector.broadcast %cst_251 : f32 to vector<2x8x8xf32>
    %481 = arith.mulf %479, %480 : vector<2x8x8xf32>
    %482 = arith.addf %481, %43 : vector<2x8x8xf32>
    %cst_252 = arith.constant dense<0xFF800000> : vector<2x8xf32>
    %483 = vector.multi_reduction <maximumf>, %482, %cst_252 [2] : vector<2x8x8xf32> to vector<2x8xf32>
    %484 = vector.shape_cast %483 : vector<2x8xf32> to vector<2x8x1xf32>
    %485 = vector.broadcast %484 : vector<2x8x1xf32> to vector<2x8x8xf32>
    %486 = arith.subf %482, %485 : vector<2x8x8xf32>
    %487 = math.exp %486 : vector<2x8x8xf32>
    %cst_253 = arith.constant dense<0.000000e+00> : vector<2x8xf32>
    %488 = vector.multi_reduction <add>, %487, %cst_253 [2] : vector<2x8x8xf32> to vector<2x8xf32>
    %489 = vector.shape_cast %488 : vector<2x8xf32> to vector<2x8x1xf32>
    %490 = tpu.reciprocal %489 {approx = true} : vector<2x8x1xf32> -> vector<2x8x1xf32>
    %491 = vector.broadcast %490 : vector<2x8x1xf32> to vector<2x8x8xf32>
    %492 = arith.mulf %487, %491 : vector<2x8x8xf32>
    %493 = arith.truncf %492 : vector<2x8x8xf32> to vector<2x8x8xbf16>
    %494 = vector.extract_strided_slice %438 {offsets = [0, 0, 16], sizes = [2, 8, 8], strides = [1, 1, 1]} : vector<2x8x32xbf16> to vector<2x8x8xbf16>
    "tpu.trace_start"() <{level = 10 : i32, message = "bqk,bkd->bqd"}> : () -> ()
    %cst_254 = arith.constant dense<0.000000e+00> : vector<2x8x8xf32>
    %495 = tpu.matmul %493, %494, %cst_254 {dimension_numbers = #tpu.dot_dimension_numbers<[2], [1], [1], [2], [0, 0, 0, 1, 1, 2], [0], [0]>} : vector<2x8x8xbf16>, vector<2x8x8xbf16>, vector<2x8x8xf32> -> vector<2x8x8xf32>
    "tpu.trace_stop"() : () -> ()
    %496 = vector.extract_strided_slice %434 {offsets = [0, 0, 24], sizes = [2, 8, 8], strides = [1, 1, 1]} : vector<2x8x32xbf16> to vector<2x8x8xbf16>
    %497 = vector.extract_strided_slice %436 {offsets = [0, 0, 24], sizes = [2, 8, 8], strides = [1, 1, 1]} : vector<2x8x32xbf16> to vector<2x8x8xbf16>
    "tpu.trace_start"() <{level = 10 : i32, message = "bqd,bkd->bqk"}> : () -> ()
    %cst_255 = arith.constant dense<0.000000e+00> : vector<2x8x8xf32>
    %498 = tpu.matmul %496, %497, %cst_255 {dimension_numbers = #tpu.dot_dimension_numbers<[2], [2], [1], [1], [0, 0, 0, 1, 1, 1], [0], [0]>} : vector<2x8x8xbf16>, vector<2x8x8xbf16>, vector<2x8x8xf32> -> vector<2x8x8xf32>
    "tpu.trace_stop"() : () -> ()
    %cst_256 = arith.constant 0.353553385 : f32
    %499 = vector.broadcast %cst_256 : f32 to vector<2x8x8xf32>
    %500 = arith.mulf %498, %499 : vector<2x8x8xf32>
    %501 = arith.addf %500, %43 : vector<2x8x8xf32>
    %cst_257 = arith.constant dense<0xFF800000> : vector<2x8xf32>
    %502 = vector.multi_reduction <maximumf>, %501, %cst_257 [2] : vector<2x8x8xf32> to vector<2x8xf32>
    %503 = vector.shape_cast %502 : vector<2x8xf32> to vector<2x8x1xf32>
    %504 = vector.broadcast %503 : vector<2x8x1xf32> to vector<2x8x8xf32>
    %505 = arith.subf %501, %504 : vector<2x8x8xf32>
    %506 = math.exp %505 : vector<2x8x8xf32>
    %cst_258 = arith.constant dense<0.000000e+00> : vector<2x8xf32>
    %507 = vector.multi_reduction <add>, %506, %cst_258 [2] : vector<2x8x8xf32> to vector<2x8xf32>
    %508 = vector.shape_cast %507 : vector<2x8xf32> to vector<2x8x1xf32>
    %509 = tpu.reciprocal %508 {approx = true} : vector<2x8x1xf32> -> vector<2x8x1xf32>
    %510 = vector.broadcast %509 : vector<2x8x1xf32> to vector<2x8x8xf32>
    %511 = arith.mulf %506, %510 : vector<2x8x8xf32>
    %512 = arith.truncf %511 : vector<2x8x8xf32> to vector<2x8x8xbf16>
    %513 = vector.extract_strided_slice %438 {offsets = [0, 0, 24], sizes = [2, 8, 8], strides = [1, 1, 1]} : vector<2x8x32xbf16> to vector<2x8x8xbf16>
    "tpu.trace_start"() <{level = 10 : i32, message = "bqk,bkd->bqd"}> : () -> ()
    %cst_259 = arith.constant dense<0.000000e+00> : vector<2x8x8xf32>
    %514 = tpu.matmul %512, %513, %cst_259 {dimension_numbers = #tpu.dot_dimension_numbers<[2], [1], [1], [2], [0, 0, 0, 1, 1, 2], [0], [0]>} : vector<2x8x8xbf16>, vector<2x8x8xbf16>, vector<2x8x8xf32> -> vector<2x8x8xf32>
    "tpu.trace_stop"() : () -> ()
    %515 = tpu.concatenate %457, %476, %495, %514 in 2 : vector<2x8x8xf32>, vector<2x8x8xf32>, vector<2x8x8xf32>, vector<2x8x8xf32> -> vector<2x8x32xf32>
    %516 = arith.truncf %515 : vector<2x8x32xf32> to vector<2x8x32xbf16>
    %517 = vector.shape_cast %516 : vector<2x8x32xbf16> to vector<16x32xbf16>
    %cst_260 = arith.constant dense<0.000000e+00> : vector<16x32xf32>
    %518 = tpu.matmul %517, %13, %cst_260 {dimension_numbers = #tpu.dot_dimension_numbers<[1], [0], [0], [1], [0, 0, 1, 1], [], []>} : vector<16x32xbf16>, vector<32x32xbf16>, vector<16x32xf32> -> vector<16x32xf32>
    %519 = vector.broadcast %11 : vector<1x32xf32> to vector<16x32xf32>
    %520 = arith.addf %518, %519 : vector<16x32xf32>
    %521 = arith.addf %407, %520 : vector<16x32xf32>
    %cst_261 = arith.constant dense<0.000000e+00> : vector<16xf32>
    %522 = vector.multi_reduction <add>, %521, %cst_261 [1] : vector<16x32xf32> to vector<16xf32>
    %523 = vector.shape_cast %522 : vector<16xf32> to vector<16x1xf32>
    %cst_262 = arith.constant 3.200000e+01 : f32
    %524 = vector.broadcast %cst_262 : f32 to vector<16x1xf32>
    %525 = arith.divf %523, %524 : vector<16x1xf32>
    %526 = vector.broadcast %525 : vector<16x1xf32> to vector<16x32xf32>
    %527 = arith.subf %521, %526 : vector<16x32xf32>
    %528 = arith.mulf %527, %527 : vector<16x32xf32>
    %cst_263 = arith.constant dense<0.000000e+00> : vector<16xf32>
    %529 = vector.multi_reduction <add>, %528, %cst_263 [1] : vector<16x32xf32> to vector<16xf32>
    %530 = vector.shape_cast %529 : vector<16xf32> to vector<16x1xf32>
    %cst_264 = arith.constant 3.200000e+01 : f32
    %531 = vector.broadcast %cst_264 : f32 to vector<16x1xf32>
    %532 = arith.divf %530, %531 : vector<16x1xf32>
    %cst_265 = arith.constant 9.99999974E-6 : f32
    %533 = vector.broadcast %cst_265 : f32 to vector<16x1xf32>
    %534 = arith.addf %532, %533 : vector<16x1xf32>
    %535 = math.rsqrt %534 : vector<16x1xf32>
    %536 = vector.broadcast %535 : vector<16x1xf32> to vector<16x32xf32>
    %537 = arith.mulf %527, %536 : vector<16x32xf32>
    %538 = vector.broadcast %8 : vector<1x32xf32> to vector<16x32xf32>
    %539 = arith.mulf %537, %538 : vector<16x32xf32>
    %540 = vector.broadcast %7 : vector<1x32xf32> to vector<16x32xf32>
    %541 = arith.addf %539, %540 : vector<16x32xf32>
    %542 = arith.truncf %541 : vector<16x32xf32> to vector<16x32xbf16>
    %cst_266 = arith.constant dense<0.000000e+00> : vector<16x32xf32>
    %543 = tpu.matmul %542, %20, %cst_266 {dimension_numbers = #tpu.dot_dimension_numbers<[1], [0], [0], [1], [0, 0, 1, 1], [], []>} : vector<16x32xbf16>, vector<32x32xbf16>, vector<16x32xf32> -> vector<16x32xf32>
    %544 = vector.broadcast %17 : vector<1x32xf32> to vector<16x32xf32>
    %545 = arith.addf %543, %544 : vector<16x32xf32>
    %546 = arith.truncf %545 : vector<16x32xf32> to vector<16x32xbf16>
    %547 = vector.shape_cast %546 : vector<16x32xbf16> to vector<2x8x32xbf16>
    %cst_267 = arith.constant dense<0.000000e+00> : vector<16x64xf32>
    %548 = tpu.matmul %397, %18, %cst_267 {dimension_numbers = #tpu.dot_dimension_numbers<[1], [0], [0], [1], [0, 0, 1, 1], [], []>} : vector<16x32xbf16>, vector<32x64xbf16>, vector<16x64xf32> -> vector<16x64xf32>
    %549 = vector.broadcast %15 : vector<1x64xf32> to vector<16x64xf32>
    %550 = arith.addf %548, %549 : vector<16x64xf32>
    %551 = arith.truncf %550 : vector<16x64xf32> to vector<16x64xbf16>
    %552 = vector.extract_strided_slice %551 {offsets = [0, 0], sizes = [16, 32], strides = [1, 1]} : vector<16x64xbf16> to vector<16x32xbf16>
    %553 = vector.shape_cast %552 : vector<16x32xbf16> to vector<2x8x32xbf16>
    %554 = vector.extract_strided_slice %551 {offsets = [0, 32], sizes = [16, 32], strides = [1, 1]} : vector<16x64xbf16> to vector<16x32xbf16>
    %555 = vector.shape_cast %554 : vector<16x32xbf16> to vector<2x8x32xbf16>
    %556 = vector.extract_strided_slice %547 {offsets = [0, 0, 0], sizes = [2, 8, 8], strides = [1, 1, 1]} : vector<2x8x32xbf16> to vector<2x8x8xbf16>
    %557 = vector.extract_strided_slice %553 {offsets = [0, 0, 0], sizes = [2, 8, 8], strides = [1, 1, 1]} : vector<2x8x32xbf16> to vector<2x8x8xbf16>
    "tpu.trace_start"() <{level = 10 : i32, message = "bqd,bkd->bqk"}> : () -> ()
    %cst_268 = arith.constant dense<0.000000e+00> : vector<2x8x8xf32>
    %558 = tpu.matmul %556, %557, %cst_268 {dimension_numbers = #tpu.dot_dimension_numbers<[2], [2], [1], [1], [0, 0, 0, 1, 1, 1], [0], [0]>} : vector<2x8x8xbf16>, vector<2x8x8xbf16>, vector<2x8x8xf32> -> vector<2x8x8xf32>
    "tpu.trace_stop"() : () -> ()
    %cst_269 = arith.constant 0.353553385 : f32
    %559 = vector.broadcast %cst_269 : f32 to vector<2x8x8xf32>
    %560 = arith.mulf %558, %559 : vector<2x8x8xf32>
    %561 = arith.addf %560, %0 : vector<2x8x8xf32>
    %cst_270 = arith.constant dense<0xFF800000> : vector<2x8xf32>
    %562 = vector.multi_reduction <maximumf>, %561, %cst_270 [2] : vector<2x8x8xf32> to vector<2x8xf32>
    %563 = vector.shape_cast %562 : vector<2x8xf32> to vector<2x8x1xf32>
    %564 = vector.broadcast %563 : vector<2x8x1xf32> to vector<2x8x8xf32>
    %565 = arith.subf %561, %564 : vector<2x8x8xf32>
    %566 = math.exp %565 : vector<2x8x8xf32>
    %cst_271 = arith.constant dense<0.000000e+00> : vector<2x8xf32>
    %567 = vector.multi_reduction <add>, %566, %cst_271 [2] : vector<2x8x8xf32> to vector<2x8xf32>
    %568 = vector.shape_cast %567 : vector<2x8xf32> to vector<2x8x1xf32>
    %569 = tpu.reciprocal %568 {approx = true} : vector<2x8x1xf32> -> vector<2x8x1xf32>
    %570 = vector.broadcast %569 : vector<2x8x1xf32> to vector<2x8x8xf32>
    %571 = arith.mulf %566, %570 : vector<2x8x8xf32>
    %572 = arith.truncf %571 : vector<2x8x8xf32> to vector<2x8x8xbf16>
    %573 = vector.extract_strided_slice %555 {offsets = [0, 0, 0], sizes = [2, 8, 8], strides = [1, 1, 1]} : vector<2x8x32xbf16> to vector<2x8x8xbf16>
    "tpu.trace_start"() <{level = 10 : i32, message = "bqk,bkd->bqd"}> : () -> ()
    %cst_272 = arith.constant dense<0.000000e+00> : vector<2x8x8xf32>
    %574 = tpu.matmul %572, %573, %cst_272 {dimension_numbers = #tpu.dot_dimension_numbers<[2], [1], [1], [2], [0, 0, 0, 1, 1, 2], [0], [0]>} : vector<2x8x8xbf16>, vector<2x8x8xbf16>, vector<2x8x8xf32> -> vector<2x8x8xf32>
    "tpu.trace_stop"() : () -> ()
    %575 = vector.extract_strided_slice %547 {offsets = [0, 0, 8], sizes = [2, 8, 8], strides = [1, 1, 1]} : vector<2x8x32xbf16> to vector<2x8x8xbf16>
    %576 = vector.extract_strided_slice %553 {offsets = [0, 0, 8], sizes = [2, 8, 8], strides = [1, 1, 1]} : vector<2x8x32xbf16> to vector<2x8x8xbf16>
    "tpu.trace_start"() <{level = 10 : i32, message = "bqd,bkd->bqk"}> : () -> ()
    %cst_273 = arith.constant dense<0.000000e+00> : vector<2x8x8xf32>
    %577 = tpu.matmul %575, %576, %cst_273 {dimension_numbers = #tpu.dot_dimension_numbers<[2], [2], [1], [1], [0, 0, 0, 1, 1, 1], [0], [0]>} : vector<2x8x8xbf16>, vector<2x8x8xbf16>, vector<2x8x8xf32> -> vector<2x8x8xf32>
    "tpu.trace_stop"() : () -> ()
    %cst_274 = arith.constant 0.353553385 : f32
    %578 = vector.broadcast %cst_274 : f32 to vector<2x8x8xf32>
    %579 = arith.mulf %577, %578 : vector<2x8x8xf32>
    %580 = arith.addf %579, %0 : vector<2x8x8xf32>
    %cst_275 = arith.constant dense<0xFF800000> : vector<2x8xf32>
    %581 = vector.multi_reduction <maximumf>, %580, %cst_275 [2] : vector<2x8x8xf32> to vector<2x8xf32>
    %582 = vector.shape_cast %581 : vector<2x8xf32> to vector<2x8x1xf32>
    %583 = vector.broadcast %582 : vector<2x8x1xf32> to vector<2x8x8xf32>
    %584 = arith.subf %580, %583 : vector<2x8x8xf32>
    %585 = math.exp %584 : vector<2x8x8xf32>
    %cst_276 = arith.constant dense<0.000000e+00> : vector<2x8xf32>
    %586 = vector.multi_reduction <add>, %585, %cst_276 [2] : vector<2x8x8xf32> to vector<2x8xf32>
    %587 = vector.shape_cast %586 : vector<2x8xf32> to vector<2x8x1xf32>
    %588 = tpu.reciprocal %587 {approx = true} : vector<2x8x1xf32> -> vector<2x8x1xf32>
    %589 = vector.broadcast %588 : vector<2x8x1xf32> to vector<2x8x8xf32>
    %590 = arith.mulf %585, %589 : vector<2x8x8xf32>
    %591 = arith.truncf %590 : vector<2x8x8xf32> to vector<2x8x8xbf16>
    %592 = vector.extract_strided_slice %555 {offsets = [0, 0, 8], sizes = [2, 8, 8], strides = [1, 1, 1]} : vector<2x8x32xbf16> to vector<2x8x8xbf16>
    "tpu.trace_start"() <{level = 10 : i32, message = "bqk,bkd->bqd"}> : () -> ()
    %cst_277 = arith.constant dense<0.000000e+00> : vector<2x8x8xf32>
    %593 = tpu.matmul %591, %592, %cst_277 {dimension_numbers = #tpu.dot_dimension_numbers<[2], [1], [1], [2], [0, 0, 0, 1, 1, 2], [0], [0]>} : vector<2x8x8xbf16>, vector<2x8x8xbf16>, vector<2x8x8xf32> -> vector<2x8x8xf32>
    "tpu.trace_stop"() : () -> ()
    %594 = vector.extract_strided_slice %547 {offsets = [0, 0, 16], sizes = [2, 8, 8], strides = [1, 1, 1]} : vector<2x8x32xbf16> to vector<2x8x8xbf16>
    %595 = vector.extract_strided_slice %553 {offsets = [0, 0, 16], sizes = [2, 8, 8], strides = [1, 1, 1]} : vector<2x8x32xbf16> to vector<2x8x8xbf16>
    "tpu.trace_start"() <{level = 10 : i32, message = "bqd,bkd->bqk"}> : () -> ()
    %cst_278 = arith.constant dense<0.000000e+00> : vector<2x8x8xf32>
    %596 = tpu.matmul %594, %595, %cst_278 {dimension_numbers = #tpu.dot_dimension_numbers<[2], [2], [1], [1], [0, 0, 0, 1, 1, 1], [0], [0]>} : vector<2x8x8xbf16>, vector<2x8x8xbf16>, vector<2x8x8xf32> -> vector<2x8x8xf32>
    "tpu.trace_stop"() : () -> ()
    %cst_279 = arith.constant 0.353553385 : f32
    %597 = vector.broadcast %cst_279 : f32 to vector<2x8x8xf32>
    %598 = arith.mulf %596, %597 : vector<2x8x8xf32>
    %599 = arith.addf %598, %0 : vector<2x8x8xf32>
    %cst_280 = arith.constant dense<0xFF800000> : vector<2x8xf32>
    %600 = vector.multi_reduction <maximumf>, %599, %cst_280 [2] : vector<2x8x8xf32> to vector<2x8xf32>
    %601 = vector.shape_cast %600 : vector<2x8xf32> to vector<2x8x1xf32>
    %602 = vector.broadcast %601 : vector<2x8x1xf32> to vector<2x8x8xf32>
    %603 = arith.subf %599, %602 : vector<2x8x8xf32>
    %604 = math.exp %603 : vector<2x8x8xf32>
    %cst_281 = arith.constant dense<0.000000e+00> : vector<2x8xf32>
    %605 = vector.multi_reduction <add>, %604, %cst_281 [2] : vector<2x8x8xf32> to vector<2x8xf32>
    %606 = vector.shape_cast %605 : vector<2x8xf32> to vector<2x8x1xf32>
    %607 = tpu.reciprocal %606 {approx = true} : vector<2x8x1xf32> -> vector<2x8x1xf32>
    %608 = vector.broadcast %607 : vector<2x8x1xf32> to vector<2x8x8xf32>
    %609 = arith.mulf %604, %608 : vector<2x8x8xf32>
    %610 = arith.truncf %609 : vector<2x8x8xf32> to vector<2x8x8xbf16>
    %611 = vector.extract_strided_slice %555 {offsets = [0, 0, 16], sizes = [2, 8, 8], strides = [1, 1, 1]} : vector<2x8x32xbf16> to vector<2x8x8xbf16>
    "tpu.trace_start"() <{level = 10 : i32, message = "bqk,bkd->bqd"}> : () -> ()
    %cst_282 = arith.constant dense<0.000000e+00> : vector<2x8x8xf32>
    %612 = tpu.matmul %610, %611, %cst_282 {dimension_numbers = #tpu.dot_dimension_numbers<[2], [1], [1], [2], [0, 0, 0, 1, 1, 2], [0], [0]>} : vector<2x8x8xbf16>, vector<2x8x8xbf16>, vector<2x8x8xf32> -> vector<2x8x8xf32>
    "tpu.trace_stop"() : () -> ()
    %613 = vector.extract_strided_slice %547 {offsets = [0, 0, 24], sizes = [2, 8, 8], strides = [1, 1, 1]} : vector<2x8x32xbf16> to vector<2x8x8xbf16>
    %614 = vector.extract_strided_slice %553 {offsets = [0, 0, 24], sizes = [2, 8, 8], strides = [1, 1, 1]} : vector<2x8x32xbf16> to vector<2x8x8xbf16>
    "tpu.trace_start"() <{level = 10 : i32, message = "bqd,bkd->bqk"}> : () -> ()
    %cst_283 = arith.constant dense<0.000000e+00> : vector<2x8x8xf32>
    %615 = tpu.matmul %613, %614, %cst_283 {dimension_numbers = #tpu.dot_dimension_numbers<[2], [2], [1], [1], [0, 0, 0, 1, 1, 1], [0], [0]>} : vector<2x8x8xbf16>, vector<2x8x8xbf16>, vector<2x8x8xf32> -> vector<2x8x8xf32>
    "tpu.trace_stop"() : () -> ()
    %cst_284 = arith.constant 0.353553385 : f32
    %616 = vector.broadcast %cst_284 : f32 to vector<2x8x8xf32>
    %617 = arith.mulf %615, %616 : vector<2x8x8xf32>
    %618 = arith.addf %617, %0 : vector<2x8x8xf32>
    %cst_285 = arith.constant dense<0xFF800000> : vector<2x8xf32>
    %619 = vector.multi_reduction <maximumf>, %618, %cst_285 [2] : vector<2x8x8xf32> to vector<2x8xf32>
    %620 = vector.shape_cast %619 : vector<2x8xf32> to vector<2x8x1xf32>
    %621 = vector.broadcast %620 : vector<2x8x1xf32> to vector<2x8x8xf32>
    %622 = arith.subf %618, %621 : vector<2x8x8xf32>
    %623 = math.exp %622 : vector<2x8x8xf32>
    %cst_286 = arith.constant dense<0.000000e+00> : vector<2x8xf32>
    %624 = vector.multi_reduction <add>, %623, %cst_286 [2] : vector<2x8x8xf32> to vector<2x8xf32>
    %625 = vector.shape_cast %624 : vector<2x8xf32> to vector<2x8x1xf32>
    %626 = tpu.reciprocal %625 {approx = true} : vector<2x8x1xf32> -> vector<2x8x1xf32>
    %627 = vector.broadcast %626 : vector<2x8x1xf32> to vector<2x8x8xf32>
    %628 = arith.mulf %623, %627 : vector<2x8x8xf32>
    %629 = arith.truncf %628 : vector<2x8x8xf32> to vector<2x8x8xbf16>
    %630 = vector.extract_strided_slice %555 {offsets = [0, 0, 24], sizes = [2, 8, 8], strides = [1, 1, 1]} : vector<2x8x32xbf16> to vector<2x8x8xbf16>
    "tpu.trace_start"() <{level = 10 : i32, message = "bqk,bkd->bqd"}> : () -> ()
    %cst_287 = arith.constant dense<0.000000e+00> : vector<2x8x8xf32>
    %631 = tpu.matmul %629, %630, %cst_287 {dimension_numbers = #tpu.dot_dimension_numbers<[2], [1], [1], [2], [0, 0, 0, 1, 1, 2], [0], [0]>} : vector<2x8x8xbf16>, vector<2x8x8xbf16>, vector<2x8x8xf32> -> vector<2x8x8xf32>
    "tpu.trace_stop"() : () -> ()
    %632 = tpu.concatenate %574, %593, %612, %631 in 2 : vector<2x8x8xf32>, vector<2x8x8xf32>, vector<2x8x8xf32>, vector<2x8x8xf32> -> vector<2x8x32xf32>
    %633 = arith.truncf %632 : vector<2x8x32xf32> to vector<2x8x32xbf16>
    %634 = vector.shape_cast %633 : vector<2x8x32xbf16> to vector<16x32xbf16>
    %cst_288 = arith.constant dense<0.000000e+00> : vector<16x32xf32>
    %635 = tpu.matmul %634, %19, %cst_288 {dimension_numbers = #tpu.dot_dimension_numbers<[1], [0], [0], [1], [0, 0, 1, 1], [], []>} : vector<16x32xbf16>, vector<32x32xbf16>, vector<16x32xf32> -> vector<16x32xf32>
    %636 = vector.broadcast %16 : vector<1x32xf32> to vector<16x32xf32>
    %637 = arith.addf %635, %636 : vector<16x32xf32>
    %638 = arith.addf %521, %637 : vector<16x32xf32>
    %cst_289 = arith.constant dense<0.000000e+00> : vector<16xf32>
    %639 = vector.multi_reduction <add>, %638, %cst_289 [1] : vector<16x32xf32> to vector<16xf32>
    %640 = vector.shape_cast %639 : vector<16xf32> to vector<16x1xf32>
    %cst_290 = arith.constant 3.200000e+01 : f32
    %641 = vector.broadcast %cst_290 : f32 to vector<16x1xf32>
    %642 = arith.divf %640, %641 : vector<16x1xf32>
    %643 = vector.broadcast %642 : vector<16x1xf32> to vector<16x32xf32>
    %644 = arith.subf %638, %643 : vector<16x32xf32>
    %645 = arith.mulf %644, %644 : vector<16x32xf32>
    %cst_291 = arith.constant dense<0.000000e+00> : vector<16xf32>
    %646 = vector.multi_reduction <add>, %645, %cst_291 [1] : vector<16x32xf32> to vector<16xf32>
    %647 = vector.shape_cast %646 : vector<16xf32> to vector<16x1xf32>
    %cst_292 = arith.constant 3.200000e+01 : f32
    %648 = vector.broadcast %cst_292 : f32 to vector<16x1xf32>
    %649 = arith.divf %647, %648 : vector<16x1xf32>
    %cst_293 = arith.constant 9.99999974E-6 : f32
    %650 = vector.broadcast %cst_293 : f32 to vector<16x1xf32>
    %651 = arith.addf %649, %650 : vector<16x1xf32>
    %652 = math.rsqrt %651 : vector<16x1xf32>
    %653 = vector.broadcast %652 : vector<16x1xf32> to vector<16x32xf32>
    %654 = arith.mulf %644, %653 : vector<16x32xf32>
    %655 = vector.broadcast %10 : vector<1x32xf32> to vector<16x32xf32>
    %656 = arith.mulf %654, %655 : vector<16x32xf32>
    %657 = vector.broadcast %9 : vector<1x32xf32> to vector<16x32xf32>
    %658 = arith.addf %656, %657 : vector<16x32xf32>
    %659 = arith.truncf %658 : vector<16x32xf32> to vector<16x32xbf16>
    %cst_294 = arith.constant dense<0.000000e+00> : vector<16x64xf32>
    %660 = tpu.matmul %659, %3, %cst_294 {dimension_numbers = #tpu.dot_dimension_numbers<[1], [0], [0], [1], [0, 0, 1, 1], [], []>} : vector<16x32xbf16>, vector<32x64xbf16>, vector<16x64xf32> -> vector<16x64xf32>
    %661 = vector.broadcast %1 : vector<1x64xf32> to vector<16x64xf32>
    %662 = arith.addf %660, %661 : vector<16x64xf32>
    %cst_295 = arith.constant 0.000000e+00 : f32
    %663 = vector.broadcast %cst_295 : f32 to vector<16x64xf32>
    %664 = arith.maximumf %662, %663 : vector<16x64xf32>
    %665 = arith.truncf %664 : vector<16x64xf32> to vector<16x64xbf16>
    %cst_296 = arith.constant dense<0.000000e+00> : vector<16x32xf32>
    %666 = tpu.matmul %665, %4, %cst_296 {dimension_numbers = #tpu.dot_dimension_numbers<[1], [0], [0], [1], [0, 0, 1, 1], [], []>} : vector<16x64xbf16>, vector<64x32xbf16>, vector<16x32xf32> -> vector<16x32xf32>
    %667 = vector.broadcast %2 : vector<1x32xf32> to vector<16x32xf32>
    %668 = arith.addf %666, %667 : vector<16x32xf32>
    %669 = arith.addf %638, %668 : vector<16x32xf32>
    %cst_297 = arith.constant dense<0.000000e+00> : vector<16xf32>
    %670 = vector.multi_reduction <add>, %669, %cst_297 [1] : vector<16x32xf32> to vector<16xf32>
    %671 = vector.shape_cast %670 : vector<16xf32> to vector<16x1xf32>
    %cst_298 = arith.constant 3.200000e+01 : f32
    %672 = vector.broadcast %cst_298 : f32 to vector<16x1xf32>
    %673 = arith.divf %671, %672 : vector<16x1xf32>
    %674 = vector.broadcast %673 : vector<16x1xf32> to vector<16x32xf32>
    %675 = arith.subf %669, %674 : vector<16x32xf32>
    %676 = arith.mulf %675, %675 : vector<16x32xf32>
    %cst_299 = arith.constant dense<0.000000e+00> : vector<16xf32>
    %677 = vector.multi_reduction <add>, %676, %cst_299 [1] : vector<16x32xf32> to vector<16xf32>
    %678 = vector.shape_cast %677 : vector<16xf32> to vector<16x1xf32>
    %cst_300 = arith.constant 3.200000e+01 : f32
    %679 = vector.broadcast %cst_300 : f32 to vector<16x1xf32>
    %680 = arith.divf %678, %679 : vector<16x1xf32>
    %cst_301 = arith.constant 9.99999974E-6 : f32
    %681 = vector.broadcast %cst_301 : f32 to vector<16x1xf32>
    %682 = arith.addf %680, %681 : vector<16x1xf32>
    %683 = math.rsqrt %682 : vector<16x1xf32>
    %684 = vector.broadcast %683 : vector<16x1xf32> to vector<16x32xf32>
    %685 = arith.mulf %675, %684 : vector<16x32xf32>
    %686 = vector.broadcast %26 : vector<1x32xf32> to vector<16x32xf32>
    %687 = arith.mulf %685, %686 : vector<16x32xf32>
    %688 = vector.broadcast %25 : vector<1x32xf32> to vector<16x32xf32>
    %689 = arith.addf %687, %688 : vector<16x32xf32>
    %690 = arith.truncf %689 : vector<16x32xf32> to vector<16x32xbf16>
    %cst_302 = arith.constant dense<0.000000e+00> : vector<16x96xf32>
    %691 = tpu.matmul %690, %34, %cst_302 {dimension_numbers = #tpu.dot_dimension_numbers<[1], [0], [0], [1], [0, 0, 1, 1], [], []>} : vector<16x32xbf16>, vector<32x96xbf16>, vector<16x96xf32> -> vector<16x96xf32>
    %692 = vector.broadcast %32 : vector<1x96xf32> to vector<16x96xf32>
    %693 = arith.addf %691, %692 : vector<16x96xf32>
    %694 = arith.truncf %693 : vector<16x96xf32> to vector<16x96xbf16>
    %695 = vector.extract_strided_slice %694 {offsets = [0, 0], sizes = [16, 32], strides = [1, 1]} : vector<16x96xbf16> to vector<16x32xbf16>
    %696 = vector.shape_cast %695 : vector<16x32xbf16> to vector<2x8x32xbf16>
    %697 = vector.extract_strided_slice %694 {offsets = [0, 32], sizes = [16, 32], strides = [1, 1]} : vector<16x96xbf16> to vector<16x32xbf16>
    %698 = vector.shape_cast %697 : vector<16x32xbf16> to vector<2x8x32xbf16>
    %699 = vector.extract_strided_slice %694 {offsets = [0, 64], sizes = [16, 32], strides = [1, 1]} : vector<16x96xbf16> to vector<16x32xbf16>
    %700 = vector.shape_cast %699 : vector<16x32xbf16> to vector<2x8x32xbf16>
    %701 = vector.extract_strided_slice %696 {offsets = [0, 0, 0], sizes = [2, 8, 8], strides = [1, 1, 1]} : vector<2x8x32xbf16> to vector<2x8x8xbf16>
    %702 = vector.extract_strided_slice %698 {offsets = [0, 0, 0], sizes = [2, 8, 8], strides = [1, 1, 1]} : vector<2x8x32xbf16> to vector<2x8x8xbf16>
    "tpu.trace_start"() <{level = 10 : i32, message = "bqd,bkd->bqk"}> : () -> ()
    %cst_303 = arith.constant dense<0.000000e+00> : vector<2x8x8xf32>
    %703 = tpu.matmul %701, %702, %cst_303 {dimension_numbers = #tpu.dot_dimension_numbers<[2], [2], [1], [1], [0, 0, 0, 1, 1, 1], [0], [0]>} : vector<2x8x8xbf16>, vector<2x8x8xbf16>, vector<2x8x8xf32> -> vector<2x8x8xf32>
    "tpu.trace_stop"() : () -> ()
    %cst_304 = arith.constant 0.353553385 : f32
    %704 = vector.broadcast %cst_304 : f32 to vector<2x8x8xf32>
    %705 = arith.mulf %703, %704 : vector<2x8x8xf32>
    %706 = arith.addf %705, %43 : vector<2x8x8xf32>
    %cst_305 = arith.constant dense<0xFF800000> : vector<2x8xf32>
    %707 = vector.multi_reduction <maximumf>, %706, %cst_305 [2] : vector<2x8x8xf32> to vector<2x8xf32>
    %708 = vector.shape_cast %707 : vector<2x8xf32> to vector<2x8x1xf32>
    %709 = vector.broadcast %708 : vector<2x8x1xf32> to vector<2x8x8xf32>
    %710 = arith.subf %706, %709 : vector<2x8x8xf32>
    %711 = math.exp %710 : vector<2x8x8xf32>
    %cst_306 = arith.constant dense<0.000000e+00> : vector<2x8xf32>
    %712 = vector.multi_reduction <add>, %711, %cst_306 [2] : vector<2x8x8xf32> to vector<2x8xf32>
    %713 = vector.shape_cast %712 : vector<2x8xf32> to vector<2x8x1xf32>
    %714 = tpu.reciprocal %713 {approx = true} : vector<2x8x1xf32> -> vector<2x8x1xf32>
    %715 = vector.broadcast %714 : vector<2x8x1xf32> to vector<2x8x8xf32>
    %716 = arith.mulf %711, %715 : vector<2x8x8xf32>
    %717 = arith.truncf %716 : vector<2x8x8xf32> to vector<2x8x8xbf16>
    %718 = vector.extract_strided_slice %700 {offsets = [0, 0, 0], sizes = [2, 8, 8], strides = [1, 1, 1]} : vector<2x8x32xbf16> to vector<2x8x8xbf16>
    "tpu.trace_start"() <{level = 10 : i32, message = "bqk,bkd->bqd"}> : () -> ()
    %cst_307 = arith.constant dense<0.000000e+00> : vector<2x8x8xf32>
    %719 = tpu.matmul %717, %718, %cst_307 {dimension_numbers = #tpu.dot_dimension_numbers<[2], [1], [1], [2], [0, 0, 0, 1, 1, 2], [0], [0]>} : vector<2x8x8xbf16>, vector<2x8x8xbf16>, vector<2x8x8xf32> -> vector<2x8x8xf32>
    "tpu.trace_stop"() : () -> ()
    %720 = vector.extract_strided_slice %696 {offsets = [0, 0, 8], sizes = [2, 8, 8], strides = [1, 1, 1]} : vector<2x8x32xbf16> to vector<2x8x8xbf16>
    %721 = vector.extract_strided_slice %698 {offsets = [0, 0, 8], sizes = [2, 8, 8], strides = [1, 1, 1]} : vector<2x8x32xbf16> to vector<2x8x8xbf16>
    "tpu.trace_start"() <{level = 10 : i32, message = "bqd,bkd->bqk"}> : () -> ()
    %cst_308 = arith.constant dense<0.000000e+00> : vector<2x8x8xf32>
    %722 = tpu.matmul %720, %721, %cst_308 {dimension_numbers = #tpu.dot_dimension_numbers<[2], [2], [1], [1], [0, 0, 0, 1, 1, 1], [0], [0]>} : vector<2x8x8xbf16>, vector<2x8x8xbf16>, vector<2x8x8xf32> -> vector<2x8x8xf32>
    "tpu.trace_stop"() : () -> ()
    %cst_309 = arith.constant 0.353553385 : f32
    %723 = vector.broadcast %cst_309 : f32 to vector<2x8x8xf32>
    %724 = arith.mulf %722, %723 : vector<2x8x8xf32>
    %725 = arith.addf %724, %43 : vector<2x8x8xf32>
    %cst_310 = arith.constant dense<0xFF800000> : vector<2x8xf32>
    %726 = vector.multi_reduction <maximumf>, %725, %cst_310 [2] : vector<2x8x8xf32> to vector<2x8xf32>
    %727 = vector.shape_cast %726 : vector<2x8xf32> to vector<2x8x1xf32>
    %728 = vector.broadcast %727 : vector<2x8x1xf32> to vector<2x8x8xf32>
    %729 = arith.subf %725, %728 : vector<2x8x8xf32>
    %730 = math.exp %729 : vector<2x8x8xf32>
    %cst_311 = arith.constant dense<0.000000e+00> : vector<2x8xf32>
    %731 = vector.multi_reduction <add>, %730, %cst_311 [2] : vector<2x8x8xf32> to vector<2x8xf32>
    %732 = vector.shape_cast %731 : vector<2x8xf32> to vector<2x8x1xf32>
    %733 = tpu.reciprocal %732 {approx = true} : vector<2x8x1xf32> -> vector<2x8x1xf32>
    %734 = vector.broadcast %733 : vector<2x8x1xf32> to vector<2x8x8xf32>
    %735 = arith.mulf %730, %734 : vector<2x8x8xf32>
    %736 = arith.truncf %735 : vector<2x8x8xf32> to vector<2x8x8xbf16>
    %737 = vector.extract_strided_slice %700 {offsets = [0, 0, 8], sizes = [2, 8, 8], strides = [1, 1, 1]} : vector<2x8x32xbf16> to vector<2x8x8xbf16>
    "tpu.trace_start"() <{level = 10 : i32, message = "bqk,bkd->bqd"}> : () -> ()
    %cst_312 = arith.constant dense<0.000000e+00> : vector<2x8x8xf32>
    %738 = tpu.matmul %736, %737, %cst_312 {dimension_numbers = #tpu.dot_dimension_numbers<[2], [1], [1], [2], [0, 0, 0, 1, 1, 2], [0], [0]>} : vector<2x8x8xbf16>, vector<2x8x8xbf16>, vector<2x8x8xf32> -> vector<2x8x8xf32>
    "tpu.trace_stop"() : () -> ()
    %739 = vector.extract_strided_slice %696 {offsets = [0, 0, 16], sizes = [2, 8, 8], strides = [1, 1, 1]} : vector<2x8x32xbf16> to vector<2x8x8xbf16>
    %740 = vector.extract_strided_slice %698 {offsets = [0, 0, 16], sizes = [2, 8, 8], strides = [1, 1, 1]} : vector<2x8x32xbf16> to vector<2x8x8xbf16>
    "tpu.trace_start"() <{level = 10 : i32, message = "bqd,bkd->bqk"}> : () -> ()
    %cst_313 = arith.constant dense<0.000000e+00> : vector<2x8x8xf32>
    %741 = tpu.matmul %739, %740, %cst_313 {dimension_numbers = #tpu.dot_dimension_numbers<[2], [2], [1], [1], [0, 0, 0, 1, 1, 1], [0], [0]>} : vector<2x8x8xbf16>, vector<2x8x8xbf16>, vector<2x8x8xf32> -> vector<2x8x8xf32>
    "tpu.trace_stop"() : () -> ()
    %cst_314 = arith.constant 0.353553385 : f32
    %742 = vector.broadcast %cst_314 : f32 to vector<2x8x8xf32>
    %743 = arith.mulf %741, %742 : vector<2x8x8xf32>
    %744 = arith.addf %743, %43 : vector<2x8x8xf32>
    %cst_315 = arith.constant dense<0xFF800000> : vector<2x8xf32>
    %745 = vector.multi_reduction <maximumf>, %744, %cst_315 [2] : vector<2x8x8xf32> to vector<2x8xf32>
    %746 = vector.shape_cast %745 : vector<2x8xf32> to vector<2x8x1xf32>
    %747 = vector.broadcast %746 : vector<2x8x1xf32> to vector<2x8x8xf32>
    %748 = arith.subf %744, %747 : vector<2x8x8xf32>
    %749 = math.exp %748 : vector<2x8x8xf32>
    %cst_316 = arith.constant dense<0.000000e+00> : vector<2x8xf32>
    %750 = vector.multi_reduction <add>, %749, %cst_316 [2] : vector<2x8x8xf32> to vector<2x8xf32>
    %751 = vector.shape_cast %750 : vector<2x8xf32> to vector<2x8x1xf32>
    %752 = tpu.reciprocal %751 {approx = true} : vector<2x8x1xf32> -> vector<2x8x1xf32>
    %753 = vector.broadcast %752 : vector<2x8x1xf32> to vector<2x8x8xf32>
    %754 = arith.mulf %749, %753 : vector<2x8x8xf32>
    %755 = arith.truncf %754 : vector<2x8x8xf32> to vector<2x8x8xbf16>
    %756 = vector.extract_strided_slice %700 {offsets = [0, 0, 16], sizes = [2, 8, 8], strides = [1, 1, 1]} : vector<2x8x32xbf16> to vector<2x8x8xbf16>
    "tpu.trace_start"() <{level = 10 : i32, message = "bqk,bkd->bqd"}> : () -> ()
    %cst_317 = arith.constant dense<0.000000e+00> : vector<2x8x8xf32>
    %757 = tpu.matmul %755, %756, %cst_317 {dimension_numbers = #tpu.dot_dimension_numbers<[2], [1], [1], [2], [0, 0, 0, 1, 1, 2], [0], [0]>} : vector<2x8x8xbf16>, vector<2x8x8xbf16>, vector<2x8x8xf32> -> vector<2x8x8xf32>
    "tpu.trace_stop"() : () -> ()
    %758 = vector.extract_strided_slice %696 {offsets = [0, 0, 24], sizes = [2, 8, 8], strides = [1, 1, 1]} : vector<2x8x32xbf16> to vector<2x8x8xbf16>
    %759 = vector.extract_strided_slice %698 {offsets = [0, 0, 24], sizes = [2, 8, 8], strides = [1, 1, 1]} : vector<2x8x32xbf16> to vector<2x8x8xbf16>
    "tpu.trace_start"() <{level = 10 : i32, message = "bqd,bkd->bqk"}> : () -> ()
    %cst_318 = arith.constant dense<0.000000e+00> : vector<2x8x8xf32>
    %760 = tpu.matmul %758, %759, %cst_318 {dimension_numbers = #tpu.dot_dimension_numbers<[2], [2], [1], [1], [0, 0, 0, 1, 1, 1], [0], [0]>} : vector<2x8x8xbf16>, vector<2x8x8xbf16>, vector<2x8x8xf32> -> vector<2x8x8xf32>
    "tpu.trace_stop"() : () -> ()
    %cst_319 = arith.constant 0.353553385 : f32
    %761 = vector.broadcast %cst_319 : f32 to vector<2x8x8xf32>
    %762 = arith.mulf %760, %761 : vector<2x8x8xf32>
    %763 = arith.addf %762, %43 : vector<2x8x8xf32>
    %cst_320 = arith.constant dense<0xFF800000> : vector<2x8xf32>
    %764 = vector.multi_reduction <maximumf>, %763, %cst_320 [2] : vector<2x8x8xf32> to vector<2x8xf32>
    %765 = vector.shape_cast %764 : vector<2x8xf32> to vector<2x8x1xf32>
    %766 = vector.broadcast %765 : vector<2x8x1xf32> to vector<2x8x8xf32>
    %767 = arith.subf %763, %766 : vector<2x8x8xf32>
    %768 = math.exp %767 : vector<2x8x8xf32>
    %cst_321 = arith.constant dense<0.000000e+00> : vector<2x8xf32>
    %769 = vector.multi_reduction <add>, %768, %cst_321 [2] : vector<2x8x8xf32> to vector<2x8xf32>
    %770 = vector.shape_cast %769 : vector<2x8xf32> to vector<2x8x1xf32>
    %771 = tpu.reciprocal %770 {approx = true} : vector<2x8x1xf32> -> vector<2x8x1xf32>
    %772 = vector.broadcast %771 : vector<2x8x1xf32> to vector<2x8x8xf32>
    %773 = arith.mulf %768, %772 : vector<2x8x8xf32>
    %774 = arith.truncf %773 : vector<2x8x8xf32> to vector<2x8x8xbf16>
    %775 = vector.extract_strided_slice %700 {offsets = [0, 0, 24], sizes = [2, 8, 8], strides = [1, 1, 1]} : vector<2x8x32xbf16> to vector<2x8x8xbf16>
    "tpu.trace_start"() <{level = 10 : i32, message = "bqk,bkd->bqd"}> : () -> ()
    %cst_322 = arith.constant dense<0.000000e+00> : vector<2x8x8xf32>
    %776 = tpu.matmul %774, %775, %cst_322 {dimension_numbers = #tpu.dot_dimension_numbers<[2], [1], [1], [2], [0, 0, 0, 1, 1, 2], [0], [0]>} : vector<2x8x8xbf16>, vector<2x8x8xbf16>, vector<2x8x8xf32> -> vector<2x8x8xf32>
    "tpu.trace_stop"() : () -> ()
    %777 = tpu.concatenate %719, %738, %757, %776 in 2 : vector<2x8x8xf32>, vector<2x8x8xf32>, vector<2x8x8xf32>, vector<2x8x8xf32> -> vector<2x8x32xf32>
    %778 = arith.truncf %777 : vector<2x8x32xf32> to vector<2x8x32xbf16>
    %779 = vector.shape_cast %778 : vector<2x8x32xbf16> to vector<16x32xbf16>
    %cst_323 = arith.constant dense<0.000000e+00> : vector<16x32xf32>
    %780 = tpu.matmul %779, %33, %cst_323 {dimension_numbers = #tpu.dot_dimension_numbers<[1], [0], [0], [1], [0, 0, 1, 1], [], []>} : vector<16x32xbf16>, vector<32x32xbf16>, vector<16x32xf32> -> vector<16x32xf32>
    %781 = vector.broadcast %31 : vector<1x32xf32> to vector<16x32xf32>
    %782 = arith.addf %780, %781 : vector<16x32xf32>
    %783 = arith.addf %669, %782 : vector<16x32xf32>
    %cst_324 = arith.constant dense<0.000000e+00> : vector<16xf32>
    %784 = vector.multi_reduction <add>, %783, %cst_324 [1] : vector<16x32xf32> to vector<16xf32>
    %785 = vector.shape_cast %784 : vector<16xf32> to vector<16x1xf32>
    %cst_325 = arith.constant 3.200000e+01 : f32
    %786 = vector.broadcast %cst_325 : f32 to vector<16x1xf32>
    %787 = arith.divf %785, %786 : vector<16x1xf32>
    %788 = vector.broadcast %787 : vector<16x1xf32> to vector<16x32xf32>
    %789 = arith.subf %783, %788 : vector<16x32xf32>
    %790 = arith.mulf %789, %789 : vector<16x32xf32>
    %cst_326 = arith.constant dense<0.000000e+00> : vector<16xf32>
    %791 = vector.multi_reduction <add>, %790, %cst_326 [1] : vector<16x32xf32> to vector<16xf32>
    %792 = vector.shape_cast %791 : vector<16xf32> to vector<16x1xf32>
    %cst_327 = arith.constant 3.200000e+01 : f32
    %793 = vector.broadcast %cst_327 : f32 to vector<16x1xf32>
    %794 = arith.divf %792, %793 : vector<16x1xf32>
    %cst_328 = arith.constant 9.99999974E-6 : f32
    %795 = vector.broadcast %cst_328 : f32 to vector<16x1xf32>
    %796 = arith.addf %794, %795 : vector<16x1xf32>
    %797 = math.rsqrt %796 : vector<16x1xf32>
    %798 = vector.broadcast %797 : vector<16x1xf32> to vector<16x32xf32>
    %799 = arith.mulf %789, %798 : vector<16x32xf32>
    %800 = vector.broadcast %28 : vector<1x32xf32> to vector<16x32xf32>
    %801 = arith.mulf %799, %800 : vector<16x32xf32>
    %802 = vector.broadcast %27 : vector<1x32xf32> to vector<16x32xf32>
    %803 = arith.addf %801, %802 : vector<16x32xf32>
    %804 = arith.truncf %803 : vector<16x32xf32> to vector<16x32xbf16>
    %cst_329 = arith.constant dense<0.000000e+00> : vector<16x32xf32>
    %805 = tpu.matmul %804, %40, %cst_329 {dimension_numbers = #tpu.dot_dimension_numbers<[1], [0], [0], [1], [0, 0, 1, 1], [], []>} : vector<16x32xbf16>, vector<32x32xbf16>, vector<16x32xf32> -> vector<16x32xf32>
    %806 = vector.broadcast %37 : vector<1x32xf32> to vector<16x32xf32>
    %807 = arith.addf %805, %806 : vector<16x32xf32>
    %808 = arith.truncf %807 : vector<16x32xf32> to vector<16x32xbf16>
    %809 = vector.shape_cast %808 : vector<16x32xbf16> to vector<2x8x32xbf16>
    %cst_330 = arith.constant dense<0.000000e+00> : vector<16x64xf32>
    %810 = tpu.matmul %397, %38, %cst_330 {dimension_numbers = #tpu.dot_dimension_numbers<[1], [0], [0], [1], [0, 0, 1, 1], [], []>} : vector<16x32xbf16>, vector<32x64xbf16>, vector<16x64xf32> -> vector<16x64xf32>
    %811 = vector.broadcast %35 : vector<1x64xf32> to vector<16x64xf32>
    %812 = arith.addf %810, %811 : vector<16x64xf32>
    %813 = arith.truncf %812 : vector<16x64xf32> to vector<16x64xbf16>
    %814 = vector.extract_strided_slice %813 {offsets = [0, 0], sizes = [16, 32], strides = [1, 1]} : vector<16x64xbf16> to vector<16x32xbf16>
    %815 = vector.shape_cast %814 : vector<16x32xbf16> to vector<2x8x32xbf16>
    %816 = vector.extract_strided_slice %813 {offsets = [0, 32], sizes = [16, 32], strides = [1, 1]} : vector<16x64xbf16> to vector<16x32xbf16>
    %817 = vector.shape_cast %816 : vector<16x32xbf16> to vector<2x8x32xbf16>
    %818 = vector.extract_strided_slice %809 {offsets = [0, 0, 0], sizes = [2, 8, 8], strides = [1, 1, 1]} : vector<2x8x32xbf16> to vector<2x8x8xbf16>
    %819 = vector.extract_strided_slice %815 {offsets = [0, 0, 0], sizes = [2, 8, 8], strides = [1, 1, 1]} : vector<2x8x32xbf16> to vector<2x8x8xbf16>
    "tpu.trace_start"() <{level = 10 : i32, message = "bqd,bkd->bqk"}> : () -> ()
    %cst_331 = arith.constant dense<0.000000e+00> : vector<2x8x8xf32>
    %820 = tpu.matmul %818, %819, %cst_331 {dimension_numbers = #tpu.dot_dimension_numbers<[2], [2], [1], [1], [0, 0, 0, 1, 1, 1], [0], [0]>} : vector<2x8x8xbf16>, vector<2x8x8xbf16>, vector<2x8x8xf32> -> vector<2x8x8xf32>
    "tpu.trace_stop"() : () -> ()
    %cst_332 = arith.constant 0.353553385 : f32
    %821 = vector.broadcast %cst_332 : f32 to vector<2x8x8xf32>
    %822 = arith.mulf %820, %821 : vector<2x8x8xf32>
    %823 = arith.addf %822, %0 : vector<2x8x8xf32>
    %cst_333 = arith.constant dense<0xFF800000> : vector<2x8xf32>
    %824 = vector.multi_reduction <maximumf>, %823, %cst_333 [2] : vector<2x8x8xf32> to vector<2x8xf32>
    %825 = vector.shape_cast %824 : vector<2x8xf32> to vector<2x8x1xf32>
    %826 = vector.broadcast %825 : vector<2x8x1xf32> to vector<2x8x8xf32>
    %827 = arith.subf %823, %826 : vector<2x8x8xf32>
    %828 = math.exp %827 : vector<2x8x8xf32>
    %cst_334 = arith.constant dense<0.000000e+00> : vector<2x8xf32>
    %829 = vector.multi_reduction <add>, %828, %cst_334 [2] : vector<2x8x8xf32> to vector<2x8xf32>
    %830 = vector.shape_cast %829 : vector<2x8xf32> to vector<2x8x1xf32>
    %831 = tpu.reciprocal %830 {approx = true} : vector<2x8x1xf32> -> vector<2x8x1xf32>
    %832 = vector.broadcast %831 : vector<2x8x1xf32> to vector<2x8x8xf32>
    %833 = arith.mulf %828, %832 : vector<2x8x8xf32>
    %834 = arith.truncf %833 : vector<2x8x8xf32> to vector<2x8x8xbf16>
    %835 = vector.extract_strided_slice %817 {offsets = [0, 0, 0], sizes = [2, 8, 8], strides = [1, 1, 1]} : vector<2x8x32xbf16> to vector<2x8x8xbf16>
    "tpu.trace_start"() <{level = 10 : i32, message = "bqk,bkd->bqd"}> : () -> ()
    %cst_335 = arith.constant dense<0.000000e+00> : vector<2x8x8xf32>
    %836 = tpu.matmul %834, %835, %cst_335 {dimension_numbers = #tpu.dot_dimension_numbers<[2], [1], [1], [2], [0, 0, 0, 1, 1, 2], [0], [0]>} : vector<2x8x8xbf16>, vector<2x8x8xbf16>, vector<2x8x8xf32> -> vector<2x8x8xf32>
    "tpu.trace_stop"() : () -> ()
    %837 = vector.extract_strided_slice %809 {offsets = [0, 0, 8], sizes = [2, 8, 8], strides = [1, 1, 1]} : vector<2x8x32xbf16> to vector<2x8x8xbf16>
    %838 = vector.extract_strided_slice %815 {offsets = [0, 0, 8], sizes = [2, 8, 8], strides = [1, 1, 1]} : vector<2x8x32xbf16> to vector<2x8x8xbf16>
    "tpu.trace_start"() <{level = 10 : i32, message = "bqd,bkd->bqk"}> : () -> ()
    %cst_336 = arith.constant dense<0.000000e+00> : vector<2x8x8xf32>
    %839 = tpu.matmul %837, %838, %cst_336 {dimension_numbers = #tpu.dot_dimension_numbers<[2], [2], [1], [1], [0, 0, 0, 1, 1, 1], [0], [0]>} : vector<2x8x8xbf16>, vector<2x8x8xbf16>, vector<2x8x8xf32> -> vector<2x8x8xf32>
    "tpu.trace_stop"() : () -> ()
    %cst_337 = arith.constant 0.353553385 : f32
    %840 = vector.broadcast %cst_337 : f32 to vector<2x8x8xf32>
    %841 = arith.mulf %839, %840 : vector<2x8x8xf32>
    %842 = arith.addf %841, %0 : vector<2x8x8xf32>
    %cst_338 = arith.constant dense<0xFF800000> : vector<2x8xf32>
    %843 = vector.multi_reduction <maximumf>, %842, %cst_338 [2] : vector<2x8x8xf32> to vector<2x8xf32>
    %844 = vector.shape_cast %843 : vector<2x8xf32> to vector<2x8x1xf32>
    %845 = vector.broadcast %844 : vector<2x8x1xf32> to vector<2x8x8xf32>
    %846 = arith.subf %842, %845 : vector<2x8x8xf32>
    %847 = math.exp %846 : vector<2x8x8xf32>
    %cst_339 = arith.constant dense<0.000000e+00> : vector<2x8xf32>
    %848 = vector.multi_reduction <add>, %847, %cst_339 [2] : vector<2x8x8xf32> to vector<2x8xf32>
    %849 = vector.shape_cast %848 : vector<2x8xf32> to vector<2x8x1xf32>
    %850 = tpu.reciprocal %849 {approx = true} : vector<2x8x1xf32> -> vector<2x8x1xf32>
    %851 = vector.broadcast %850 : vector<2x8x1xf32> to vector<2x8x8xf32>
    %852 = arith.mulf %847, %851 : vector<2x8x8xf32>
    %853 = arith.truncf %852 : vector<2x8x8xf32> to vector<2x8x8xbf16>
    %854 = vector.extract_strided_slice %817 {offsets = [0, 0, 8], sizes = [2, 8, 8], strides = [1, 1, 1]} : vector<2x8x32xbf16> to vector<2x8x8xbf16>
    "tpu.trace_start"() <{level = 10 : i32, message = "bqk,bkd->bqd"}> : () -> ()
    %cst_340 = arith.constant dense<0.000000e+00> : vector<2x8x8xf32>
    %855 = tpu.matmul %853, %854, %cst_340 {dimension_numbers = #tpu.dot_dimension_numbers<[2], [1], [1], [2], [0, 0, 0, 1, 1, 2], [0], [0]>} : vector<2x8x8xbf16>, vector<2x8x8xbf16>, vector<2x8x8xf32> -> vector<2x8x8xf32>
    "tpu.trace_stop"() : () -> ()
    %856 = vector.extract_strided_slice %809 {offsets = [0, 0, 16], sizes = [2, 8, 8], strides = [1, 1, 1]} : vector<2x8x32xbf16> to vector<2x8x8xbf16>
    %857 = vector.extract_strided_slice %815 {offsets = [0, 0, 16], sizes = [2, 8, 8], strides = [1, 1, 1]} : vector<2x8x32xbf16> to vector<2x8x8xbf16>
    "tpu.trace_start"() <{level = 10 : i32, message = "bqd,bkd->bqk"}> : () -> ()
    %cst_341 = arith.constant dense<0.000000e+00> : vector<2x8x8xf32>
    %858 = tpu.matmul %856, %857, %cst_341 {dimension_numbers = #tpu.dot_dimension_numbers<[2], [2], [1], [1], [0, 0, 0, 1, 1, 1], [0], [0]>} : vector<2x8x8xbf16>, vector<2x8x8xbf16>, vector<2x8x8xf32> -> vector<2x8x8xf32>
    "tpu.trace_stop"() : () -> ()
    %cst_342 = arith.constant 0.353553385 : f32
    %859 = vector.broadcast %cst_342 : f32 to vector<2x8x8xf32>
    %860 = arith.mulf %858, %859 : vector<2x8x8xf32>
    %861 = arith.addf %860, %0 : vector<2x8x8xf32>
    %cst_343 = arith.constant dense<0xFF800000> : vector<2x8xf32>
    %862 = vector.multi_reduction <maximumf>, %861, %cst_343 [2] : vector<2x8x8xf32> to vector<2x8xf32>
    %863 = vector.shape_cast %862 : vector<2x8xf32> to vector<2x8x1xf32>
    %864 = vector.broadcast %863 : vector<2x8x1xf32> to vector<2x8x8xf32>
    %865 = arith.subf %861, %864 : vector<2x8x8xf32>
    %866 = math.exp %865 : vector<2x8x8xf32>
    %cst_344 = arith.constant dense<0.000000e+00> : vector<2x8xf32>
    %867 = vector.multi_reduction <add>, %866, %cst_344 [2] : vector<2x8x8xf32> to vector<2x8xf32>
    %868 = vector.shape_cast %867 : vector<2x8xf32> to vector<2x8x1xf32>
    %869 = tpu.reciprocal %868 {approx = true} : vector<2x8x1xf32> -> vector<2x8x1xf32>
    %870 = vector.broadcast %869 : vector<2x8x1xf32> to vector<2x8x8xf32>
    %871 = arith.mulf %866, %870 : vector<2x8x8xf32>
    %872 = arith.truncf %871 : vector<2x8x8xf32> to vector<2x8x8xbf16>
    %873 = vector.extract_strided_slice %817 {offsets = [0, 0, 16], sizes = [2, 8, 8], strides = [1, 1, 1]} : vector<2x8x32xbf16> to vector<2x8x8xbf16>
    "tpu.trace_start"() <{level = 10 : i32, message = "bqk,bkd->bqd"}> : () -> ()
    %cst_345 = arith.constant dense<0.000000e+00> : vector<2x8x8xf32>
    %874 = tpu.matmul %872, %873, %cst_345 {dimension_numbers = #tpu.dot_dimension_numbers<[2], [1], [1], [2], [0, 0, 0, 1, 1, 2], [0], [0]>} : vector<2x8x8xbf16>, vector<2x8x8xbf16>, vector<2x8x8xf32> -> vector<2x8x8xf32>
    "tpu.trace_stop"() : () -> ()
    %875 = vector.extract_strided_slice %809 {offsets = [0, 0, 24], sizes = [2, 8, 8], strides = [1, 1, 1]} : vector<2x8x32xbf16> to vector<2x8x8xbf16>
    %876 = vector.extract_strided_slice %815 {offsets = [0, 0, 24], sizes = [2, 8, 8], strides = [1, 1, 1]} : vector<2x8x32xbf16> to vector<2x8x8xbf16>
    "tpu.trace_start"() <{level = 10 : i32, message = "bqd,bkd->bqk"}> : () -> ()
    %cst_346 = arith.constant dense<0.000000e+00> : vector<2x8x8xf32>
    %877 = tpu.matmul %875, %876, %cst_346 {dimension_numbers = #tpu.dot_dimension_numbers<[2], [2], [1], [1], [0, 0, 0, 1, 1, 1], [0], [0]>} : vector<2x8x8xbf16>, vector<2x8x8xbf16>, vector<2x8x8xf32> -> vector<2x8x8xf32>
    "tpu.trace_stop"() : () -> ()
    %cst_347 = arith.constant 0.353553385 : f32
    %878 = vector.broadcast %cst_347 : f32 to vector<2x8x8xf32>
    %879 = arith.mulf %877, %878 : vector<2x8x8xf32>
    %880 = arith.addf %879, %0 : vector<2x8x8xf32>
    %cst_348 = arith.constant dense<0xFF800000> : vector<2x8xf32>
    %881 = vector.multi_reduction <maximumf>, %880, %cst_348 [2] : vector<2x8x8xf32> to vector<2x8xf32>
    %882 = vector.shape_cast %881 : vector<2x8xf32> to vector<2x8x1xf32>
    %883 = vector.broadcast %882 : vector<2x8x1xf32> to vector<2x8x8xf32>
    %884 = arith.subf %880, %883 : vector<2x8x8xf32>
    %885 = math.exp %884 : vector<2x8x8xf32>
    %cst_349 = arith.constant dense<0.000000e+00> : vector<2x8xf32>
    %886 = vector.multi_reduction <add>, %885, %cst_349 [2] : vector<2x8x8xf32> to vector<2x8xf32>
    %887 = vector.shape_cast %886 : vector<2x8xf32> to vector<2x8x1xf32>
    %888 = tpu.reciprocal %887 {approx = true} : vector<2x8x1xf32> -> vector<2x8x1xf32>
    %889 = vector.broadcast %888 : vector<2x8x1xf32> to vector<2x8x8xf32>
    %890 = arith.mulf %885, %889 : vector<2x8x8xf32>
    %891 = arith.truncf %890 : vector<2x8x8xf32> to vector<2x8x8xbf16>
    %892 = vector.extract_strided_slice %817 {offsets = [0, 0, 24], sizes = [2, 8, 8], strides = [1, 1, 1]} : vector<2x8x32xbf16> to vector<2x8x8xbf16>
    "tpu.trace_start"() <{level = 10 : i32, message = "bqk,bkd->bqd"}> : () -> ()
    %cst_350 = arith.constant dense<0.000000e+00> : vector<2x8x8xf32>
    %893 = tpu.matmul %891, %892, %cst_350 {dimension_numbers = #tpu.dot_dimension_numbers<[2], [1], [1], [2], [0, 0, 0, 1, 1, 2], [0], [0]>} : vector<2x8x8xbf16>, vector<2x8x8xbf16>, vector<2x8x8xf32> -> vector<2x8x8xf32>
    "tpu.trace_stop"() : () -> ()
    %894 = tpu.concatenate %836, %855, %874, %893 in 2 : vector<2x8x8xf32>, vector<2x8x8xf32>, vector<2x8x8xf32>, vector<2x8x8xf32> -> vector<2x8x32xf32>
    %895 = arith.truncf %894 : vector<2x8x32xf32> to vector<2x8x32xbf16>
    %896 = vector.shape_cast %895 : vector<2x8x32xbf16> to vector<16x32xbf16>
    %cst_351 = arith.constant dense<0.000000e+00> : vector<16x32xf32>
    %897 = tpu.matmul %896, %39, %cst_351 {dimension_numbers = #tpu.dot_dimension_numbers<[1], [0], [0], [1], [0, 0, 1, 1], [], []>} : vector<16x32xbf16>, vector<32x32xbf16>, vector<16x32xf32> -> vector<16x32xf32>
    %898 = vector.broadcast %36 : vector<1x32xf32> to vector<16x32xf32>
    %899 = arith.addf %897, %898 : vector<16x32xf32>
    %900 = arith.addf %783, %899 : vector<16x32xf32>
    %cst_352 = arith.constant dense<0.000000e+00> : vector<16xf32>
    %901 = vector.multi_reduction <add>, %900, %cst_352 [1] : vector<16x32xf32> to vector<16xf32>
    %902 = vector.shape_cast %901 : vector<16xf32> to vector<16x1xf32>
    %cst_353 = arith.constant 3.200000e+01 : f32
    %903 = vector.broadcast %cst_353 : f32 to vector<16x1xf32>
    %904 = arith.divf %902, %903 : vector<16x1xf32>
    %905 = vector.broadcast %904 : vector<16x1xf32> to vector<16x32xf32>
    %906 = arith.subf %900, %905 : vector<16x32xf32>
    %907 = arith.mulf %906, %906 : vector<16x32xf32>
    %cst_354 = arith.constant dense<0.000000e+00> : vector<16xf32>
    %908 = vector.multi_reduction <add>, %907, %cst_354 [1] : vector<16x32xf32> to vector<16xf32>
    %909 = vector.shape_cast %908 : vector<16xf32> to vector<16x1xf32>
    %cst_355 = arith.constant 3.200000e+01 : f32
    %910 = vector.broadcast %cst_355 : f32 to vector<16x1xf32>
    %911 = arith.divf %909, %910 : vector<16x1xf32>
    %cst_356 = arith.constant 9.99999974E-6 : f32
    %912 = vector.broadcast %cst_356 : f32 to vector<16x1xf32>
    %913 = arith.addf %911, %912 : vector<16x1xf32>
    %914 = math.rsqrt %913 : vector<16x1xf32>
    %915 = vector.broadcast %914 : vector<16x1xf32> to vector<16x32xf32>
    %916 = arith.mulf %906, %915 : vector<16x32xf32>
    %917 = vector.broadcast %30 : vector<1x32xf32> to vector<16x32xf32>
    %918 = arith.mulf %916, %917 : vector<16x32xf32>
    %919 = vector.broadcast %29 : vector<1x32xf32> to vector<16x32xf32>
    %920 = arith.addf %918, %919 : vector<16x32xf32>
    %921 = arith.truncf %920 : vector<16x32xf32> to vector<16x32xbf16>
    %cst_357 = arith.constant dense<0.000000e+00> : vector<16x64xf32>
    %922 = tpu.matmul %921, %23, %cst_357 {dimension_numbers = #tpu.dot_dimension_numbers<[1], [0], [0], [1], [0, 0, 1, 1], [], []>} : vector<16x32xbf16>, vector<32x64xbf16>, vector<16x64xf32> -> vector<16x64xf32>
    %923 = vector.broadcast %21 : vector<1x64xf32> to vector<16x64xf32>
    %924 = arith.addf %922, %923 : vector<16x64xf32>
    %cst_358 = arith.constant 0.000000e+00 : f32
    %925 = vector.broadcast %cst_358 : f32 to vector<16x64xf32>
    %926 = arith.maximumf %924, %925 : vector<16x64xf32>
    %927 = arith.truncf %926 : vector<16x64xf32> to vector<16x64xbf16>
    %cst_359 = arith.constant dense<0.000000e+00> : vector<16x32xf32>
    %928 = tpu.matmul %927, %24, %cst_359 {dimension_numbers = #tpu.dot_dimension_numbers<[1], [0], [0], [1], [0, 0, 1, 1], [], []>} : vector<16x64xbf16>, vector<64x32xbf16>, vector<16x32xf32> -> vector<16x32xf32>
    %929 = vector.broadcast %22 : vector<1x32xf32> to vector<16x32xf32>
    %930 = arith.addf %928, %929 : vector<16x32xf32>
    %931 = arith.addf %900, %930 : vector<16x32xf32>
    %cst_360 = arith.constant dense<0.000000e+00> : vector<16xf32>
    %932 = vector.multi_reduction <add>, %931, %cst_360 [1] : vector<16x32xf32> to vector<16xf32>
    %933 = vector.shape_cast %932 : vector<16xf32> to vector<16x1xf32>
    %cst_361 = arith.constant 3.200000e+01 : f32
    %934 = vector.broadcast %cst_361 : f32 to vector<16x1xf32>
    %935 = arith.divf %933, %934 : vector<16x1xf32>
    %936 = vector.broadcast %935 : vector<16x1xf32> to vector<16x32xf32>
    %937 = arith.subf %931, %936 : vector<16x32xf32>
    %938 = arith.mulf %937, %937 : vector<16x32xf32>
    %cst_362 = arith.constant dense<0.000000e+00> : vector<16xf32>
    %939 = vector.multi_reduction <add>, %938, %cst_362 [1] : vector<16x32xf32> to vector<16xf32>
    %940 = vector.shape_cast %939 : vector<16xf32> to vector<16x1xf32>
    %cst_363 = arith.constant 3.200000e+01 : f32
    %941 = vector.broadcast %cst_363 : f32 to vector<16x1xf32>
    %942 = arith.divf %940, %941 : vector<16x1xf32>
    %cst_364 = arith.constant 9.99999974E-6 : f32
    %943 = vector.broadcast %cst_364 : f32 to vector<16x1xf32>
    %944 = arith.addf %942, %943 : vector<16x1xf32>
    %945 = math.rsqrt %944 : vector<16x1xf32>
    %946 = vector.broadcast %945 : vector<16x1xf32> to vector<16x32xf32>
    %947 = arith.mulf %937, %946 : vector<16x32xf32>
    %948 = vector.broadcast %42 : vector<1x32xf32> to vector<16x32xf32>
    %949 = arith.mulf %947, %948 : vector<16x32xf32>
    %950 = vector.broadcast %41 : vector<1x32xf32> to vector<16x32xf32>
    %951 = arith.addf %949, %950 : vector<16x32xf32>
    %c0_365 = arith.constant 0 : index
    %c0_366 = arith.constant 0 : index
    %952 = vector.load %arg77[%c0_365, %c0_366] : memref<16x32xf32, #tpu.memory_space<vmem>>, vector<16x32xf32>
    tpu.vector_store %arg77[%c0_365, %c0_366], %951 {strides = array<i32>} : memref<16x32xf32, #tpu.memory_space<vmem>>, vector<16x32xf32>,
    return
  }
}

</mosaic_0001>

<bundles_post_ra>
// kernel: transformer_forward.1
= control target key start
LH: loop header
LB: loop body
LE: loop exit
PB: predicated region body
PF: predicated region fallthrough
CT: control target
= control target key end

     0   :  { %s11389_s6 = smov 1   ;;  %s11390_s10 = smov 2   ;;  %s13451_s0 = inlined_call_operand.smem [shape: u32[78], index: -1, kind: input, shape index: {}] }
   0x1   :  { %s11527_s5 = sld [smem:[%s13451_s0]]   ;;  %s11391_s14 = smov 3  }
   0x2   :  { %s11532_s9 = sld [smem:[%s13451_s0 + %s11389_s6]]   ;;  %s11392_s18 = smov 4  }
   0x3   :  { %s11537_s13 = sld [smem:[%s13451_s0 + %s11390_s10]]   ;;  %s11393_s22 = smov 5  }
   0x4   :  { %s11542_s17 = sld [smem:[%s13451_s0 + %s11391_s14]]   ;;  %s11394_s26 = smov 6  }
   0x5   :  { %s11547_s21 = sld [smem:[%s13451_s0 + %s11392_s18]]   ;;  %s11395_s30 = smov 7  }
   0x6   :  { %s11552_s25 = sld [smem:[%s13451_s0 + %s11393_s22]]   ;;  %s11396_s4 = smov 8  }
   0x7   :  { %13480 = sst [smem:[#allocation76_spill]] %s11527_s5  ;;  %s11397_s10 = smov 9  }
   0x8   :  { %13481 = sst [smem:[#allocation77_spill]] %s11532_s9  ;;  %s11398_s15 = smov 10  }
   0x9   :  { %s11557_s29 = sld [smem:[%s13451_s0 + %s11394_s26]]   ;;  %s11399_s20 = smov 11  }
   0xa   :  { %13482 = sst [smem:[#allocation78_spill]] %s11542_s17  ;;  %s11400_s26 = smov 12  }
   0xb   :  { %13483 = sst [smem:[#allocation79_spill]] %s11547_s21  ;;  %s11401_s1 = smov 13  }
   0xc   :  { %13484 = sst [smem:[#allocation80_spill]] %s11552_s25  ;;  %s11402_s7 = smov 14  }
   0xd   :  { %s11562_s3 = sld [smem:[%s13451_s0 + %s11395_s30]]   ;;  %s11404_s22 = smov 16  }
   0xe   :  { %s11567_s8 = sld [smem:[%s13451_s0 + %s11396_s4]]   ;;  %s11405_s28 = smov 17  }
   0xf   :  { %s11572_s14 = sld [smem:[%s13451_s0 + %s11397_s10]]  }
  0x10   :  { %s11577_s19 = sld [smem:[%s13451_s0 + %s11398_s15]]   ;;  %s11403_s15 = smov 15  }
  0x11   :  { %s11582_s24 = sld [smem:[%s13451_s0 + %s11399_s20]]  }
  0x12   :  { %s11587_s30 = sld [smem:[%s13451_s0 + %s11400_s26]]  }
  0x13   :  { %13485 = sst [smem:[#allocation81_spill]] %s11562_s3 }
  0x14   :  { %s11592_s6 = sld [smem:[%s13451_s0 + %s11401_s1]]  }
  0x15   :  { %13486 = sst [smem:[#allocation82_spill]] %s11572_s14 }
  0x16   :  { %s11597_s12 = sld [smem:[%s13451_s0 + %s11402_s7]]   ;;  %s11406_s7 = smov 18  }
  0x17   :  { %13487 = sst [smem:[#allocation83_spill]] %s11582_s24 }
  0x18   :  { %s11602_s20 = sld [smem:[%s13451_s0 + %s11403_s15]]   ;;  %s11407_s15 = smov 19  }
  0x19   :  { %s11607_s27 = sld [smem:[%s13451_s0 + %s11404_s22]]   ;;  %s11408_s22 = smov 20  }
  0x1a   :  { %13488 = sst [smem:[#allocation84_spill]] %s11592_s6 }
  0x1b   :  { %s11612_s4 = sld [smem:[%s13451_s0 + %s11405_s28]]   ;;  %s11409_s28 = smov 21  }
  0x1c   :  { %13489 = sst [smem:[#allocation85_spill]] %s11597_s12 }
  0x1d   :  { %s11617_s21 = sld [smem:[%s13451_s0 + %s11406_s7]]   ;;  %s11410_s7 = smov 22  }
  0x1e   :  { %13490 = sst [smem:[#allocation86_spill]] %s11602_s20 }
  0x1f   :  { %s11622_s17 = sld [smem:[%s13451_s0 + %s11407_s15]]   ;;  %s11411_s15 = smov 23  }
  0x20   :  { %s11627_s5 = sld [smem:[%s13451_s0 + %s11408_s22]]   ;;  %s11412_s22 = smov 24  }
  0x21   :  { %13491 = sst [smem:[#allocation87_spill]] %s11612_s4 }
  0x22   :  { %s11632_s6 = sld [smem:[%s13451_s0 + %s11409_s28]]   ;;  %s11413_s28 = smov 25  }
  0x23   :  { %13492 = sst [smem:[#allocation88_spill]] %s11617_s21 }
  0x24   :  { %s11637_s21 = sld [smem:[%s13451_s0 + %s11410_s7]]   ;;  %s11414_s7 = smov 26  }
  0x25   :  { %13493 = sst [smem:[#allocation89_spill]] %s11622_s17 }
  0x26   :  { %13494 = sst [smem:[#allocation90_spill]] %s11627_s5 }
  0x27   :  { %s11642_s17 = sld [smem:[%s13451_s0 + %s11411_s15]]   ;;  %s11415_s15 = smov 27  }
  0x28   :  { %s11647_s5 = sld [smem:[%s13451_s0 + %s11412_s22]]   ;;  %s11416_s22 = smov 28  }
  0x29   :  { %s11652_s12 = sld [smem:[%s13451_s0 + %s11413_s28]]   ;;  %s11417_s28 = smov 29  }
  0x2a   :  { %13495 = sst [smem:[#allocation91_spill]] %s11637_s21 }
  0x2b   :  { %s11657_s21 = sld [smem:[%s13451_s0 + %s11414_s7]]   ;;  %s11418_s7 = smov 30  }
  0x2c   :  { %s11672_s4 = sld [smem:[%s13451_s0 + %s11417_s28]]   ;;  %s11421_s28 = smov 33  }
  0x2d   :  { %13496 = sst [smem:[#allocation92_spill]] %s11642_s17 }
  0x2e   :  { %13497 = sst [smem:[#allocation93_spill]] %s11647_s5 }
  0x2f   :  { %s11662_s17 = sld [smem:[%s13451_s0 + %s11415_s15]]   ;;  %s11419_s15 = smov 31  }
  0x30   :  { %s11667_s5 = sld [smem:[%s13451_s0 + %s11416_s22]]   ;;  %s11420_s22 = smov 32  }
  0x31   :  { %13498 = sst [smem:[#allocation94_spill]] %s11657_s21 }
  0x32   :  { %s11677_s21 = sld [smem:[%s13451_s0 + %s11418_s7]]   ;;  %s11422_s7 = smov 34  }
  0x33   :  { %s11682_s20 = sld [smem:[%s13451_s0 + %s11419_s15]]   ;;  %s11423_s15 = smov 35  }
  0x34   :  { %s11692_s24 = sld [smem:[%s13451_s0 + %s11421_s28]]   ;;  %s11425_s28 = smov 37  }
  0x36   :  { %13499 = sst [smem:[#allocation95_spill]] %s11667_s5 }
  0x37   :  { %s11687_s5 = sld [smem:[%s13451_s0 + %s11420_s22]]   ;;  %s11424_s22 = smov 36  }
  0x38   :  { %13500 = sst [smem:[#allocation96_spill]] %s11677_s21 }
  0x39   :  { %13501 = sst [smem:[#allocation97_spill]] %s11682_s20 }
  0x3a   :  { %13503 = sst [smem:[#allocation99_spill]] %s11692_s24 }
  0x3b   :  { %s11697_s21 = sld [smem:[%s13451_s0 + %s11422_s7]]   ;;  %s11426_s7 = smov 38  }
  0x3c   :  { %s11702_s20 = sld [smem:[%s13451_s0 + %s11423_s15]]   ;;  %s11427_s15 = smov 39  }
  0x3d   :  { %13502 = sst [smem:[#allocation98_spill]] %s11687_s5 }
  0x3e   :  { %s11707_s5 = sld [smem:[%s13451_s0 + %s11424_s22]]   ;;  %s11428_s22 = smov 40  }
  0x3f   :  { %s11712_s24 = sld [smem:[%s13451_s0 + %s11425_s28]]   ;;  %s11429_s28 = smov 41  }
  0x41   :  { %13504 = sst [smem:[#allocation100_spill]] %s11697_s21 }
  0x42   :  { %13505 = sst [smem:[#allocation101_spill]] %s11702_s20 }
  0x43   :  { %s11717_s21 = sld [smem:[%s13451_s0 + %s11426_s7]]   ;;  %s11430_s7 = smov 42  }
  0x44   :  { %13506 = sst [smem:[#allocation102_spill]] %s11707_s5 }
  0x45   :  { %13507 = sst [smem:[#allocation103_spill]] %s11712_s24 }
  0x46   :  { %s11722_s20 = sld [smem:[%s13451_s0 + %s11427_s15]]   ;;  %s11431_s15 = smov 43  }
  0x47   :  { %s11727_s5 = sld [smem:[%s13451_s0 + %s11428_s22]]   ;;  %s11432_s22 = smov 44  }
  0x48   :  { %s11732_s24 = sld [smem:[%s13451_s0 + %s11429_s28]]   ;;  %s11433_s28 = smov 45  }
  0x49   :  { %13508 = sst [smem:[#allocation104_spill]] %s11717_s21 }
  0x4a   :  { %s11737_s21 = sld [smem:[%s13451_s0 + %s11430_s7]]   ;;  %s11434_s7 = smov 46  }
  0x4c   :  { %13509 = sst [smem:[#allocation105_spill]] %s11722_s20 }
  0x4d   :  { %13510 = sst [smem:[#allocation106_spill]] %s11727_s5 }
  0x4e   :  { %13511 = sst [smem:[#allocation107_spill]] %s11732_s24 }
  0x4f   :  { %s11742_s20 = sld [smem:[%s13451_s0 + %s11431_s15]]   ;;  %s11435_s15 = smov 47  }
  0x50   :  { %13512 = sst [smem:[#allocation108_spill]] %s11737_s21 }
  0x51   :  { %s11747_s5 = sld [smem:[%s13451_s0 + %s11432_s22]]   ;;  %s11436_s22 = smov 48  }
  0x52   :  { %s11752_s24 = sld [smem:[%s13451_s0 + %s11433_s28]]   ;;  %s11437_s28 = smov 49  }
  0x53   :  { %s11757_s21 = sld [smem:[%s13451_s0 + %s11434_s7]]   ;;  %s11438_s7 = smov 50  }
  0x55   :  { %13513 = sst [smem:[#allocation109_spill]] %s11742_s20 }
  0x56   :  { %s11762_s20 = sld [smem:[%s13451_s0 + %s11435_s15]]   ;;  %s11439_s15 = smov 51  }
  0x57   :  { %13514 = sst [smem:[#allocation110_spill]] %s11747_s5 }
  0x58   :  { %13515 = sst [smem:[#allocation111_spill]] %s11752_s24 }
  0x59   :  { %13516 = sst [smem:[#allocation112_spill]] %s11757_s21 }
  0x5a   :  { %s11767_s5 = sld [smem:[%s13451_s0 + %s11436_s22]]   ;;  %s11440_s22 = smov 52  }
  0x5b   :  { %s11772_s24 = sld [smem:[%s13451_s0 + %s11437_s28]]   ;;  %s11441_s28 = smov 53  }
  0x5c   :  { %13517 = sst [smem:[#allocation113_spill]] %s11762_s20 }
  0x5d   :  { %s11777_s21 = sld [smem:[%s13451_s0 + %s11438_s7]]   ;;  %s11442_s7 = smov 54  }
  0x5e   :  { %s11782_s20 = sld [smem:[%s13451_s0 + %s11439_s15]]   ;;  %s11443_s15 = smov 55  }
  0x5f   :  { %s11797_s14 = sld [smem:[%s13451_s0 + %s11442_s7]]   ;;  %s11446_s7 = smov 58  }
  0x60   :  { %13518 = sst [smem:[#allocation114_spill]] %s11767_s5 }
  0x61   :  { %13519 = sst [smem:[#allocation115_spill]] %s11772_s24 }
  0x62   :  { %s11787_s5 = sld [smem:[%s13451_s0 + %s11440_s22]]   ;;  %s11444_s22 = smov 56  }
  0x63   :  { %s11792_s24 = sld [smem:[%s13451_s0 + %s11441_s28]]   ;;  %s11445_s28 = smov 57  }
  0x64   :  { %13520 = sst [smem:[#allocation116_spill]] %s11782_s20 }
  0x65   :  { %s11802_s20 = sld [smem:[%s13451_s0 + %s11443_s15]]   ;;  %s11447_s15 = smov 59  }
  0x66   :  { %s11807_s3 = sld [smem:[%s13451_s0 + %s11444_s22]]   ;;  %s11448_s22 = smov 60  }
  0x67   :  { %s11817_s25 = sld [smem:[%s13451_s0 + %s11446_s7]]   ;;  %s11450_s7 = smov 62  }
  0x68   :  { %s11837_s9 = sld [smem:[%s13451_s0 + %s11450_s7]]   ;;  %s11454_s7 = smov 66  }
  0x69   :  { %13521 = sst [smem:[#allocation117_spill]] %s11792_s24 }
  0x6a   :  { %s11812_s24 = sld [smem:[%s13451_s0 + %s11445_s28]]   ;;  %s11449_s28 = smov 61  }
  0x6b   :  { %13522 = sst [smem:[#allocation118_spill]] %s11802_s20 }
  0x6c   :  { %13523 = sst [smem:[#allocation119_spill]] %s11807_s3 }
  0x6d   :  { %s11822_s20 = sld [smem:[%s13451_s0 + %s11447_s15]]   ;;  %s11451_s15 = smov 63  }
  0x6e   :  { %s11827_s3 = sld [smem:[%s13451_s0 + %s11448_s22]]   ;;  %s11452_s22 = smov 64  }
  0x6f   :  { %13528 = sst [smem:[#allocation124_spill]] %s11837_s9 }
  0x70   :  { %13524 = sst [smem:[#allocation120_spill]] %s11812_s24 }
  0x71   :  { %s11832_s24 = sld [smem:[%s13451_s0 + %s11449_s28]]   ;;  %s11453_s28 = smov 65  }
  0x72   :  { %s11857_s9 = sld [smem:[%s13451_s0 + %s11454_s7]]   ;;  %s11458_s7 = smov 70  }
  0x73   :  { %13525 = sst [smem:[#allocation121_spill]] %s11822_s20 }
  0x74   :  { %13526 = sst [smem:[#allocation122_spill]] %s11827_s3 }
  0x75   :  { %s11842_s20 = sld [smem:[%s13451_s0 + %s11451_s15]]   ;;  %s11455_s15 = smov 67  }
  0x76   :  { %s11847_s3 = sld [smem:[%s13451_s0 + %s11452_s22]]   ;;  %s11456_s22 = smov 68  }
  0x77   :  { %13527 = sst [smem:[#allocation123_spill]] %s11832_s24 }
  0x78   :  { %s11852_s24 = sld [smem:[%s13451_s0 + %s11453_s28]]   ;;  %s11457_s28 = smov 69  }
  0x79   :  { %13532 = sst [smem:[#allocation128_spill]] %s11857_s9 }
  0x7a   :  { %s11877_s9 = sld [smem:[%s13451_s0 + %s11458_s7]]   ;;  %s11462_s7 = smov 74  }
  0x7b   :  { %13529 = sst [smem:[#allocation125_spill]] %s11842_s20 }
  0x7c   :  { %13530 = sst [smem:[#allocation126_spill]] %s11847_s3 }
  0x7d   :  { %s11862_s20 = sld [smem:[%s13451_s0 + %s11455_s15]]   ;;  %s11459_s15 = smov 71  }
  0x7e   :  { %13531 = sst [smem:[#allocation127_spill]] %s11852_s24 }
  0x7f   :  { %s11867_s3 = sld [smem:[%s13451_s0 + %s11456_s22]]   ;;  %s11460_s22 = smov 72  }
  0x80   :  { %s11872_s24 = sld [smem:[%s13451_s0 + %s11457_s28]]   ;;  %s11461_s28 = smov 73  }
  0x81   :  { %13536 = sst [smem:[#allocation132_spill]] %s11877_s9 }
  0x82   :  { %s11897_s9 = sld [smem:[%s13451_s0 + %s11462_s7]]  }
  0x83   :  { %13533 = sst [smem:[#allocation129_spill]] %s11862_s20 }
  0x84   :  { %s11882_s20 = sld [smem:[%s13451_s0 + %s11459_s15]]   ;;  %s11463_s15 = smov 75  }
  0x85   :  { %13534 = sst [smem:[#allocation130_spill]] %s11867_s3 }
  0x86   :  { %13535 = sst [smem:[#allocation131_spill]] %s11872_s24 }
  0x87   :  { %s11887_s3 = sld [smem:[%s13451_s0 + %s11460_s22]]   ;;  %s11464_s22 = smov 76  }
  0x88   :  { %s11892_s24 = sld [smem:[%s13451_s0 + %s11461_s28]]   ;;  %s11465_s28 = smov 77  }
  0x8a   :  { %13537 = sst [smem:[#allocation133_spill]] %s11882_s20 }
  0x8b   :  { %s11902_s20 = sld [smem:[%s13451_s0 + %s11463_s15]]  }
  0x8d   :  { %13538 = sst [smem:[#allocation134_spill]] %s11887_s3 }
  0x8e   :  { %13539 = sst [smem:[#allocation135_spill]] %s11892_s24 }
  0x8f   :  { %s11907_s3 = sld [smem:[%s13451_s0 + %s11464_s22]]  }
  0x90   :  { %s11912_s24 = sld [smem:[%s13451_s0 + %s11465_s28]]  }
  0x91   :  { %160 = vsyncpa [#allocation3], 0 }
  0x92   :  { %161 = vsyncpa [#allocation5], 0 }
  0x93   :  { %162 = vsyncpa [#allocation8], 0 }
  0x94   :  { %163 = vsyncpa [#allocation11], 0 }
  0x95   :  { %164 = vsyncpa [#allocation14], 0 }
  0x96   :  { %165 = vsyncpa [#allocation17], 0 }
  0x97   :  { %166 = vsyncpa [#allocation20], 0 }
  0x98   :  { %167 = vsyncpa [#allocation23], 0 }
  0x99   :  { %168 = vsyncpa [#allocation26], 0 }
  0x9a   :  { %169 = vsyncpa [#allocation29], 0 }
  0x9b   :  { %170 = vsyncpa [#allocation32], 0 }
  0x9c   :  { %171 = vsyncpa [#allocation35], 0 }
  0x9d   :  { %172 = vsyncpa [#allocation38], 0 }
  0x9e   :  { %173 = vsyncpa [#allocation41], 0 }
  0x9f   :  { %174 = vsyncpa [#allocation44], 0 }
  0xa0   :  { %175 = vsyncpa [#allocation47], 0 }
  0xa1   :  { %176 = vsyncpa [#allocation50], 0 }
  0xa2   :  { %177 = vsyncpa [#allocation53], 0 }
  0xa3   :  { %178 = vsyncpa [#allocation56], 0  ;;  %s11466_s0 = smov [#allocation4]   ;;  %s11467_s10 = smov [#allocation7]  }
  0xa4   :  { %s197_s7 = sshll.u32 %s11466_s0, 4  ;;  %s221_s11 = sshll.u32 %s11467_s10, 4  ;;  %s198_s7 = int_to_ptr.vmem [resolvable:$true] %s197_s7  ;;  %s222_s11 = int_to_ptr.vmem [resolvable:$true] %s221_s11 }
  0xa5   :  { %s10639_s15 = scalar_lea.vmem %s198_s7, 16  ;;  %s10643_s16 = scalar_lea.vmem %s198_s7, 32 }
  0xa6   :  { %p10640_p0 = scmp.ne.s32.totalorder %s198_s7, %s10639_s15  ;;  %p10644_p1 = scmp.lt.s32.totalorder %s198_s7, %s198_s7 }
  0xa7   :  { %p10645_p2 = scmp.lt.s32.totalorder %s10643_s16, %s10639_s15 }
  0xa9   :  { %p10646_p3 = por %p10645_p2, %p10644_p1 }
  0xab   :  { %p10647_p4 = pnand %p10646_p3, %p10640_p0 }
  0xad   :  { %10650 = shalt.err (!%p10647_p4)
}
  0xae   :  { %200 = dma.hbm_to_vmem [thread:$0]  %s11537_s13, 16, %s198_s7, [#allocation5]  }
  0xaf   :  { %s10659_s18 = scalar_lea.vmem %s222_s11, 16  ;;  %s10663_s22 = scalar_lea.vmem %s222_s11, 32 }
  0xb0   :  { %p10660_p5 = scmp.ne.s32.totalorder %s222_s11, %s10659_s18  ;;  %p10664_p6 = scmp.lt.s32.totalorder %s222_s11, %s222_s11 }
  0xb1   :  { %p10665_p7 = scmp.lt.s32.totalorder %s10663_s22, %s10659_s18 }
  0xb3   :  { %p10666_p8 = por %p10665_p7, %p10664_p6 }
  0xb5   :  { %p10667_p9 = pnand %p10666_p8, %p10660_p5 }
  0xb7   :  { %10670 = shalt.err (!%p10667_p9)
}
  0xb8   :  { %224 = dma.hbm_to_vmem [thread:$0]  %s11557_s29, 16, %s222_s11, [#allocation8]  }
  0xb9   :  { %s11468_s23 = smov [#allocation10]   ;;  %s11469_s28 = smov [#allocation13]  }
  0xba   :  { %s241_s26 = sshll.u32 %s11468_s23, 4  ;;  %s261_s1 = sshll.u32 %s11469_s28, 4  ;;  %s242_s26 = int_to_ptr.vmem [resolvable:$true] %s241_s26  ;;  %s262_s1 = int_to_ptr.vmem [resolvable:$true] %s261_s1 }
  0xbb   :  { %s10679_s2 = scalar_lea.vmem %s242_s26, 16  ;;  %s10683_s0 = scalar_lea.vmem %s242_s26, 32 }
  0xbc   :  { %p10680_p10 = scmp.ne.s32.totalorder %s242_s26, %s10679_s2  ;;  %p10684_p11 = scmp.lt.s32.totalorder %s242_s26, %s242_s26 }
  0xbd   :  { %p10685_p12 = scmp.lt.s32.totalorder %s10683_s0, %s10679_s2 }
  0xbf   :  { %p10686_p13 = por %p10685_p12, %p10684_p11 }
  0xc1   :  { %p10687_p0 = pnand %p10686_p13, %p10680_p10 }
  0xc3   :  { %10690 = shalt.err (!%p10687_p0)
}
  0xc4   :  { %244 = dma.hbm_to_vmem [thread:$0]  %s11567_s8, 16, %s242_s26, [#allocation11]  }
  0xc5   :  { %s10699_s13 = scalar_lea.vmem %s262_s1, 16  ;;  %s10703_s7 = scalar_lea.vmem %s262_s1, 32 }
  0xc6   :  { %p10700_p1 = scmp.ne.s32.totalorder %s262_s1, %s10699_s13  ;;  %p10704_p2 = scmp.lt.s32.totalorder %s262_s1, %s262_s1 }
  0xc7   :  { %p10705_p3 = scmp.lt.s32.totalorder %s10703_s7, %s10699_s13 }
  0xc9   :  { %p10706_p4 = por %p10705_p3, %p10704_p2 }
  0xcb   :  { %p10707_p5 = pnand %p10706_p4, %p10700_p1 }
  0xcd   :  { %10710 = shalt.err (!%p10707_p5)
}
  0xce   :  { %264 = dma.hbm_to_vmem [thread:$0]  %s11577_s19, 16, %s262_s1, [#allocation14]  }
  0xcf   :  { %s11470_s29 = smov [#allocation16]   ;;  %s11471_s11 = smov [#allocation19]  }
  0xd0   :  { %s281_s10 = sshll.u32 %s11470_s29, 4  ;;  %s305_s15 = sshll.u32 %s11471_s11, 4  ;;  %s282_s10 = int_to_ptr.vmem [resolvable:$true] %s281_s10  ;;  %s306_s15 = int_to_ptr.vmem [resolvable:$true] %s305_s15 }
  0xd1   :  { %s10719_s16 = scalar_lea.vmem %s282_s10, 16  ;;  %s10723_s18 = scalar_lea.vmem %s282_s10, 32 }
  0xd2   :  { %p10720_p6 = scmp.ne.s32.totalorder %s282_s10, %s10719_s16  ;;  %p10724_p7 = scmp.lt.s32.totalorder %s282_s10, %s282_s10 }
  0xd3   :  { %p10725_p8 = scmp.lt.s32.totalorder %s10723_s18, %s10719_s16 }
  0xd5   :  { %p10726_p9 = por %p10725_p8, %p10724_p7 }
  0xd7   :  { %p10727_p10 = pnand %p10726_p9, %p10720_p6 }
  0xd9   :  { %10730 = shalt.err (!%p10727_p10)
}
  0xda   :  { %284 = dma.hbm_to_vmem [thread:$0]  %s11587_s30, 16, %s282_s10, [#allocation17]  }
  0xdb   :  { %s10739_s8 = scalar_lea.vmem %s306_s15, 16  ;;  %s10743_s22 = scalar_lea.vmem %s306_s15, 32 }
  0xdc   :  { %p10740_p11 = scmp.ne.s32.totalorder %s306_s15, %s10739_s8  ;;  %p10744_p12 = scmp.lt.s32.totalorder %s306_s15, %s306_s15 }
  0xdd   :  { %p10745_p13 = scmp.lt.s32.totalorder %s10743_s22, %s10739_s8 }
  0xdf   :  { %p10746_p0 = por %p10745_p13, %p10744_p12 }
  0xe1   :  { %p10747_p1 = pnand %p10746_p0, %p10740_p11 }
  0xe3   :  { %10750 = shalt.err (!%p10747_p1)
}
  0xe4   :  { %308 = dma.hbm_to_vmem [thread:$0]  %s11607_s27, 16, %s306_s15, [#allocation20]  }
  0xe5   :  { %s11472_s19 = smov [#allocation22]   ;;  %s11473_s26 = smov [#allocation25]  }
  0xe6   :  { %s331_s23 = sshll.u32 %s11472_s19, 4  ;;  %s355_s28 = sshll.u32 %s11473_s26, 4  ;;  %s332_s23 = int_to_ptr.vmem [resolvable:$true] %s331_s23  ;;  %s356_s28 = int_to_ptr.vmem [resolvable:$true] %s355_s28 }
  0xe7   :  { %s10759_s1 = scalar_lea.vmem %s332_s23, 16  ;;  %s10763_s2 = scalar_lea.vmem %s332_s23, 32 }
  0xe8   :  { %p10760_p2 = scmp.ne.s32.totalorder %s332_s23, %s10759_s1  ;;  %p10764_p3 = scmp.lt.s32.totalorder %s332_s23, %s332_s23 }
  0xe9   :  { %p10765_p4 = scmp.lt.s32.totalorder %s10763_s2, %s10759_s1 }
  0xeb   :  { %p10766_p5 = por %p10765_p4, %p10764_p3 }
  0xed   :  { %p10767_p6 = pnand %p10766_p5, %p10760_p2 }
  0xef   :  { %10770 = shalt.err (!%p10767_p6)
}
  0xf0   :  { %334 = dma.hbm_to_vmem [thread:$0]  %s11632_s6, 16, %s332_s23, [#allocation23]  }
  0xf1   :  { %s10779_s30 = scalar_lea.vmem %s356_s28, 16  ;;  %s10783_s0 = scalar_lea.vmem %s356_s28, 32 }
  0xf2   :  { %p10780_p7 = scmp.ne.s32.totalorder %s356_s28, %s10779_s30  ;;  %p10784_p8 = scmp.lt.s32.totalorder %s356_s28, %s356_s28 }
  0xf3   :  { %p10785_p9 = scmp.lt.s32.totalorder %s10783_s0, %s10779_s30 }
  0xf5   :  { %p10786_p10 = por %p10785_p9, %p10784_p8 }
  0xf7   :  { %p10787_p11 = pnand %p10786_p10, %p10780_p7 }
  0xf9   :  { %10790 = shalt.err (!%p10787_p11)
}
  0xfa   :  { %358 = dma.hbm_to_vmem [thread:$0]  %s11652_s12, 16, %s356_s28, [#allocation26]  }
  0xfb   :  { %s11474_s27 = smov [#allocation28]   ;;  %s11475_s7 = smov [#allocation31]  }
  0xfc   :  { %s375_s13 = sshll.u32 %s11474_s27, 4  ;;  %s395_s29 = sshll.u32 %s11475_s7, 4  ;;  %s376_s13 = int_to_ptr.vmem [resolvable:$true] %s375_s13  ;;  %s396_s29 = int_to_ptr.vmem [resolvable:$true] %s395_s29 }
  0xfd   :  { %s10799_s10 = scalar_lea.vmem %s376_s13, 16  ;;  %s10803_s11 = scalar_lea.vmem %s376_s13, 32 }
  0xfe   :  { %p10800_p12 = scmp.ne.s32.totalorder %s376_s13, %s10799_s10  ;;  %p10804_p13 = scmp.lt.s32.totalorder %s376_s13, %s376_s13 }
  0xff   :  { %p10805_p0 = scmp.lt.s32.totalorder %s10803_s11, %s10799_s10 }
 0x101   :  { %p10806_p1 = por %p10805_p0, %p10804_p13 }
 0x103   :  { %p10807_p2 = pnand %p10806_p1, %p10800_p12 }
 0x105   :  { %10810 = shalt.err (!%p10807_p2)
}
 0x106   :  { %378 = dma.hbm_to_vmem [thread:$0]  %s11662_s17, 16, %s376_s13, [#allocation29]  }
 0x107   :  { %s10819_s6 = scalar_lea.vmem %s396_s29, 16  ;;  %s10823_s15 = scalar_lea.vmem %s396_s29, 32 }
 0x108   :  { %p10820_p3 = scmp.ne.s32.totalorder %s396_s29, %s10819_s6  ;;  %p10824_p4 = scmp.lt.s32.totalorder %s396_s29, %s396_s29 }
 0x109   :  { %p10825_p5 = scmp.lt.s32.totalorder %s10823_s15, %s10819_s6 }
 0x10b   :  { %p10826_p6 = por %p10825_p5, %p10824_p4 }
 0x10d   :  { %p10827_p7 = pnand %p10826_p6, %p10820_p3 }
 0x10f   :  { %10830 = shalt.err (!%p10827_p7)
}
 0x110   :  { %398 = dma.hbm_to_vmem [thread:$0]  %s11672_s4, 16, %s396_s29, [#allocation32]  }
 0x111   :  { %s11476_s12 = smov [#allocation34]   ;;  %s11477_s18 = smov [#allocation37]  }
 0x112   :  { %s453_s16 = sshll.u32 %s11476_s12, 4  ;;  %s473_s8 = sshll.u32 %s11477_s18, 4  ;;  %s454_s16 = int_to_ptr.vmem [resolvable:$true] %s453_s16  ;;  %s474_s8 = int_to_ptr.vmem [resolvable:$true] %s473_s8 }
 0x113   :  { %s10839_s22 = scalar_lea.vmem %s454_s16, 16  ;;  %s10843_s19 = scalar_lea.vmem %s454_s16, 32 }
 0x114   :  { %p10840_p8 = scmp.ne.s32.totalorder %s454_s16, %s10839_s22  ;;  %p10844_p9 = scmp.lt.s32.totalorder %s454_s16, %s454_s16 }
 0x115   :  { %p10845_p10 = scmp.lt.s32.totalorder %s10843_s19, %s10839_s22 }
 0x117   :  { %p10846_p11 = por %p10845_p10, %p10844_p9 }
 0x119   :  { %p10847_p12 = pnand %p10846_p11, %p10840_p8 }
 0x11b   :  { %10850 = shalt.err (!%p10847_p12)
}
 0x11c   :  { %456 = dma.hbm_to_vmem [thread:$0]  %s11777_s21, 16, %s454_s16, [#allocation35]  }
 0x11d   :  { %s10859_s17 = scalar_lea.vmem %s474_s8, 16  ;;  %s10863_s23 = scalar_lea.vmem %s474_s8, 32 }
 0x11e   :  { %p10860_p13 = scmp.ne.s32.totalorder %s474_s8, %s10859_s17  ;;  %p10864_p0 = scmp.lt.s32.totalorder %s474_s8, %s474_s8 }
 0x11f   :  { %p10865_p1 = scmp.lt.s32.totalorder %s10863_s23, %s10859_s17 }
 0x121   :  { %p10866_p2 = por %p10865_p1, %p10864_p0 }
 0x123   :  { %p10867_p3 = pnand %p10866_p2, %p10860_p13 }
 0x125   :  { %10870 = shalt.err (!%p10867_p3)
}
 0x126   :  { %476 = dma.hbm_to_vmem [thread:$0]  %s11787_s5, 16, %s474_s8, [#allocation38]  }
 0x127   :  { %s11478_s4 = smov [#allocation40]   ;;  %s11479_s28 = smov [#allocation43]  }
 0x128   :  { %s493_s26 = sshll.u32 %s11478_s4, 4  ;;  %s517_s1 = sshll.u32 %s11479_s28, 4  ;;  %s494_s26 = int_to_ptr.vmem [resolvable:$true] %s493_s26  ;;  %s518_s1 = int_to_ptr.vmem [resolvable:$true] %s517_s1 }
 0x129   :  { %s10879_s2 = scalar_lea.vmem %s494_s26, 16  ;;  %s10883_s30 = scalar_lea.vmem %s494_s26, 32 }
 0x12a   :  { %p10880_p4 = scmp.ne.s32.totalorder %s494_s26, %s10879_s2  ;;  %p10884_p5 = scmp.lt.s32.totalorder %s494_s26, %s494_s26 }
 0x12b   :  { %p10885_p6 = scmp.lt.s32.totalorder %s10883_s30, %s10879_s2 }
 0x12d   :  { %p10886_p7 = por %p10885_p6, %p10884_p5 }
 0x12f   :  { %p10887_p8 = pnand %p10886_p7, %p10880_p4 }
 0x131   :  { %10890 = shalt.err (!%p10887_p8)
}
 0x132   :  { %496 = dma.hbm_to_vmem [thread:$0]  %s11797_s14, 16, %s494_s26, [#allocation41]  }
 0x133   :  { %s10899_s21 = scalar_lea.vmem %s518_s1, 16  ;;  %s10903_s0 = scalar_lea.vmem %s518_s1, 32 }
 0x134   :  { %p10900_p9 = scmp.ne.s32.totalorder %s518_s1, %s10899_s21  ;;  %p10904_p10 = scmp.lt.s32.totalorder %s518_s1, %s518_s1 }
 0x135   :  { %p10905_p11 = scmp.lt.s32.totalorder %s10903_s0, %s10899_s21 }
 0x137   :  { %p10906_p12 = por %p10905_p11, %p10904_p10 }
 0x139   :  { %p10907_p13 = pnand %p10906_p12, %p10900_p9 }
 0x13b   :  { %10910 = shalt.err (!%p10907_p13)
}
 0x13c   :  { %520 = dma.hbm_to_vmem [thread:$0]  %s11817_s25, 16, %s518_s1, [#allocation44]  }
 0x13d   :  { %s11480_s5 = smov [#allocation46]   ;;  %s11481_s13 = smov [#allocation49]  }
 0x13e   :  { %s541_s27 = sshll.u32 %s11480_s5, 4  ;;  %s561_s7 = sshll.u32 %s11481_s13, 4  ;;  %s542_s27 = int_to_ptr.vmem [resolvable:$true] %s541_s27  ;;  %s562_s7 = int_to_ptr.vmem [resolvable:$true] %s561_s7 }
 0x13f   :  { %s10919_s29 = scalar_lea.vmem %s542_s27, 16  ;;  %s10923_s10 = scalar_lea.vmem %s542_s27, 32 }
 0x140   :  { %p10920_p0 = scmp.ne.s32.totalorder %s542_s27, %s10919_s29  ;;  %p10924_p1 = scmp.lt.s32.totalorder %s542_s27, %s542_s27 }
 0x141   :  { %p10925_p2 = scmp.lt.s32.totalorder %s10923_s10, %s10919_s29 }
 0x143   :  { %p10926_p3 = por %p10925_p2, %p10924_p1 }
 0x145   :  { %p10927_p4 = pnand %p10926_p3, %p10920_p0 }
 0x147   :  { %10930 = shalt.err (!%p10927_p4)
}
 0x148   :  { %s13540_s14 = sld [smem:[#allocation124_spill]]  ;;  %s10939_s11 = scalar_lea.vmem %s562_s7, 16 }
 0x149   :  { %p10940_p5 = scmp.ne.s32.totalorder %s562_s7, %s10939_s11  ;;  %s10943_s6 = scalar_lea.vmem %s562_s7, 32 }
 0x14a   :  { %p10944_p6 = scmp.lt.s32.totalorder %s562_s7, %s562_s7  ;;  %p10945_p7 = scmp.lt.s32.totalorder %s10943_s6, %s10939_s11 }
 0x14c   :  { %p10946_p8 = por %p10945_p7, %p10944_p6 }
 0x14e   :  { %544 = dma.hbm_to_vmem [thread:$0]  %s13540_s14, 16, %s542_s27, [#allocation47]  }
 0x14f   :  { %p10947_p9 = pnand %p10946_p8, %p10940_p5 }
 0x151   :  { %10950 = shalt.err (!%p10947_p9)
}
 0x152   :  { %s13541_s25 = sld [smem:[#allocation126_spill]]  ;;  %s11482_s15 = smov [#allocation52]  }
 0x153   :  { %s581_s12 = sshll.u32 %s11482_s15, 4  ;;  %s11483_s16 = smov [#allocation2]   ;;  %s582_s12 = int_to_ptr.vmem [resolvable:$true] %s581_s12 }
 0x154   :  { %s187_s18 = sshll.u32 %s11483_s16, 4  ;;  %s10959_s8 = scalar_lea.vmem %s582_s12, 16  ;;  %s188_s18 = int_to_ptr.vmem [resolvable:$true] %s187_s18 }
 0x155   :  { %p10960_p10 = scmp.ne.s32.totalorder %s582_s12, %s10959_s8  ;;  %s10963_s22 = scalar_lea.vmem %s582_s12, 32 }
 0x156   :  { %p10964_p11 = scmp.lt.s32.totalorder %s582_s12, %s582_s12  ;;  %p10965_p12 = scmp.lt.s32.totalorder %s10963_s22, %s10959_s8 }
 0x158   :  { %564 = dma.hbm_to_vmem [thread:$0]  %s13541_s25, 16, %s562_s7, [#allocation50]  }
 0x159   :  { %p10966_p13 = por %p10965_p12, %p10964_p11 }
 0x15b   :  { %p10967_p0 = pnand %p10966_p13, %p10960_p10 }
 0x15d   :  { %10970 = shalt.err (!%p10967_p0)
}
 0x15e   :  { %s13542_s19 = sld [smem:[#allocation128_spill]]  ;;  %s10979_s17 = scalar_lea.vmem %s188_s18, 16 }
 0x15f   :  { %p10980_p1 = scmp.ne.s32.totalorder %s188_s18, %s10979_s17  ;;  %s10983_s23 = scalar_lea.vmem %s188_s18, 32 }
 0x160   :  { %p10984_p2 = scmp.lt.s32.totalorder %s188_s18, %s188_s18  ;;  %p10985_p3 = scmp.lt.s32.totalorder %s10983_s23, %s10979_s17 }
 0x162   :  { %p10986_p4 = por %p10985_p3, %p10984_p2 }
 0x164   :  { %584 = dma.hbm_to_vmem [thread:$0]  %s13542_s19, 16, %s582_s12, [#allocation53]  }
 0x165   :  { %p10987_p5 = pnand %p10986_p4, %p10980_p1 }
 0x167   :  { %10990 = shalt.err (!%p10987_p5)
}
 0x168   :  { %s13543_s4 = sld [smem:[#allocation77_spill]]  ;;  %s11484_s26 = smov [#allocation6]  }
 0x169   :  { %s211_s28 = sshll.u32 %s11484_s26, 4  ;;  %s11485_s1 = smov [#allocation9]   ;;  %s212_s28 = int_to_ptr.vmem [resolvable:$true] %s211_s28 }
 0x16a   :  { %s231_s2 = sshll.u32 %s11485_s1, 4  ;;  %s10999_s30 = scalar_lea.vmem %s212_s28, 16  ;;  %s232_s2 = int_to_ptr.vmem [resolvable:$true] %s231_s2 }
 0x16b   :  { %p11000_p6 = scmp.ne.s32.totalorder %s212_s28, %s10999_s30  ;;  %s11003_s21 = scalar_lea.vmem %s212_s28, 32 }
 0x16c   :  { %p11004_p7 = scmp.lt.s32.totalorder %s212_s28, %s212_s28  ;;  %p11005_p8 = scmp.lt.s32.totalorder %s11003_s21, %s10999_s30 }
 0x16e   :  { %190 = dma.hbm_to_vmem [thread:$0]  %s13543_s4, 16, %s188_s18, [#allocation3]  }
 0x16f   :  { %p11006_p9 = por %p11005_p8, %p11004_p7 }
 0x171   :  { %p11007_p10 = pnand %p11006_p9, %p11000_p6 }
 0x173   :  { %11010 = shalt.err (!%p11007_p10)
}
 0x174   :  { %s13544_s0 = sld [smem:[#allocation80_spill]]  ;;  %s11019_s5 = scalar_lea.vmem %s232_s2, 16 }
 0x175   :  { %p11020_p11 = scmp.ne.s32.totalorder %s232_s2, %s11019_s5  ;;  %s11023_s27 = scalar_lea.vmem %s232_s2, 32 }
 0x176   :  { %p11024_p12 = scmp.lt.s32.totalorder %s232_s2, %s232_s2  ;;  %p11025_p13 = scmp.lt.s32.totalorder %s11023_s27, %s11019_s5 }
 0x178   :  { %p11026_p0 = por %p11025_p13, %p11024_p12 }
 0x17a   :  { %214 = dma.hbm_to_vmem [thread:$0]  %s13544_s0, 16, %s212_s28, [#allocation5]  }
 0x17b   :  { %p11027_p1 = pnand %p11026_p0, %p11020_p11 }
 0x17d   :  { %11030 = shalt.err (!%p11027_p1)
}
 0x17e   :  { %s13545_s13 = sld [smem:[#allocation81_spill]]  ;;  %s11486_s7 = smov [#allocation12]  }
 0x17f   :  { %s251_s29 = sshll.u32 %s11486_s7, 4  ;;  %s11487_s10 = smov [#allocation15]   ;;  %s252_s29 = int_to_ptr.vmem [resolvable:$true] %s251_s29 }
 0x180   :  { %s271_s14 = sshll.u32 %s11487_s10, 4  ;;  %s11039_s11 = scalar_lea.vmem %s252_s29, 16  ;;  %s272_s14 = int_to_ptr.vmem [resolvable:$true] %s271_s14 }
 0x181   :  { %p11040_p2 = scmp.ne.s32.totalorder %s252_s29, %s11039_s11  ;;  %s11043_s6 = scalar_lea.vmem %s252_s29, 32 }
 0x182   :  { %p11044_p3 = scmp.lt.s32.totalorder %s252_s29, %s252_s29  ;;  %p11045_p4 = scmp.lt.s32.totalorder %s11043_s6, %s11039_s11 }
 0x184   :  { %234 = dma.hbm_to_vmem [thread:$0]  %s13545_s13, 16, %s232_s2, [#allocation8]  }
 0x185   :  { %p11046_p5 = por %p11045_p4, %p11044_p3 }
 0x187   :  { %p11047_p6 = pnand %p11046_p5, %p11040_p2 }
 0x189   :  { %11050 = shalt.err (!%p11047_p6)
}
 0x18a   :  { %s13546_s25 = sld [smem:[#allocation82_spill]]  ;;  %s11059_s15 = scalar_lea.vmem %s272_s14, 16 }
 0x18b   :  { %p11060_p7 = scmp.ne.s32.totalorder %s272_s14, %s11059_s15  ;;  %s11063_s12 = scalar_lea.vmem %s272_s14, 32 }
 0x18c   :  { %p11064_p8 = scmp.lt.s32.totalorder %s272_s14, %s272_s14  ;;  %p11065_p9 = scmp.lt.s32.totalorder %s11063_s12, %s11059_s15 }
 0x18e   :  { %p11066_p10 = por %p11065_p9, %p11064_p8 }
 0x190   :  { %254 = dma.hbm_to_vmem [thread:$0]  %s13546_s25, 16, %s252_s29, [#allocation11]  }
 0x191   :  { %p11067_p11 = pnand %p11066_p10, %p11060_p7 }
 0x193   :  { %11070 = shalt.err (!%p11067_p11)
}
 0x194   :  { %s13547_s16 = sld [smem:[#allocation83_spill]]  ;;  %s11488_s18 = smov [#allocation18]  }
 0x195   :  { %s295_s8 = sshll.u32 %s11488_s18, 4  ;;  %s11489_s22 = smov [#allocation21]   ;;  %s296_s8 = int_to_ptr.vmem [resolvable:$true] %s295_s8 }
 0x196   :  { %s315_s19 = sshll.u32 %s11489_s22, 4  ;;  %s11079_s17 = scalar_lea.vmem %s296_s8, 16  ;;  %s316_s19 = int_to_ptr.vmem [resolvable:$true] %s315_s19 }
 0x197   :  { %p11080_p12 = scmp.ne.s32.totalorder %s296_s8, %s11079_s17  ;;  %s11083_s23 = scalar_lea.vmem %s296_s8, 32 }
 0x198   :  { %p11084_p13 = scmp.lt.s32.totalorder %s296_s8, %s296_s8  ;;  %p11085_p0 = scmp.lt.s32.totalorder %s11083_s23, %s11079_s17 }
 0x19a   :  { %274 = dma.hbm_to_vmem [thread:$0]  %s13547_s16, 16, %s272_s14, [#allocation14]  }
 0x19b   :  { %p11086_p1 = por %p11085_p0, %p11084_p13 }
 0x19d   :  { %p11087_p2 = pnand %p11086_p1, %p11080_p12 }
 0x19f   :  { %11090 = shalt.err (!%p11087_p2)
}
 0x1a0   :  { %s13548_s4 = sld [smem:[#allocation86_spill]]  ;;  %s11099_s26 = scalar_lea.vmem %s316_s19, 16 }
 0x1a1   :  { %p11100_p3 = scmp.ne.s32.totalorder %s316_s19, %s11099_s26  ;;  %s11103_s28 = scalar_lea.vmem %s316_s19, 32 }
 0x1a2   :  { %p11104_p4 = scmp.lt.s32.totalorder %s316_s19, %s316_s19  ;;  %p11105_p5 = scmp.lt.s32.totalorder %s11103_s28, %s11099_s26 }
 0x1a4   :  { %p11106_p6 = por %p11105_p5, %p11104_p4 }
 0x1a6   :  { %298 = dma.hbm_to_vmem [thread:$0]  %s13548_s4, 16, %s296_s8, [#allocation17]  }
 0x1a7   :  { %p11107_p7 = pnand %p11106_p6, %p11100_p3 }
 0x1a9   :  { %11110 = shalt.err (!%p11107_p7)
}
 0x1aa   :  { %s13549_s1 = sld [smem:[#allocation87_spill]]  ;;  %s11490_s2 = smov [#allocation24]  }
 0x1ab   :  { %s341_s30 = sshll.u32 %s11490_s2, 4  ;;  %s11491_s21 = smov [#allocation27]   ;;  %s342_s30 = int_to_ptr.vmem [resolvable:$true] %s341_s30 }
 0x1ac   :  { %s365_s0 = sshll.u32 %s11491_s21, 4  ;;  %s11119_s5 = scalar_lea.vmem %s342_s30, 16  ;;  %s366_s0 = int_to_ptr.vmem [resolvable:$true] %s365_s0 }
 0x1ad   :  { %p11120_p8 = scmp.ne.s32.totalorder %s342_s30, %s11119_s5  ;;  %s11123_s27 = scalar_lea.vmem %s342_s30, 32 }
 0x1ae   :  { %p11124_p9 = scmp.lt.s32.totalorder %s342_s30, %s342_s30  ;;  %p11125_p10 = scmp.lt.s32.totalorder %s11123_s27, %s11119_s5 }
 0x1b0   :  { %318 = dma.hbm_to_vmem [thread:$0]  %s13549_s1, 16, %s316_s19, [#allocation20]  }
 0x1b1   :  { %p11126_p11 = por %p11125_p10, %p11124_p9 }
 0x1b3   :  { %p11127_p12 = pnand %p11126_p11, %p11120_p8 }
 0x1b5   :  { %11130 = shalt.err (!%p11127_p12)
}
 0x1b6   :  { %s13550_s13 = sld [smem:[#allocation91_spill]]  ;;  %s11139_s7 = scalar_lea.vmem %s366_s0, 16 }
 0x1b7   :  { %p11140_p13 = scmp.ne.s32.totalorder %s366_s0, %s11139_s7  ;;  %s11143_s29 = scalar_lea.vmem %s366_s0, 32 }
 0x1b8   :  { %p11144_p0 = scmp.lt.s32.totalorder %s366_s0, %s366_s0  ;;  %p11145_p1 = scmp.lt.s32.totalorder %s11143_s29, %s11139_s7 }
 0x1ba   :  { %p11146_p2 = por %p11145_p1, %p11144_p0 }
 0x1bc   :  { %344 = dma.hbm_to_vmem [thread:$0]  %s13550_s13, 16, %s342_s30, [#allocation23]  }
 0x1bd   :  { %p11147_p3 = pnand %p11146_p2, %p11140_p13 }
 0x1bf   :  { %11150 = shalt.err (!%p11147_p3)
}
 0x1c0   :  { %s13551_s10 = sld [smem:[#allocation94_spill]]  ;;  %s11492_s14 = smov [#allocation30]  }
 0x1c1   :  { %s385_s11 = sshll.u32 %s11492_s14, 4  ;;  %s11493_s6 = smov [#allocation33]   ;;  %s386_s11 = int_to_ptr.vmem [resolvable:$true] %s385_s11 }
 0x1c2   :  { %s443_s25 = sshll.u32 %s11493_s6, 4  ;;  %s11159_s15 = scalar_lea.vmem %s386_s11, 16  ;;  %s444_s25 = int_to_ptr.vmem [resolvable:$true] %s443_s25 }
 0x1c3   :  { %p11160_p4 = scmp.ne.s32.totalorder %s386_s11, %s11159_s15  ;;  %s11163_s12 = scalar_lea.vmem %s386_s11, 32 }
 0x1c4   :  { %p11164_p5 = scmp.lt.s32.totalorder %s386_s11, %s386_s11  ;;  %p11165_p6 = scmp.lt.s32.totalorder %s11163_s12, %s11159_s15 }
 0x1c6   :  { %368 = dma.hbm_to_vmem [thread:$0]  %s13551_s10, 16, %s366_s0, [#allocation26]  }
 0x1c7   :  { %p11166_p7 = por %p11165_p6, %p11164_p5 }
 0x1c9   :  { %p11167_p8 = pnand %p11166_p7, %p11160_p4 }
 0x1cb   :  { %11170 = shalt.err (!%p11167_p8)
}
 0x1cc   :  { %s13552_s16 = sld [smem:[#allocation95_spill]]  ;;  %s11179_s18 = scalar_lea.vmem %s444_s25, 16 }
 0x1cd   :  { %p11180_p9 = scmp.ne.s32.totalorder %s444_s25, %s11179_s18  ;;  %s11183_s8 = scalar_lea.vmem %s444_s25, 32 }
 0x1ce   :  { %p11184_p10 = scmp.lt.s32.totalorder %s444_s25, %s444_s25  ;;  %p11185_p11 = scmp.lt.s32.totalorder %s11183_s8, %s11179_s18 }
 0x1d0   :  { %p11186_p12 = por %p11185_p11, %p11184_p10 }
 0x1d2   :  { %388 = dma.hbm_to_vmem [thread:$0]  %s13552_s16, 16, %s386_s11, [#allocation29]  }
 0x1d3   :  { %p11187_p13 = pnand %p11186_p12, %p11180_p9 }
 0x1d5   :  { %11190 = shalt.err (!%p11187_p13)
}
 0x1d6   :  { %s13553_s22 = sld [smem:[#allocation115_spill]]  ;;  %s11494_s19 = smov [#allocation36]  }
 0x1d7   :  { %s463_s17 = sshll.u32 %s11494_s19, 4  ;;  %s11495_s23 = smov [#allocation39]   ;;  %s464_s17 = int_to_ptr.vmem [resolvable:$true] %s463_s17 }
 0x1d8   :  { %s483_s4 = sshll.u32 %s11495_s23, 4  ;;  %s11199_s26 = scalar_lea.vmem %s464_s17, 16  ;;  %s484_s4 = int_to_ptr.vmem [resolvable:$true] %s483_s4 }
 0x1d9   :  { %p11200_p0 = scmp.ne.s32.totalorder %s464_s17, %s11199_s26  ;;  %s11203_s28 = scalar_lea.vmem %s464_s17, 32 }
 0x1da   :  { %p11204_p1 = scmp.lt.s32.totalorder %s464_s17, %s464_s17  ;;  %p11205_p2 = scmp.lt.s32.totalorder %s11203_s28, %s11199_s26 }
 0x1dc   :  { %446 = dma.hbm_to_vmem [thread:$0]  %s13553_s22, 16, %s444_s25, [#allocation32]  }
 0x1dd   :  { %p11206_p3 = por %p11205_p2, %p11204_p1 }
 0x1df   :  { %p11207_p4 = pnand %p11206_p3, %p11200_p0 }
 0x1e1   :  { %11210 = shalt.err (!%p11207_p4)
}
 0x1e2   :  { %s13554_s1 = sld [smem:[#allocation116_spill]]  ;;  %s11219_s2 = scalar_lea.vmem %s484_s4, 16 }
 0x1e3   :  { %p11220_p5 = scmp.ne.s32.totalorder %s484_s4, %s11219_s2  ;;  %s11223_s30 = scalar_lea.vmem %s484_s4, 32 }
 0x1e4   :  { %p11224_p6 = scmp.lt.s32.totalorder %s484_s4, %s484_s4  ;;  %p11225_p7 = scmp.lt.s32.totalorder %s11223_s30, %s11219_s2 }
 0x1e6   :  { %p11226_p8 = por %p11225_p7, %p11224_p6 }
 0x1e8   :  { %466 = dma.hbm_to_vmem [thread:$0]  %s13554_s1, 16, %s464_s17, [#allocation35]  }
 0x1e9   :  { %p11227_p9 = pnand %p11226_p8, %p11220_p5 }
 0x1eb   :  { %11230 = shalt.err (!%p11227_p9)
}
 0x1ec   :  { %s13555_s21 = sld [smem:[#allocation117_spill]]  ;;  %s11496_s0 = smov [#allocation42]  }
 0x1ed   :  { %s507_s5 = sshll.u32 %s11496_s0, 4  ;;  %s11497_s27 = smov [#allocation45]   ;;  %s508_s5 = int_to_ptr.vmem [resolvable:$true] %s507_s5 }
 0x1ee   :  { %s531_s13 = sshll.u32 %s11497_s27, 4  ;;  %s11239_s7 = scalar_lea.vmem %s508_s5, 16  ;;  %s532_s13 = int_to_ptr.vmem [resolvable:$true] %s531_s13 }
 0x1ef   :  { %p11240_p10 = scmp.ne.s32.totalorder %s508_s5, %s11239_s7  ;;  %s11243_s29 = scalar_lea.vmem %s508_s5, 32 }
 0x1f0   :  { %p11244_p11 = scmp.lt.s32.totalorder %s508_s5, %s508_s5  ;;  %p11245_p12 = scmp.lt.s32.totalorder %s11243_s29, %s11239_s7 }
 0x1f2   :  { %486 = dma.hbm_to_vmem [thread:$0]  %s13555_s21, 16, %s484_s4, [#allocation38]  }
 0x1f3   :  { %p11246_p13 = por %p11245_p12, %p11244_p11 }
 0x1f5   :  { %p11247_p0 = pnand %p11246_p13, %p11240_p10 }
 0x1f7   :  { %11250 = shalt.err (!%p11247_p0)
}
 0x1f8   :  { %s13556_s10 = sld [smem:[#allocation120_spill]]  ;;  %s11259_s14 = scalar_lea.vmem %s532_s13, 16 }
 0x1f9   :  { %p11260_p1 = scmp.ne.s32.totalorder %s532_s13, %s11259_s14  ;;  %s11263_s11 = scalar_lea.vmem %s532_s13, 32 }
 0x1fa   :  { %p11264_p2 = scmp.lt.s32.totalorder %s532_s13, %s532_s13  ;;  %p11265_p3 = scmp.lt.s32.totalorder %s11263_s11, %s11259_s14 }
 0x1fc   :  { %p11266_p4 = por %p11265_p3, %p11264_p2 }
 0x1fe   :  { %510 = dma.hbm_to_vmem [thread:$0]  %s13556_s10, 16, %s508_s5, [#allocation41]  }
 0x1ff   :  { %p11267_p5 = pnand %p11266_p4, %p11260_p1 }
 0x201   :  { %11270 = shalt.err (!%p11267_p5)
}
 0x202   :  { %s13557_s6 = sld [smem:[#allocation123_spill]]  ;;  %s11498_s25 = smov [#allocation48]  }
 0x203   :  { %s551_s15 = sshll.u32 %s11498_s25, 4  ;;  %s11499_s12 = smov [#allocation51]   ;;  %s552_s15 = int_to_ptr.vmem [resolvable:$true] %s551_s15 }
 0x204   :  { %s571_s16 = sshll.u32 %s11499_s12, 4  ;;  %s11279_s18 = scalar_lea.vmem %s552_s15, 16  ;;  %s572_s16 = int_to_ptr.vmem [resolvable:$true] %s571_s16 }
 0x205   :  { %p11280_p6 = scmp.ne.s32.totalorder %s552_s15, %s11279_s18  ;;  %s11283_s8 = scalar_lea.vmem %s552_s15, 32 }
 0x206   :  { %p11284_p7 = scmp.lt.s32.totalorder %s552_s15, %s552_s15  ;;  %p11285_p8 = scmp.lt.s32.totalorder %s11283_s8, %s11279_s18 }
 0x208   :  { %534 = dma.hbm_to_vmem [thread:$0]  %s13557_s6, 16, %s532_s13, [#allocation44]  }
 0x209   :  { %p11286_p9 = por %p11285_p8, %p11284_p7 }
 0x20b   :  { %p11287_p10 = pnand %p11286_p9, %p11280_p6 }
 0x20d   :  { %11290 = shalt.err (!%p11287_p10)
}
 0x20e   :  { %s13558_s22 = sld [smem:[#allocation125_spill]]  ;;  %s11299_s19 = scalar_lea.vmem %s572_s16, 16 }
 0x20f   :  { %p11300_p11 = scmp.ne.s32.totalorder %s572_s16, %s11299_s19  ;;  %s11303_s17 = scalar_lea.vmem %s572_s16, 32 }
 0x210   :  { %p11304_p12 = scmp.lt.s32.totalorder %s572_s16, %s572_s16  ;;  %p11305_p13 = scmp.lt.s32.totalorder %s11303_s17, %s11299_s19 }
 0x212   :  { %p11306_p0 = por %p11305_p13, %p11304_p12 }
 0x214   :  { %554 = dma.hbm_to_vmem [thread:$0]  %s13558_s22, 16, %s552_s15, [#allocation47]  }
 0x215   :  { %p11307_p1 = pnand %p11306_p0, %p11300_p11 }
 0x217   :  { %11310 = shalt.err (!%p11307_p1)
}
 0x218   :  { %s13559_s23 = sld [smem:[#allocation127_spill]]  ;;  %s11500_s4 = smov [#allocation54]  }
 0x219   :  { %s595_s26 = sshll.u32 %s11500_s4, 4  ;;  %s11501_s28 = smov [#allocation55]   ;;  %s596_s26 = int_to_ptr.vmem [resolvable:$true] %s595_s26 }
 0x21a   :  { %s605_s1 = sshll.u32 %s11501_s28, 4  ;;  %s11319_s2 = scalar_lea.vmem %s596_s26, 16  ;;  %s606_s1 = int_to_ptr.vmem [resolvable:$true] %s605_s1 }
 0x21b   :  { %p11320_p2 = scmp.ne.s32.totalorder %s596_s26, %s11319_s2  ;;  %s11323_s30 = scalar_lea.vmem %s596_s26, 32 }
 0x21c   :  { %p11324_p3 = scmp.lt.s32.totalorder %s596_s26, %s596_s26  ;;  %p11325_p4 = scmp.lt.s32.totalorder %s11323_s30, %s11319_s2 }
 0x21e   :  { %574 = dma.hbm_to_vmem [thread:$0]  %s13559_s23, 16, %s572_s16, [#allocation50]  }
 0x21f   :  { %p11326_p5 = por %p11325_p4, %p11324_p3 }
 0x221   :  { %p11327_p6 = pnand %p11326_p5, %p11320_p2 }
 0x223   :  { %11330 = shalt.err (!%p11327_p6)
}
 0x224   :  { %s13560_s21 = sld [smem:[#allocation131_spill]]  ;;  %s11339_s0 = scalar_lea.vmem %s606_s1, 16 }
 0x225   :  { %p11340_p7 = scmp.ne.s32.totalorder %s606_s1, %s11339_s0  ;;  %s11343_s5 = scalar_lea.vmem %s606_s1, 32 }
 0x226   :  { %p11344_p8 = scmp.lt.s32.totalorder %s606_s1, %s606_s1  ;;  %p11345_p9 = scmp.lt.s32.totalorder %s11343_s5, %s11339_s0 }
 0x228   :  { %p11346_p10 = por %p11345_p9, %p11344_p8 }
 0x22a   :  { %598 = dma.hbm_to_vmem [thread:$0]  %s13560_s21, 16, %s596_s26, [#allocation53]  }
 0x22b   :  { %p11347_p11 = pnand %p11346_p10, %p11340_p7 }
 0x22d   :  { %11350 = shalt.err (!%p11347_p11)
}
 0x22e   :  { %s13561_s27 = sld [smem:[#allocation132_spill]] }
 0x234   :  { %608 = dma.hbm_to_vmem [thread:$0]  %s13561_s27, 16, %s606_s1, [#allocation56]  }
 0x235   :  { %11351 = dma.done.wait [#allocation3], 16  }
 0x236   :  { %11352 = vsyncadd [#allocation3], 4294967280 }
 0x237   :  { %11353 = dma.done.wait [#allocation5], 32  }
 0x238   :  { %11354 = vsyncadd [#allocation5], 4294967264 }
 0x239   :  { %11355 = dma.done.wait [#allocation8], 32  }
 0x23a   :  { %11356 = vsyncadd [#allocation8], 4294967264 }
 0x23b   :  { %11357 = dma.done.wait [#allocation11], 32  }
 0x23c   :  { %11358 = vsyncadd [#allocation11], 4294967264 }
 0x23d   :  { %11359 = dma.done.wait [#allocation14], 32  }
 0x23e   :  { %11360 = vsyncadd [#allocation14], 4294967264 }
 0x23f   :  { %11361 = dma.done.wait [#allocation17], 32  }
 0x240   :  { %11362 = vsyncadd [#allocation17], 4294967264 }
 0x241   :  { %11363 = dma.done.wait [#allocation20], 32  }
 0x242   :  { %11364 = vsyncadd [#allocation20], 4294967264 }
 0x243   :  { %11365 = dma.done.wait [#allocation23], 32  }
 0x244   :  { %11366 = vsyncadd [#allocation23], 4294967264 }
 0x245   :  { %11367 = dma.done.wait [#allocation26], 32  }
 0x246   :  { %11368 = vsyncadd [#allocation26], 4294967264 }
 0x247   :  { %11369 = dma.done.wait [#allocation29], 32  }
 0x248   :  { %11370 = vsyncadd [#allocation29], 4294967264 }
 0x249   :  { %11371 = dma.done.wait [#allocation32], 32  }
 0x24a   :  { %11372 = vsyncadd [#allocation32], 4294967264 }
 0x24b   :  { %11373 = dma.done.wait [#allocation35], 32  }
 0x24c   :  { %11374 = vsyncadd [#allocation35], 4294967264 }
 0x24d   :  { %11375 = dma.done.wait [#allocation38], 32  }
 0x24e   :  { %11376 = vsyncadd [#allocation38], 4294967264 }
 0x24f   :  { %11377 = dma.done.wait [#allocation41], 32  }
 0x250   :  { %11378 = vsyncadd [#allocation41], 4294967264 }
 0x251   :  { %11379 = dma.done.wait [#allocation44], 32  }
 0x252   :  { %11380 = vsyncadd [#allocation44], 4294967264 }
 0x253   :  { %11381 = dma.done.wait [#allocation47], 32  }
 0x254   :  { %11382 = vsyncadd [#allocation47], 4294967264 }
 0x255   :  { %11383 = dma.done.wait [#allocation50], 32  }
 0x256   :  { %11384 = vsyncadd [#allocation50], 4294967264 }
 0x257   :  { %11385 = dma.done.wait [#allocation53], 32  }
 0x258   :  { %11386 = vsyncadd [#allocation53], 4294967264 }
 0x259   :  { %11387 = dma.done.wait [#allocation56], 16  }
 0x25a   :  { %11388 = vsyncadd [#allocation56], 4294967280  ;;  %s13562_s13 = sld [smem:[#allocation135_spill]]  ;;  %v11502_v0 = vmov 0   ;;  %v11503_v1 = vmov 0.0   ;;  %v897_v2 = vld [vmem:[%s11897_s9] sm:$0xff]  ;;  %v908_v9 = vlaneseq }
 0x25b   :  { %10233 = vset.pattern.permute.xlu0 %v11502_v0  ;;  %9311 = vmatprep.subr.bf16.mxu0 %v11503_v1  ;;  %vm948_vm0 = vcmask 1040384   ;;  %v898_v4 = vld [vmem:[%s11897_s9 + $0x8] sm:$0xff]  ;;  %vm11504_vm1 = vmmov 0   ;;  %s13563_s9 = sld [smem:[#allocation133_spill]]  ;;  %vm944_vm4 = vcmask 408576   ;;  %vm997_vm5 = vcmask 261120  }
 0x25c   :  { %9323 = vmatprep.subr.bf16.mxu1 %v11503_v1  ;;  %10264 = vset.pattern.permute.xlu1 %v11502_v0  ;;  %v11967_v10 = vand.u32 127, %v908_v9  ;;  %s13564_s7 = sld [smem:[#allocation119_spill]]  ;;  %v8768_v48 = vld [vmem:[#allocation34] ss:$0 sm:$0xff]  ;;  %v8769_v52 = vld [vmem:[#allocation33] ss:$0 sm:$0xff] }
 0x25d   :  { %911 = vperm.xlu0 %10233, %v897_v2   ;;  %9319 = vmatprep.mubr.msk.bf16.mxu0 %vm11504_vm1, %v11503_v1  ;;  %v8770_v57 = vld [vmem:[#allocation40] ss:$0 sm:$0xff]  ;;  %s11505_s29 = smov 96   ;;  %s13565_s10 = sld [smem:[#allocation110_spill]]  ;;  %vm1112_vm6 = vcmask 64512   ;;  %vm1240_vm7 = vcmask 1043456  }
 0x25e   :  { %9327 = vmatprep.mubr.msk.bf16.mxu1 %vm11504_vm1, %v11503_v1  ;;  %s11506_s14 = smov 64   ;;  %s11507_s11 = smov 88   ;;  %vm2030_vm8 = vcmask 130048   ;;  %vm2033_vm9 = vcmask 195584   ;;  %vm2245_vm10 = vcmask 523264  }
 0x25f   :  { %s11508_s6 = smov 120   ;;  %s11509_s25 = smov 56  }
 0x260   :  { %v10325_v3 = vld [vmem:[%s13562_s13 + $0x18] ss:$0 sps:$4 sm:$0x11]   ;;  %v10327_v6 = vld [vmem:[%s13562_s13 + $0x10] sm:$0xff]   ;;  %v10328_v7 = vld [vmem:[%s13562_s13 + $0x8] sm:$0xff]   ;;  %s11510_s15 = smov 80  }
 0x261   :  { %v950_v5 = vsel %vm948_vm0, %v10325_v3, 0  ;;  %914 = vperm.xlu0 %10233, %v898_v4   ;;  %v10329_v8 = vld [vmem:[%s13562_s13] sm:$0xff]   ;;  %v887_v21 = vld [vmem:[%s13563_s9 + $0x8] sm:$0xff]  ;;  %s11511_s12 = smov 112   ;;  %s11512_s16 = smov 48  }
 0x262   :  { %9312 = vmatpush3.bf16.msra.mxu0 %v950_v5  ;;  %v886_v16 = vld [vmem:[%s13563_s9] sm:$0xff]  ;;  %v10330_v38 = vld [vmem:[%s13564_s7 + $0x8] sm:$0xff]   ;;  %s11513_s18 = smov 72   ;;  %s11514_s8 = smov 104  }
 0x263   :  { %9313 = vmatprep.subr.bf16.mxu0 %v11503_v1  ;;  %9324 = vmatpush3.bf16.msra.mxu1 %v10330_v38  ;;  %v10331_v39 = vld [vmem:[%s13564_s7] sm:$0xff]   ;;  %s11515_s22 = smov 40   ;;  %s11516_s19 = smov 16  }
 0x264   :  { %9325 = vmatprep.subr.bf16.mxu1 %v11503_v1  ;;  %s11517_s17 = smov 8   ;;  %s13566_s23 = sld [smem:[#allocation118_spill]] }
 0x265   :  { %s11518_s4 = smov 24   ;;  %s13567_s26 = sld [smem:[#allocation113_spill]] }
 0x266   :  { %9314 = vmatpush3.bf16.msra.mxu0 %v10327_v6  ;;  %s13568_s28 = sld [smem:[#allocation114_spill]] }
 0x267   :  { %9315 = vmatprep.subr.bf16.mxu0 %v11503_v1  ;;  %9326 = vmatpush3.bf16.msra.mxu1 %v10331_v39  ;;  %s13569_s1 = sld [smem:[#allocation111_spill]] }
 0x268   :  { %9331 = vmatprep.subr.bf16.mxu1 %v11503_v1  ;;  %s13570_s2 = sld [smem:[#allocation112_spill]] }
 0x269   :  { %s13571_s30 = sld [smem:[#allocation130_spill]] }
 0x26a   :  { %9316 = vmatpush3.bf16.msra.mxu0 %v10328_v7  ;;  %s13572_s21 = sld [smem:[#allocation129_spill]] }
 0x26b   :  { %9317 = vmatprep.subr.bf16.mxu0 %v11503_v1  ;;  %s13573_s0 = sld [smem:[#allocation121_spill]] }
 0x26c   :  { %s13574_s5 = sld [smem:[#allocation122_spill]] }
 0x26d   :  { %s13577_s27 = sld [smem:[#allocation109_spill]] }
 0x26e   :  { %9318 = vmatpush3.bf16.msra.mxu0 %v10329_v8  ;;  %v12018_v8 = vld [vmem:[%s13565_s10] sm:$0xff]  ;;  %s13578_s13 = sld [smem:[#allocation84_spill]] }
 0x26f   :  { %9349 = vmatprep.subr.bf16.mxu0 %v11503_v1  ;;  %s13579_s9 = sld [smem:[#allocation88_spill]] }
 0x270   :  { %s13580_s7 = sld [smem:[#allocation90_spill]] }
 0x2d8   :  { %v912_v11 = vpop.permute.xlu0 %911 }
 0x2d9   :  { %vm916_vm2 = vcmp.eq.s32.totalorder %v912_v11, %v11967_v10 }
 0x2da   :  { %v8761_v13 = vsel %vm916_vm2, 1.0, %v11503_v1 }
 0x2dc   :  { %v915_v12 = vpop.permute.xlu0 %914 }
 0x2dd   :  { %vm917_vm3 = vcmp.eq.s32.totalorder %v915_v12, %v11967_v10 }
 0x2de   :  { %v8762_v14 = vsel %vm917_vm3, 1.0, %v11503_v1 }
 0x2df   :  { %v922_v15 = vpack.c.bf16 %v8762_v14, %v8761_v13 }
 0x2e1   :  { %9320 = vmatmul.mubr.msk.bf16.vlgmr.msra.gmra.mxu0 %vm944_vm4, %v922_v15 }
 0x2e2   :  { %9351 = vmatprep.mubr.msk.bf16.mxu0 %vm11504_vm1, %v11503_v1 }
 0x3a1   :  { %v986_v17 = vpop.f32.mrf.mxu0 }
 0x3a2   :  { %v993_v18 = vmul.f32 5.656854, %v986_v17  ;;  %v12023_v17 = vld [vmem:[%s13565_s10 + $0x8] sm:$0xff] }
 0x3a3   :  { %v9321_v19 = vpop.f32.mrf.mxu0 }
 0x3a4   :  { %v11977_v20 = vadd.f32 %v993_v18, %v886_v16 }
 0x3a5   :  { %v989_v22 = vpop.f32.mrf.mxu0 }
 0x3a6   :  { %v994_v23 = vmul.f32 5.656854, %v989_v22  ;;  %v998_v24 = vsel %vm997_vm5, %v11977_v20, 0.0 }
 0x3a7   :  { %v9322_v25 = vpop.f32.mrf.mxu0  ;;  %999 = vadd.xlane.f32.xlu1 %v998_v24 }
 0x3a8   :  { %v11982_v26 = vadd.f32 %v994_v23, %v887_v21 }
 0x3aa   :  { %v1001_v27 = vsel %vm997_vm5, %v11982_v26, 0.0 }
 0x3ab   :  { %1002 = vadd.xlane.f32.xlu1 %v1001_v27 }
 0x430   :  { %v1000_v28 = vpop.xlane.xlu1 %999 }
 0x431   :  { %v1005_v29 = vmul.f32 0.03125, %v1000_v28 }
 0x433   :  { %v1007_v30 = vsub.f32 %v11977_v20, %v1005_v29 }
 0x434   :  { %v1003_v31 = vpop.xlane.xlu1 %1002 }
 0x435   :  { %v1006_v32 = vmul.f32 0.03125, %v1003_v31  ;;  %v1009_v33 = vmul.f32 %v1007_v30, %v1007_v30 }
 0x437   :  { %v1008_v34 = vsub.f32 %v11982_v26, %v1006_v32  ;;  %v1011_v35 = vsel %vm997_vm5, %v1009_v33, 0.0 }
 0x438   :  { %1012 = vadd.xlane.f32.xlu0 %v1011_v35 }
 0x439   :  { %v1010_v36 = vmul.f32 %v1008_v34, %v1008_v34 }
 0x43b   :  { %v1014_v37 = vsel %vm997_vm5, %v1010_v36, 0.0 }
 0x43c   :  { %1015 = vadd.xlane.f32.xlu1 %v1014_v37 }
 0x4c1   :  { %v1013_v40 = vpop.xlane.xlu0 %1012 }
 0x4c2   :  { %v1017_v41 = vmul.f32 0.03125, %v1013_v40 }
 0x4c4   :  { %v1019_v42 = vadd.f32 1e-05, %v1017_v41 }
 0x4c5   :  { %v1016_v43 = vpop.xlane.xlu1 %1015 }
 0x4c6   :  { %10385 = vrsqrt.f32 %v1019_v42  ;;  %v1018_v44 = vmul.f32 0.03125, %v1016_v43 }
 0x4c8   :  { %v1020_v45 = vadd.f32 1e-05, %v1018_v44 }
 0x4ca   :  { %10387 = vrsqrt.f32 %v1020_v45 }
 0x4d3   :  { %v10386_v46 = vpop.eup %10385 }
 0x4d4   :  { %v1023_v47 = vmul.f32 %v10386_v46, %v1007_v30 }
 0x4d6   :  { %v1031_v51 = vmul.f32 %v8768_v48, %v1023_v47 }
 0x4d7   :  { %v10388_v49 = vpop.eup %10387 }
 0x4d8   :  { %v1024_v50 = vmul.f32 %v10388_v49, %v1008_v34  ;;  %v1039_v54 = vadd.f32 %v8769_v52, %v1031_v51 }
 0x4da   :  { %v1032_v53 = vmul.f32 %v8768_v48, %v1024_v50 }
 0x4dc   :  { %v1040_v55 = vadd.f32 %v8769_v52, %v1032_v53 }
 0x4de   :  { %v1041_v56 = vpack.c.bf16 %v1040_v55, %v1039_v54 }
 0x4e0   :  { %9328 = vmatmul.mubr.msk.bf16.vlgmr.msra.gmra.mxu1 %vm997_vm5, %v1041_v56 }
 0x4e1   :  { %9333 = vmatprep.mubr.msk.bf16.mxu1 %vm11504_vm1, %v11503_v1 }
 0x5a0   :  { %v1097_v58 = vpop.f32.mrf.mxu1 }
 0x5a1   :  { %v1098_v59 = vadd.f32 %v8770_v57, %v1097_v58 }
 0x5a2   :  { %v9329_v60 = vpop.f32.mrf.mxu1 }
 0x5a3   :  { %v11997_v61 = vpack.c.bf16 %v1098_v59, %v1098_v59 }
 0x5a4   :  { %v1100_v62 = vpop.f32.mrf.mxu1 }
 0x5a5   :  { %v1101_v63 = vadd.f32 %v8770_v57, %v1100_v62  ;;  %1110 = vrot.lane.b32.xlu1 %v11997_v61, %s11505_s29 }
 0x5a6   :  { %v9330_v0 = vpop.f32.mrf.mxu1 }
 0x5a7   :  { %v12001_v2 = vpack.c.bf16 %v1101_v63, %v1101_v63 }
 0x5a9   :  { %1159 = vrot.lane.b32.xlu1 %v12001_v2, %s11505_s29 }
 0x617   :  { %v1111_v3 = vpop.permute.xlu1 %1110 }
 0x618   :  { %v1117_v4 = vsel %vm1112_vm6, %v1111_v3, 0 }
 0x619   :  { %9332 = vmatpush3.bf16.xpose.msra.mxu1 %v1117_v4 }
 0x61a   :  { %9337 = vmatprep.subr.bf16.mxu1 %v11503_v1 }
 0x61b   :  { %v1160_v5 = vpop.permute.xlu1 %1159 }
 0x61c   :  { %v1165_v6 = vsel %vm1112_vm6, %v1160_v5, 0 }
 0x620   :  { %9334 = vmatmul.mubr.msk.bf16.vlgmr.msra.gmra.mxu1 %vm1112_vm6, %v11997_v61 }
 0x621   :  { %9338 = vmatpush3.bf16.xpose.msra.mxu1 %v1165_v6  ;;  %9339 = vmatprep.mubr.msk.bf16.mxu1 %vm11504_vm1, %v11503_v1 }
 0x622   :  { %9343 = vmatprep.subr.bf16.mxu1 %v11503_v1 }
 0x628   :  { %9340 = vmatmul.mubr.msk.bf16.vlgmr.msra.gmra.mxu1 %vm1112_vm6, %v12001_v2 }
 0x629   :  { %9345 = vmatprep.mubr.msk.bf16.mxu1 %vm11504_vm1, %v11503_v1 }
 0x6e0   :  { %v1153_v7 = vpop.f32.mrf.mxu1 }
 0x6e1   :  { %v1207_v9 = vmul.f32 0.35355338, %v1153_v7 }
 0x6e2   :  { %v9335_v11 = vpop.f32.mrf.mxu1 }
 0x6e3   :  { %v1209_v12 = vadd.f32 %v1207_v9, %v12018_v8 }
 0x6e4   :  { %v1156_v13 = vpop.f32.mrf.mxu1 }
 0x6e5   :  { %v1211_v14 = vsel %vm1112_vm6, %v1209_v12, -inf }
 0x6e6   :  { %v9336_v15 = vpop.f32.mrf.mxu1  ;;  %1212 = vmax.xlane.f32.xlu1 %v1211_v14 }
 0x6e8   :  { %v1201_v16 = vpop.f32.mrf.mxu1 }
 0x6e9   :  { %v1208_v18 = vmul.f32 0.35355338, %v1201_v16 }
 0x6ea   :  { %v9341_v19 = vpop.f32.mrf.mxu1 }
 0x6eb   :  { %v1210_v21 = vadd.f32 %v1208_v18, %v12023_v17 }
 0x6ec   :  { %v1204_v22 = vpop.f32.mrf.mxu1 }
 0x6ed   :  { %v1214_v23 = vsel %vm1112_vm6, %v1210_v21, -inf }
 0x6ee   :  { %v9342_v24 = vpop.f32.mrf.mxu1  ;;  %1215 = vmax.xlane.f32.xlu0 %v1214_v23 }
 0x6f7   :  { %1284 = vrot.lane.b32.xlu1 %v12001_v2, %s11506_s14 }
 0x704   :  { %1235 = vrot.lane.b32.xlu0 %v11997_v61, %s11506_s14 }
 0x708   :  { %1334 = vrot.lane.b32.xlu0 %v11997_v61, %s11507_s11 }
 0x76f   :  { %v1213_v25 = vpop.xlane.xlu1 %1212 }
 0x770   :  { %v1217_v27 = vsub.f32 %v1209_v12, %v1213_v25 }
 0x772   :  { %v1219_v28 = vmul.f32 1.442695, %v1217_v27 }
 0x773   :  { %v1285_v29 = vpop.permute.xlu1 %1284 }
 0x774   :  { %10389 = vpow2.f32 %v1219_v28  ;;  %v1290_v30 = vsel %vm1240_vm7, %v1285_v29, 0 }
 0x775   :  { %9350 = vmatpush3.bf16.msra.mxu0 %v1290_v30 }
 0x776   :  { %9361 = vmatprep.subr.bf16.mxu0 %v11503_v1 }
 0x777   :  { %v1216_v31 = vpop.xlane.xlu0 %1215 }
 0x778   :  { %v1218_v32 = vsub.f32 %v1210_v21, %v1216_v31 }
 0x77a   :  { %v1221_v33 = vmul.f32 1.442695, %v1218_v32 }
 0x77b   :  { %v1236_v34 = vpop.permute.xlu0 %1235 }
 0x77c   :  { %10391 = vpow2.f32 %v1221_v33  ;;  %v1242_v35 = vsel %vm1240_vm7, %v1236_v34, 0 }
 0x77d   :  { %9344 = vmatpush3.bf16.msra.mxu1 %v1242_v35 }
 0x77e   :  { %9355 = vmatprep.subr.bf16.mxu1 %v11503_v1 }
 0x77f   :  { %v1335_v40 = vpop.permute.xlu0 %1334 }
 0x780   :  { %v1340_v46 = vsel %vm1112_vm6, %v1335_v40, 0 }
 0x781   :  { %v10390_v36 = vpop.eup %10389 }
 0x782   :  { %v1223_v37 = vsel %vm1112_vm6, %v10390_v36, 0.0 }
 0x783   :  { %1224 = vadd.xlane.f32.xlu0 %v1223_v37 }
 0x789   :  { %v10392_v38 = vpop.eup %10391 }
 0x78a   :  { %v1226_v39 = vsel %vm1112_vm6, %v10392_v38, 0.0 }
 0x78b   :  { %1227 = vadd.xlane.f32.xlu0 %v1226_v39 }
 0x7a1   :  { %1384 = vrot.lane.b32.xlu0 %v12001_v2, %s11507_s11 }
 0x7a5   :  { %1332 = vrot.lane.b32.xlu0 %v11997_v61, %s11508_s6 }
 0x7a9   :  { %1382 = vrot.lane.b32.xlu0 %v12001_v2, %s11508_s6 }
 0x80c   :  { %v1225_v41 = vpop.xlane.xlu0 %1224 }
 0x80d   :  { %10393 = vrcp.f32 %v1225_v41 }
 0x814   :  { %v1228_v42 = vpop.xlane.xlu0 %1227 }
 0x815   :  { %10395 = vrcp.f32 %v1228_v42 }
 0x818   :  { %v1385_v47 = vpop.permute.xlu0 %1384 }
 0x819   :  { %v1390_v52 = vsel %vm1112_vm6, %v1385_v47, 0 }
 0x81a   :  { %v10394_v43 = vpop.eup %10393 }
 0x81b   :  { %v1231_v44 = vmul.f32 %v10394_v43, %v10390_v36 }
 0x81c   :  { %v1333_v51 = vpop.permute.xlu0 %1332 }
 0x81d   :  { %v1233_v45 = vpack.c.bf16 %v1231_v44, %v1231_v44 }
 0x81f   :  { %9346 = vmatmul.mubr.msk.bf16.vlgmr.msra.gmra.mxu1 %vm1112_vm6, %v1233_v45 }
 0x820   :  { %9356 = vmatpush3.bf16.xpose.msra.mxu1 %v1340_v46  ;;  %9357 = vmatprep.mubr.msk.bf16.mxu1 %vm11504_vm1, %v11503_v1  ;;  %v1383_v53 = vpop.permute.xlu0 %1382 }
 0x821   :  { %9367 = vmatprep.subr.bf16.mxu1 %v11503_v1 }
 0x822   :  { %v10396_v48 = vpop.eup %10395 }
 0x823   :  { %v1232_v49 = vmul.f32 %v10396_v48, %v10392_v38 }
 0x825   :  { %v1234_v50 = vpack.c.bf16 %v1232_v49, %v1232_v49 }
 0x827   :  { %9352 = vmatmul.mubr.msk.bf16.vlgmr.msra.gmra.mxu0 %vm1112_vm6, %v1234_v50  ;;  %9358 = vmatmul.mubr.msk.bf16.vlgmr.msra.gmra.mxu1 %vm1112_vm6, %v1333_v51 }
 0x828   :  { %9362 = vmatpush3.bf16.xpose.msra.mxu0 %v1390_v52  ;;  %9363 = vmatprep.mubr.msk.bf16.mxu0 %vm11504_vm1, %v11503_v1 }
 0x829   :  { %9373 = vmatprep.subr.bf16.mxu0 %v11503_v1  ;;  %9369 = vmatprep.mubr.msk.bf16.mxu1 %vm11504_vm1, %v11503_v1 }
 0x82f   :  { %9364 = vmatmul.mubr.msk.bf16.vlgmr.msra.gmra.mxu0 %vm1112_vm6, %v1383_v53 }
 0x830   :  { %9375 = vmatprep.mubr.msk.bf16.mxu0 %vm11504_vm1, %v11503_v1 }
 0x8df   :  { %v12061_v54 = vpop.f32.mrf.mxu1 }
 0x8e1   :  { %v9347_v55 = vpop.f32.mrf.mxu1 }
 0x8e3   :  { %v1281_v56 = vpop.f32.mrf.mxu1 }
 0x8e5   :  { %v9348_v57 = vpop.f32.mrf.mxu1 }
 0x8e7   :  { %v12063_v58 = vpop.f32.mrf.mxu0  ;;  %v1376_v59 = vpop.f32.mrf.mxu1 }
 0x8e8   :  { %v1432_v60 = vmul.f32 0.35355338, %v1376_v59 }
 0x8e9   :  { %v9353_v62 = vpop.f32.mrf.mxu0  ;;  %v9359_v63 = vpop.f32.mrf.mxu1 }
 0x8ea   :  { %v1434_v0 = vadd.f32 %v1432_v60, %v12018_v8 }
 0x8eb   :  { %v1329_v3 = vpop.f32.mrf.mxu0  ;;  %v1379_v4 = vpop.f32.mrf.mxu1 }
 0x8ec   :  { %v1436_v5 = vsel %vm1112_vm6, %v1434_v0, -inf }
 0x8ed   :  { %1437 = vmax.xlane.f32.xlu1 %v1436_v5  ;;  %v9354_v6 = vpop.f32.mrf.mxu0  ;;  %v9360_v7 = vpop.f32.mrf.mxu1 }
 0x8ef   :  { %v1426_v9 = vpop.f32.mrf.mxu0 }
 0x8f0   :  { %v1433_v11 = vmul.f32 0.35355338, %v1426_v9 }
 0x8f1   :  { %v9365_v12 = vpop.f32.mrf.mxu0 }
 0x8f2   :  { %v1435_v13 = vadd.f32 %v1433_v11, %v12023_v17 }
 0x8f3   :  { %v1429_v14 = vpop.f32.mrf.mxu0 }
 0x8f4   :  { %v1439_v15 = vsel %vm1112_vm6, %v1435_v13, -inf }
 0x8f5   :  { %1440 = vmax.xlane.f32.xlu0 %v1439_v15  ;;  %v9366_v16 = vpop.f32.mrf.mxu0 }
 0x8fe   :  { %1508 = vrot.lane.b32.xlu1 %v12001_v2, %s11509_s25 }
 0x90b   :  { %1460 = vrot.lane.b32.xlu0 %v11997_v61, %s11509_s25 }
 0x976   :  { %v1438_v18 = vpop.xlane.xlu1 %1437 }
 0x977   :  { %v1442_v19 = vsub.f32 %v1434_v0, %v1438_v18 }
 0x979   :  { %v1444_v21 = vmul.f32 1.442695, %v1442_v19 }
 0x97a   :  { %v1509_v22 = vpop.permute.xlu1 %1508 }
 0x97b   :  { %10397 = vpow2.f32 %v1444_v21  ;;  %v1514_v23 = vsel %vm1240_vm7, %v1509_v22, 0 }
 0x97c   :  { %9374 = vmatpush3.bf16.msra.mxu0 %v1514_v23 }
 0x97d   :  { %9385 = vmatprep.subr.bf16.mxu0 %v11503_v1 }
 0x97e   :  { %v1441_v24 = vpop.xlane.xlu0 %1440 }
 0x97f   :  { %v1443_v25 = vsub.f32 %v1435_v13, %v1441_v24 }
 0x981   :  { %v1446_v27 = vmul.f32 1.442695, %v1443_v25 }
 0x982   :  { %v1461_v28 = vpop.permute.xlu0 %1460 }
 0x983   :  { %10399 = vpow2.f32 %v1446_v27  ;;  %v1466_v29 = vsel %vm1240_vm7, %v1461_v28, 0 }
 0x984   :  { %9368 = vmatpush3.bf16.msra.mxu1 %v1466_v29 }
 0x985   :  { %9379 = vmatprep.subr.bf16.mxu1 %v11503_v1 }
 0x988   :  { %v10398_v30 = vpop.eup %10397 }
 0x989   :  { %v1448_v31 = vsel %vm1112_vm6, %v10398_v30, 0.0 }
 0x98a   :  { %1449 = vadd.xlane.f32.xlu0 %v1448_v31 }
 0x990   :  { %v10400_v32 = vpop.eup %10399 }
 0x991   :  { %v1451_v33 = vsel %vm1112_vm6, %v10400_v32, 0.0 }
 0x992   :  { %1452 = vadd.xlane.f32.xlu1 %v1451_v33 }
 0x9a0   :  { %1608 = vrot.lane.b32.xlu0 %v12001_v2, %s11510_s15 }
 0x9a3   :  { %1558 = vrot.lane.b32.xlu1 %v11997_v61, %s11510_s15 }
 0x9a4   :  { %1606 = vrot.lane.b32.xlu0 %v12001_v2, %s11511_s12 }
 0x9a7   :  { %1556 = vrot.lane.b32.xlu1 %v11997_v61, %s11511_s12 }
 0xa13   :  { %v1450_v34 = vpop.xlane.xlu0 %1449 }
 0xa14   :  { %10401 = vrcp.f32 %v1450_v34 }
 0xa17   :  { %v1609_v43 = vpop.permute.xlu0 %1608 }
 0xa18   :  { %v1614_v46 = vsel %vm1112_vm6, %v1609_v43, 0 }
 0xa1b   :  { %v1453_v35 = vpop.xlane.xlu1 %1452  ;;  %v1607_v47 = vpop.permute.xlu0 %1606 }
 0xa1c   :  { %10403 = vrcp.f32 %v1453_v35 }
 0xa1f   :  { %v1559_v38 = vpop.permute.xlu1 %1558 }
 0xa20   :  { %v1564_v40 = vsel %vm1112_vm6, %v1559_v38, 0 }
 0xa21   :  { %v10402_v36 = vpop.eup %10401 }
 0xa22   :  { %v1456_v37 = vmul.f32 %v10402_v36, %v10398_v30 }
 0xa23   :  { %v1557_v45 = vpop.permute.xlu1 %1556 }
 0xa24   :  { %v1458_v39 = vpack.c.bf16 %v1456_v37, %v1456_v37 }
 0xa26   :  { %9370 = vmatmul.mubr.msk.bf16.vlgmr.msra.gmra.mxu1 %vm1112_vm6, %v1458_v39 }
 0xa27   :  { %9380 = vmatpush3.bf16.xpose.msra.mxu1 %v1564_v40  ;;  %9381 = vmatprep.mubr.msk.bf16.mxu1 %vm11504_vm1, %v11503_v1 }
 0xa28   :  { %9391 = vmatprep.subr.bf16.mxu1 %v11503_v1 }
 0xa29   :  { %v10404_v41 = vpop.eup %10403 }
 0xa2a   :  { %v1457_v42 = vmul.f32 %v10404_v41, %v10400_v32 }
 0xa2c   :  { %v1459_v44 = vpack.c.bf16 %v1457_v42, %v1457_v42 }
 0xa2e   :  { %9376 = vmatmul.mubr.msk.bf16.vlgmr.msra.gmra.mxu0 %vm1112_vm6, %v1459_v44  ;;  %9382 = vmatmul.mubr.msk.bf16.vlgmr.msra.gmra.mxu1 %vm1112_vm6, %v1557_v45 }
 0xa2f   :  { %9386 = vmatpush3.bf16.xpose.msra.mxu0 %v1614_v46  ;;  %9387 = vmatprep.mubr.msk.bf16.mxu0 %vm11504_vm1, %v11503_v1 }
 0xa30   :  { %9397 = vmatprep.subr.bf16.mxu0 %v11503_v1  ;;  %9393 = vmatprep.mubr.msk.bf16.mxu1 %vm11504_vm1, %v11503_v1 }
 0xa36   :  { %9388 = vmatmul.mubr.msk.bf16.vlgmr.msra.gmra.mxu0 %vm1112_vm6, %v1607_v47 }
 0xa37   :  { %9399 = vmatprep.mubr.msk.bf16.mxu0 %vm11504_vm1, %v11503_v1 }
 0xae6   :  { %v12103_v48 = vpop.f32.mrf.mxu1 }
 0xae8   :  { %v9371_v49 = vpop.f32.mrf.mxu1 }
 0xaea   :  { %v1505_v50 = vpop.f32.mrf.mxu1 }
 0xaec   :  { %v9372_v51 = vpop.f32.mrf.mxu1 }
 0xaee   :  { %v12105_v52 = vpop.f32.mrf.mxu0  ;;  %v1600_v53 = vpop.f32.mrf.mxu1 }
 0xaef   :  { %v10234_v55 = vpack.i.bf16 %v12105_v52, %v12103_v48  ;;  %v1656_v56 = vmul.f32 0.35355338, %v1600_v53 }
 0xaf0   :  { %v9377_v57 = vpop.f32.mrf.mxu0  ;;  %v9383_v59 = vpop.f32.mrf.mxu1 }
 0xaf1   :  { %v1658_v60 = vadd.f32 %v1656_v56, %v12018_v8 }
 0xaf2   :  { %v1553_v62 = vpop.f32.mrf.mxu0  ;;  %v1603_v63 = vpop.f32.mrf.mxu1 }
 0xaf3   :  { %v1660_v0 = vsel %vm1112_vm6, %v1658_v60, -inf }
 0xaf4   :  { %v9378_v3 = vpop.f32.mrf.mxu0  ;;  %1661 = vmax.xlane.f32.xlu1 %v1660_v0  ;;  %v9384_v4 = vpop.f32.mrf.mxu1 }
 0xaf6   :  { %v1650_v5 = vpop.f32.mrf.mxu0 }
 0xaf7   :  { %v1657_v6 = vmul.f32 0.35355338, %v1650_v5 }
 0xaf8   :  { %v9389_v7 = vpop.f32.mrf.mxu0 }
 0xaf9   :  { %v1659_v9 = vadd.f32 %v1657_v6, %v12023_v17 }
 0xafa   :  { %v1653_v11 = vpop.f32.mrf.mxu0 }
 0xafb   :  { %v1663_v12 = vsel %vm1112_vm6, %v1659_v9, -inf }
 0xafc   :  { %1664 = vmax.xlane.f32.xlu0 %v1663_v12  ;;  %v9390_v13 = vpop.f32.mrf.mxu0 }
 0xb05   :  { %1732 = vrot.lane.b32.xlu1 %v12001_v2, %s11512_s16 }
 0xb12   :  { %1684 = vrot.lane.b32.xlu0 %v11997_v61, %s11512_s16 }
 0xb7d   :  { %v1662_v14 = vpop.xlane.xlu1 %1661 }
 0xb7e   :  { %v1666_v15 = vsub.f32 %v1658_v60, %v1662_v14 }
 0xb80   :  { %v1668_v16 = vmul.f32 1.442695, %v1666_v15 }
 0xb81   :  { %v1733_v18 = vpop.permute.xlu1 %1732 }
 0xb82   :  { %10405 = vpow2.f32 %v1668_v16  ;;  %v1738_v19 = vsel %vm1240_vm7, %v1733_v18, 0 }
 0xb83   :  { %9398 = vmatpush3.bf16.msra.mxu0 %v1738_v19 }
 0xb84   :  { %9409 = vmatprep.subr.bf16.mxu0 %v11503_v1 }
 0xb85   :  { %v1665_v21 = vpop.xlane.xlu0 %1664 }
 0xb86   :  { %v1667_v22 = vsub.f32 %v1659_v9, %v1665_v21 }
 0xb88   :  { %v1670_v23 = vmul.f32 1.442695, %v1667_v22 }
 0xb89   :  { %v1685_v24 = vpop.permute.xlu0 %1684 }
 0xb8a   :  { %10407 = vpow2.f32 %v1670_v23  ;;  %v1690_v25 = vsel %vm1240_vm7, %v1685_v24, 0 }
 0xb8b   :  { %9392 = vmatpush3.bf16.msra.mxu1 %v1690_v25 }
 0xb8c   :  { %9403 = vmatprep.subr.bf16.mxu1 %v11503_v1 }
 0xb8f   :  { %v10406_v27 = vpop.eup %10405 }
 0xb90   :  { %v1672_v28 = vsel %vm1112_vm6, %v10406_v27, 0.0 }
 0xb91   :  { %1673 = vadd.xlane.f32.xlu0 %v1672_v28 }
 0xb97   :  { %v10408_v29 = vpop.eup %10407 }
 0xb98   :  { %v1675_v30 = vsel %vm1112_vm6, %v10408_v29, 0.0 }
 0xb99   :  { %1676 = vadd.xlane.f32.xlu1 %v1675_v30 }
 0xba7   :  { %1832 = vrot.lane.b32.xlu0 %v12001_v2, %s11513_s18 }
 0xbaa   :  { %1782 = vrot.lane.b32.xlu1 %v11997_v61, %s11513_s18 }
 0xbab   :  { %1830 = vrot.lane.b32.xlu0 %v12001_v2, %s11514_s8 }
 0xbae   :  { %1780 = vrot.lane.b32.xlu1 %v11997_v61, %s11514_s8 }
 0xc1a   :  { %v1674_v31 = vpop.xlane.xlu0 %1673 }
 0xc1b   :  { %10409 = vrcp.f32 %v1674_v31 }
 0xc1e   :  { %v1833_v40 = vpop.permute.xlu0 %1832 }
 0xc1f   :  { %v1838_v43 = vsel %vm1112_vm6, %v1833_v40, 0 }
 0xc22   :  { %v1677_v32 = vpop.xlane.xlu1 %1676  ;;  %v1831_v44 = vpop.permute.xlu0 %1830 }
 0xc23   :  { %10411 = vrcp.f32 %v1677_v32 }
 0xc26   :  { %v1783_v35 = vpop.permute.xlu1 %1782 }
 0xc27   :  { %v1788_v37 = vsel %vm1112_vm6, %v1783_v35, 0  ;;  %v10333_v35 = vld [vmem:[%s13566_s23] sm:$0xff]  }
 0xc28   :  { %v10410_v33 = vpop.eup %10409 }
 0xc29   :  { %v1680_v34 = vmul.f32 %v10410_v33, %v10406_v27 }
 0xc2a   :  { %v1781_v42 = vpop.permute.xlu1 %1780 }
 0xc2b   :  { %v1682_v36 = vpack.c.bf16 %v1680_v34, %v1680_v34  ;;  %v10332_v34 = vld [vmem:[%s13566_s23 + $0x8] sm:$0xff]   ;;  %s13582_s23 = sld [smem:[#allocation89_spill]] }
 0xc2d   :  { %9394 = vmatmul.mubr.msk.bf16.vlgmr.msra.gmra.mxu1 %vm1112_vm6, %v1682_v36 }
 0xc2e   :  { %9404 = vmatpush3.bf16.xpose.msra.mxu1 %v1788_v37  ;;  %9405 = vmatprep.mubr.msk.bf16.mxu1 %vm11504_vm1, %v11503_v1 }
 0xc2f   :  { %9415 = vmatprep.subr.bf16.mxu1 %v11503_v1 }
 0xc30   :  { %v10412_v38 = vpop.eup %10411 }
 0xc31   :  { %v1681_v39 = vmul.f32 %v10412_v38, %v10408_v29 }
 0xc33   :  { %v1683_v41 = vpack.c.bf16 %v1681_v39, %v1681_v39 }
 0xc35   :  { %9400 = vmatmul.mubr.msk.bf16.vlgmr.msra.gmra.mxu0 %vm1112_vm6, %v1683_v41  ;;  %9406 = vmatmul.mubr.msk.bf16.vlgmr.msra.gmra.mxu1 %vm1112_vm6, %v1781_v42 }
 0xc36   :  { %9410 = vmatpush3.bf16.xpose.msra.mxu0 %v1838_v43  ;;  %9411 = vmatprep.mubr.msk.bf16.mxu0 %vm11504_vm1, %v11503_v1 }
 0xc37   :  { %9421 = vmatprep.subr.bf16.mxu0 %v11503_v1  ;;  %9417 = vmatprep.mubr.msk.bf16.mxu1 %vm11504_vm1, %v11503_v1 }
 0xc3d   :  { %9412 = vmatmul.mubr.msk.bf16.vlgmr.msra.gmra.mxu0 %vm1112_vm6, %v1831_v44 }
 0xc3e   :  { %9423 = vmatprep.mubr.msk.bf16.mxu0 %vm11504_vm1, %v11503_v1 }
 0xced   :  { %v1726_v45 = vpop.f32.mrf.mxu1 }
 0xcef   :  { %v9395_v46 = vpop.f32.mrf.mxu1 }
 0xcf1   :  { %v1729_v47 = vpop.f32.mrf.mxu1 }
 0xcf3   :  { %v9396_v49 = vpop.f32.mrf.mxu1 }
 0xcf5   :  { %v1774_v50 = vpop.f32.mrf.mxu0  ;;  %v1824_v51 = vpop.f32.mrf.mxu1 }
 0xcf6   :  { %v10239_v53 = vpack.i.bf16 %v1774_v50, %v1726_v45  ;;  %v1880_v56 = vmul.f32 0.35355338, %v1824_v51 }
 0xcf7   :  { %v9401_v57 = vpop.f32.mrf.mxu0  ;;  %v9407_v59 = vpop.f32.mrf.mxu1 }
 0xcf8   :  { %v1882_v60 = vadd.f32 %v1880_v56, %v12018_v8 }
 0xcf9   :  { %v1777_v62 = vpop.f32.mrf.mxu0  ;;  %v1827_v63 = vpop.f32.mrf.mxu1 }
 0xcfa   :  { %v1884_v0 = vsel %vm1112_vm6, %v1882_v60, -inf }
 0xcfb   :  { %v9402_v3 = vpop.f32.mrf.mxu0  ;;  %1885 = vmax.xlane.f32.xlu1 %v1884_v0  ;;  %v9408_v4 = vpop.f32.mrf.mxu1 }
 0xcfd   :  { %v1874_v5 = vpop.f32.mrf.mxu0 }
 0xcfe   :  { %v1881_v6 = vmul.f32 0.35355338, %v1874_v5 }
 0xcff   :  { %v9413_v7 = vpop.f32.mrf.mxu0 }
 0xd00   :  { %v1883_v9 = vadd.f32 %v1881_v6, %v12023_v17 }
 0xd01   :  { %v1877_v11 = vpop.f32.mrf.mxu0 }
 0xd02   :  { %v1887_v12 = vsel %vm1112_vm6, %v1883_v9, -inf }
 0xd03   :  { %1888 = vmax.xlane.f32.xlu0 %v1887_v12  ;;  %v9414_v13 = vpop.f32.mrf.mxu0 }
 0xd84   :  { %v1886_v14 = vpop.xlane.xlu1 %1885 }
 0xd85   :  { %v1890_v15 = vsub.f32 %v1882_v60, %v1886_v14 }
 0xd87   :  { %v1892_v16 = vmul.f32 1.442695, %v1890_v15 }
 0xd89   :  { %10413 = vpow2.f32 %v1892_v16 }
 0xd8c   :  { %v1889_v18 = vpop.xlane.xlu0 %1888 }
 0xd8d   :  { %v1891_v19 = vsub.f32 %v1883_v9, %v1889_v18 }
 0xd8f   :  { %v1894_v21 = vmul.f32 1.442695, %v1891_v19 }
 0xd91   :  { %10415 = vpow2.f32 %v1894_v21 }
 0xd96   :  { %v10414_v22 = vpop.eup %10413 }
 0xd97   :  { %v1896_v23 = vsel %vm1112_vm6, %v10414_v22, 0.0 }
 0xd98   :  { %1897 = vadd.xlane.f32.xlu0 %v1896_v23 }
 0xd9e   :  { %v10416_v24 = vpop.eup %10415 }
 0xd9f   :  { %v1899_v25 = vsel %vm1112_vm6, %v10416_v24, 0.0 }
 0xda0   :  { %1900 = vadd.xlane.f32.xlu1 %v1899_v25 }
 0xdae   :  { %1908 = vrot.lane.b32.xlu0 %v11997_v61, %s11515_s22 }
 0xdb1   :  { %1956 = vrot.lane.b32.xlu1 %v12001_v2, %s11515_s22 }
 0xdb2   :  { %10240 = vrot.lane.b32.xlu0 %v10239_v53, %s11516_s19 }
 0xdb5   :  { %10235 = vrot.lane.b32.xlu1 %v10234_v55, %s11517_s17 }
 0xe21   :  { %v1898_v27 = vpop.xlane.xlu0 %1897 }
 0xe22   :  { %10417 = vrcp.f32 %v1898_v27  ;;  %v10334_v27 = vld [vmem:[%s13567_s26 + $0x8] sm:$0xff]  }
 0xe25   :  { %v1909_v28 = vpop.permute.xlu0 %1908 }
 0xe26   :  { %v1914_v29 = vsel %vm1240_vm7, %v1909_v28, 0  ;;  %v10335_v28 = vld [vmem:[%s13567_s26] sm:$0xff]   ;;  %s13583_s26 = sld [smem:[#allocation78_spill]] }
 0xe27   :  { %9416 = vmatpush3.bf16.msra.mxu1 %v1914_v29  ;;  %v10336_v29 = vld [vmem:[%s13568_s28 + $0x18] sm:$0xff]  }
 0xe28   :  { %9427 = vmatprep.subr.bf16.mxu1 %v11503_v1 }
 0xe29   :  { %v1901_v61 = vpop.xlane.xlu1 %1900  ;;  %v10241_v49 = vpop.permute.xlu0 %10240 }
 0xe2a   :  { %10419 = vrcp.f32 %v1901_v61  ;;  %v10243_v53 = vunpack.i.h.bf16 %v10241_v49  ;;  %v10242_v56 = vunpack.i.l.bf16 %v10241_v49 }
 0xe2d   :  { %v1957_v2 = vpop.permute.xlu1 %1956 }
 0xe2e   :  { %v1962_v30 = vsel %vm1240_vm7, %v1957_v2, 0 }
 0xe2f   :  { %v10418_v31 = vpop.eup %10417  ;;  %9422 = vmatpush3.bf16.msra.mxu0 %v1962_v30 }
 0xe30   :  { %v1904_v32 = vmul.f32 %v10418_v31, %v10414_v22  ;;  %9435 = vmatprep.subr.bf16.mxu0 %v11503_v1 }
 0xe31   :  { %v10236_v45 = vpop.permute.xlu1 %10235 }
 0xe32   :  { %v1906_v48 = vpack.c.bf16 %v1904_v32, %v1904_v32  ;;  %v10238_v46 = vunpack.i.h.bf16 %v10236_v45  ;;  %v10237_v47 = vunpack.i.l.bf16 %v10236_v45  ;;  %v8799_v45 = vld [vmem:[%s13569_s1] ss:$0 sm:$0xff]  ;;  %s13585_s1 = sld [smem:[#allocation100_spill]] }
 0xe34   :  { %9418 = vmatmul.mubr.msk.bf16.vlgmr.msra.gmra.mxu1 %vm1112_vm6, %v1906_v48  ;;  %v2029_v50 = vsel %vm1112_vm6, %v12063_v58, %v10238_v46  ;;  %v2028_v51 = vsel %vm1112_vm6, %v12061_v54, %v10237_v47  ;;  %v8792_v54 = vld [vmem:[#allocation39] ss:$0 sm:$0xff] }
 0xe35   :  { %9431 = vmatprep.mubr.msk.bf16.mxu1 %vm11504_vm1, %v11503_v1  ;;  %9428 = vmatpush3.bf16.msra.mxu1 %v10332_v34  ;;  %v2031_v62 = vsel %vm2030_vm8, %v2028_v51, %v10242_v56  ;;  %v2032_v63 = vsel %vm2030_vm8, %v2029_v50, %v10243_v53 }
 0xe36   :  { %9429 = vmatprep.subr.bf16.mxu1 %v11503_v1 }
 0xe37   :  { %v10420_v52 = vpop.eup %10419 }
 0xe38   :  { %v1905_v55 = vmul.f32 %v10420_v52, %v10416_v24 }
 0xe39   :  { %9430 = vmatpush3.bf16.msra.mxu1 %v10333_v35 }
 0xe3a   :  { %v1907_v33 = vpack.c.bf16 %v1905_v55, %v1905_v55  ;;  %9443 = vmatprep.subr.bf16.mxu1 %v11503_v1 }
 0xe3c   :  { %9424 = vmatmul.mubr.msk.bf16.vlgmr.msra.gmra.mxu0 %vm1112_vm6, %v1907_v33  ;;  %v8797_v33 = vld [vmem:[#allocation37] ss:$0 sm:$0xff] }
 0xe3d   :  { %9439 = vmatprep.mubr.msk.bf16.mxu0 %vm11504_vm1, %v11503_v1  ;;  %9436 = vmatpush3.bf16.msra.mxu0 %v10334_v27 }
 0xe3e   :  { %9437 = vmatprep.subr.bf16.mxu0 %v11503_v1 }
 0xe41   :  { %9438 = vmatpush3.bf16.msra.mxu0 %v10335_v28 }
 0xe42   :  { %9455 = vmatprep.subr.bf16.mxu0 %v11503_v1 }
 0xef4   :  { %v1950_v36 = vpop.f32.mrf.mxu1 }
 0xef6   :  { %v9419_v37 = vpop.f32.mrf.mxu1 }
 0xef7   :  { %v8798_v37 = vld [vmem:[#allocation36] ss:$0 sm:$0xff] }
 0xef8   :  { %v1953_v38 = vpop.f32.mrf.mxu1 }
 0xefa   :  { %v9420_v39 = vpop.f32.mrf.mxu1 }
 0xefc   :  { %v1998_v40 = vpop.f32.mrf.mxu0 }
 0xefd   :  { %v10244_v41 = vpack.i.bf16 %v1998_v40, %v1950_v36 }
 0xefe   :  { %v9425_v42 = vpop.f32.mrf.mxu0 }
 0xeff   :  { %10245 = vrot.lane.b32.xlu1 %v10244_v41, %s11518_s4  ;;  %v10337_v42 = vld [vmem:[%s13568_s28 + $0x10] sm:$0xff]  }
 0xf00   :  { %v2001_v43 = vpop.f32.mrf.mxu0 }
 0xf01   :  { %v10338_v43 = vld [vmem:[%s13568_s28 + $0x8] sm:$0xff]  }
 0xf02   :  { %v9426_v44 = vpop.f32.mrf.mxu0 }
 0xf03   :  { %v10339_v44 = vld [vmem:[%s13568_s28] sm:$0xff]   ;;  %s13584_s28 = sld [smem:[#allocation79_spill]] }
 0xf71   :  { %v10246_v57 = vpop.permute.xlu1 %10245 }
 0xf72   :  { %v10248_v59 = vunpack.i.h.bf16 %v10246_v57  ;;  %v10247_v60 = vunpack.i.l.bf16 %v10246_v57 }
 0xf74   :  { %v2035_v0 = vsel %vm2033_vm9, %v2032_v63, %v10248_v59  ;;  %v2034_v3 = vsel %vm2033_vm9, %v2031_v62, %v10247_v60  ;;  %v8803_v60 = vld [vmem:[%s13570_s2] ss:$0 sm:$0xff]  ;;  %s13586_s2 = sld [smem:[#allocation98_spill]] }
 0xf75   :  { %v9015_v4 = vpack.c.bf16 %v2035_v0, %v2034_v3 }
 0xf77   :  { %9432 = vmatmul.mubr.msk.bf16.vlgmr.msra.gmra.mxu1 %vm997_vm5, %v9015_v4 }
 0xf78   :  { %9451 = vmatprep.mubr.msk.bf16.mxu1 %vm11504_vm1, %v11503_v1  ;;  %9444 = vmatpush3.bf16.msra.mxu1 %v10336_v29 }
 0xf79   :  { %9445 = vmatprep.subr.bf16.mxu1 %v11503_v1 }
 0xf7c   :  { %9446 = vmatpush3.bf16.msra.mxu1 %v10337_v42 }
 0xf7d   :  { %9447 = vmatprep.subr.bf16.mxu1 %v11503_v1 }
 0xf80   :  { %9448 = vmatpush3.bf16.msra.mxu1 %v10338_v43 }
 0xf81   :  { %9449 = vmatprep.subr.bf16.mxu1 %v11503_v1 }
 0xf84   :  { %9450 = vmatpush3.bf16.msra.mxu1 %v10339_v44 }
 0xf85   :  { %9469 = vmatprep.subr.bf16.mxu1 %v11503_v1 }
0x1037   :  { %v2098_v58 = vpop.f32.mrf.mxu1 }
0x1038   :  { %v2099_v5 = vadd.f32 %v8792_v54, %v2098_v58 }
0x1039   :  { %v9433_v6 = vpop.f32.mrf.mxu1 }
0x103a   :  { %v12189_v7 = vadd.f32 %v2099_v5, %v11977_v20 }
0x103b   :  { %v2101_v9 = vpop.f32.mrf.mxu1 }
0x103c   :  { %v2102_v11 = vadd.f32 %v8792_v54, %v2101_v9  ;;  %v2107_v12 = vsel %vm997_vm5, %v12189_v7, 0.0 }
0x103d   :  { %2108 = vadd.xlane.f32.xlu0 %v2107_v12  ;;  %v9434_v13 = vpop.f32.mrf.mxu1 }
0x103e   :  { %v12194_v14 = vadd.f32 %v2102_v11, %v11982_v26 }
0x1040   :  { %v2110_v15 = vsel %vm997_vm5, %v12194_v14, 0.0 }
0x1041   :  { %2111 = vadd.xlane.f32.xlu1 %v2110_v15 }
0x10c6   :  { %v2109_v16 = vpop.xlane.xlu0 %2108 }
0x10c7   :  { %v2113_v18 = vmul.f32 0.03125, %v2109_v16 }
0x10c9   :  { %v2115_v20 = vsub.f32 %v12189_v7, %v2113_v18 }
0x10ca   :  { %v2112_v19 = vpop.xlane.xlu1 %2111 }
0x10cb   :  { %v2114_v21 = vmul.f32 0.03125, %v2112_v19  ;;  %v2117_v22 = vmul.f32 %v2115_v20, %v2115_v20 }
0x10cd   :  { %v2116_v23 = vsub.f32 %v12194_v14, %v2114_v21  ;;  %v2119_v24 = vsel %vm997_vm5, %v2117_v22, 0.0  ;;  %v10340_v21 = vld [vmem:[%s13571_s30 + $0x8] sm:$0xff]   ;;  %v10341_v22 = vld [vmem:[%s13571_s30] sm:$0xff]   ;;  %s13591_s30 = sld [smem:[#allocation106_spill]] }
0x10ce   :  { %2120 = vadd.xlane.f32.xlu0 %v2119_v24 }
0x10cf   :  { %v2118_v26 = vmul.f32 %v2116_v23, %v2116_v23 }
0x10d1   :  { %v2122_v25 = vsel %vm997_vm5, %v2118_v26, 0.0 }
0x10d2   :  { %2123 = vadd.xlane.f32.xlu0 %v2122_v25 }
0x1157   :  { %v2121_v61 = vpop.xlane.xlu0 %2120 }
0x1158   :  { %v2125_v2 = vmul.f32 0.03125, %v2121_v61 }
0x115a   :  { %v2127_v30 = vadd.f32 1e-05, %v2125_v2  ;;  %v8809_v2 = vld [vmem:[#allocation46] ss:$0 sm:$0xff] }
0x115b   :  { %v2124_v31 = vpop.xlane.xlu0 %2123 }
0x115c   :  { %10421 = vrsqrt.f32 %v2127_v30  ;;  %v2126_v32 = vmul.f32 0.03125, %v2124_v31 }
0x115e   :  { %v2128_v48 = vadd.f32 1e-05, %v2126_v32 }
0x1160   :  { %10423 = vrsqrt.f32 %v2128_v48  ;;  %v8810_v48 = vld [vmem:[#allocation45] ss:$0 sm:$0xff] }
0x1169   :  { %v10422_v52 = vpop.eup %10421 }
0x116a   :  { %v2131_v55 = vmul.f32 %v10422_v52, %v2115_v20 }
0x116c   :  { %v2139_v36 = vmul.f32 %v8797_v33, %v2131_v55 }
0x116d   :  { %v10424_v34 = vpop.eup %10423 }
0x116e   :  { %v2132_v35 = vmul.f32 %v10424_v34, %v2116_v23  ;;  %v2147_v39 = vadd.f32 %v8798_v37, %v2139_v36 }
0x1170   :  { %v2140_v38 = vmul.f32 %v8797_v33, %v2132_v35  ;;  %v8811_v35 = vld [vmem:[#allocation52] ss:$0 sm:$0xff] }
0x1172   :  { %v2148_v40 = vadd.f32 %v8798_v37, %v2140_v38 }
0x1174   :  { %v2149_v41 = vpack.c.bf16 %v2148_v40, %v2147_v39 }
0x1176   :  { %9440 = vmatmul.mubr.msk.bf16.vlgmr.msra.gmra.mxu0 %vm997_vm5, %v2149_v41 }
0x1177   :  { %9459 = vmatprep.mubr.msk.bf16.mxu0 %vm11504_vm1, %v11503_v1  ;;  %9456 = vmatpush3.bf16.msra.mxu0 %v10340_v21 }
0x1178   :  { %9457 = vmatprep.subr.bf16.mxu0 %v11503_v1 }
0x117b   :  { %9458 = vmatpush3.bf16.msra.mxu0 %v10341_v22 }
0x117c   :  { %9463 = vmatprep.subr.bf16.mxu0 %v11503_v1 }
0x1236   :  { %v2205_v46 = vpop.f32.mrf.mxu0 }
0x1237   :  { %v2206_v49 = vadd.f32 %v8799_v45, %v2205_v46 }
0x1238   :  { %v9441_v47 = vpop.f32.mrf.mxu0 }
0x1239   :  { %v2212_v56 = vmax.f32 %v2206_v49, 0.0 }
0x123a   :  { %v2208_v50 = vpop.f32.mrf.mxu0 }
0x123b   :  { %v2209_v51 = vadd.f32 %v8799_v45, %v2208_v50 }
0x123c   :  { %v9442_v53 = vpop.f32.mrf.mxu0 }
0x123d   :  { %v2213_v57 = vmax.f32 %v2209_v51, 0.0 }
0x123f   :  { %v2214_v59 = vpack.c.bf16 %v2213_v57, %v2212_v56 }
0x1241   :  { %9452 = vmatmul.mubr.msk.bf16.vlgmr.msra.gmra.mxu1 %vm2245_vm10, %v2214_v59 }
0x1242   :  { %9471 = vmatprep.mubr.msk.bf16.mxu1 %vm11504_vm1, %v11503_v1 }
0x1301   :  { %v2283_v62 = vpop.f32.mrf.mxu1 }
0x1302   :  { %v2284_v63 = vadd.f32 %v8803_v60, %v2283_v62 }
0x1303   :  { %v9453_v0 = vpop.f32.mrf.mxu1 }
0x1304   :  { %v12223_v3 = vadd.f32 %v2284_v63, %v12189_v7 }
0x1305   :  { %v2286_v4 = vpop.f32.mrf.mxu1 }
0x1306   :  { %v2287_v54 = vadd.f32 %v8803_v60, %v2286_v4  ;;  %v2292_v58 = vsel %vm997_vm5, %v12223_v3, 0.0 }
0x1307   :  { %2293 = vadd.xlane.f32.xlu1 %v2292_v58  ;;  %v9454_v5 = vpop.f32.mrf.mxu1 }
0x1308   :  { %v12228_v6 = vadd.f32 %v2287_v54, %v12194_v14 }
0x130a   :  { %v2295_v9 = vsel %vm997_vm5, %v12228_v6, 0.0 }
0x130b   :  { %2296 = vadd.xlane.f32.xlu0 %v2295_v9 }
0x1390   :  { %v2294_v11 = vpop.xlane.xlu1 %2293 }
0x1391   :  { %v2298_v12 = vmul.f32 0.03125, %v2294_v11 }
0x1393   :  { %v2300_v7 = vsub.f32 %v12223_v3, %v2298_v12 }
0x1394   :  { %v2297_v13 = vpop.xlane.xlu0 %2296 }
0x1395   :  { %v2299_v15 = vmul.f32 0.03125, %v2297_v13  ;;  %v2302_v16 = vmul.f32 %v2300_v7, %v2300_v7 }
0x1397   :  { %v2301_v18 = vsub.f32 %v12228_v6, %v2299_v15  ;;  %v2304_v20 = vsel %vm997_vm5, %v2302_v16, 0.0 }
0x1398   :  { %2305 = vadd.xlane.f32.xlu1 %v2304_v20 }
0x1399   :  { %v2303_v19 = vmul.f32 %v2301_v18, %v2301_v18 }
0x139b   :  { %v2307_v14 = vsel %vm997_vm5, %v2303_v19, 0.0 }
0x139c   :  { %2308 = vadd.xlane.f32.xlu0 %v2307_v14 }
0x1421   :  { %v2306_v23 = vpop.xlane.xlu1 %2305 }
0x1422   :  { %v2310_v24 = vmul.f32 0.03125, %v2306_v23 }
0x1424   :  { %v2312_v26 = vadd.f32 1e-05, %v2310_v24 }
0x1425   :  { %v2309_v25 = vpop.xlane.xlu0 %2308 }
0x1426   :  { %10425 = vrsqrt.f32 %v2312_v26  ;;  %v2311_v27 = vmul.f32 0.03125, %v2309_v25 }
0x1428   :  { %v2313_v28 = vadd.f32 1e-05, %v2311_v27 }
0x142a   :  { %10427 = vrsqrt.f32 %v2313_v28 }
0x1433   :  { %v10426_v29 = vpop.eup %10425 }
0x1434   :  { %v2316_v61 = vmul.f32 %v10426_v29, %v2300_v7 }
0x1436   :  { %v2324_v32 = vmul.f32 %v8809_v2, %v2316_v61 }
0x1437   :  { %v10428_v30 = vpop.eup %10427 }
0x1438   :  { %v2317_v31 = vmul.f32 %v10428_v30, %v2301_v18  ;;  %v2332_v55 = vadd.f32 %v8810_v48, %v2324_v32 }
0x143a   :  { %v2325_v52 = vmul.f32 %v8809_v2, %v2317_v31 }
0x143c   :  { %v2333_v33 = vadd.f32 %v8810_v48, %v2325_v52 }
0x143e   :  { %v2334_v34 = vpack.c.bf16 %v2333_v33, %v2332_v55 }
0x1440   :  { %9460 = vmatmul.mubr.msk.bf16.vlgmr.msra.gmra.mxu0 %vm997_vm5, %v2334_v34 }
0x1441   :  { %9465 = vmatprep.mubr.msk.bf16.mxu0 %vm11504_vm1, %v11503_v1 }
0x1500   :  { %v2390_v36 = vpop.f32.mrf.mxu0 }
0x1501   :  { %v2391_v37 = vadd.f32 %v8811_v35, %v2390_v36 }
0x1502   :  { %v9461_v38 = vpop.f32.mrf.mxu0 }
0x1503   :  { %v12243_v39 = vpack.c.bf16 %v2391_v37, %v2391_v37 }
0x1504   :  { %v2393_v40 = vpop.f32.mrf.mxu0 }
0x1505   :  { %v2394_v41 = vadd.f32 %v8811_v35, %v2393_v40  ;;  %2403 = vrot.lane.b32.xlu1 %v12243_v39, %s11505_s29 }
0x1506   :  { %v9462_v42 = vpop.f32.mrf.mxu0 }
0x1507   :  { %v12247_v43 = vpack.c.bf16 %v2394_v41, %v2394_v41  ;;  %v12306_v42 = vld [vmem:[%s13565_s10] sm:$0xff] }
0x1509   :  { %2451 = vrot.lane.b32.xlu0 %v12247_v43, %s11505_s29 }
0x1577   :  { %v2404_v44 = vpop.permute.xlu1 %2403 }
0x1578   :  { %v2409_v45 = vsel %vm1112_vm6, %v2404_v44, 0 }
0x1579   :  { %9464 = vmatpush3.bf16.xpose.msra.mxu0 %v2409_v45 }
0x157a   :  { %9475 = vmatprep.subr.bf16.mxu0 %v11503_v1 }
0x157b   :  { %v2452_v46 = vpop.permute.xlu0 %2451 }
0x157c   :  { %v2457_v47 = vsel %vm1112_vm6, %v2452_v46, 0 }
0x157d   :  { %9470 = vmatpush3.bf16.xpose.msra.mxu1 %v2457_v47 }
0x157e   :  { %9481 = vmatprep.subr.bf16.mxu1 %v11503_v1 }
0x1580   :  { %9466 = vmatmul.mubr.msk.bf16.vlgmr.msra.gmra.mxu0 %vm1112_vm6, %v12243_v39 }
0x1581   :  { %9477 = vmatprep.mubr.msk.bf16.mxu0 %vm11504_vm1, %v11503_v1 }
0x1584   :  { %9472 = vmatmul.mubr.msk.bf16.vlgmr.msra.gmra.mxu1 %vm1112_vm6, %v12247_v43 }
0x1585   :  { %9483 = vmatprep.mubr.msk.bf16.mxu1 %vm11504_vm1, %v11503_v1 }
0x1640   :  { %v2445_v49 = vpop.f32.mrf.mxu0 }
0x1641   :  { %v2499_v50 = vmul.f32 0.35355338, %v2445_v49 }
0x1642   :  { %v9467_v51 = vpop.f32.mrf.mxu0 }
0x1643   :  { %v2501_v53 = vadd.f32 %v2499_v50, %v12018_v8 }
0x1644   :  { %v2448_v56 = vpop.f32.mrf.mxu0  ;;  %v2493_v57 = vpop.f32.mrf.mxu1 }
0x1645   :  { %v2500_v59 = vmul.f32 0.35355338, %v2493_v57  ;;  %v2503_v60 = vsel %vm1112_vm6, %v2501_v53, -inf }
0x1646   :  { %2504 = vmax.xlane.f32.xlu1 %v2503_v60  ;;  %v9468_v62 = vpop.f32.mrf.mxu0  ;;  %v9473_v63 = vpop.f32.mrf.mxu1 }
0x1647   :  { %v2502_v0 = vadd.f32 %v2500_v59, %v12023_v17 }
0x1648   :  { %v2496_v4 = vpop.f32.mrf.mxu1 }
0x1649   :  { %v2506_v54 = vsel %vm1112_vm6, %v2502_v0, -inf }
0x164a   :  { %2507 = vmax.xlane.f32.xlu0 %v2506_v54  ;;  %v9474_v58 = vpop.f32.mrf.mxu1 }
0x1657   :  { %2527 = vrot.lane.b32.xlu1 %v12243_v39, %s11506_s14 }
0x16cf   :  { %v2505_v5 = vpop.xlane.xlu1 %2504 }
0x16d0   :  { %v2509_v8 = vsub.f32 %v2501_v53, %v2505_v5  ;;  %v12311_v53 = vld [vmem:[%s13565_s10 + $0x8] sm:$0xff]  ;;  %s13581_s10 = sld [smem:[#allocation76_spill]] }
0x16d2   :  { %v2511_v9 = vmul.f32 1.442695, %v2509_v8 }
0x16d3   :  { %v2528_v11 = vpop.permute.xlu1 %2527  ;;  %v2508_v12 = vpop.xlane.xlu0 %2507 }
0x16d4   :  { %10429 = vpow2.f32 %v2511_v9  ;;  %v2533_v7 = vsel %vm1240_vm7, %v2528_v11, 0  ;;  %v2510_v13 = vsub.f32 %v2502_v0, %v2508_v12 }
0x16d5   :  { %9476 = vmatpush3.bf16.msra.mxu0 %v2533_v7 }
0x16d6   :  { %v2513_v15 = vmul.f32 1.442695, %v2510_v13  ;;  %9487 = vmatprep.subr.bf16.mxu0 %v11503_v1 }
0x16d8   :  { %10431 = vpow2.f32 %v2513_v15 }
0x16e1   :  { %v10430_v17 = vpop.eup %10429 }
0x16e2   :  { %v2515_v16 = vsel %vm1112_vm6, %v10430_v17, 0.0 }
0x16e3   :  { %2516 = vadd.xlane.f32.xlu1 %v2515_v16 }
0x16e5   :  { %v10432_v18 = vpop.eup %10431 }
0x16e6   :  { %v2518_v20 = vsel %vm1112_vm6, %v10432_v18, 0.0 }
0x16e7   :  { %2519 = vadd.xlane.f32.xlu0 %v2518_v20 }
0x16f4   :  { %2625 = vrot.lane.b32.xlu1 %v12243_v39, %s11507_s11 }
0x16f8   :  { %2675 = vrot.lane.b32.xlu1 %v12247_v43, %s11507_s11 }
0x16fc   :  { %2673 = vrot.lane.b32.xlu1 %v12247_v43, %s11508_s6 }
0x16fd   :  { %2575 = vrot.lane.b32.xlu0 %v12247_v43, %s11506_s14 }
0x1701   :  { %2623 = vrot.lane.b32.xlu0 %v12243_v39, %s11508_s6 }
0x176c   :  { %v2517_v19 = vpop.xlane.xlu1 %2516 }
0x176d   :  { %10433 = vrcp.f32 %v2517_v19 }
0x1770   :  { %v2520_v14 = vpop.xlane.xlu0 %2519  ;;  %v2626_v24 = vpop.permute.xlu1 %2625 }
0x1771   :  { %10435 = vrcp.f32 %v2520_v14  ;;  %v2631_v28 = vsel %vm1112_vm6, %v2626_v24, 0 }
0x1774   :  { %v2576_v21 = vpop.permute.xlu0 %2575  ;;  %v2676_v61 = vpop.permute.xlu1 %2675 }
0x1775   :  { %v2581_v22 = vsel %vm1240_vm7, %v2576_v21, 0  ;;  %v2681_v30 = vsel %vm1112_vm6, %v2676_v61, 0 }
0x1776   :  { %9482 = vmatpush3.bf16.msra.mxu1 %v2581_v22 }
0x1777   :  { %9493 = vmatprep.subr.bf16.mxu1 %v11503_v1 }
0x1778   :  { %v2624_v31 = vpop.permute.xlu0 %2623  ;;  %v2674_v32 = vpop.permute.xlu1 %2673 }
0x177a   :  { %v10434_v23 = vpop.eup %10433 }
0x177b   :  { %v2523_v26 = vmul.f32 %v10434_v23, %v10430_v17 }
0x177d   :  { %v2525_v25 = vpack.c.bf16 %v2523_v26, %v2523_v26 }
0x177e   :  { %v10436_v27 = vpop.eup %10435 }
0x177f   :  { %9478 = vmatmul.mubr.msk.bf16.vlgmr.msra.gmra.mxu0 %vm1112_vm6, %v2525_v25  ;;  %v2524_v29 = vmul.f32 %v10436_v27, %v10432_v18 }
0x1780   :  { %9488 = vmatpush3.bf16.xpose.msra.mxu0 %v2631_v28  ;;  %9489 = vmatprep.mubr.msk.bf16.mxu0 %vm11504_vm1, %v11503_v1 }
0x1781   :  { %v2526_v2 = vpack.c.bf16 %v2524_v29, %v2524_v29  ;;  %9499 = vmatprep.subr.bf16.mxu0 %v11503_v1 }
0x1783   :  { %9484 = vmatmul.mubr.msk.bf16.vlgmr.msra.gmra.mxu1 %vm1112_vm6, %v2526_v2 }
0x1784   :  { %9494 = vmatpush3.bf16.xpose.msra.mxu1 %v2681_v30  ;;  %9495 = vmatprep.mubr.msk.bf16.mxu1 %vm11504_vm1, %v11503_v1 }
0x1785   :  { %9505 = vmatprep.subr.bf16.mxu1 %v11503_v1 }
0x1787   :  { %9490 = vmatmul.mubr.msk.bf16.vlgmr.msra.gmra.mxu0 %vm1112_vm6, %v2624_v31 }
0x1788   :  { %9501 = vmatprep.mubr.msk.bf16.mxu0 %vm11504_vm1, %v11503_v1 }
0x178b   :  { %9496 = vmatmul.mubr.msk.bf16.vlgmr.msra.gmra.mxu1 %vm1112_vm6, %v2674_v32 }
0x178c   :  { %9507 = vmatprep.mubr.msk.bf16.mxu1 %vm11504_vm1, %v11503_v1 }
0x183f   :  { %v12301_v48 = vpop.f32.mrf.mxu0 }
0x1841   :  { %v9479_v52 = vpop.f32.mrf.mxu0 }
0x1843   :  { %v2572_v55 = vpop.f32.mrf.mxu0  ;;  %v12303_v33 = vpop.f32.mrf.mxu1 }
0x1845   :  { %v9480_v34 = vpop.f32.mrf.mxu0  ;;  %v9485_v35 = vpop.f32.mrf.mxu1 }
0x1847   :  { %v2620_v36 = vpop.f32.mrf.mxu1  ;;  %v2667_v37 = vpop.f32.mrf.mxu0 }
0x1848   :  { %v2723_v38 = vmul.f32 0.35355338, %v2667_v37 }
0x1849   :  { %v9486_v40 = vpop.f32.mrf.mxu1  ;;  %v9491_v41 = vpop.f32.mrf.mxu0 }
0x184a   :  { %v2725_v44 = vadd.f32 %v12306_v42, %v2723_v38 }
0x184b   :  { %v2670_v45 = vpop.f32.mrf.mxu0  ;;  %v2717_v46 = vpop.f32.mrf.mxu1 }
0x184c   :  { %v2724_v47 = vmul.f32 0.35355338, %v2717_v46  ;;  %v2727_v49 = vsel %vm1112_vm6, %v2725_v44, -inf }
0x184d   :  { %2728 = vmax.xlane.f32.xlu0 %v2727_v49  ;;  %v9492_v50 = vpop.f32.mrf.mxu0  ;;  %v9497_v51 = vpop.f32.mrf.mxu1 }
0x184e   :  { %v2726_v56 = vadd.f32 %v12311_v53, %v2724_v47 }
0x184f   :  { %v2720_v57 = vpop.f32.mrf.mxu1 }
0x1850   :  { %v2730_v59 = vsel %vm1112_vm6, %v2726_v56, -inf }
0x1851   :  { %2731 = vmax.xlane.f32.xlu1 %v2730_v59  ;;  %v9498_v60 = vpop.f32.mrf.mxu1 }
0x1862   :  { %2751 = vrot.lane.b32.xlu1 %v12243_v39, %s11509_s25 }
0x1866   :  { %2849 = vrot.lane.b32.xlu1 %v12243_v39, %s11510_s15 }
0x186a   :  { %2899 = vrot.lane.b32.xlu1 %v12247_v43, %s11510_s15 }
0x186e   :  { %2897 = vrot.lane.b32.xlu1 %v12247_v43, %s11511_s12 }
0x18d6   :  { %v2729_v62 = vpop.xlane.xlu0 %2728 }
0x18d7   :  { %v2733_v63 = vsub.f32 %v2725_v44, %v2729_v62 }
0x18d9   :  { %v2735_v0 = vmul.f32 1.442695, %v2733_v63 }
0x18da   :  { %v2732_v4 = vpop.xlane.xlu1 %2731 }
0x18db   :  { %10437 = vpow2.f32 %v2735_v0  ;;  %v2734_v54 = vsub.f32 %v2726_v56, %v2732_v4 }
0x18dd   :  { %v2737_v58 = vmul.f32 1.442695, %v2734_v54 }
0x18de   :  { %v2752_v5 = vpop.permute.xlu1 %2751 }
0x18df   :  { %10439 = vpow2.f32 %v2737_v58  ;;  %v2757_v8 = vsel %vm1240_vm7, %v2752_v5, 0 }
0x18e0   :  { %9500 = vmatpush3.bf16.msra.mxu0 %v2757_v8 }
0x18e1   :  { %9511 = vmatprep.subr.bf16.mxu0 %v11503_v1 }
0x18e2   :  { %v2850_v20 = vpop.permute.xlu1 %2849 }
0x18e3   :  { %v2855_v22 = vsel %vm1112_vm6, %v2850_v20, 0 }
0x18e6   :  { %v2900_v24 = vpop.permute.xlu1 %2899 }
0x18e7   :  { %v2905_v25 = vsel %vm1112_vm6, %v2900_v24, 0 }
0x18e8   :  { %v10438_v9 = vpop.eup %10437 }
0x18e9   :  { %v2739_v11 = vsel %vm1112_vm6, %v10438_v9, 0.0 }
0x18ea   :  { %2740 = vadd.xlane.f32.xlu0 %v2739_v11  ;;  %v2898_v28 = vpop.permute.xlu1 %2897 }
0x18ec   :  { %v10440_v12 = vpop.eup %10439 }
0x18ed   :  { %v2742_v7 = vsel %vm1112_vm6, %v10440_v12, 0.0 }
0x18ee   :  { %2743 = vadd.xlane.f32.xlu0 %v2742_v7 }
0x1904   :  { %2799 = vrot.lane.b32.xlu0 %v12247_v43, %s11509_s25 }
0x1908   :  { %2847 = vrot.lane.b32.xlu0 %v12243_v39, %s11511_s12 }
0x1973   :  { %v2741_v13 = vpop.xlane.xlu0 %2740 }
0x1974   :  { %10441 = vrcp.f32 %v2741_v13 }
0x1977   :  { %v2744_v15 = vpop.xlane.xlu0 %2743 }
0x1978   :  { %10443 = vrcp.f32 %v2744_v15 }
0x197b   :  { %v2800_v17 = vpop.permute.xlu0 %2799 }
0x197c   :  { %v2805_v16 = vsel %vm1240_vm7, %v2800_v17, 0 }
0x197d   :  { %9506 = vmatpush3.bf16.msra.mxu1 %v2805_v16 }
0x197e   :  { %9517 = vmatprep.subr.bf16.mxu1 %v11503_v1 }
0x197f   :  { %v2848_v27 = vpop.permute.xlu0 %2847 }
0x1981   :  { %v10442_v18 = vpop.eup %10441 }
0x1982   :  { %v2747_v19 = vmul.f32 %v10442_v18, %v10438_v9 }
0x1984   :  { %v2749_v14 = vpack.c.bf16 %v2747_v19, %v2747_v19 }
0x1985   :  { %v10444_v21 = vpop.eup %10443 }
0x1986   :  { %9502 = vmatmul.mubr.msk.bf16.vlgmr.msra.gmra.mxu0 %vm1112_vm6, %v2749_v14  ;;  %v2748_v23 = vmul.f32 %v10444_v21, %v10440_v12 }
0x1987   :  { %9512 = vmatpush3.bf16.xpose.msra.mxu0 %v2855_v22  ;;  %9513 = vmatprep.mubr.msk.bf16.mxu0 %vm11504_vm1, %v11503_v1 }
0x1988   :  { %v2750_v26 = vpack.c.bf16 %v2748_v23, %v2748_v23  ;;  %9523 = vmatprep.subr.bf16.mxu0 %v11503_v1 }
0x198a   :  { %9508 = vmatmul.mubr.msk.bf16.vlgmr.msra.gmra.mxu1 %vm1112_vm6, %v2750_v26 }
0x198b   :  { %9518 = vmatpush3.bf16.xpose.msra.mxu1 %v2905_v25  ;;  %9519 = vmatprep.mubr.msk.bf16.mxu1 %vm11504_vm1, %v11503_v1 }
0x198c   :  { %9529 = vmatprep.subr.bf16.mxu1 %v11503_v1 }
0x198e   :  { %9514 = vmatmul.mubr.msk.bf16.vlgmr.msra.gmra.mxu0 %vm1112_vm6, %v2848_v27 }
0x198f   :  { %9525 = vmatprep.mubr.msk.bf16.mxu0 %vm11504_vm1, %v11503_v1 }
0x1992   :  { %9520 = vmatmul.mubr.msk.bf16.vlgmr.msra.gmra.mxu1 %vm1112_vm6, %v2898_v28 }
0x1993   :  { %9531 = vmatprep.mubr.msk.bf16.mxu1 %vm11504_vm1, %v11503_v1 }
0x1a46   :  { %v12349_v29 = vpop.f32.mrf.mxu0 }
0x1a48   :  { %v9503_v61 = vpop.f32.mrf.mxu0 }
0x1a4a   :  { %v2796_v2 = vpop.f32.mrf.mxu0  ;;  %v12351_v30 = vpop.f32.mrf.mxu1 }
0x1a4b   :  { %v10249_v31 = vpack.i.bf16 %v12351_v30, %v12349_v29 }
0x1a4c   :  { %v9504_v32 = vpop.f32.mrf.mxu0  ;;  %v9509_v52 = vpop.f32.mrf.mxu1 }
0x1a4e   :  { %v2844_v55 = vpop.f32.mrf.mxu1  ;;  %v2891_v34 = vpop.f32.mrf.mxu0 }
0x1a4f   :  { %v2947_v35 = vmul.f32 0.35355338, %v2891_v34 }
0x1a50   :  { %v9510_v36 = vpop.f32.mrf.mxu1  ;;  %v9515_v37 = vpop.f32.mrf.mxu0 }
0x1a51   :  { %v2949_v38 = vadd.f32 %v12306_v42, %v2947_v35 }
0x1a52   :  { %v2894_v40 = vpop.f32.mrf.mxu0  ;;  %v2941_v41 = vpop.f32.mrf.mxu1 }
0x1a53   :  { %v2948_v44 = vmul.f32 0.35355338, %v2941_v41  ;;  %v2951_v45 = vsel %vm1112_vm6, %v2949_v38, -inf }
0x1a54   :  { %2952 = vmax.xlane.f32.xlu0 %v2951_v45  ;;  %v9516_v46 = vpop.f32.mrf.mxu0  ;;  %v9521_v47 = vpop.f32.mrf.mxu1 }
0x1a55   :  { %v2950_v49 = vadd.f32 %v12311_v53, %v2948_v44 }
0x1a56   :  { %v2944_v50 = vpop.f32.mrf.mxu1 }
0x1a57   :  { %v2954_v51 = vsel %vm1112_vm6, %v2950_v49, -inf }
0x1a58   :  { %2955 = vmax.xlane.f32.xlu1 %v2954_v51  ;;  %v9522_v56 = vpop.f32.mrf.mxu1 }
0x1a69   :  { %2975 = vrot.lane.b32.xlu1 %v12243_v39, %s11512_s16 }
0x1a6d   :  { %3073 = vrot.lane.b32.xlu1 %v12243_v39, %s11513_s18 }
0x1a71   :  { %3123 = vrot.lane.b32.xlu1 %v12247_v43, %s11513_s18 }
0x1a75   :  { %3121 = vrot.lane.b32.xlu1 %v12247_v43, %s11514_s8 }
0x1add   :  { %v2953_v57 = vpop.xlane.xlu0 %2952 }
0x1ade   :  { %v2957_v59 = vsub.f32 %v2949_v38, %v2953_v57 }
0x1ae0   :  { %v2959_v60 = vmul.f32 1.442695, %v2957_v59 }
0x1ae1   :  { %v2956_v62 = vpop.xlane.xlu1 %2955 }
0x1ae2   :  { %10445 = vpow2.f32 %v2959_v60  ;;  %v2958_v63 = vsub.f32 %v2950_v49, %v2956_v62 }
0x1ae4   :  { %v2961_v0 = vmul.f32 1.442695, %v2958_v63 }
0x1ae5   :  { %v2976_v4 = vpop.permute.xlu1 %2975 }
0x1ae6   :  { %10447 = vpow2.f32 %v2961_v0  ;;  %v2981_v54 = vsel %vm1240_vm7, %v2976_v4, 0 }
0x1ae7   :  { %9524 = vmatpush3.bf16.msra.mxu0 %v2981_v54 }
0x1ae8   :  { %9535 = vmatprep.subr.bf16.mxu0 %v11503_v1 }
0x1ae9   :  { %v3074_v17 = vpop.permute.xlu1 %3073 }
0x1aea   :  { %v3079_v19 = vsel %vm1112_vm6, %v3074_v17, 0 }
0x1aed   :  { %v3124_v21 = vpop.permute.xlu1 %3123 }
0x1aee   :  { %v3129_v23 = vsel %vm1112_vm6, %v3124_v21, 0 }
0x1aef   :  { %v10446_v58 = vpop.eup %10445 }
0x1af0   :  { %v2963_v5 = vsel %vm1112_vm6, %v10446_v58, 0.0 }
0x1af1   :  { %2964 = vadd.xlane.f32.xlu0 %v2963_v5  ;;  %v3122_v26 = vpop.permute.xlu1 %3121 }
0x1af3   :  { %v10448_v8 = vpop.eup %10447 }
0x1af4   :  { %v2966_v9 = vsel %vm1112_vm6, %v10448_v8, 0.0 }
0x1af5   :  { %2967 = vadd.xlane.f32.xlu0 %v2966_v9 }
0x1b0b   :  { %3023 = vrot.lane.b32.xlu0 %v12247_v43, %s11512_s16 }
0x1b0f   :  { %3071 = vrot.lane.b32.xlu0 %v12243_v39, %s11514_s8 }
0x1b7a   :  { %v2965_v11 = vpop.xlane.xlu0 %2964 }
0x1b7b   :  { %10449 = vrcp.f32 %v2965_v11 }
0x1b7e   :  { %v2968_v12 = vpop.xlane.xlu0 %2967 }
0x1b7f   :  { %10451 = vrcp.f32 %v2968_v12 }
0x1b82   :  { %v3024_v7 = vpop.permute.xlu0 %3023 }
0x1b83   :  { %v3029_v13 = vsel %vm1240_vm7, %v3024_v7, 0 }
0x1b84   :  { %9530 = vmatpush3.bf16.msra.mxu1 %v3029_v13  ;;  %v10342_v13 = vld [vmem:[%s13572_s21 + $0x8] sm:$0xff]  }
0x1b85   :  { %9541 = vmatprep.subr.bf16.mxu1 %v11503_v1 }
0x1b86   :  { %v3072_v24 = vpop.permute.xlu0 %3071 }
0x1b88   :  { %v10450_v15 = vpop.eup %10449 }
0x1b89   :  { %v2971_v16 = vmul.f32 %v10450_v15, %v10446_v58  ;;  %v10343_v15 = vld [vmem:[%s13572_s21] sm:$0xff]   ;;  %s13592_s21 = sld [smem:[#allocation103_spill]] }
0x1b8b   :  { %v2973_v18 = vpack.c.bf16 %v2971_v16, %v2971_v16 }
0x1b8c   :  { %v10452_v20 = vpop.eup %10451 }
0x1b8d   :  { %9526 = vmatmul.mubr.msk.bf16.vlgmr.msra.gmra.mxu0 %vm1112_vm6, %v2973_v18  ;;  %v2972_v14 = vmul.f32 %v10452_v20, %v10448_v8 }
0x1b8e   :  { %9536 = vmatpush3.bf16.xpose.msra.mxu0 %v3079_v19  ;;  %9537 = vmatprep.mubr.msk.bf16.mxu0 %vm11504_vm1, %v11503_v1 }
0x1b8f   :  { %v2974_v22 = vpack.c.bf16 %v2972_v14, %v2972_v14  ;;  %9547 = vmatprep.subr.bf16.mxu0 %v11503_v1 }
0x1b91   :  { %9532 = vmatmul.mubr.msk.bf16.vlgmr.msra.gmra.mxu1 %vm1112_vm6, %v2974_v22 }
0x1b92   :  { %9542 = vmatpush3.bf16.xpose.msra.mxu1 %v3129_v23  ;;  %9543 = vmatprep.mubr.msk.bf16.mxu1 %vm11504_vm1, %v11503_v1 }
0x1b93   :  { %9553 = vmatprep.subr.bf16.mxu1 %v11503_v1 }
0x1b95   :  { %9538 = vmatmul.mubr.msk.bf16.vlgmr.msra.gmra.mxu0 %vm1112_vm6, %v3072_v24 }
0x1b96   :  { %9549 = vmatprep.mubr.msk.bf16.mxu0 %vm11504_vm1, %v11503_v1 }
0x1b99   :  { %9544 = vmatmul.mubr.msk.bf16.vlgmr.msra.gmra.mxu1 %vm1112_vm6, %v3122_v26 }
0x1b9a   :  { %9555 = vmatprep.mubr.msk.bf16.mxu1 %vm11504_vm1, %v11503_v1 }
0x1c4d   :  { %v3017_v25 = vpop.f32.mrf.mxu0 }
0x1c4f   :  { %v9527_v27 = vpop.f32.mrf.mxu0 }
0x1c51   :  { %v3020_v28 = vpop.f32.mrf.mxu0  ;;  %v3065_v61 = vpop.f32.mrf.mxu1 }
0x1c53   :  { %v9528_v2 = vpop.f32.mrf.mxu0  ;;  %v9533_v32 = vpop.f32.mrf.mxu1 }
0x1c55   :  { %v3068_v52 = vpop.f32.mrf.mxu1  ;;  %v3115_v55 = vpop.f32.mrf.mxu0 }
0x1c56   :  { %v3171_v34 = vmul.f32 0.35355338, %v3115_v55 }
0x1c57   :  { %v9534_v35 = vpop.f32.mrf.mxu1  ;;  %v9539_v36 = vpop.f32.mrf.mxu0 }
0x1c58   :  { %v3173_v37 = vadd.f32 %v12306_v42, %v3171_v34  ;;  %v10254_v42 = vpack.i.bf16 %v3065_v61, %v3017_v25 }
0x1c59   :  { %v3118_v38 = vpop.f32.mrf.mxu0  ;;  %v3165_v40 = vpop.f32.mrf.mxu1 }
0x1c5a   :  { %v3172_v41 = vmul.f32 0.35355338, %v3165_v40  ;;  %v3175_v44 = vsel %vm1112_vm6, %v3173_v37, -inf }
0x1c5b   :  { %3176 = vmax.xlane.f32.xlu0 %v3175_v44  ;;  %v9540_v45 = vpop.f32.mrf.mxu0  ;;  %v9545_v46 = vpop.f32.mrf.mxu1 }
0x1c5c   :  { %v3174_v47 = vadd.f32 %v12311_v53, %v3172_v41 }
0x1c5d   :  { %v3168_v49 = vpop.f32.mrf.mxu1 }
0x1c5e   :  { %v3178_v50 = vsel %vm1112_vm6, %v3174_v47, -inf }
0x1c5f   :  { %3179 = vmax.xlane.f32.xlu1 %v3178_v50  ;;  %v9546_v51 = vpop.f32.mrf.mxu1 }
0x1c70   :  { %3199 = vrot.lane.b32.xlu1 %v12243_v39, %s11515_s22 }
0x1c74   :  { %10250 = vrot.lane.b32.xlu1 %v10249_v31, %s11517_s17 }
0x1c78   :  { %10255 = vrot.lane.b32.xlu1 %v10254_v42, %s11516_s19 }
0x1ce4   :  { %v3177_v56 = vpop.xlane.xlu0 %3176 }
0x1ce5   :  { %v3181_v57 = vsub.f32 %v3173_v37, %v3177_v56 }
0x1ce7   :  { %v3183_v59 = vmul.f32 1.442695, %v3181_v57 }
0x1ce8   :  { %v3180_v53 = vpop.xlane.xlu1 %3179 }
0x1ce9   :  { %10453 = vpow2.f32 %v3183_v59  ;;  %v3182_v60 = vsub.f32 %v3174_v47, %v3180_v53 }
0x1ceb   :  { %v3185_v62 = vmul.f32 1.442695, %v3182_v60 }
0x1cec   :  { %v3200_v63 = vpop.permute.xlu1 %3199 }
0x1ced   :  { %10455 = vpow2.f32 %v3185_v62  ;;  %v3205_v0 = vsel %vm1240_vm7, %v3200_v63, 0 }
0x1cee   :  { %9548 = vmatpush3.bf16.msra.mxu0 %v3205_v0 }
0x1cef   :  { %9559 = vmatprep.subr.bf16.mxu0 %v11503_v1 }
0x1cf0   :  { %v10251_v24 = vpop.permute.xlu1 %10250 }
0x1cf1   :  { %v10253_v25 = vunpack.i.h.bf16 %v10251_v24  ;;  %v10252_v27 = vunpack.i.l.bf16 %v10251_v24 }
0x1cf3   :  { %v3320_v32 = vsel %vm1112_vm6, %v12303_v33, %v10253_v25  ;;  %v3319_v52 = vsel %vm1112_vm6, %v12301_v48, %v10252_v27  ;;  %v8833_v33 = vld [vmem:[#allocation51] ss:$0 sm:$0xff]  ;;  %v10347_v25 = vld [vmem:[%s11902_s20 + $0x8] sm:$0xff]  }
0x1cf4   :  { %v10256_v26 = vpop.permute.xlu1 %10255  ;;  %v10348_v27 = vld [vmem:[%s11902_s20] sm:$0xff]  }
0x1cf5   :  { %v10258_v28 = vunpack.i.h.bf16 %v10256_v26  ;;  %v10257_v61 = vunpack.i.l.bf16 %v10256_v26 }
0x1cf6   :  { %v10454_v39 = vpop.eup %10453 }
0x1cf7   :  { %v3187_v29 = vsel %vm1112_vm6, %v10454_v39, 0.0  ;;  %v3321_v35 = vsel %vm2030_vm8, %v3319_v52, %v10257_v61  ;;  %v3322_v36 = vsel %vm2030_vm8, %v3320_v32, %v10258_v28  ;;  %v10350_v32 = vld [vmem:[%s13574_s5 + $0x10] sm:$0xff]   ;;  %v10352_v52 = vld [vmem:[%s13574_s5] sm:$0xff]  }
0x1cf8   :  { %3188 = vadd.xlane.f32.xlu0 %v3187_v29  ;;  %v906_v29 = vld [vmem:[%s11907_s3] sm:$0xff] }
0x1cfa   :  { %v10456_v30 = vpop.eup %10455 }
0x1cfb   :  { %v3190_v31 = vsel %vm1112_vm6, %v10456_v30, 0.0 }
0x1cfc   :  { %3191 = vadd.xlane.f32.xlu0 %v3190_v31  ;;  %v10345_v31 = vld [vmem:[%s13573_s0] sm:$0xff]  }
0x1d12   :  { %3247 = vrot.lane.b32.xlu0 %v12247_v43, %s11515_s22 }
0x1d81   :  { %v3189_v4 = vpop.xlane.xlu0 %3188 }
0x1d82   :  { %10457 = vrcp.f32 %v3189_v4  ;;  %v10349_v4 = vld [vmem:[%s13574_s5 + $0x18] sm:$0xff]  }
0x1d85   :  { %v3192_v54 = vpop.xlane.xlu0 %3191 }
0x1d86   :  { %10459 = vrcp.f32 %v3192_v54 }
0x1d89   :  { %v3248_v58 = vpop.permute.xlu0 %3247 }
0x1d8a   :  { %v3253_v5 = vsel %vm1240_vm7, %v3248_v58, 0 }
0x1d8b   :  { %9554 = vmatpush3.bf16.msra.mxu1 %v3253_v5 }
0x1d8c   :  { %9567 = vmatprep.subr.bf16.mxu1 %v11503_v1 }
0x1d8f   :  { %v10458_v8 = vpop.eup %10457 }
0x1d90   :  { %v3195_v9 = vmul.f32 %v10458_v8, %v10454_v39  ;;  %v907_v39 = vld [vmem:[%s11907_s3 + $0x8] sm:$0xff]  ;;  %s13575_s3 = sld [smem:[#allocation134_spill]] }
0x1d92   :  { %v3197_v11 = vpack.c.bf16 %v3195_v9, %v3195_v9 }
0x1d93   :  { %v10460_v12 = vpop.eup %10459 }
0x1d94   :  { %9550 = vmatmul.mubr.msk.bf16.vlgmr.msra.gmra.mxu0 %vm1112_vm6, %v3197_v11  ;;  %v3196_v7 = vmul.f32 %v10460_v12, %v10456_v30  ;;  %v10344_v30 = vld [vmem:[%s13573_s0 + $0x8] sm:$0xff]  }
0x1d95   :  { %9563 = vmatprep.mubr.msk.bf16.mxu0 %vm11504_vm1, %v11503_v1  ;;  %9560 = vmatpush3.bf16.msra.mxu0 %v10342_v13 }
0x1d96   :  { %v3198_v43 = vpack.c.bf16 %v3196_v7, %v3196_v7  ;;  %9561 = vmatprep.subr.bf16.mxu0 %v11503_v1 }
0x1d98   :  { %9556 = vmatmul.mubr.msk.bf16.vlgmr.msra.gmra.mxu1 %vm1112_vm6, %v3198_v43  ;;  %v8838_v43 = vld [vmem:[#allocation49] ss:$0 sm:$0xff] }
0x1d99   :  { %9571 = vmatprep.mubr.msk.bf16.mxu1 %vm11504_vm1, %v11503_v1  ;;  %9562 = vmatpush3.bf16.msra.mxu0 %v10343_v15 }
0x1d9a   :  { %9575 = vmatprep.subr.bf16.mxu0 %v11503_v1  ;;  %9568 = vmatpush3.bf16.msra.mxu1 %v10344_v30 }
0x1d9b   :  { %9569 = vmatprep.subr.bf16.mxu1 %v11503_v1 }
0x1d9e   :  { %9570 = vmatpush3.bf16.msra.mxu1 %v10345_v31 }
0x1d9f   :  { %9587 = vmatprep.subr.bf16.mxu1 %v11503_v1 }
0x1e54   :  { %v3241_v17 = vpop.f32.mrf.mxu0 }
0x1e56   :  { %v9551_v16 = vpop.f32.mrf.mxu0 }
0x1e57   :  { %v8839_v16 = vld [vmem:[#allocation48] ss:$0 sm:$0xff] }
0x1e58   :  { %v3244_v18 = vpop.f32.mrf.mxu0  ;;  %v3289_v20 = vpop.f32.mrf.mxu1 }
0x1e59   :  { %v10259_v19 = vpack.i.bf16 %v3289_v20, %v3241_v17  ;;  %v10326_v18 = vld [vmem:[%s11902_s20 + $0x18] ss:$0 sps:$4 sm:$0x11]  }
0x1e5a   :  { %v9552_v14 = vpop.f32.mrf.mxu0  ;;  %v9557_v21 = vpop.f32.mrf.mxu1 }
0x1e5b   :  { %10260 = vrot.lane.b32.xlu0 %v10259_v19, %s11518_s4  ;;  %v3661_v21 = vsel %vm948_vm0, %v10326_v18, 0 }
0x1e5c   :  { %v3292_v22 = vpop.f32.mrf.mxu1 }
0x1e5e   :  { %v9558_v23 = vpop.f32.mrf.mxu1 }
0x1e5f   :  { %v10346_v23 = vld [vmem:[%s11902_s20 + $0x10] sm:$0xff]   ;;  %s13576_s20 = sld [smem:[#allocation85_spill]] }
0x1ecd   :  { %v10261_v2 = vpop.permute.xlu0 %10260 }
0x1ece   :  { %v10263_v55 = vunpack.i.h.bf16 %v10261_v2  ;;  %v10262_v34 = vunpack.i.l.bf16 %v10261_v2 }
0x1ed0   :  { %v3324_v37 = vsel %vm2033_vm9, %v3322_v36, %v10263_v55  ;;  %v3323_v38 = vsel %vm2033_vm9, %v3321_v35, %v10262_v34  ;;  %v8840_v55 = vld [vmem:[#allocation42] ss:$0 sm:$0xff] }
0x1ed1   :  { %v9018_v40 = vpack.c.bf16 %v3324_v37, %v3323_v38 }
0x1ed3   :  { %9564 = vmatmul.mubr.msk.bf16.vlgmr.msra.gmra.mxu0 %vm997_vm5, %v9018_v40 }
0x1ed4   :  { %9583 = vmatprep.mubr.msk.bf16.mxu0 %vm11504_vm1, %v11503_v1  ;;  %9576 = vmatpush3.bf16.msra.mxu0 %v10349_v4 }
0x1ed5   :  { %9577 = vmatprep.subr.bf16.mxu0 %v11503_v1 }
0x1ed8   :  { %9578 = vmatpush3.bf16.msra.mxu0 %v10350_v32 }
0x1ed9   :  { %9579 = vmatprep.subr.bf16.mxu0 %v11503_v1 }
0x1f93   :  { %v3387_v41 = vpop.f32.mrf.mxu0 }
0x1f94   :  { %v3388_v44 = vadd.f32 %v8833_v33, %v3387_v41 }
0x1f95   :  { %v9565_v48 = vpop.f32.mrf.mxu0 }
0x1f96   :  { %v12435_v45 = vadd.f32 %v3388_v44, %v12223_v3  ;;  %v888_v48 = vld [vmem:[%s13575_s3] sm:$0xff] }
0x1f97   :  { %v3390_v46 = vpop.f32.mrf.mxu0 }
0x1f98   :  { %v3391_v47 = vadd.f32 %v8833_v33, %v3390_v46  ;;  %v3396_v49 = vsel %vm997_vm5, %v12435_v45, 0.0 }
0x1f99   :  { %3397 = vadd.xlane.f32.xlu1 %v3396_v49  ;;  %v9566_v50 = vpop.f32.mrf.mxu0 }
0x1f9a   :  { %v12440_v51 = vadd.f32 %v3391_v47, %v12228_v6 }
0x1f9c   :  { %v3399_v42 = vsel %vm997_vm5, %v12440_v51, 0.0 }
0x1f9d   :  { %3400 = vadd.xlane.f32.xlu0 %v3399_v42  ;;  %v889_v42 = vld [vmem:[%s13575_s3 + $0x8] sm:$0xff] }
0x2022   :  { %v3398_v56 = vpop.xlane.xlu1 %3397 }
0x2023   :  { %v3402_v3 = vmul.f32 0.03125, %v3398_v56 }
0x2025   :  { %v3404_v57 = vsub.f32 %v12435_v45, %v3402_v3 }
0x2026   :  { %v3401_v59 = vpop.xlane.xlu0 %3400 }
0x2027   :  { %v3403_v53 = vmul.f32 0.03125, %v3401_v59  ;;  %v3406_v60 = vmul.f32 %v3404_v57, %v3404_v57 }
0x2029   :  { %v3405_v62 = vsub.f32 %v12440_v51, %v3403_v53  ;;  %v3408_v6 = vsel %vm997_vm5, %v3406_v60, 0.0 }
0x202a   :  { %3409 = vadd.xlane.f32.xlu0 %v3408_v6 }
0x202b   :  { %v3407_v63 = vmul.f32 %v3405_v62, %v3405_v62 }
0x202d   :  { %v3411_v0 = vsel %vm997_vm5, %v3407_v63, 0.0 }
0x202e   :  { %3412 = vadd.xlane.f32.xlu1 %v3411_v0 }
0x203f   :  { %3627 = vperm.xlu1 %10264, %v907_v39  }
0x2040   :  { %3624 = vperm.xlu0 %10233, %v906_v29  }
0x20b3   :  { %v3410_v54 = vpop.xlane.xlu0 %3409 }
0x20b4   :  { %v3414_v58 = vmul.f32 0.03125, %v3410_v54 }
0x20b6   :  { %v3416_v5 = vadd.f32 1e-05, %v3414_v58  ;;  %v10353_v58 = vld [vmem:[%s13576_s20 + $0x8] sm:$0xff]  }
0x20b7   :  { %v3413_v8 = vpop.xlane.xlu1 %3412 }
0x20b8   :  { %10461 = vrsqrt.f32 %v3416_v5  ;;  %v3415_v9 = vmul.f32 0.03125, %v3413_v8  ;;  %v10354_v5 = vld [vmem:[%s13576_s20] sm:$0xff]  }
0x20ba   :  { %v3417_v11 = vadd.f32 1e-05, %v3415_v9 }
0x20bb   :  { %v3628_v24 = vpop.permute.xlu1 %3627  ;;  %v3625_v26 = vpop.permute.xlu0 %3624 }
0x20bc   :  { %10463 = vrsqrt.f32 %v3417_v11  ;;  %vm3630_vm11 = vcmp.eq.s32.totalorder %v3628_v24, %v11967_v10  ;;  %vm3629_vm12 = vcmp.eq.s32.totalorder %v3625_v26, %v11967_v10  ;;  %v10351_v10 = vld [vmem:[%s13574_s5 + $0x8] sm:$0xff]   ;;  %v12504_v11 = vld [vmem:[#allocation43] ss:$0 sm:$0xff]  ;;  %v8860_v26 = vld [vmem:[#allocation6] ss:$0 sm:$0xff] }
0x20bd   :  { %v8853_v28 = vsel %vm3630_vm11, 1.0, %v11503_v1  ;;  %v8852_v61 = vsel %vm3629_vm12, 1.0, %v11503_v1  ;;  %9580 = vmatpush3.bf16.msra.mxu0 %v10351_v10 }
0x20be   :  { %v3635_v2 = vpack.c.bf16 %v8853_v28, %v8852_v61  ;;  %9581 = vmatprep.subr.bf16.mxu0 %v11503_v1 }
0x20c1   :  { %9582 = vmatpush3.bf16.msra.mxu0 %v10352_v52 }
0x20c2   :  { %9599 = vmatprep.subr.bf16.mxu0 %v11503_v1 }
0x20c5   :  { %v10462_v12 = vpop.eup %10461 }
0x20c6   :  { %v3420_v7 = vmul.f32 %v10462_v12, %v3404_v57 }
0x20c8   :  { %v3428_v17 = vmul.f32 %v8838_v43, %v3420_v7 }
0x20c9   :  { %v10464_v13 = vpop.eup %10463 }
0x20ca   :  { %v3421_v15 = vmul.f32 %v10464_v13, %v3405_v62  ;;  %v3436_v19 = vadd.f32 %v8839_v16, %v3428_v17 }
0x20cc   :  { %v3429_v20 = vmul.f32 %v8838_v43, %v3421_v15 }
0x20ce   :  { %v3437_v14 = vadd.f32 %v8839_v16, %v3429_v20 }
0x20d0   :  { %v3438_v22 = vpack.c.bf16 %v3437_v14, %v3436_v19 }
0x20d2   :  { %9572 = vmatmul.mubr.msk.bf16.vlgmr.msra.gmra.mxu1 %vm997_vm5, %v3438_v22 }
0x20d3   :  { %9588 = vmatpush3.bf16.msra.mxu1 %v3661_v21  ;;  %9595 = vmatprep.mubr.msk.bf16.mxu1 %vm11504_vm1, %v11503_v1  ;;  %v8859_v21 = vld [vmem:[#allocation7] ss:$0 sm:$0xff] }
0x20d4   :  { %9589 = vmatprep.subr.bf16.mxu1 %v11503_v1 }
0x20d7   :  { %9590 = vmatpush3.bf16.msra.mxu1 %v10346_v23 }
0x20d8   :  { %9591 = vmatprep.subr.bf16.mxu1 %v11503_v1 }
0x20db   :  { %9592 = vmatpush3.bf16.msra.mxu1 %v10347_v25 }
0x20dc   :  { %9593 = vmatprep.subr.bf16.mxu1 %v11503_v1 }
0x20df   :  { %9594 = vmatpush3.bf16.msra.mxu1 %v10348_v27 }
0x20e0   :  { %9607 = vmatprep.subr.bf16.mxu1 %v11503_v1 }
0x20e2   :  { %9596 = vmatmul.mubr.msk.bf16.vlgmr.msra.gmra.mxu1 %vm944_vm4, %v3635_v2  ;;  %v8861_v2 = vld [vmem:[#allocation16] ss:$0 sm:$0xff] }
0x20e3   :  { %9609 = vmatprep.mubr.msk.bf16.mxu1 %vm11504_vm1, %v11503_v1 }
0x2192   :  { %v3494_v34 = vpop.f32.mrf.mxu1 }
0x2193   :  { %v3495_v36 = vadd.f32 %v8840_v55, %v3494_v34 }
0x2194   :  { %v9573_v35 = vpop.f32.mrf.mxu1 }
0x2195   :  { %v3501_v33 = vmax.f32 %v3495_v36, 0.0 }
0x2196   :  { %v3497_v37 = vpop.f32.mrf.mxu1 }
0x2197   :  { %v3498_v38 = vadd.f32 %v8840_v55, %v3497_v37 }
0x2198   :  { %v9574_v40 = vpop.f32.mrf.mxu1 }
0x2199   :  { %v3502_v41 = vmax.f32 %v3498_v38, 0.0 }
0x219b   :  { %v3503_v44 = vpack.c.bf16 %v3502_v41, %v3501_v33 }
0x219d   :  { %9584 = vmatmul.mubr.msk.bf16.vlgmr.msra.gmra.mxu0 %vm2245_vm10, %v3503_v44  ;;  %v12533_v44 = vld [vmem:[%s13577_s27] sm:$0xff] }
0x219e   :  { %9603 = vmatprep.mubr.msk.bf16.mxu0 %vm11504_vm1, %v11503_v1  ;;  %9600 = vmatpush3.bf16.msra.mxu0 %v10353_v58 }
0x219f   :  { %9601 = vmatprep.subr.bf16.mxu0 %v11503_v1 }
0x21a2   :  { %v3697_v46 = vpop.f32.mrf.mxu1  ;;  %9602 = vmatpush3.bf16.msra.mxu0 %v10354_v5 }
0x21a3   :  { %v3704_v47 = vmul.f32 5.656854, %v3697_v46  ;;  %9613 = vmatprep.subr.bf16.mxu0 %v11503_v1 }
0x21a4   :  { %v9597_v49 = vpop.f32.mrf.mxu1 }
0x21a5   :  { %v12485_v50 = vadd.f32 %v3704_v47, %v888_v48 }
0x21a6   :  { %v3700_v56 = vpop.f32.mrf.mxu1 }
0x21a7   :  { %v3705_v3 = vmul.f32 5.656854, %v3700_v56  ;;  %v3708_v57 = vsel %vm997_vm5, %v12485_v50, 0.0  ;;  %v12537_v56 = vld [vmem:[%s13577_s27 + $0x8] sm:$0xff] }
0x21a8   :  { %3709 = vadd.xlane.f32.xlu1 %v3708_v57  ;;  %v9598_v59 = vpop.f32.mrf.mxu1 }
0x21a9   :  { %v12490_v53 = vadd.f32 %v3705_v3, %v889_v42 }
0x21ab   :  { %v3711_v60 = vsel %vm997_vm5, %v12490_v53, 0.0 }
0x21ac   :  { %3712 = vadd.xlane.f32.xlu0 %v3711_v60 }
0x2231   :  { %v3710_v62 = vpop.xlane.xlu1 %3709 }
0x2232   :  { %v3714_v6 = vmul.f32 0.03125, %v3710_v62 }
0x2234   :  { %v3716_v63 = vsub.f32 %v12485_v50, %v3714_v6 }
0x2235   :  { %v3713_v0 = vpop.xlane.xlu0 %3712 }
0x2236   :  { %v3715_v39 = vmul.f32 0.03125, %v3713_v0  ;;  %v3718_v29 = vmul.f32 %v3716_v63, %v3716_v63 }
0x2238   :  { %v3717_v30 = vsub.f32 %v12490_v53, %v3715_v39  ;;  %v3720_v31 = vsel %vm997_vm5, %v3718_v29, 0.0 }
0x2239   :  { %3721 = vadd.xlane.f32.xlu0 %v3720_v31 }
0x223a   :  { %v3719_v4 = vmul.f32 %v3717_v30, %v3717_v30 }
0x223c   :  { %v3723_v54 = vsel %vm997_vm5, %v3719_v4, 0.0 }
0x223d   :  { %3724 = vadd.xlane.f32.xlu1 %v3723_v54 }
0x225d   :  { %v12501_v8 = vpop.f32.mrf.mxu0 }
0x225f   :  { %v9585_v9 = vpop.f32.mrf.mxu0 }
0x2261   :  { %v3574_v12 = vpop.f32.mrf.mxu0 }
0x2262   :  { %v12507_v7 = vadd.f32 %v12504_v11, %v3574_v12 }
0x2263   :  { %v9586_v43 = vpop.f32.mrf.mxu0 }
0x22c2   :  { %v3722_v13 = vpop.xlane.xlu0 %3721 }
0x22c3   :  { %v3726_v15 = vmul.f32 0.03125, %v3722_v13 }
0x22c5   :  { %v3728_v17 = vadd.f32 1e-05, %v3726_v15 }
0x22c6   :  { %v3725_v16 = vpop.xlane.xlu1 %3724 }
0x22c7   :  { %10465 = vrsqrt.f32 %v3728_v17  ;;  %v3727_v18 = vmul.f32 0.03125, %v3725_v16 }
0x22c9   :  { %v3729_v20 = vadd.f32 1e-05, %v3727_v18 }
0x22cb   :  { %10467 = vrsqrt.f32 %v3729_v20 }
0x22d4   :  { %v10466_v19 = vpop.eup %10465 }
0x22d5   :  { %v3732_v14 = vmul.f32 %v10466_v19, %v3716_v63 }
0x22d7   :  { %v3740_v24 = vmul.f32 %v8859_v21, %v3732_v14 }
0x22d8   :  { %v10468_v22 = vpop.eup %10467 }
0x22d9   :  { %v3733_v23 = vmul.f32 %v10468_v22, %v3717_v30  ;;  %v3748_v27 = vadd.f32 %v8860_v26, %v3740_v24 }
0x22db   :  { %v3741_v25 = vmul.f32 %v8859_v21, %v3733_v23 }
0x22dd   :  { %v3749_v28 = vadd.f32 %v8860_v26, %v3741_v25 }
0x22df   :  { %v3750_v61 = vpack.c.bf16 %v3749_v28, %v3748_v27 }
0x22e1   :  { %9604 = vmatmul.mubr.msk.bf16.vlgmr.msra.gmra.mxu0 %vm997_vm5, %v3750_v61 }
0x22e2   :  { %9615 = vmatprep.mubr.msk.bf16.mxu0 %vm11504_vm1, %v11503_v1 }
0x23a1   :  { %v3806_v32 = vpop.f32.mrf.mxu0 }
0x23a2   :  { %v3807_v10 = vadd.f32 %v8861_v2, %v3806_v32 }
0x23a3   :  { %v9605_v52 = vpop.f32.mrf.mxu0 }
0x23a4   :  { %v12512_v55 = vpack.c.bf16 %v3807_v10, %v3807_v10 }
0x23a5   :  { %v3809_v34 = vpop.f32.mrf.mxu0 }
0x23a6   :  { %v3810_v35 = vadd.f32 %v8861_v2, %v3809_v34  ;;  %3819 = vrot.lane.b32.xlu0 %v12512_v55, %s11505_s29 }
0x23a7   :  { %v9606_v36 = vpop.f32.mrf.mxu0 }
0x23a8   :  { %v12516_v37 = vpack.c.bf16 %v3810_v35, %v3810_v35 }
0x23aa   :  { %3867 = vrot.lane.b32.xlu1 %v12516_v37, %s11505_s29 }
0x2418   :  { %v3820_v38 = vpop.permute.xlu0 %3819 }
0x2419   :  { %v3825_v40 = vsel %vm1112_vm6, %v3820_v38, 0 }
0x241a   :  { %9608 = vmatpush3.bf16.xpose.msra.mxu1 %v3825_v40 }
0x241b   :  { %9619 = vmatprep.subr.bf16.mxu1 %v11503_v1 }
0x241c   :  { %v3868_v33 = vpop.permute.xlu1 %3867 }
0x241d   :  { %v3873_v41 = vsel %vm1112_vm6, %v3868_v33, 0 }
0x241e   :  { %9614 = vmatpush3.bf16.xpose.msra.mxu0 %v3873_v41 }
0x241f   :  { %9625 = vmatprep.subr.bf16.mxu0 %v11503_v1 }
0x2421   :  { %9610 = vmatmul.mubr.msk.bf16.vlgmr.msra.gmra.mxu1 %vm1112_vm6, %v12512_v55 }
0x2422   :  { %9621 = vmatprep.mubr.msk.bf16.mxu1 %vm11504_vm1, %v11503_v1 }
0x2425   :  { %9616 = vmatmul.mubr.msk.bf16.vlgmr.msra.gmra.mxu0 %vm1112_vm6, %v12516_v37 }
0x2426   :  { %9627 = vmatprep.mubr.msk.bf16.mxu0 %vm11504_vm1, %v11503_v1 }
0x24e1   :  { %v3861_v48 = vpop.f32.mrf.mxu1 }
0x24e2   :  { %v3915_v46 = vmul.f32 0.35355338, %v3861_v48 }
0x24e3   :  { %v9611_v47 = vpop.f32.mrf.mxu1 }
0x24e4   :  { %v3917_v49 = vadd.f32 %v3915_v46, %v12533_v44 }
0x24e5   :  { %v3864_v42 = vpop.f32.mrf.mxu1  ;;  %v3909_v3 = vpop.f32.mrf.mxu0 }
0x24e6   :  { %v3916_v57 = vmul.f32 0.35355338, %v3909_v3  ;;  %v3919_v59 = vsel %vm1112_vm6, %v3917_v49, -inf }
0x24e7   :  { %v9612_v60 = vpop.f32.mrf.mxu1  ;;  %3920 = vmax.xlane.f32.xlu1 %v3919_v59  ;;  %v9617_v62 = vpop.f32.mrf.mxu0 }
0x24e8   :  { %v3918_v6 = vadd.f32 %v3916_v57, %v12537_v56 }
0x24e9   :  { %v3912_v63 = vpop.f32.mrf.mxu0 }
0x24ea   :  { %v3922_v0 = vsel %vm1112_vm6, %v3918_v6, -inf }
0x24eb   :  { %3923 = vmax.xlane.f32.xlu0 %v3922_v0  ;;  %v9618_v39 = vpop.f32.mrf.mxu0 }
0x24f8   :  { %3991 = vrot.lane.b32.xlu1 %v12516_v37, %s11506_s14 }
0x2501   :  { %3943 = vrot.lane.b32.xlu0 %v12512_v55, %s11506_s14 }
0x2570   :  { %v3921_v29 = vpop.xlane.xlu1 %3920 }
0x2571   :  { %v3925_v30 = vsub.f32 %v3917_v49, %v3921_v29 }
0x2573   :  { %v3927_v31 = vmul.f32 1.442695, %v3925_v30 }
0x2574   :  { %v3992_v4 = vpop.permute.xlu1 %3991  ;;  %v3924_v54 = vpop.xlane.xlu0 %3923 }
0x2575   :  { %10469 = vpow2.f32 %v3927_v31  ;;  %v3997_v58 = vsel %vm1240_vm7, %v3992_v4, 0  ;;  %v3926_v5 = vsub.f32 %v3918_v6, %v3924_v54 }
0x2576   :  { %9626 = vmatpush3.bf16.msra.mxu0 %v3997_v58 }
0x2577   :  { %v3929_v9 = vmul.f32 1.442695, %v3926_v5  ;;  %9637 = vmatprep.subr.bf16.mxu0 %v11503_v1 }
0x2578   :  { %v3944_v12 = vpop.permute.xlu0 %3943 }
0x2579   :  { %10471 = vpow2.f32 %v3929_v9  ;;  %v3949_v43 = vsel %vm1240_vm7, %v3944_v12, 0 }
0x257a   :  { %9620 = vmatpush3.bf16.msra.mxu1 %v3949_v43 }
0x257b   :  { %9631 = vmatprep.subr.bf16.mxu1 %v11503_v1 }
0x2582   :  { %v10470_v13 = vpop.eup %10469 }
0x2583   :  { %v3931_v15 = vsel %vm1112_vm6, %v10470_v13, 0.0 }
0x2584   :  { %3932 = vadd.xlane.f32.xlu0 %v3931_v15 }
0x2586   :  { %v10472_v17 = vpop.eup %10471 }
0x2587   :  { %v3934_v16 = vsel %vm1112_vm6, %v10472_v17, 0.0 }
0x2588   :  { %3935 = vadd.xlane.f32.xlu1 %v3934_v16 }
0x2599   :  { %4041 = vrot.lane.b32.xlu1 %v12512_v55, %s11507_s11 }
0x259a   :  { %4091 = vrot.lane.b32.xlu0 %v12516_v37, %s11507_s11 }
0x259d   :  { %4039 = vrot.lane.b32.xlu1 %v12512_v55, %s11508_s6 }
0x259e   :  { %4089 = vrot.lane.b32.xlu0 %v12516_v37, %s11508_s6 }
0x260d   :  { %v3933_v18 = vpop.xlane.xlu0 %3932 }
0x260e   :  { %10473 = vrcp.f32 %v3933_v18 }
0x2611   :  { %v3936_v20 = vpop.xlane.xlu1 %3935  ;;  %v4092_v25 = vpop.permute.xlu0 %4091 }
0x2612   :  { %10475 = vrcp.f32 %v3936_v20  ;;  %v4097_v28 = vsel %vm1112_vm6, %v4092_v25, 0 }
0x2615   :  { %v4042_v21 = vpop.permute.xlu1 %4041  ;;  %v4090_v2 = vpop.permute.xlu0 %4089 }
0x2616   :  { %v4047_v24 = vsel %vm1112_vm6, %v4042_v21, 0 }
0x2619   :  { %v4040_v61 = vpop.permute.xlu1 %4039 }
0x261b   :  { %v10474_v19 = vpop.eup %10473 }
0x261c   :  { %v3939_v14 = vmul.f32 %v10474_v19, %v10470_v13 }
0x261e   :  { %v3941_v22 = vpack.c.bf16 %v3939_v14, %v3939_v14 }
0x261f   :  { %v10476_v23 = vpop.eup %10475 }
0x2620   :  { %9622 = vmatmul.mubr.msk.bf16.vlgmr.msra.gmra.mxu1 %vm1112_vm6, %v3941_v22  ;;  %v3940_v26 = vmul.f32 %v10476_v23, %v10472_v17 }
0x2621   :  { %9632 = vmatpush3.bf16.xpose.msra.mxu1 %v4047_v24  ;;  %9633 = vmatprep.mubr.msk.bf16.mxu1 %vm11504_vm1, %v11503_v1 }
0x2622   :  { %v3942_v27 = vpack.c.bf16 %v3940_v26, %v3940_v26  ;;  %9643 = vmatprep.subr.bf16.mxu1 %v11503_v1 }
0x2624   :  { %9628 = vmatmul.mubr.msk.bf16.vlgmr.msra.gmra.mxu0 %vm1112_vm6, %v3942_v27 }
0x2625   :  { %9638 = vmatpush3.bf16.xpose.msra.mxu0 %v4097_v28  ;;  %9639 = vmatprep.mubr.msk.bf16.mxu0 %vm11504_vm1, %v11503_v1 }
0x2626   :  { %9649 = vmatprep.subr.bf16.mxu0 %v11503_v1 }
0x2628   :  { %9634 = vmatmul.mubr.msk.bf16.vlgmr.msra.gmra.mxu1 %vm1112_vm6, %v4040_v61 }
0x2629   :  { %9645 = vmatprep.mubr.msk.bf16.mxu1 %vm11504_vm1, %v11503_v1 }
0x262c   :  { %9640 = vmatmul.mubr.msk.bf16.vlgmr.msra.gmra.mxu0 %vm1112_vm6, %v4090_v2 }
0x262d   :  { %9651 = vmatprep.mubr.msk.bf16.mxu0 %vm11504_vm1, %v11503_v1 }
0x26e0   :  { %v12576_v32 = vpop.f32.mrf.mxu1 }
0x26e2   :  { %v9623_v10 = vpop.f32.mrf.mxu1 }
0x26e4   :  { %v3988_v52 = vpop.f32.mrf.mxu1  ;;  %v12578_v34 = vpop.f32.mrf.mxu0 }
0x26e6   :  { %v9624_v35 = vpop.f32.mrf.mxu1  ;;  %v9629_v36 = vpop.f32.mrf.mxu0 }
0x26e8   :  { %v4036_v38 = vpop.f32.mrf.mxu0  ;;  %v4083_v40 = vpop.f32.mrf.mxu1 }
0x26e9   :  { %v4139_v33 = vmul.f32 0.35355338, %v4083_v40 }
0x26ea   :  { %v9630_v41 = vpop.f32.mrf.mxu0  ;;  %v9635_v48 = vpop.f32.mrf.mxu1 }
0x26eb   :  { %v4141_v46 = vadd.f32 %v4139_v33, %v12533_v44 }
0x26ec   :  { %v4086_v47 = vpop.f32.mrf.mxu1  ;;  %v4133_v49 = vpop.f32.mrf.mxu0 }
0x26ed   :  { %v4140_v42 = vmul.f32 0.35355338, %v4133_v49  ;;  %v4143_v3 = vsel %vm1112_vm6, %v4141_v46, -inf }
0x26ee   :  { %4144 = vmax.xlane.f32.xlu1 %v4143_v3  ;;  %v9636_v57 = vpop.f32.mrf.mxu1  ;;  %v9641_v59 = vpop.f32.mrf.mxu0 }
0x26ef   :  { %v4142_v60 = vadd.f32 %v4140_v42, %v12537_v56 }
0x26f0   :  { %v4136_v62 = vpop.f32.mrf.mxu0 }
0x26f1   :  { %v4146_v6 = vsel %vm1112_vm6, %v4142_v60, -inf }
0x26f2   :  { %4147 = vmax.xlane.f32.xlu0 %v4146_v6  ;;  %v9642_v63 = vpop.f32.mrf.mxu0 }
0x26ff   :  { %4215 = vrot.lane.b32.xlu1 %v12516_v37, %s11509_s25 }
0x2708   :  { %4167 = vrot.lane.b32.xlu0 %v12512_v55, %s11509_s25 }
0x2777   :  { %v4145_v0 = vpop.xlane.xlu1 %4144 }
0x2778   :  { %v4149_v39 = vsub.f32 %v4141_v46, %v4145_v0 }
0x277a   :  { %v4151_v29 = vmul.f32 1.442695, %v4149_v39 }
0x277b   :  { %v4216_v30 = vpop.permute.xlu1 %4215  ;;  %v4148_v31 = vpop.xlane.xlu0 %4147 }
0x277c   :  { %10477 = vpow2.f32 %v4151_v29  ;;  %v4221_v4 = vsel %vm1240_vm7, %v4216_v30, 0  ;;  %v4150_v54 = vsub.f32 %v4142_v60, %v4148_v31 }
0x277d   :  { %9650 = vmatpush3.bf16.msra.mxu0 %v4221_v4 }
0x277e   :  { %v4153_v58 = vmul.f32 1.442695, %v4150_v54  ;;  %9661 = vmatprep.subr.bf16.mxu0 %v11503_v1 }
0x277f   :  { %v4168_v5 = vpop.permute.xlu0 %4167 }
0x2780   :  { %10479 = vpow2.f32 %v4153_v58  ;;  %v4173_v9 = vsel %vm1240_vm7, %v4168_v5, 0 }
0x2781   :  { %9644 = vmatpush3.bf16.msra.mxu1 %v4173_v9 }
0x2782   :  { %9655 = vmatprep.subr.bf16.mxu1 %v11503_v1 }
0x2789   :  { %v10478_v12 = vpop.eup %10477 }
0x278a   :  { %v4155_v43 = vsel %vm1112_vm6, %v10478_v12, 0.0 }
0x278b   :  { %4156 = vadd.xlane.f32.xlu0 %v4155_v43 }
0x278d   :  { %v10480_v13 = vpop.eup %10479 }
0x278e   :  { %v4158_v15 = vsel %vm1112_vm6, %v10480_v13, 0.0 }
0x278f   :  { %4159 = vadd.xlane.f32.xlu1 %v4158_v15 }
0x27a0   :  { %4265 = vrot.lane.b32.xlu1 %v12512_v55, %s11510_s15 }
0x27a1   :  { %4315 = vrot.lane.b32.xlu0 %v12516_v37, %s11510_s15 }
0x27a4   :  { %4263 = vrot.lane.b32.xlu1 %v12512_v55, %s11511_s12 }
0x27a5   :  { %4313 = vrot.lane.b32.xlu0 %v12516_v37, %s11511_s12 }
0x2814   :  { %v4157_v17 = vpop.xlane.xlu0 %4156 }
0x2815   :  { %10481 = vrcp.f32 %v4157_v17 }
0x2818   :  { %v4160_v16 = vpop.xlane.xlu1 %4159  ;;  %v4316_v24 = vpop.permute.xlu0 %4315 }
0x2819   :  { %10483 = vrcp.f32 %v4160_v16  ;;  %v4321_v25 = vsel %vm1112_vm6, %v4316_v24, 0 }
0x281c   :  { %v4266_v19 = vpop.permute.xlu1 %4265  ;;  %v4314_v28 = vpop.permute.xlu0 %4313 }
0x281d   :  { %v4271_v22 = vsel %vm1112_vm6, %v4266_v19, 0 }
0x2820   :  { %v4264_v27 = vpop.permute.xlu1 %4263 }
0x2822   :  { %v10482_v18 = vpop.eup %10481 }
0x2823   :  { %v4163_v20 = vmul.f32 %v10482_v18, %v10478_v12 }
0x2825   :  { %v4165_v14 = vpack.c.bf16 %v4163_v20, %v4163_v20 }
0x2826   :  { %v10484_v21 = vpop.eup %10483 }
0x2827   :  { %9646 = vmatmul.mubr.msk.bf16.vlgmr.msra.gmra.mxu1 %vm1112_vm6, %v4165_v14  ;;  %v4164_v23 = vmul.f32 %v10484_v21, %v10480_v13 }
0x2828   :  { %9656 = vmatpush3.bf16.xpose.msra.mxu1 %v4271_v22  ;;  %9657 = vmatprep.mubr.msk.bf16.mxu1 %vm11504_vm1, %v11503_v1 }
0x2829   :  { %v4166_v26 = vpack.c.bf16 %v4164_v23, %v4164_v23  ;;  %9667 = vmatprep.subr.bf16.mxu1 %v11503_v1 }
0x282b   :  { %9652 = vmatmul.mubr.msk.bf16.vlgmr.msra.gmra.mxu0 %vm1112_vm6, %v4166_v26 }
0x282c   :  { %9662 = vmatpush3.bf16.xpose.msra.mxu0 %v4321_v25  ;;  %9663 = vmatprep.mubr.msk.bf16.mxu0 %vm11504_vm1, %v11503_v1 }
0x282d   :  { %9673 = vmatprep.subr.bf16.mxu0 %v11503_v1 }
0x282f   :  { %9658 = vmatmul.mubr.msk.bf16.vlgmr.msra.gmra.mxu1 %vm1112_vm6, %v4264_v27 }
0x2830   :  { %9669 = vmatprep.mubr.msk.bf16.mxu1 %vm11504_vm1, %v11503_v1 }
0x2833   :  { %9664 = vmatmul.mubr.msk.bf16.vlgmr.msra.gmra.mxu0 %vm1112_vm6, %v4314_v28 }
0x2834   :  { %9675 = vmatprep.mubr.msk.bf16.mxu0 %vm11504_vm1, %v11503_v1 }
0x28e7   :  { %v12618_v61 = vpop.f32.mrf.mxu1 }
0x28e9   :  { %v9647_v2 = vpop.f32.mrf.mxu1 }
0x28eb   :  { %v4212_v10 = vpop.f32.mrf.mxu1  ;;  %v12620_v52 = vpop.f32.mrf.mxu0 }
0x28ec   :  { %v10265_v35 = vpack.i.bf16 %v12620_v52, %v12618_v61 }
0x28ed   :  { %v9648_v36 = vpop.f32.mrf.mxu1  ;;  %v9653_v38 = vpop.f32.mrf.mxu0 }
0x28ef   :  { %v4260_v40 = vpop.f32.mrf.mxu0  ;;  %v4307_v33 = vpop.f32.mrf.mxu1 }
0x28f0   :  { %v4363_v41 = vmul.f32 0.35355338, %v4307_v33 }
0x28f1   :  { %v9654_v48 = vpop.f32.mrf.mxu0  ;;  %v9659_v46 = vpop.f32.mrf.mxu1 }
0x28f2   :  { %v4365_v47 = vadd.f32 %v4363_v41, %v12533_v44 }
0x28f3   :  { %v4310_v49 = vpop.f32.mrf.mxu1  ;;  %v4357_v42 = vpop.f32.mrf.mxu0 }
0x28f4   :  { %v4364_v3 = vmul.f32 0.35355338, %v4357_v42  ;;  %v4367_v57 = vsel %vm1112_vm6, %v4365_v47, -inf }
0x28f5   :  { %4368 = vmax.xlane.f32.xlu1 %v4367_v57  ;;  %v9660_v59 = vpop.f32.mrf.mxu1  ;;  %v9665_v60 = vpop.f32.mrf.mxu0 }
0x28f6   :  { %v4366_v62 = vadd.f32 %v4364_v3, %v12537_v56 }
0x28f7   :  { %v4360_v6 = vpop.f32.mrf.mxu0 }
0x28f8   :  { %v4370_v63 = vsel %vm1112_vm6, %v4366_v62, -inf }
0x28f9   :  { %4371 = vmax.xlane.f32.xlu0 %v4370_v63  ;;  %v9666_v0 = vpop.f32.mrf.mxu0 }
0x2906   :  { %4439 = vrot.lane.b32.xlu1 %v12516_v37, %s11512_s16 }
0x290f   :  { %4391 = vrot.lane.b32.xlu0 %v12512_v55, %s11512_s16 }
0x297e   :  { %v4369_v39 = vpop.xlane.xlu1 %4368 }
0x297f   :  { %v4373_v29 = vsub.f32 %v4365_v47, %v4369_v39 }
0x2981   :  { %v4375_v30 = vmul.f32 1.442695, %v4373_v29 }
0x2982   :  { %v4440_v31 = vpop.permute.xlu1 %4439  ;;  %v4372_v4 = vpop.xlane.xlu0 %4371 }
0x2983   :  { %10485 = vpow2.f32 %v4375_v30  ;;  %v4445_v54 = vsel %vm1240_vm7, %v4440_v31, 0  ;;  %v4374_v58 = vsub.f32 %v4366_v62, %v4372_v4 }
0x2984   :  { %9674 = vmatpush3.bf16.msra.mxu0 %v4445_v54 }
0x2985   :  { %v4377_v5 = vmul.f32 1.442695, %v4374_v58  ;;  %9685 = vmatprep.subr.bf16.mxu0 %v11503_v1 }
0x2986   :  { %v4392_v9 = vpop.permute.xlu0 %4391 }
0x2987   :  { %10487 = vpow2.f32 %v4377_v5  ;;  %v4397_v12 = vsel %vm1240_vm7, %v4392_v9, 0 }
0x2988   :  { %9668 = vmatpush3.bf16.msra.mxu1 %v4397_v12 }
0x2989   :  { %9679 = vmatprep.subr.bf16.mxu1 %v11503_v1 }
0x2990   :  { %v10486_v43 = vpop.eup %10485 }
0x2991   :  { %v4379_v13 = vsel %vm1112_vm6, %v10486_v43, 0.0 }
0x2992   :  { %4380 = vadd.xlane.f32.xlu0 %v4379_v13 }
0x2994   :  { %v10488_v15 = vpop.eup %10487 }
0x2995   :  { %v4382_v17 = vsel %vm1112_vm6, %v10488_v15, 0.0 }
0x2996   :  { %4383 = vadd.xlane.f32.xlu1 %v4382_v17 }
0x29a7   :  { %4489 = vrot.lane.b32.xlu1 %v12512_v55, %s11513_s18 }
0x29a8   :  { %4539 = vrot.lane.b32.xlu0 %v12516_v37, %s11513_s18 }
0x29ab   :  { %4487 = vrot.lane.b32.xlu1 %v12512_v55, %s11514_s8 }
0x29ac   :  { %4537 = vrot.lane.b32.xlu0 %v12516_v37, %s11514_s8 }
0x2a1b   :  { %v4381_v16 = vpop.xlane.xlu0 %4380 }
0x2a1c   :  { %10489 = vrcp.f32 %v4381_v16 }
0x2a1f   :  { %v4384_v18 = vpop.xlane.xlu1 %4383  ;;  %v4540_v26 = vpop.permute.xlu0 %4539 }
0x2a20   :  { %10491 = vrcp.f32 %v4384_v18  ;;  %v4545_v27 = vsel %vm1112_vm6, %v4540_v26, 0 }
0x2a23   :  { %v4490_v14 = vpop.permute.xlu1 %4489  ;;  %v4538_v2 = vpop.permute.xlu0 %4537 }
0x2a24   :  { %v4495_v23 = vsel %vm1112_vm6, %v4490_v14, 0 }
0x2a27   :  { %v4488_v28 = vpop.permute.xlu1 %4487 }
0x2a29   :  { %v10490_v20 = vpop.eup %10489 }
0x2a2a   :  { %v4387_v19 = vmul.f32 %v10490_v20, %v10486_v43 }
0x2a2c   :  { %v4389_v21 = vpack.c.bf16 %v4387_v19, %v4387_v19 }
0x2a2d   :  { %v10492_v22 = vpop.eup %10491 }
0x2a2e   :  { %9670 = vmatmul.mubr.msk.bf16.vlgmr.msra.gmra.mxu1 %vm1112_vm6, %v4389_v21  ;;  %v4388_v24 = vmul.f32 %v10492_v22, %v10488_v15  ;;  %v3572_v15 = vadd.f32 %v12504_v11, %v12501_v8  ;;  %v10355_v21 = vld [vmem:[%s13578_s13 + $0x8] sm:$0xff]   ;;  %v10356_v22 = vld [vmem:[%s13578_s13] sm:$0xff]  }
0x2a2f   :  { %9680 = vmatpush3.bf16.xpose.msra.mxu1 %v4495_v23  ;;  %9681 = vmatprep.mubr.msk.bf16.mxu1 %vm11504_vm1, %v11503_v1 }
0x2a30   :  { %v4390_v25 = vpack.c.bf16 %v4388_v24, %v4388_v24  ;;  %9691 = vmatprep.subr.bf16.mxu1 %v11503_v1  ;;  %v3578_v17 = vadd.f32 %v3572_v15, %v12435_v45 }
0x2a32   :  { %9676 = vmatmul.mubr.msk.bf16.vlgmr.msra.gmra.mxu0 %vm1112_vm6, %v4390_v25  ;;  %v3580_v16 = vsel %vm997_vm5, %v3578_v17, 0.0 }
0x2a33   :  { %9686 = vmatpush3.bf16.xpose.msra.mxu0 %v4545_v27  ;;  %9687 = vmatprep.mubr.msk.bf16.mxu0 %vm11504_vm1, %v11503_v1 }
0x2a34   :  { %9697 = vmatprep.subr.bf16.mxu0 %v11503_v1 }
0x2a36   :  { %9682 = vmatmul.mubr.msk.bf16.vlgmr.msra.gmra.mxu1 %vm1112_vm6, %v4488_v28 }
0x2a37   :  { %9693 = vmatprep.mubr.msk.bf16.mxu1 %vm11504_vm1, %v11503_v1 }
0x2a3a   :  { %9688 = vmatmul.mubr.msk.bf16.vlgmr.msra.gmra.mxu0 %vm1112_vm6, %v4538_v2 }
0x2a3b   :  { %9699 = vmatprep.mubr.msk.bf16.mxu0 %vm11504_vm1, %v11503_v1 }
0x2aee   :  { %v4433_v10 = vpop.f32.mrf.mxu1 }
0x2af0   :  { %v9671_v36 = vpop.f32.mrf.mxu1 }
0x2af2   :  { %v4436_v38 = vpop.f32.mrf.mxu1  ;;  %v4481_v40 = vpop.f32.mrf.mxu0 }
0x2af3   :  { %v10270_v33 = vpack.i.bf16 %v4481_v40, %v4433_v10 }
0x2af4   :  { %v9672_v41 = vpop.f32.mrf.mxu1  ;;  %v9677_v48 = vpop.f32.mrf.mxu0 }
0x2af5   :  { %v3579_v41 = vadd.f32 %v12507_v7, %v12440_v51 }
0x2af6   :  { %v4484_v46 = vpop.f32.mrf.mxu0  ;;  %v4531_v47 = vpop.f32.mrf.mxu1 }
0x2af7   :  { %v4587_v49 = vmul.f32 0.35355338, %v4531_v47  ;;  %v3583_v46 = vsel %vm997_vm5, %v3579_v41, 0.0 }
0x2af8   :  { %v9678_v42 = vpop.f32.mrf.mxu0  ;;  %v9683_v3 = vpop.f32.mrf.mxu1 }
0x2af9   :  { %v4589_v57 = vadd.f32 %v4587_v49, %v12533_v44 }
0x2afa   :  { %v4534_v59 = vpop.f32.mrf.mxu1  ;;  %v4581_v60 = vpop.f32.mrf.mxu0 }
0x2afb   :  { %v4588_v62 = vmul.f32 0.35355338, %v4581_v60  ;;  %v4591_v6 = vsel %vm1112_vm6, %v4589_v57, -inf }
0x2afc   :  { %4592 = vmax.xlane.f32.xlu1 %v4591_v6  ;;  %v9684_v63 = vpop.f32.mrf.mxu1  ;;  %v9689_v0 = vpop.f32.mrf.mxu0 }
0x2afd   :  { %v4590_v39 = vadd.f32 %v4588_v62, %v12537_v56 }
0x2afe   :  { %v4584_v29 = vpop.f32.mrf.mxu0 }
0x2aff   :  { %v4594_v30 = vsel %vm1112_vm6, %v4590_v39, -inf }
0x2b00   :  { %4595 = vmax.xlane.f32.xlu0 %v4594_v30  ;;  %v9690_v31 = vpop.f32.mrf.mxu0 }
0x2b85   :  { %v4593_v4 = vpop.xlane.xlu1 %4592 }
0x2b86   :  { %v4597_v54 = vsub.f32 %v4589_v57, %v4593_v4 }
0x2b88   :  { %v4599_v58 = vmul.f32 1.442695, %v4597_v54 }
0x2b89   :  { %v4596_v5 = vpop.xlane.xlu0 %4595 }
0x2b8a   :  { %10493 = vpow2.f32 %v4599_v58  ;;  %v4598_v44 = vsub.f32 %v4590_v39, %v4596_v5 }
0x2b8c   :  { %v4601_v9 = vmul.f32 1.442695, %v4598_v44 }
0x2b8e   :  { %10495 = vpow2.f32 %v4601_v9 }
0x2b97   :  { %v10494_v12 = vpop.eup %10493 }
0x2b98   :  { %v4603_v43 = vsel %vm1112_vm6, %v10494_v12, 0.0 }
0x2b99   :  { %4604 = vadd.xlane.f32.xlu0 %v4603_v43 }
0x2b9b   :  { %v10496_v13 = vpop.eup %10495 }
0x2b9c   :  { %v4606_v56 = vsel %vm1112_vm6, %v10496_v13, 0.0 }
0x2b9d   :  { %4607 = vadd.xlane.f32.xlu1 %v4606_v56 }
0x2bae   :  { %4663 = vrot.lane.b32.xlu1 %v12516_v37, %s11515_s22 }
0x2baf   :  { %4615 = vrot.lane.b32.xlu0 %v12512_v55, %s11515_s22 }
0x2bb2   :  { %10266 = vrot.lane.b32.xlu1 %v10265_v35, %s11517_s17 }
0x2bb3   :  { %10271 = vrot.lane.b32.xlu0 %v10270_v33, %s11516_s19 }
0x2bd2   :  { %3581 = vadd.xlane.f32.xlu0 %v3580_v16 }
0x2c22   :  { %v4605_v18 = vpop.xlane.xlu0 %4604 }
0x2c23   :  { %10497 = vrcp.f32 %v4605_v18 }
0x2c26   :  { %v4608_v37 = vpop.xlane.xlu1 %4607  ;;  %v4616_v20 = vpop.permute.xlu0 %4615 }
0x2c27   :  { %10499 = vrcp.f32 %v4608_v37  ;;  %v4621_v55 = vsel %vm1240_vm7, %v4616_v20, 0  ;;  %v10358_v37 = vld [vmem:[%s13579_s9] sm:$0xff]  }
0x2c28   :  { %9692 = vmatpush3.bf16.msra.mxu1 %v4621_v55 }
0x2c29   :  { %9703 = vmatprep.subr.bf16.mxu1 %v11503_v1 }
0x2c2a   :  { %v4664_v61 = vpop.permute.xlu1 %4663  ;;  %v10272_v38 = vpop.permute.xlu0 %10271 }
0x2c2b   :  { %v4669_v52 = vsel %vm1240_vm7, %v4664_v61, 0  ;;  %v10274_v7 = vunpack.i.h.bf16 %v10272_v38  ;;  %v10273_v60 = vunpack.i.l.bf16 %v10272_v38  ;;  %v8851_v38 = vld [vmem:[#allocation54] ss:$0 sm:$0xff] }
0x2c2c   :  { %9698 = vmatpush3.bf16.msra.mxu0 %v4669_v52 }
0x2c2d   :  { %9711 = vmatprep.subr.bf16.mxu0 %v11503_v1 }
0x2c2e   :  { %v10267_v42 = vpop.permute.xlu1 %10266 }
0x2c2f   :  { %v10269_v3 = vunpack.i.h.bf16 %v10267_v42  ;;  %v10268_v57 = vunpack.i.l.bf16 %v10267_v42 }
0x2c30   :  { %v10498_v45 = vpop.eup %10497 }
0x2c31   :  { %v4611_v8 = vmul.f32 %v10498_v45, %v10494_v12  ;;  %v4736_v59 = vsel %vm1112_vm6, %v12578_v34, %v10269_v3  ;;  %v4735_v51 = vsel %vm1112_vm6, %v12576_v32, %v10268_v57  ;;  %v8883_v34 = vld [vmem:[#allocation15] ss:$0 sm:$0xff] }
0x2c32   :  { %v4737_v0 = vsel %vm2030_vm8, %v4735_v51, %v10273_v60  ;;  %v4738_v39 = vsel %vm2030_vm8, %v4736_v59, %v10274_v7 }
0x2c33   :  { %v4613_v11 = vpack.c.bf16 %v4611_v8, %v4611_v8 }
0x2c34   :  { %v10500_v35 = vpop.eup %10499 }
0x2c35   :  { %v4612_v19 = vmul.f32 %v10500_v35, %v10496_v13  ;;  %9694 = vmatmul.mubr.msk.bf16.vlgmr.msra.gmra.mxu1 %vm1112_vm6, %v4613_v11 }
0x2c36   :  { %9707 = vmatprep.mubr.msk.bf16.mxu1 %vm11504_vm1, %v11503_v1  ;;  %9704 = vmatpush3.bf16.msra.mxu1 %v10355_v21 }
0x2c37   :  { %v4614_v14 = vpack.c.bf16 %v4612_v19, %v4612_v19  ;;  %9705 = vmatprep.subr.bf16.mxu1 %v11503_v1 }
0x2c39   :  { %9700 = vmatmul.mubr.msk.bf16.vlgmr.msra.gmra.mxu0 %vm1112_vm6, %v4614_v14 }
0x2c3a   :  { %9715 = vmatprep.mubr.msk.bf16.mxu0 %vm11504_vm1, %v11503_v1  ;;  %9706 = vmatpush3.bf16.msra.mxu1 %v10356_v22 }
0x2c3b   :  { %9719 = vmatprep.subr.bf16.mxu1 %v11503_v1 }
0x2c5b   :  { %v3582_v40 = vpop.xlane.xlu0 %3581 }
0x2c5c   :  { %v3586_v33 = vmul.f32 0.03125, %v3582_v40 }
0x2c5e   :  { %v12698_v48 = vsub.f32 %v3578_v17, %v3586_v33 }
0x2c60   :  { %v3590_v47 = vmul.f32 %v12698_v48, %v12698_v48 }
0x2c62   :  { %v3592_v49 = vsel %vm997_vm5, %v3590_v47, 0.0  ;;  %v10359_v47 = vld [vmem:[%s13580_s7 + $0x8] sm:$0xff]  }
0x2c63   :  { %9712 = vmatpush3.bf16.msra.mxu0 %v10359_v47 }
0x2c64   :  { %9713 = vmatprep.subr.bf16.mxu0 %v11503_v1 }
0x2cf5   :  { %v4657_v23 = vpop.f32.mrf.mxu1 }
0x2cf7   :  { %v9695_v24 = vpop.f32.mrf.mxu1 }
0x2cf9   :  { %v4660_v26 = vpop.f32.mrf.mxu1  ;;  %v4705_v25 = vpop.f32.mrf.mxu0 }
0x2cfa   :  { %v10275_v27 = vpack.i.bf16 %v4705_v25, %v4657_v23 }
0x2cfb   :  { %v9696_v28 = vpop.f32.mrf.mxu1  ;;  %v9701_v2 = vpop.f32.mrf.mxu0 }
0x2cfc   :  { %10276 = vrot.lane.b32.xlu1 %v10275_v27, %s11518_s4  ;;  %v8850_v28 = vld [vmem:[#allocation55] ss:$0 sm:$0xff] }
0x2cfd   :  { %v4708_v10 = vpop.f32.mrf.mxu0 }
0x2cff   :  { %v9702_v36 = vpop.f32.mrf.mxu0 }
0x2d20   :  { %3584 = vadd.xlane.f32.xlu1 %v3583_v46 }
0x2d24   :  { %3593 = vadd.xlane.f32.xlu1 %v3592_v49  ;;  %v10360_v49 = vld [vmem:[%s13580_s7] sm:$0xff]  }
0x2d25   :  { %9714 = vmatpush3.bf16.msra.mxu0 %v10360_v49 }
0x2d26   :  { %9727 = vmatprep.subr.bf16.mxu0 %v11503_v1 }
0x2d6e   :  { %v10277_v62 = vpop.permute.xlu1 %10276 }
0x2d6f   :  { %v10279_v6 = vunpack.i.h.bf16 %v10277_v62  ;;  %v10278_v63 = vunpack.i.l.bf16 %v10277_v62  ;;  %v8888_v62 = vld [vmem:[#allocation10] ss:$0 sm:$0xff] }
0x2d71   :  { %v4740_v29 = vsel %vm2033_vm9, %v4738_v39, %v10279_v6  ;;  %v4739_v30 = vsel %vm2033_vm9, %v4737_v0, %v10278_v63  ;;  %v8889_v39 = vld [vmem:[#allocation9] ss:$0 sm:$0xff] }
0x2d72   :  { %v9021_v31 = vpack.c.bf16 %v4740_v29, %v4739_v30 }
0x2d74   :  { %9708 = vmatmul.mubr.msk.bf16.vlgmr.msra.gmra.mxu1 %vm997_vm5, %v9021_v31 }
0x2d75   :  { %9723 = vmatprep.mubr.msk.bf16.mxu1 %vm11504_vm1, %v11503_v1 }
0x2da9   :  { %v3585_v32 = vpop.xlane.xlu1 %3584 }
0x2daa   :  { %v3587_v54 = vmul.f32 0.03125, %v3585_v32 }
0x2dac   :  { %v3589_v12 = vsub.f32 %v3579_v41, %v3587_v54 }
0x2dad   :  { %v3594_v20 = vpop.xlane.xlu1 %3593 }
0x2dae   :  { %v3591_v16 = vmul.f32 %v3589_v12, %v3589_v12  ;;  %v3598_v55 = vmul.f32 0.03125, %v3594_v20 }
0x2db0   :  { %v3595_v18 = vsel %vm997_vm5, %v3591_v16, 0.0  ;;  %v3600_v52 = vadd.f32 1e-05, %v3598_v55  ;;  %v8890_v16 = vld [vmem:[#allocation21] ss:$0 sm:$0xff] }
0x2db2   :  { %10501 = vrsqrt.f32 %v3600_v52 }
0x2dbf   :  { %v10502_v25 = vpop.eup %10501 }
0x2dc0   :  { %v3604_v27 = vmul.f32 %v10502_v25, %v12698_v48 }
0x2dc2   :  { %v3612_v10 = vmul.f32 %v8850_v28, %v3604_v27 }
0x2dc4   :  { %v3620_v33 = vadd.f32 %v8851_v38, %v3612_v10 }
0x2e34   :  { %v4803_v4 = vpop.f32.mrf.mxu1 }
0x2e35   :  { %v4804_v58 = vadd.f32 %v8883_v34, %v4803_v4 }
0x2e36   :  { %v9709_v5 = vpop.f32.mrf.mxu1 }
0x2e37   :  { %v12716_v44 = vadd.f32 %v4804_v58, %v12485_v50  ;;  %v10357_v50 = vld [vmem:[%s13579_s9 + $0x8] sm:$0xff]  }
0x2e38   :  { %v4806_v9 = vpop.f32.mrf.mxu1  ;;  %9720 = vmatpush3.bf16.msra.mxu1 %v10357_v50 }
0x2e39   :  { %v4807_v43 = vadd.f32 %v8883_v34, %v4806_v9  ;;  %v4812_v13 = vsel %vm997_vm5, %v12716_v44, 0.0  ;;  %9721 = vmatprep.subr.bf16.mxu1 %v11503_v1  ;;  %v8896_v34 = vld [vmem:[#allocation18] ss:$0 sm:$0xff] }
0x2e3a   :  { %4813 = vadd.xlane.f32.xlu0 %v4812_v13  ;;  %v9710_v56 = vpop.f32.mrf.mxu1 }
0x2e3b   :  { %v12721_v15 = vadd.f32 %v4807_v43, %v12490_v53 }
0x2e3c   :  { %9722 = vmatpush3.bf16.msra.mxu1 %v10358_v37 }
0x2e3d   :  { %v4815_v17 = vsel %vm997_vm5, %v12721_v15, 0.0  ;;  %9733 = vmatprep.subr.bf16.mxu1 %v11503_v1 }
0x2e3e   :  { %4816 = vadd.xlane.f32.xlu0 %v4815_v17 }
0x2e42   :  { %3596 = vadd.xlane.f32.xlu0 %v3595_v18 }
0x2ec3   :  { %v4814_v53 = vpop.xlane.xlu0 %4813 }
0x2ec4   :  { %v4818_v61 = vmul.f32 0.03125, %v4814_v53 }
0x2ec6   :  { %v4820_v45 = vsub.f32 %v12716_v44, %v4818_v61 }
0x2ec7   :  { %v4817_v8 = vpop.xlane.xlu0 %4816 }
0x2ec8   :  { %v4819_v11 = vmul.f32 0.03125, %v4817_v8  ;;  %v4822_v35 = vmul.f32 %v4820_v45, %v4820_v45 }
0x2eca   :  { %v4821_v19 = vsub.f32 %v12721_v15, %v4819_v11  ;;  %v4824_v14 = vsel %vm997_vm5, %v4822_v35, 0.0 }
0x2ecb   :  { %4825 = vadd.xlane.f32.xlu1 %v4824_v14  ;;  %v3597_v21 = vpop.xlane.xlu0 %3596 }
0x2ecc   :  { %v3599_v22 = vmul.f32 0.03125, %v3597_v21  ;;  %v4823_v23 = vmul.f32 %v4821_v19, %v4821_v19  ;;  %v12775_v21 = vld [vmem:[%s13581_s10 + $0x8] sm:$0xff] }
0x2ece   :  { %v3601_v24 = vadd.f32 1e-05, %v3599_v22  ;;  %v4827_v26 = vsel %vm997_vm5, %v4823_v23, 0.0 }
0x2ecf   :  { %4828 = vadd.xlane.f32.xlu0 %v4827_v26 }
0x2ed0   :  { %10503 = vrsqrt.f32 %v3601_v24 }
0x2edd   :  { %v10504_v2 = vpop.eup %10503 }
0x2ede   :  { %v3605_v36 = vmul.f32 %v10504_v2, %v3589_v12 }
0x2ee0   :  { %v3613_v40 = vmul.f32 %v8850_v28, %v3605_v36 }
0x2ee2   :  { %v3621_v41 = vadd.f32 %v8851_v38, %v3613_v40 }
0x2ee4   :  { %v12735_v46 = vpack.c.bf16 %v3621_v41, %v3620_v33 }
0x2ee6   :  { %9724 = vmatmul.mubr.msk.bf16.vlgmr.msra.gmra.mxu1 %vm997_vm5, %v12735_v46 }
0x2ee7   :  { %9735 = vmatprep.mubr.msk.bf16.mxu1 %vm11504_vm1, %v11503_v1 }
0x2f54   :  { %v4826_v48 = vpop.xlane.xlu1 %4825 }
0x2f55   :  { %v4830_v42 = vmul.f32 0.03125, %v4826_v48 }
0x2f57   :  { %v4832_v3 = vadd.f32 1e-05, %v4830_v42 }
0x2f58   :  { %v4829_v57 = vpop.xlane.xlu0 %4828 }
0x2f59   :  { %10505 = vrsqrt.f32 %v4832_v3  ;;  %v4831_v59 = vmul.f32 0.03125, %v4829_v57 }
0x2f5b   :  { %v4833_v51 = vadd.f32 1e-05, %v4831_v59 }
0x2f5d   :  { %10507 = vrsqrt.f32 %v4833_v51 }
0x2f66   :  { %v10506_v7 = vpop.eup %10505 }
0x2f67   :  { %v4836_v60 = vmul.f32 %v10506_v7, %v4820_v45  ;;  %v12771_v45 = vld [vmem:[%s13581_s10] sm:$0xff] }
0x2f69   :  { %v4844_v63 = vmul.f32 %v8888_v62, %v4836_v60 }
0x2f6a   :  { %v10508_v6 = vpop.eup %10507 }
0x2f6b   :  { %v4837_v0 = vmul.f32 %v10508_v6, %v4821_v19  ;;  %v4852_v30 = vadd.f32 %v8889_v39, %v4844_v63 }
0x2f6d   :  { %v4845_v29 = vmul.f32 %v8888_v62, %v4837_v0 }
0x2f6f   :  { %v4853_v31 = vadd.f32 %v8889_v39, %v4845_v29 }
0x2f71   :  { %v4854_v32 = vpack.c.bf16 %v4853_v31, %v4852_v30 }
0x2f73   :  { %9716 = vmatmul.mubr.msk.bf16.vlgmr.msra.gmra.mxu0 %vm997_vm5, %v4854_v32 }
0x2f74   :  { %9729 = vmatprep.mubr.msk.bf16.mxu0 %vm11504_vm1, %v11503_v1 }
0x2fa6   :  { %v4978_v4 = vpop.f32.mrf.mxu1 }
0x2fa7   :  { %v4979_v54 = vadd.f32 %v8896_v34, %v4978_v4 }
0x2fa8   :  { %v9725_v58 = vpop.f32.mrf.mxu1 }
0x2fa9   :  { %v12748_v5 = vpack.c.bf16 %v4979_v54, %v4979_v54 }
0x2faa   :  { %v4981_v9 = vpop.f32.mrf.mxu1 }
0x2fab   :  { %v4982_v12 = vadd.f32 %v8896_v34, %v4981_v9  ;;  %v4995_v43 = vsel %vm1112_vm6, %v12748_v5, 0 }
0x2fac   :  { %v9726_v13 = vpop.f32.mrf.mxu1  ;;  %9728 = vmatpush3.bf16.xpose.msra.mxu0 %v4995_v43 }
0x2fad   :  { %v12752_v56 = vpack.c.bf16 %v4982_v12, %v4982_v12  ;;  %9739 = vmatprep.subr.bf16.mxu0 %v11503_v1 }
0x2faf   :  { %v5041_v17 = vsel %vm1112_vm6, %v12752_v56, 0 }
0x2fb0   :  { %9734 = vmatpush3.bf16.xpose.msra.mxu1 %v5041_v17 }
0x2fb1   :  { %9745 = vmatprep.subr.bf16.mxu1 %v11503_v1 }
0x3033   :  { %v4910_v18 = vpop.f32.mrf.mxu0 }
0x3034   :  { %v4911_v50 = vadd.f32 %v8890_v16, %v4910_v18 }
0x3035   :  { %v9717_v37 = vpop.f32.mrf.mxu0 }
0x3036   :  { %v12758_v20 = vpack.c.bf16 %v4911_v50, %v4911_v50 }
0x3037   :  { %v4913_v55 = vpop.f32.mrf.mxu0 }
0x3038   :  { %v4914_v53 = vadd.f32 %v8890_v16, %v4913_v55  ;;  %9730 = vmatmul.mubr.msk.bf16.vlgmr.msra.gmra.mxu0 %vm1112_vm6, %v12758_v20 }
0x3039   :  { %v9718_v61 = vpop.f32.mrf.mxu0  ;;  %9741 = vmatprep.mubr.msk.bf16.mxu0 %vm11504_vm1, %v11503_v1 }
0x303a   :  { %v12764_v52 = vpack.c.bf16 %v4914_v53, %v4914_v53 }
0x303c   :  { %9736 = vmatmul.mubr.msk.bf16.vlgmr.msra.gmra.mxu1 %vm1112_vm6, %v12764_v52 }
0x303d   :  { %9747 = vmatprep.mubr.msk.bf16.mxu1 %vm11504_vm1, %v11503_v1 }
0x30f8   :  { %v5031_v8 = vpop.f32.mrf.mxu0 }
0x30f9   :  { %v5083_v11 = vmul.f32 0.35355338, %v5031_v8 }
0x30fa   :  { %v9731_v35 = vpop.f32.mrf.mxu0 }
0x30fb   :  { %v5085_v19 = vadd.f32 %v5083_v11, %v12771_v45 }
0x30fc   :  { %v5034_v14 = vpop.f32.mrf.mxu0  ;;  %v5077_v22 = vpop.f32.mrf.mxu1 }
0x30fd   :  { %v5084_v23 = vmul.f32 0.35355338, %v5077_v22  ;;  %v5087_v24 = vsel %vm1112_vm6, %v5085_v19, -inf }
0x30fe   :  { %v9732_v26 = vpop.f32.mrf.mxu0  ;;  %v9737_v25 = vpop.f32.mrf.mxu1  ;;  %5088 = vmax.xlane.f32.xlu1 %v5087_v24 }
0x30ff   :  { %v5086_v27 = vadd.f32 %v5084_v23, %v12775_v21 }
0x3100   :  { %v5080_v28 = vpop.f32.mrf.mxu1 }
0x3101   :  { %v5090_v2 = vsel %vm1112_vm6, %v5086_v27, -inf }
0x3102   :  { %v9738_v10 = vpop.f32.mrf.mxu1  ;;  %5091 = vmax.xlane.f32.xlu0 %v5090_v2 }
0x310f   :  { %5111 = vrot.lane.b32.xlu1 %v12748_v5, %s11505_s29 }
0x3187   :  { %v5089_v36 = vpop.xlane.xlu1 %5088 }
0x3188   :  { %v5093_v38 = vsub.f32 %v5085_v19, %v5089_v36 }
0x318a   :  { %v5095_v40 = vmul.f32 1.442695, %v5093_v38 }
0x318b   :  { %v5092_v33 = vpop.xlane.xlu0 %5091  ;;  %v5112_v41 = vpop.permute.xlu1 %5111 }
0x318c   :  { %10509 = vpow2.f32 %v5095_v40  ;;  %v5094_v47 = vsub.f32 %v5086_v27, %v5092_v33  ;;  %v5117_v49 = vsel %vm1240_vm7, %v5112_v41, 0 }
0x318d   :  { %9740 = vmatpush3.bf16.msra.mxu0 %v5117_v49 }
0x318e   :  { %v5097_v48 = vmul.f32 1.442695, %v5094_v47  ;;  %9751 = vmatprep.subr.bf16.mxu0 %v11503_v1 }
0x3190   :  { %10511 = vpow2.f32 %v5097_v48 }
0x3199   :  { %v10510_v42 = vpop.eup %10509 }
0x319a   :  { %v5099_v3 = vsel %vm1112_vm6, %v10510_v42, 0.0 }
0x319b   :  { %5100 = vadd.xlane.f32.xlu1 %v5099_v3 }
0x319d   :  { %v10512_v57 = vpop.eup %10511 }
0x319e   :  { %v5102_v59 = vsel %vm1112_vm6, %v10512_v57, 0.0 }
0x319f   :  { %5103 = vadd.xlane.f32.xlu0 %v5102_v59 }
0x31ac   :  { %5209 = vrot.lane.b32.xlu1 %v12748_v5, %s11508_s6 }
0x31b0   :  { %5259 = vrot.lane.b32.xlu1 %v12752_v56, %s11508_s6 }
0x31b4   :  { %5257 = vrot.lane.b32.xlu1 %v12764_v52, %s11508_s6 }
0x31b5   :  { %5159 = vrot.lane.b32.xlu0 %v12752_v56, %s11505_s29 }
0x31b9   :  { %5207 = vrot.lane.b32.xlu0 %v12758_v20, %s11508_s6 }
0x3224   :  { %v5101_v51 = vpop.xlane.xlu1 %5100 }
0x3225   :  { %10513 = vrcp.f32 %v5101_v51 }
0x3228   :  { %v5104_v7 = vpop.xlane.xlu0 %5103  ;;  %v5210_v63 = vpop.permute.xlu1 %5209 }
0x3229   :  { %10515 = vrcp.f32 %v5104_v7  ;;  %v5215_v31 = vsel %vm1112_vm6, %v5210_v63, 0 }
0x322c   :  { %v5160_v60 = vpop.permute.xlu0 %5159  ;;  %v5260_v32 = vpop.permute.xlu1 %5259 }
0x322d   :  { %v5165_v62 = vsel %vm1240_vm7, %v5160_v60, 0  ;;  %v5265_v4 = vsel %vm1112_vm6, %v5260_v32, 0 }
0x322e   :  { %9746 = vmatpush3.bf16.msra.mxu1 %v5165_v62 }
0x322f   :  { %9757 = vmatprep.subr.bf16.mxu1 %v11503_v1 }
0x3230   :  { %v5208_v54 = vpop.permute.xlu0 %5207  ;;  %v5258_v58 = vpop.permute.xlu1 %5257 }
0x3232   :  { %v10514_v6 = vpop.eup %10513 }
0x3233   :  { %v5107_v0 = vmul.f32 %v10514_v6, %v10510_v42 }
0x3235   :  { %v5109_v39 = vpack.c.bf16 %v5107_v0, %v5107_v0 }
0x3236   :  { %v10516_v29 = vpop.eup %10515 }
0x3237   :  { %v5108_v30 = vmul.f32 %v10516_v29, %v10512_v57  ;;  %9742 = vmatmul.mubr.msk.bf16.vlgmr.msra.gmra.mxu0 %vm1112_vm6, %v5109_v39 }
0x3238   :  { %9752 = vmatpush3.bf16.xpose.msra.mxu0 %v5215_v31  ;;  %9753 = vmatprep.mubr.msk.bf16.mxu0 %vm11504_vm1, %v11503_v1 }
0x3239   :  { %v5110_v34 = vpack.c.bf16 %v5108_v30, %v5108_v30  ;;  %9763 = vmatprep.subr.bf16.mxu0 %v11503_v1 }
0x323b   :  { %9748 = vmatmul.mubr.msk.bf16.vlgmr.msra.gmra.mxu1 %vm1112_vm6, %v5110_v34 }
0x323c   :  { %9758 = vmatpush3.bf16.xpose.msra.mxu1 %v5265_v4  ;;  %9759 = vmatprep.mubr.msk.bf16.mxu1 %vm11504_vm1, %v11503_v1 }
0x323d   :  { %9769 = vmatprep.subr.bf16.mxu1 %v11503_v1 }
0x323f   :  { %9754 = vmatmul.mubr.msk.bf16.vlgmr.msra.gmra.mxu0 %vm1112_vm6, %v5208_v54 }
0x3240   :  { %9765 = vmatprep.mubr.msk.bf16.mxu0 %vm11504_vm1, %v11503_v1 }
0x3243   :  { %9760 = vmatmul.mubr.msk.bf16.vlgmr.msra.gmra.mxu1 %vm1112_vm6, %v5258_v58 }
0x3244   :  { %9771 = vmatprep.mubr.msk.bf16.mxu1 %vm11504_vm1, %v11503_v1 }
0x32f7   :  { %v12814_v9 = vpop.f32.mrf.mxu0 }
0x32f9   :  { %v9743_v12 = vpop.f32.mrf.mxu0 }
0x32fb   :  { %v5156_v43 = vpop.f32.mrf.mxu0  ;;  %v12816_v13 = vpop.f32.mrf.mxu1 }
0x32fd   :  { %v9744_v17 = vpop.f32.mrf.mxu0  ;;  %v9749_v16 = vpop.f32.mrf.mxu1 }
0x32ff   :  { %v5204_v18 = vpop.f32.mrf.mxu1  ;;  %v5251_v50 = vpop.f32.mrf.mxu0 }
0x3300   :  { %v5307_v37 = vmul.f32 0.35355338, %v5251_v50 }
0x3301   :  { %v9750_v55 = vpop.f32.mrf.mxu1  ;;  %v9755_v53 = vpop.f32.mrf.mxu0 }
0x3302   :  { %v5309_v61 = vadd.f32 %v5307_v37, %v12771_v45 }
0x3303   :  { %v5254_v8 = vpop.f32.mrf.mxu0  ;;  %v5301_v11 = vpop.f32.mrf.mxu1 }
0x3304   :  { %v5308_v35 = vmul.f32 0.35355338, %v5301_v11  ;;  %v5311_v19 = vsel %vm1112_vm6, %v5309_v61, -inf }
0x3305   :  { %5312 = vmax.xlane.f32.xlu0 %v5311_v19  ;;  %v9756_v14 = vpop.f32.mrf.mxu0  ;;  %v9761_v22 = vpop.f32.mrf.mxu1 }
0x3306   :  { %v5310_v23 = vadd.f32 %v5308_v35, %v12775_v21 }
0x3307   :  { %v5304_v24 = vpop.f32.mrf.mxu1 }
0x3308   :  { %v5314_v26 = vsel %vm1112_vm6, %v5310_v23, -inf }
0x3309   :  { %5315 = vmax.xlane.f32.xlu1 %v5314_v26  ;;  %v9762_v25 = vpop.f32.mrf.mxu1 }
0x331a   :  { %5335 = vrot.lane.b32.xlu1 %v12748_v5, %s11507_s11 }
0x331e   :  { %5433 = vrot.lane.b32.xlu1 %v12748_v5, %s11511_s12 }
0x3322   :  { %5483 = vrot.lane.b32.xlu1 %v12752_v56, %s11511_s12 }
0x3326   :  { %5481 = vrot.lane.b32.xlu1 %v12764_v52, %s11511_s12 }
0x338e   :  { %v5313_v27 = vpop.xlane.xlu0 %5312 }
0x338f   :  { %v5317_v28 = vsub.f32 %v5309_v61, %v5313_v27 }
0x3391   :  { %v5319_v2 = vmul.f32 1.442695, %v5317_v28 }
0x3392   :  { %v5316_v10 = vpop.xlane.xlu1 %5315 }
0x3393   :  { %10517 = vpow2.f32 %v5319_v2  ;;  %v5318_v36 = vsub.f32 %v5310_v23, %v5316_v10 }
0x3395   :  { %v5321_v38 = vmul.f32 1.442695, %v5318_v36 }
0x3396   :  { %v5336_v40 = vpop.permute.xlu1 %5335 }
0x3397   :  { %10519 = vpow2.f32 %v5321_v38  ;;  %v5341_v33 = vsel %vm1240_vm7, %v5336_v40, 0 }
0x3398   :  { %9764 = vmatpush3.bf16.msra.mxu0 %v5341_v33 }
0x3399   :  { %9775 = vmatprep.subr.bf16.mxu0 %v11503_v1 }
0x339a   :  { %v5434_v7 = vpop.permute.xlu1 %5433 }
0x339b   :  { %v5439_v63 = vsel %vm1112_vm6, %v5434_v7, 0 }
0x339e   :  { %v5484_v39 = vpop.permute.xlu1 %5483 }
0x339f   :  { %v5489_v30 = vsel %vm1112_vm6, %v5484_v39, 0 }
0x33a0   :  { %v10518_v41 = vpop.eup %10517 }
0x33a1   :  { %v5323_v47 = vsel %vm1112_vm6, %v10518_v41, 0.0 }
0x33a2   :  { %5324 = vadd.xlane.f32.xlu0 %v5323_v47  ;;  %v5482_v32 = vpop.permute.xlu1 %5481 }
0x33a4   :  { %v10520_v49 = vpop.eup %10519 }
0x33a5   :  { %v5326_v48 = vsel %vm1112_vm6, %v10520_v49, 0.0 }
0x33a6   :  { %5327 = vadd.xlane.f32.xlu0 %v5326_v48 }
0x33bc   :  { %5383 = vrot.lane.b32.xlu0 %v12752_v56, %s11507_s11 }
0x33c0   :  { %5431 = vrot.lane.b32.xlu0 %v12758_v20, %s11511_s12 }
0x342b   :  { %v5325_v42 = vpop.xlane.xlu0 %5324 }
0x342c   :  { %10521 = vrcp.f32 %v5325_v42 }
0x342f   :  { %v5328_v3 = vpop.xlane.xlu0 %5327 }
0x3430   :  { %10523 = vrcp.f32 %v5328_v3 }
0x3433   :  { %v5384_v57 = vpop.permute.xlu0 %5383 }
0x3434   :  { %v5389_v59 = vsel %vm1240_vm7, %v5384_v57, 0 }
0x3435   :  { %9770 = vmatpush3.bf16.msra.mxu1 %v5389_v59 }
0x3436   :  { %9781 = vmatprep.subr.bf16.mxu1 %v11503_v1 }
0x3437   :  { %v5432_v31 = vpop.permute.xlu0 %5431 }
0x3439   :  { %v10522_v51 = vpop.eup %10521 }
0x343a   :  { %v5331_v60 = vmul.f32 %v10522_v51, %v10518_v41 }
0x343c   :  { %v5333_v62 = vpack.c.bf16 %v5331_v60, %v5331_v60 }
0x343d   :  { %v10524_v6 = vpop.eup %10523 }
0x343e   :  { %v5332_v0 = vmul.f32 %v10524_v6, %v10520_v49  ;;  %9766 = vmatmul.mubr.msk.bf16.vlgmr.msra.gmra.mxu0 %vm1112_vm6, %v5333_v62 }
0x343f   :  { %9776 = vmatpush3.bf16.xpose.msra.mxu0 %v5439_v63  ;;  %9777 = vmatprep.mubr.msk.bf16.mxu0 %vm11504_vm1, %v11503_v1 }
0x3440   :  { %v5334_v29 = vpack.c.bf16 %v5332_v0, %v5332_v0  ;;  %9787 = vmatprep.subr.bf16.mxu0 %v11503_v1 }
0x3442   :  { %9772 = vmatmul.mubr.msk.bf16.vlgmr.msra.gmra.mxu1 %vm1112_vm6, %v5334_v29 }
0x3443   :  { %9782 = vmatpush3.bf16.xpose.msra.mxu1 %v5489_v30  ;;  %9783 = vmatprep.mubr.msk.bf16.mxu1 %vm11504_vm1, %v11503_v1 }
0x3444   :  { %9793 = vmatprep.subr.bf16.mxu1 %v11503_v1 }
0x3446   :  { %9778 = vmatmul.mubr.msk.bf16.vlgmr.msra.gmra.mxu0 %vm1112_vm6, %v5432_v31 }
0x3447   :  { %9789 = vmatprep.mubr.msk.bf16.mxu0 %vm11504_vm1, %v11503_v1 }
0x344a   :  { %9784 = vmatmul.mubr.msk.bf16.vlgmr.msra.gmra.mxu1 %vm1112_vm6, %v5482_v32 }
0x344b   :  { %9795 = vmatprep.mubr.msk.bf16.mxu1 %vm11504_vm1, %v11503_v1 }
0x34fe   :  { %v12856_v34 = vpop.f32.mrf.mxu0 }
0x3500   :  { %v9767_v4 = vpop.f32.mrf.mxu0 }
0x3502   :  { %v5380_v54 = vpop.f32.mrf.mxu0  ;;  %v12858_v58 = vpop.f32.mrf.mxu1 }
0x3503   :  { %v10280_v12 = vpack.i.bf16 %v12858_v58, %v12856_v34 }
0x3504   :  { %v9768_v43 = vpop.f32.mrf.mxu0  ;;  %v9773_v17 = vpop.f32.mrf.mxu1 }
0x3506   :  { %v5428_v16 = vpop.f32.mrf.mxu1  ;;  %v5475_v18 = vpop.f32.mrf.mxu0 }
0x3507   :  { %v5531_v50 = vmul.f32 0.35355338, %v5475_v18 }
0x3508   :  { %v9774_v37 = vpop.f32.mrf.mxu1  ;;  %v9779_v55 = vpop.f32.mrf.mxu0 }
0x3509   :  { %v5533_v53 = vadd.f32 %v5531_v50, %v12771_v45 }
0x350a   :  { %v5478_v61 = vpop.f32.mrf.mxu0  ;;  %v5525_v8 = vpop.f32.mrf.mxu1 }
0x350b   :  { %v5532_v11 = vmul.f32 0.35355338, %v5525_v8  ;;  %v5535_v35 = vsel %vm1112_vm6, %v5533_v53, -inf }
0x350c   :  { %5536 = vmax.xlane.f32.xlu0 %v5535_v35  ;;  %v9780_v19 = vpop.f32.mrf.mxu0  ;;  %v9785_v14 = vpop.f32.mrf.mxu1 }
0x350d   :  { %v5534_v22 = vadd.f32 %v5532_v11, %v12775_v21 }
0x350e   :  { %v5528_v23 = vpop.f32.mrf.mxu1 }
0x350f   :  { %v5538_v24 = vsel %vm1112_vm6, %v5534_v22, -inf }
0x3510   :  { %5539 = vmax.xlane.f32.xlu1 %v5538_v24  ;;  %v9786_v26 = vpop.f32.mrf.mxu1 }
0x3521   :  { %5559 = vrot.lane.b32.xlu1 %v12748_v5, %s11510_s15 }
0x3525   :  { %5657 = vrot.lane.b32.xlu1 %v12748_v5, %s11514_s8 }
0x3529   :  { %5707 = vrot.lane.b32.xlu1 %v12752_v56, %s11514_s8 }
0x352d   :  { %5705 = vrot.lane.b32.xlu1 %v12764_v52, %s11514_s8 }
0x3595   :  { %v5537_v25 = vpop.xlane.xlu0 %5536 }
0x3596   :  { %v5541_v27 = vsub.f32 %v5533_v53, %v5537_v25 }
0x3598   :  { %v5543_v28 = vmul.f32 1.442695, %v5541_v27 }
0x3599   :  { %v5540_v2 = vpop.xlane.xlu1 %5539 }
0x359a   :  { %10525 = vpow2.f32 %v5543_v28  ;;  %v5542_v10 = vsub.f32 %v5534_v22, %v5540_v2 }
0x359c   :  { %v5545_v36 = vmul.f32 1.442695, %v5542_v10 }
0x359d   :  { %v5560_v38 = vpop.permute.xlu1 %5559 }
0x359e   :  { %10527 = vpow2.f32 %v5545_v36  ;;  %v5565_v40 = vsel %vm1240_vm7, %v5560_v38, 0 }
0x359f   :  { %9788 = vmatpush3.bf16.msra.mxu0 %v5565_v40 }
0x35a0   :  { %9799 = vmatprep.subr.bf16.mxu0 %v11503_v1 }
0x35a1   :  { %v5658_v59 = vpop.permute.xlu1 %5657 }
0x35a2   :  { %v5663_v62 = vsel %vm1112_vm6, %v5658_v59, 0 }
0x35a7   :  { %v10526_v33 = vpop.eup %10525 }
0x35a8   :  { %v5547_v41 = vsel %vm1112_vm6, %v10526_v33, 0.0 }
0x35a9   :  { %5548 = vadd.xlane.f32.xlu0 %v5547_v41 }
0x35ab   :  { %v10528_v47 = vpop.eup %10527 }
0x35ac   :  { %v5550_v52 = vsel %vm1112_vm6, %v10528_v47, 0.0 }
0x35ad   :  { %5551 = vadd.xlane.f32.xlu0 %v5550_v52 }
0x35c3   :  { %5607 = vrot.lane.b32.xlu0 %v12752_v56, %s11510_s15 }
0x35c7   :  { %5655 = vrot.lane.b32.xlu0 %v12758_v20, %s11514_s8  ;;  %v5708_v20 = vpop.permute.xlu1 %5707 }
0x35c8   :  { %v5713_v0 = vsel %vm1112_vm6, %v5708_v20, 0 }
0x35cb   :  { %v5706_v29 = vpop.permute.xlu1 %5705 }
0x3632   :  { %v5549_v49 = vpop.xlane.xlu0 %5548 }
0x3633   :  { %10529 = vrcp.f32 %v5549_v49 }
0x3636   :  { %v5552_v48 = vpop.xlane.xlu0 %5551 }
0x3637   :  { %10531 = vrcp.f32 %v5552_v48 }
0x363a   :  { %v5608_v42 = vpop.permute.xlu0 %5607 }
0x363b   :  { %v5613_v3 = vsel %vm1240_vm7, %v5608_v42, 0 }
0x363c   :  { %9794 = vmatpush3.bf16.msra.mxu1 %v5613_v3  ;;  %v10361_v3 = vld [vmem:[%s13582_s23 + $0x8] sm:$0xff]  }
0x363d   :  { %9805 = vmatprep.subr.bf16.mxu1 %v11503_v1 }
0x363e   :  { %v5656_v39 = vpop.permute.xlu0 %5655 }
0x3640   :  { %v10530_v57 = vpop.eup %10529 }
0x3641   :  { %v5555_v51 = vmul.f32 %v10530_v57, %v10526_v33  ;;  %v10362_v57 = vld [vmem:[%s13582_s23] sm:$0xff]  }
0x3643   :  { %v5557_v7 = vpack.c.bf16 %v5555_v51, %v5555_v51 }
0x3644   :  { %v10532_v60 = vpop.eup %10531 }
0x3645   :  { %v5556_v6 = vmul.f32 %v10532_v60, %v10528_v47  ;;  %9790 = vmatmul.mubr.msk.bf16.vlgmr.msra.gmra.mxu0 %vm1112_vm6, %v5557_v7 }
0x3646   :  { %9800 = vmatpush3.bf16.xpose.msra.mxu0 %v5663_v62  ;;  %9801 = vmatprep.mubr.msk.bf16.mxu0 %vm11504_vm1, %v11503_v1 }
0x3647   :  { %v5558_v63 = vpack.c.bf16 %v5556_v6, %v5556_v6  ;;  %9811 = vmatprep.subr.bf16.mxu0 %v11503_v1 }
0x3649   :  { %9796 = vmatmul.mubr.msk.bf16.vlgmr.msra.gmra.mxu1 %vm1112_vm6, %v5558_v63 }
0x364a   :  { %9806 = vmatpush3.bf16.xpose.msra.mxu1 %v5713_v0  ;;  %9807 = vmatprep.mubr.msk.bf16.mxu1 %vm11504_vm1, %v11503_v1 }
0x364b   :  { %9817 = vmatprep.subr.bf16.mxu1 %v11503_v1 }
0x364d   :  { %9802 = vmatmul.mubr.msk.bf16.vlgmr.msra.gmra.mxu0 %vm1112_vm6, %v5656_v39 }
0x364e   :  { %9813 = vmatprep.mubr.msk.bf16.mxu0 %vm11504_vm1, %v11503_v1 }
0x3651   :  { %9808 = vmatmul.mubr.msk.bf16.vlgmr.msra.gmra.mxu1 %vm1112_vm6, %v5706_v29 }
0x3652   :  { %9819 = vmatprep.mubr.msk.bf16.mxu1 %vm11504_vm1, %v11503_v1 }
0x3705   :  { %v5601_v30 = vpop.f32.mrf.mxu0 }
0x3707   :  { %v9791_v31 = vpop.f32.mrf.mxu0 }
0x3709   :  { %v5604_v32 = vpop.f32.mrf.mxu0  ;;  %v5649_v4 = vpop.f32.mrf.mxu1 }
0x370b   :  { %v9792_v54 = vpop.f32.mrf.mxu0  ;;  %v9797_v43 = vpop.f32.mrf.mxu1 }
0x370d   :  { %v5652_v17 = vpop.f32.mrf.mxu1  ;;  %v5699_v16 = vpop.f32.mrf.mxu0 }
0x370e   :  { %v5755_v18 = vmul.f32 0.35355338, %v5699_v16 }
0x370f   :  { %v9798_v50 = vpop.f32.mrf.mxu1  ;;  %v9803_v37 = vpop.f32.mrf.mxu0 }
0x3710   :  { %v5757_v55 = vadd.f32 %v5755_v18, %v12771_v45  ;;  %v10285_v45 = vpack.i.bf16 %v5649_v4, %v5601_v30 }
0x3711   :  { %v5702_v53 = vpop.f32.mrf.mxu0  ;;  %v5749_v61 = vpop.f32.mrf.mxu1 }
0x3712   :  { %v5756_v8 = vmul.f32 0.35355338, %v5749_v61  ;;  %v5759_v11 = vsel %vm1112_vm6, %v5757_v55, -inf }
0x3713   :  { %5760 = vmax.xlane.f32.xlu0 %v5759_v11  ;;  %v9804_v35 = vpop.f32.mrf.mxu0  ;;  %v9809_v19 = vpop.f32.mrf.mxu1 }
0x3714   :  { %v5758_v14 = vadd.f32 %v5756_v8, %v12775_v21 }
0x3715   :  { %v5752_v22 = vpop.f32.mrf.mxu1 }
0x3716   :  { %v5762_v23 = vsel %vm1112_vm6, %v5758_v14, -inf }
0x3717   :  { %5763 = vmax.xlane.f32.xlu1 %v5762_v23  ;;  %v9810_v24 = vpop.f32.mrf.mxu1 }
0x3728   :  { %5783 = vrot.lane.b32.xlu1 %v12748_v5, %s11513_s18 }
0x372c   :  { %10281 = vrot.lane.b32.xlu1 %v10280_v12, %s11517_s17 }
0x3730   :  { %10286 = vrot.lane.b32.xlu1 %v10285_v45, %s11516_s19 }
0x379c   :  { %v5761_v26 = vpop.xlane.xlu0 %5760 }
0x379d   :  { %v5765_v25 = vsub.f32 %v5757_v55, %v5761_v26 }
0x379f   :  { %v5767_v27 = vmul.f32 1.442695, %v5765_v25 }
0x37a0   :  { %v5764_v21 = vpop.xlane.xlu1 %5763 }
0x37a1   :  { %10533 = vpow2.f32 %v5767_v27  ;;  %v5766_v28 = vsub.f32 %v5758_v14, %v5764_v21 }
0x37a3   :  { %v5769_v2 = vmul.f32 1.442695, %v5766_v28 }
0x37a4   :  { %v5784_v10 = vpop.permute.xlu1 %5783 }
0x37a5   :  { %10535 = vpow2.f32 %v5769_v2  ;;  %v5789_v36 = vsel %vm1240_vm7, %v5784_v10, 0 }
0x37a6   :  { %9812 = vmatpush3.bf16.msra.mxu0 %v5789_v36 }
0x37a7   :  { %9823 = vmatprep.subr.bf16.mxu0 %v11503_v1 }
0x37a8   :  { %v10282_v39 = vpop.permute.xlu1 %10281 }
0x37a9   :  { %v10284_v30 = vunpack.i.h.bf16 %v10282_v39  ;;  %v10283_v31 = vunpack.i.l.bf16 %v10282_v39 }
0x37ab   :  { %v5904_v43 = vsel %vm1112_vm6, %v12816_v13, %v10284_v30  ;;  %v5903_v17 = vsel %vm1112_vm6, %v12814_v9, %v10283_v31  ;;  %v8918_v13 = vld [vmem:[#allocation19] ss:$0 sm:$0xff] }
0x37ac   :  { %v10287_v29 = vpop.permute.xlu1 %10286 }
0x37ad   :  { %v10289_v32 = vunpack.i.h.bf16 %v10287_v29  ;;  %v10288_v4 = vunpack.i.l.bf16 %v10287_v29 }
0x37ae   :  { %v10534_v5 = vpop.eup %10533 }
0x37af   :  { %v5771_v34 = vsel %vm1112_vm6, %v10534_v5, 0.0  ;;  %v5905_v50 = vsel %vm2030_vm8, %v5903_v17, %v10288_v4  ;;  %v5906_v37 = vsel %vm2030_vm8, %v5904_v43, %v10289_v32  ;;  %v8929_v17 = vld [vmem:[#allocation4] ss:$0 sm:$0xff] }
0x37b0   :  { %5772 = vadd.xlane.f32.xlu0 %v5771_v34  ;;  %v10364_v34 = vld [vmem:[%s13583_s26] sm:$0xff]  }
0x37b2   :  { %v10536_v58 = vpop.eup %10535 }
0x37b3   :  { %v5774_v12 = vsel %vm1112_vm6, %v10536_v58, 0.0 }
0x37b4   :  { %5775 = vadd.xlane.f32.xlu0 %v5774_v12 }
0x37ca   :  { %5831 = vrot.lane.b32.xlu0 %v12752_v56, %s11513_s18 }
0x3839   :  { %v5773_v38 = vpop.xlane.xlu0 %5772 }
0x383a   :  { %10537 = vrcp.f32 %v5773_v38 }
0x383d   :  { %v5776_v40 = vpop.xlane.xlu0 %5775 }
0x383e   :  { %10539 = vrcp.f32 %v5776_v40 }
0x3841   :  { %v5832_v33 = vpop.permute.xlu0 %5831 }
0x3842   :  { %v5837_v41 = vsel %vm1240_vm7, %v5832_v33, 0 }
0x3843   :  { %9818 = vmatpush3.bf16.msra.mxu1 %v5837_v41 }
0x3844   :  { %9831 = vmatprep.subr.bf16.mxu1 %v11503_v1 }
0x3847   :  { %v10538_v47 = vpop.eup %10537 }
0x3848   :  { %v5779_v52 = vmul.f32 %v10538_v47, %v10534_v5  ;;  %v10363_v5 = vld [vmem:[%s13583_s26 + $0x8] sm:$0xff]  }
0x384a   :  { %v5781_v49 = vpack.c.bf16 %v5779_v52, %v5779_v52 }
0x384b   :  { %v10540_v48 = vpop.eup %10539 }
0x384c   :  { %v5780_v42 = vmul.f32 %v10540_v48, %v10536_v58  ;;  %9814 = vmatmul.mubr.msk.bf16.vlgmr.msra.gmra.mxu0 %vm1112_vm6, %v5781_v49  ;;  %v10365_v58 = vld [vmem:[%s13584_s28 + $0x18] sm:$0xff]   ;;  %v8923_v48 = vld [vmem:[#allocation13] ss:$0 sm:$0xff] }
0x384d   :  { %9827 = vmatprep.mubr.msk.bf16.mxu0 %vm11504_vm1, %v11503_v1  ;;  %9824 = vmatpush3.bf16.msra.mxu0 %v10361_v3 }
0x384e   :  { %v5782_v56 = vpack.c.bf16 %v5780_v42, %v5780_v42  ;;  %9825 = vmatprep.subr.bf16.mxu0 %v11503_v1 }
0x3850   :  { %9820 = vmatmul.mubr.msk.bf16.vlgmr.msra.gmra.mxu1 %vm1112_vm6, %v5782_v56 }
0x3851   :  { %9835 = vmatprep.mubr.msk.bf16.mxu1 %vm11504_vm1, %v11503_v1  ;;  %9826 = vmatpush3.bf16.msra.mxu0 %v10362_v57  ;;  %v8924_v57 = vld [vmem:[#allocation12] ss:$0 sm:$0xff] }
0x3852   :  { %9839 = vmatprep.subr.bf16.mxu0 %v11503_v1  ;;  %9832 = vmatpush3.bf16.msra.mxu1 %v10363_v5 }
0x3853   :  { %9833 = vmatprep.subr.bf16.mxu1 %v11503_v1 }
0x3856   :  { %9834 = vmatpush3.bf16.msra.mxu1 %v10364_v34 }
0x3857   :  { %9851 = vmatprep.subr.bf16.mxu1 %v11503_v1 }
0x390c   :  { %v5825_v59 = vpop.f32.mrf.mxu0 }
0x390e   :  { %v9815_v51 = vpop.f32.mrf.mxu0 }
0x3910   :  { %v5828_v7 = vpop.f32.mrf.mxu0  ;;  %v5873_v60 = vpop.f32.mrf.mxu1 }
0x3911   :  { %v10290_v62 = vpack.i.bf16 %v5873_v60, %v5825_v59 }
0x3912   :  { %v9816_v6 = vpop.f32.mrf.mxu0  ;;  %v9821_v20 = vpop.f32.mrf.mxu1 }
0x3913   :  { %10291 = vrot.lane.b32.xlu0 %v10290_v62, %s11518_s4  ;;  %v10366_v62 = vld [vmem:[%s13584_s28 + $0x10] sm:$0xff]   ;;  %v10367_v6 = vld [vmem:[%s13584_s28 + $0x8] sm:$0xff]   ;;  %v10368_v20 = vld [vmem:[%s13584_s28] sm:$0xff]  }
0x3914   :  { %v5876_v63 = vpop.f32.mrf.mxu1 }
0x3915   :  { %v8925_v63 = vld [vmem:[#allocation2] ss:$0 sm:$0xff] }
0x3916   :  { %v9822_v0 = vpop.f32.mrf.mxu1 }
0x3985   :  { %v10292_v54 = vpop.permute.xlu0 %10291 }
0x3986   :  { %v10294_v16 = vunpack.i.h.bf16 %v10292_v54  ;;  %v10293_v18 = vunpack.i.l.bf16 %v10292_v54 }
0x3988   :  { %v5908_v55 = vsel %vm2033_vm9, %v5906_v37, %v10294_v16  ;;  %v5907_v53 = vsel %vm2033_vm9, %v5905_v50, %v10293_v18 }
0x3989   :  { %v9026_v61 = vpack.c.bf16 %v5908_v55, %v5907_v53 }
0x398b   :  { %9828 = vmatmul.mubr.msk.bf16.vlgmr.msra.gmra.mxu0 %vm997_vm5, %v9026_v61 }
0x398c   :  { %9847 = vmatprep.mubr.msk.bf16.mxu0 %vm11504_vm1, %v11503_v1  ;;  %9840 = vmatpush3.bf16.msra.mxu0 %v10365_v58  ;;  %v8935_v58 = vld [vmem:[#allocation27] ss:$0 sm:$0xff] }
0x398d   :  { %9841 = vmatprep.subr.bf16.mxu0 %v11503_v1 }
0x3990   :  { %9842 = vmatpush3.bf16.msra.mxu0 %v10366_v62 }
0x3991   :  { %9843 = vmatprep.subr.bf16.mxu0 %v11503_v1 }
0x3994   :  { %9844 = vmatpush3.bf16.msra.mxu0 %v10367_v6 }
0x3995   :  { %9845 = vmatprep.subr.bf16.mxu0 %v11503_v1 }
0x3998   :  { %9846 = vmatpush3.bf16.msra.mxu0 %v10368_v20 }
0x3999   :  { %9865 = vmatprep.subr.bf16.mxu0 %v11503_v1 }
0x3a4b   :  { %v5971_v8 = vpop.f32.mrf.mxu0 }
0x3a4c   :  { %v5972_v11 = vadd.f32 %v8918_v13, %v5971_v8 }
0x3a4d   :  { %v9829_v9 = vpop.f32.mrf.mxu0 }
0x3a4e   :  { %v12942_v35 = vadd.f32 %v5972_v11, %v12716_v44 }
0x3a4f   :  { %v5974_v19 = vpop.f32.mrf.mxu0 }
0x3a50   :  { %v5975_v14 = vadd.f32 %v8918_v13, %v5974_v19  ;;  %v5980_v22 = vsel %vm997_vm5, %v12942_v35, 0.0 }
0x3a51   :  { %5981 = vadd.xlane.f32.xlu1 %v5980_v22  ;;  %v9830_v23 = vpop.f32.mrf.mxu0 }
0x3a52   :  { %v12947_v24 = vadd.f32 %v5975_v14, %v12721_v15 }
0x3a54   :  { %v5983_v45 = vsel %vm997_vm5, %v12947_v24, 0.0 }
0x3a55   :  { %5984 = vadd.xlane.f32.xlu0 %v5983_v45 }
0x3ada   :  { %v5982_v26 = vpop.xlane.xlu1 %5981 }
0x3adb   :  { %v5986_v25 = vmul.f32 0.03125, %v5982_v26 }
0x3add   :  { %v5988_v44 = vsub.f32 %v12942_v35, %v5986_v25 }
0x3ade   :  { %v5985_v27 = vpop.xlane.xlu0 %5984 }
0x3adf   :  { %v5987_v21 = vmul.f32 0.03125, %v5985_v27  ;;  %v5990_v28 = vmul.f32 %v5988_v44, %v5988_v44  ;;  %v10370_v27 = vld [vmem:[%s13585_s1] sm:$0xff]  }
0x3ae1   :  { %v5989_v2 = vsub.f32 %v12947_v24, %v5987_v21  ;;  %v5992_v10 = vsel %vm997_vm5, %v5990_v28, 0.0 }
0x3ae2   :  { %5993 = vadd.xlane.f32.xlu0 %v5992_v10 }
0x3ae3   :  { %v5991_v15 = vmul.f32 %v5989_v2, %v5989_v2 }
0x3ae5   :  { %v5995_v36 = vsel %vm997_vm5, %v5991_v15, 0.0 }
0x3ae6   :  { %5996 = vadd.xlane.f32.xlu1 %v5995_v36 }
0x3b6b   :  { %v5994_v12 = vpop.xlane.xlu0 %5993 }
0x3b6c   :  { %v5998_v38 = vmul.f32 0.03125, %v5994_v12 }
0x3b6e   :  { %v6000_v40 = vadd.f32 1e-05, %v5998_v38 }
0x3b6f   :  { %v5997_v33 = vpop.xlane.xlu1 %5996 }
0x3b70   :  { %10541 = vrsqrt.f32 %v6000_v40  ;;  %v5999_v41 = vmul.f32 0.03125, %v5997_v33  ;;  %v8936_v33 = vld [vmem:[#allocation25] ss:$0 sm:$0xff] }
0x3b72   :  { %v6001_v47 = vadd.f32 1e-05, %v5999_v41 }
0x3b74   :  { %10543 = vrsqrt.f32 %v6001_v47 }
0x3b7d   :  { %v10542_v52 = vpop.eup %10541 }
0x3b7e   :  { %v6004_v49 = vmul.f32 %v10542_v52, %v5988_v44  ;;  %v10369_v44 = vld [vmem:[%s13585_s1 + $0x8] sm:$0xff]  }
0x3b80   :  { %v6012_v56 = vmul.f32 %v8923_v48, %v6004_v49 }
0x3b81   :  { %v10544_v42 = vpop.eup %10543 }
0x3b82   :  { %v6005_v3 = vmul.f32 %v10544_v42, %v5989_v2  ;;  %v6020_v51 = vadd.f32 %v8924_v57, %v6012_v56 }
0x3b84   :  { %v6013_v59 = vmul.f32 %v8923_v48, %v6005_v3  ;;  %v8937_v48 = vld [vmem:[%s13586_s2] ss:$0 sm:$0xff] }
0x3b86   :  { %v6021_v7 = vadd.f32 %v8924_v57, %v6013_v59 }
0x3b88   :  { %v6022_v60 = vpack.c.bf16 %v6021_v7, %v6020_v51 }
0x3b8a   :  { %9836 = vmatmul.mubr.msk.bf16.vlgmr.msra.gmra.mxu1 %vm997_vm5, %v6022_v60 }
0x3b8b   :  { %9855 = vmatprep.mubr.msk.bf16.mxu1 %vm11504_vm1, %v11503_v1  ;;  %9852 = vmatpush3.bf16.msra.mxu1 %v10369_v44 }
0x3b8c   :  { %9853 = vmatprep.subr.bf16.mxu1 %v11503_v1 }
0x3b8f   :  { %9854 = vmatpush3.bf16.msra.mxu1 %v10370_v27 }
0x3b90   :  { %9859 = vmatprep.subr.bf16.mxu1 %v11503_v1 }
0x3c4a   :  { %v6078_v0 = vpop.f32.mrf.mxu1 }
0x3c4b   :  { %v6079_v29 = vadd.f32 %v8925_v63, %v6078_v0 }
0x3c4c   :  { %v9837_v39 = vpop.f32.mrf.mxu1 }
0x3c4d   :  { %v6085_v4 = vmax.f32 %v6079_v29, 0.0 }
0x3c4e   :  { %v6081_v30 = vpop.f32.mrf.mxu1 }
0x3c4f   :  { %v6082_v31 = vadd.f32 %v8925_v63, %v6081_v30  ;;  %v13016_v30 = vld [vmem:[%s13577_s27] sm:$0xff] }
0x3c50   :  { %v9838_v32 = vpop.f32.mrf.mxu1 }
0x3c51   :  { %v6086_v54 = vmax.f32 %v6082_v31, 0.0 }
0x3c53   :  { %v6087_v43 = vpack.c.bf16 %v6086_v54, %v6085_v4 }
0x3c55   :  { %9848 = vmatmul.mubr.msk.bf16.vlgmr.msra.gmra.mxu0 %vm2245_vm10, %v6087_v43 }
0x3c56   :  { %9867 = vmatprep.mubr.msk.bf16.mxu0 %vm11504_vm1, %v11503_v1 }
0x3d15   :  { %v6155_v16 = vpop.f32.mrf.mxu0 }
0x3d16   :  { %v6156_v18 = vadd.f32 %v8929_v17, %v6155_v16 }
0x3d17   :  { %v9849_v50 = vpop.f32.mrf.mxu0 }
0x3d18   :  { %v12974_v37 = vadd.f32 %v6156_v18, %v12942_v35  ;;  %v13021_v18 = vld [vmem:[%s13577_s27 + $0x8] sm:$0xff] }
0x3d19   :  { %v6158_v55 = vpop.f32.mrf.mxu0 }
0x3d1a   :  { %v6159_v53 = vadd.f32 %v8929_v17, %v6158_v55  ;;  %v6164_v61 = vsel %vm997_vm5, %v12974_v37, 0.0 }
0x3d1b   :  { %6165 = vadd.xlane.f32.xlu0 %v6164_v61  ;;  %v9850_v13 = vpop.f32.mrf.mxu0 }
0x3d1c   :  { %v12979_v8 = vadd.f32 %v6159_v53, %v12947_v24 }
0x3d1e   :  { %v6167_v11 = vsel %vm997_vm5, %v12979_v8, 0.0 }
0x3d1f   :  { %6168 = vadd.xlane.f32.xlu1 %v6167_v11 }
0x3da4   :  { %v6166_v9 = vpop.xlane.xlu0 %6165 }
0x3da5   :  { %v6170_v19 = vmul.f32 0.03125, %v6166_v9 }
0x3da7   :  { %v6172_v35 = vsub.f32 %v12974_v37, %v6170_v19 }
0x3da8   :  { %v6169_v14 = vpop.xlane.xlu1 %6168 }
0x3da9   :  { %v6171_v22 = vmul.f32 0.03125, %v6169_v14  ;;  %v6174_v23 = vmul.f32 %v6172_v35, %v6172_v35 }
0x3dab   :  { %v6173_v45 = vsub.f32 %v12979_v8, %v6171_v22  ;;  %v6176_v26 = vsel %vm997_vm5, %v6174_v23, 0.0 }
0x3dac   :  { %6177 = vadd.xlane.f32.xlu0 %v6176_v26 }
0x3dad   :  { %v6175_v25 = vmul.f32 %v6173_v45, %v6173_v45 }
0x3daf   :  { %v6179_v24 = vsel %vm997_vm5, %v6175_v25, 0.0 }
0x3db0   :  { %6180 = vadd.xlane.f32.xlu1 %v6179_v24 }
0x3e35   :  { %v6178_v21 = vpop.xlane.xlu0 %6177 }
0x3e36   :  { %v6182_v28 = vmul.f32 0.03125, %v6178_v21 }
0x3e38   :  { %v6184_v2 = vadd.f32 1e-05, %v6182_v28 }
0x3e39   :  { %v6181_v10 = vpop.xlane.xlu1 %6180 }
0x3e3a   :  { %10545 = vrsqrt.f32 %v6184_v2  ;;  %v6183_v15 = vmul.f32 0.03125, %v6181_v10 }
0x3e3c   :  { %v6185_v36 = vadd.f32 1e-05, %v6183_v15 }
0x3e3e   :  { %10547 = vrsqrt.f32 %v6185_v36 }
0x3e47   :  { %v10546_v5 = vpop.eup %10545 }
0x3e48   :  { %v6188_v34 = vmul.f32 %v10546_v5, %v6172_v35 }
0x3e4a   :  { %v6196_v38 = vmul.f32 %v8935_v58, %v6188_v34 }
0x3e4b   :  { %v10548_v12 = vpop.eup %10547 }
0x3e4c   :  { %v6189_v40 = vmul.f32 %v10548_v12, %v6173_v45  ;;  %v6204_v47 = vadd.f32 %v8936_v33, %v6196_v38 }
0x3e4e   :  { %v6197_v41 = vmul.f32 %v8935_v58, %v6189_v40 }
0x3e50   :  { %v6205_v52 = vadd.f32 %v8936_v33, %v6197_v41 }
0x3e52   :  { %v6206_v49 = vpack.c.bf16 %v6205_v52, %v6204_v47 }
0x3e54   :  { %9856 = vmatmul.mubr.msk.bf16.vlgmr.msra.gmra.mxu1 %vm997_vm5, %v6206_v49 }
0x3e55   :  { %9861 = vmatprep.mubr.msk.bf16.mxu1 %vm11504_vm1, %v11503_v1 }
0x3f14   :  { %v6262_v42 = vpop.f32.mrf.mxu1 }
0x3f15   :  { %v6263_v56 = vadd.f32 %v8937_v48, %v6262_v42 }
0x3f16   :  { %v9857_v3 = vpop.f32.mrf.mxu1 }
0x3f17   :  { %v12995_v57 = vpack.c.bf16 %v6263_v56, %v6263_v56 }
0x3f18   :  { %v6265_v59 = vpop.f32.mrf.mxu1 }
0x3f19   :  { %v6266_v51 = vadd.f32 %v8937_v48, %v6265_v59  ;;  %6275 = vrot.lane.b32.xlu0 %v12995_v57, %s11505_s29 }
0x3f1a   :  { %v9858_v7 = vpop.f32.mrf.mxu1 }
0x3f1b   :  { %v12999_v60 = vpack.c.bf16 %v6266_v51, %v6266_v51 }
0x3f1d   :  { %6323 = vrot.lane.b32.xlu1 %v12999_v60, %s11505_s29 }
0x3f8b   :  { %v6276_v62 = vpop.permute.xlu0 %6275 }
0x3f8c   :  { %v6281_v6 = vsel %vm1112_vm6, %v6276_v62, 0 }
0x3f8d   :  { %9860 = vmatpush3.bf16.xpose.msra.mxu1 %v6281_v6 }
0x3f8e   :  { %9871 = vmatprep.subr.bf16.mxu1 %v11503_v1 }
0x3f8f   :  { %v6324_v20 = vpop.permute.xlu1 %6323 }
0x3f90   :  { %v6329_v63 = vsel %vm1112_vm6, %v6324_v20, 0 }
0x3f91   :  { %9866 = vmatpush3.bf16.xpose.msra.mxu0 %v6329_v63 }
0x3f92   :  { %9877 = vmatprep.subr.bf16.mxu0 %v11503_v1 }
0x3f94   :  { %9862 = vmatmul.mubr.msk.bf16.vlgmr.msra.gmra.mxu1 %vm1112_vm6, %v12995_v57 }
0x3f95   :  { %9873 = vmatprep.mubr.msk.bf16.mxu1 %vm11504_vm1, %v11503_v1 }
0x3f98   :  { %9868 = vmatmul.mubr.msk.bf16.vlgmr.msra.gmra.mxu0 %vm1112_vm6, %v12999_v60 }
0x3f99   :  { %9879 = vmatprep.mubr.msk.bf16.mxu0 %vm11504_vm1, %v11503_v1 }
0x4054   :  { %v6317_v0 = vpop.f32.mrf.mxu1 }
0x4055   :  { %v6371_v39 = vmul.f32 0.35355338, %v6317_v0 }
0x4056   :  { %v9863_v29 = vpop.f32.mrf.mxu1 }
0x4057   :  { %v6373_v31 = vadd.f32 %v13016_v30, %v6371_v39 }
0x4058   :  { %v6320_v32 = vpop.f32.mrf.mxu1  ;;  %v6365_v4 = vpop.f32.mrf.mxu0 }
0x4059   :  { %v6372_v54 = vmul.f32 0.35355338, %v6365_v4  ;;  %v6375_v43 = vsel %vm1112_vm6, %v6373_v31, -inf }
0x405a   :  { %v9869_v17 = vpop.f32.mrf.mxu0  ;;  %6376 = vmax.xlane.f32.xlu1 %v6375_v43  ;;  %v9864_v16 = vpop.f32.mrf.mxu1 }
0x405b   :  { %v6374_v50 = vadd.f32 %v13021_v18, %v6372_v54 }
0x405c   :  { %v6368_v55 = vpop.f32.mrf.mxu0 }
0x405d   :  { %v6378_v53 = vsel %vm1112_vm6, %v6374_v50, -inf }
0x405e   :  { %6379 = vmax.xlane.f32.xlu0 %v6378_v53  ;;  %v9870_v61 = vpop.f32.mrf.mxu0 }
0x406b   :  { %6447 = vrot.lane.b32.xlu1 %v12999_v60, %s11506_s14 }
0x4074   :  { %6399 = vrot.lane.b32.xlu0 %v12995_v57, %s11506_s14  ;;  %s13587_s14 = sld [smem:[#allocation99_spill]] }
0x40e3   :  { %v6377_v13 = vpop.xlane.xlu1 %6376 }
0x40e4   :  { %v6381_v11 = vsub.f32 %v6373_v31, %v6377_v13 }
0x40e6   :  { %v6383_v9 = vmul.f32 1.442695, %v6381_v11 }
0x40e7   :  { %v6380_v19 = vpop.xlane.xlu0 %6379  ;;  %v6448_v35 = vpop.permute.xlu1 %6447 }
0x40e8   :  { %10549 = vpow2.f32 %v6383_v9  ;;  %v6382_v14 = vsub.f32 %v6374_v50, %v6380_v19  ;;  %v6453_v22 = vsel %vm1240_vm7, %v6448_v35, 0 }
0x40e9   :  { %9878 = vmatpush3.bf16.msra.mxu0 %v6453_v22 }
0x40ea   :  { %v6385_v23 = vmul.f32 1.442695, %v6382_v14  ;;  %9889 = vmatprep.subr.bf16.mxu0 %v11503_v1 }
0x40eb   :  { %v6400_v45 = vpop.permute.xlu0 %6399 }
0x40ec   :  { %10551 = vpow2.f32 %v6385_v23  ;;  %v6405_v26 = vsel %vm1240_vm7, %v6400_v45, 0 }
0x40ed   :  { %9872 = vmatpush3.bf16.msra.mxu1 %v6405_v26 }
0x40ee   :  { %9883 = vmatprep.subr.bf16.mxu1 %v11503_v1 }
0x40f5   :  { %v10550_v25 = vpop.eup %10549 }
0x40f6   :  { %v6387_v24 = vsel %vm1112_vm6, %v10550_v25, 0.0 }
0x40f7   :  { %6388 = vadd.xlane.f32.xlu0 %v6387_v24 }
0x40f9   :  { %v10552_v44 = vpop.eup %10551 }
0x40fa   :  { %v6390_v27 = vsel %vm1112_vm6, %v10552_v44, 0.0 }
0x40fb   :  { %6391 = vadd.xlane.f32.xlu1 %v6390_v27 }
0x410c   :  { %6497 = vrot.lane.b32.xlu1 %v12995_v57, %s11507_s11 }
0x410d   :  { %6547 = vrot.lane.b32.xlu0 %v12999_v60, %s11507_s11 }
0x4110   :  { %6495 = vrot.lane.b32.xlu1 %v12995_v57, %s11508_s6 }
0x4111   :  { %6545 = vrot.lane.b32.xlu0 %v12999_v60, %s11508_s6 }
0x4180   :  { %v6389_v21 = vpop.xlane.xlu0 %6388 }
0x4181   :  { %10553 = vrcp.f32 %v6389_v21 }
0x4184   :  { %v6392_v28 = vpop.xlane.xlu1 %6391  ;;  %v6548_v12 = vpop.permute.xlu0 %6547 }
0x4185   :  { %10555 = vrcp.f32 %v6392_v28  ;;  %v6553_v40 = vsel %vm1112_vm6, %v6548_v12, 0 }
0x4188   :  { %v6498_v15 = vpop.permute.xlu1 %6497  ;;  %v6546_v41 = vpop.permute.xlu0 %6545 }
0x4189   :  { %v6503_v58 = vsel %vm1112_vm6, %v6498_v15, 0 }
0x418c   :  { %v6496_v33 = vpop.permute.xlu1 %6495 }
0x418e   :  { %v10554_v2 = vpop.eup %10553 }
0x418f   :  { %v6395_v10 = vmul.f32 %v10554_v2, %v10550_v25 }
0x4191   :  { %v6397_v36 = vpack.c.bf16 %v6395_v10, %v6395_v10 }
0x4192   :  { %v10556_v5 = vpop.eup %10555 }
0x4193   :  { %v6396_v34 = vmul.f32 %v10556_v5, %v10552_v44  ;;  %9874 = vmatmul.mubr.msk.bf16.vlgmr.msra.gmra.mxu1 %vm1112_vm6, %v6397_v36 }
0x4194   :  { %9884 = vmatpush3.bf16.xpose.msra.mxu1 %v6503_v58  ;;  %9885 = vmatprep.mubr.msk.bf16.mxu1 %vm11504_vm1, %v11503_v1 }
0x4195   :  { %v6398_v38 = vpack.c.bf16 %v6396_v34, %v6396_v34  ;;  %9895 = vmatprep.subr.bf16.mxu1 %v11503_v1 }
0x4197   :  { %9880 = vmatmul.mubr.msk.bf16.vlgmr.msra.gmra.mxu0 %vm1112_vm6, %v6398_v38 }
0x4198   :  { %9890 = vmatpush3.bf16.xpose.msra.mxu0 %v6553_v40  ;;  %9891 = vmatprep.mubr.msk.bf16.mxu0 %vm11504_vm1, %v11503_v1 }
0x4199   :  { %9901 = vmatprep.subr.bf16.mxu0 %v11503_v1 }
0x419b   :  { %9886 = vmatmul.mubr.msk.bf16.vlgmr.msra.gmra.mxu1 %vm1112_vm6, %v6496_v33 }
0x419c   :  { %9897 = vmatprep.mubr.msk.bf16.mxu1 %vm11504_vm1, %v11503_v1 }
0x419f   :  { %9892 = vmatmul.mubr.msk.bf16.vlgmr.msra.gmra.mxu0 %vm1112_vm6, %v6546_v41 }
0x41a0   :  { %9903 = vmatprep.mubr.msk.bf16.mxu0 %vm11504_vm1, %v11503_v1 }
0x4253   :  { %v13059_v47 = vpop.f32.mrf.mxu1 }
0x4255   :  { %v9875_v52 = vpop.f32.mrf.mxu1 }
0x4257   :  { %v6444_v49 = vpop.f32.mrf.mxu1  ;;  %v13061_v48 = vpop.f32.mrf.mxu0 }
0x4259   :  { %v9876_v42 = vpop.f32.mrf.mxu1  ;;  %v9881_v56 = vpop.f32.mrf.mxu0 }
0x425b   :  { %v6492_v3 = vpop.f32.mrf.mxu0  ;;  %v6539_v59 = vpop.f32.mrf.mxu1 }
0x425c   :  { %v6595_v51 = vmul.f32 0.35355338, %v6539_v59 }
0x425d   :  { %v9882_v7 = vpop.f32.mrf.mxu0  ;;  %v9887_v62 = vpop.f32.mrf.mxu1 }
0x425e   :  { %v6597_v6 = vadd.f32 %v13016_v30, %v6595_v51 }
0x425f   :  { %v6542_v20 = vpop.f32.mrf.mxu1  ;;  %v6589_v63 = vpop.f32.mrf.mxu0 }
0x4260   :  { %v6596_v0 = vmul.f32 0.35355338, %v6589_v63  ;;  %v6599_v39 = vsel %vm1112_vm6, %v6597_v6, -inf }
0x4261   :  { %v9893_v29 = vpop.f32.mrf.mxu0  ;;  %6600 = vmax.xlane.f32.xlu1 %v6599_v39  ;;  %v9888_v31 = vpop.f32.mrf.mxu1 }
0x4262   :  { %v6598_v32 = vadd.f32 %v13021_v18, %v6596_v0 }
0x4263   :  { %v6592_v4 = vpop.f32.mrf.mxu0 }
0x4264   :  { %v6602_v54 = vsel %vm1112_vm6, %v6598_v32, -inf }
0x4265   :  { %6603 = vmax.xlane.f32.xlu0 %v6602_v54  ;;  %v9894_v43 = vpop.f32.mrf.mxu0 }
0x4272   :  { %6671 = vrot.lane.b32.xlu1 %v12999_v60, %s11509_s25 }
0x427b   :  { %6623 = vrot.lane.b32.xlu0 %v12995_v57, %s11509_s25  ;;  %s13588_s25 = sld [smem:[#allocation104_spill]] }
0x42ea   :  { %v6601_v17 = vpop.xlane.xlu1 %6600 }
0x42eb   :  { %v6605_v16 = vsub.f32 %v6597_v6, %v6601_v17 }
0x42ed   :  { %v6607_v50 = vmul.f32 1.442695, %v6605_v16 }
0x42ee   :  { %v6604_v55 = vpop.xlane.xlu0 %6603  ;;  %v6672_v53 = vpop.permute.xlu1 %6671 }
0x42ef   :  { %10557 = vpow2.f32 %v6607_v50  ;;  %v6606_v61 = vsub.f32 %v6598_v32, %v6604_v55  ;;  %v6677_v13 = vsel %vm1240_vm7, %v6672_v53, 0 }
0x42f0   :  { %9902 = vmatpush3.bf16.msra.mxu0 %v6677_v13 }
0x42f1   :  { %v6609_v11 = vmul.f32 1.442695, %v6606_v61  ;;  %9913 = vmatprep.subr.bf16.mxu0 %v11503_v1 }
0x42f2   :  { %v6624_v9 = vpop.permute.xlu0 %6623 }
0x42f3   :  { %10559 = vpow2.f32 %v6609_v11  ;;  %v6629_v19 = vsel %vm1240_vm7, %v6624_v9, 0 }
0x42f4   :  { %9896 = vmatpush3.bf16.msra.mxu1 %v6629_v19 }
0x42f5   :  { %9907 = vmatprep.subr.bf16.mxu1 %v11503_v1 }
0x42fc   :  { %v10558_v35 = vpop.eup %10557 }
0x42fd   :  { %v6611_v14 = vsel %vm1112_vm6, %v10558_v35, 0.0 }
0x42fe   :  { %6612 = vadd.xlane.f32.xlu0 %v6611_v14 }
0x4300   :  { %v10560_v22 = vpop.eup %10559 }
0x4301   :  { %v6614_v23 = vsel %vm1112_vm6, %v10560_v22, 0.0 }
0x4302   :  { %6615 = vadd.xlane.f32.xlu1 %v6614_v23 }
0x4313   :  { %6721 = vrot.lane.b32.xlu1 %v12995_v57, %s11510_s15 }
0x4314   :  { %6771 = vrot.lane.b32.xlu0 %v12999_v60, %s11510_s15 }
0x4317   :  { %6719 = vrot.lane.b32.xlu1 %v12995_v57, %s11511_s12 }
0x4318   :  { %6769 = vrot.lane.b32.xlu0 %v12999_v60, %s11511_s12 }
0x4387   :  { %v6613_v45 = vpop.xlane.xlu0 %6612 }
0x4388   :  { %10561 = vrcp.f32 %v6613_v45 }
0x438b   :  { %v6616_v26 = vpop.xlane.xlu1 %6615  ;;  %v6772_v10 = vpop.permute.xlu0 %6771 }
0x438c   :  { %10563 = vrcp.f32 %v6616_v26  ;;  %v6777_v36 = vsel %vm1112_vm6, %v6772_v10, 0 }
0x438f   :  { %v6722_v44 = vpop.permute.xlu1 %6721  ;;  %v6770_v34 = vpop.permute.xlu0 %6769 }
0x4390   :  { %v6727_v2 = vsel %vm1112_vm6, %v6722_v44, 0 }
0x4393   :  { %v6720_v5 = vpop.permute.xlu1 %6719 }
0x4395   :  { %v10562_v25 = vpop.eup %10561 }
0x4396   :  { %v6619_v24 = vmul.f32 %v10562_v25, %v10558_v35 }
0x4398   :  { %v6621_v27 = vpack.c.bf16 %v6619_v24, %v6619_v24 }
0x4399   :  { %v10564_v21 = vpop.eup %10563 }
0x439a   :  { %v6620_v28 = vmul.f32 %v10564_v21, %v10560_v22  ;;  %9898 = vmatmul.mubr.msk.bf16.vlgmr.msra.gmra.mxu1 %vm1112_vm6, %v6621_v27 }
0x439b   :  { %9908 = vmatpush3.bf16.xpose.msra.mxu1 %v6727_v2  ;;  %9909 = vmatprep.mubr.msk.bf16.mxu1 %vm11504_vm1, %v11503_v1 }
0x439c   :  { %v6622_v15 = vpack.c.bf16 %v6620_v28, %v6620_v28  ;;  %9919 = vmatprep.subr.bf16.mxu1 %v11503_v1 }
0x439e   :  { %9904 = vmatmul.mubr.msk.bf16.vlgmr.msra.gmra.mxu0 %vm1112_vm6, %v6622_v15 }
0x439f   :  { %9914 = vmatpush3.bf16.xpose.msra.mxu0 %v6777_v36  ;;  %9915 = vmatprep.mubr.msk.bf16.mxu0 %vm11504_vm1, %v11503_v1 }
0x43a0   :  { %9925 = vmatprep.subr.bf16.mxu0 %v11503_v1 }
0x43a2   :  { %9910 = vmatmul.mubr.msk.bf16.vlgmr.msra.gmra.mxu1 %vm1112_vm6, %v6720_v5 }
0x43a3   :  { %9921 = vmatprep.mubr.msk.bf16.mxu1 %vm11504_vm1, %v11503_v1 }
0x43a6   :  { %9916 = vmatmul.mubr.msk.bf16.vlgmr.msra.gmra.mxu0 %vm1112_vm6, %v6770_v34 }
0x43a7   :  { %9927 = vmatprep.mubr.msk.bf16.mxu0 %vm11504_vm1, %v11503_v1 }
0x445a   :  { %v13101_v58 = vpop.f32.mrf.mxu1 }
0x445c   :  { %v9899_v12 = vpop.f32.mrf.mxu1 }
0x445e   :  { %v6668_v38 = vpop.f32.mrf.mxu1  ;;  %v13103_v40 = vpop.f32.mrf.mxu0 }
0x445f   :  { %v10295_v33 = vpack.i.bf16 %v13103_v40, %v13101_v58 }
0x4460   :  { %v9900_v41 = vpop.f32.mrf.mxu1  ;;  %v9905_v52 = vpop.f32.mrf.mxu0 }
0x4462   :  { %v6716_v49 = vpop.f32.mrf.mxu0  ;;  %v6763_v42 = vpop.f32.mrf.mxu1 }
0x4463   :  { %v6819_v56 = vmul.f32 0.35355338, %v6763_v42 }
0x4464   :  { %v9906_v3 = vpop.f32.mrf.mxu0  ;;  %v9911_v59 = vpop.f32.mrf.mxu1 }
0x4465   :  { %v6821_v51 = vadd.f32 %v13016_v30, %v6819_v56 }
0x4466   :  { %v6766_v7 = vpop.f32.mrf.mxu1  ;;  %v6813_v62 = vpop.f32.mrf.mxu0 }
0x4467   :  { %v6820_v6 = vmul.f32 0.35355338, %v6813_v62  ;;  %v6823_v20 = vsel %vm1112_vm6, %v6821_v51, -inf }
0x4468   :  { %v9917_v63 = vpop.f32.mrf.mxu0  ;;  %6824 = vmax.xlane.f32.xlu1 %v6823_v20  ;;  %v9912_v0 = vpop.f32.mrf.mxu1 }
0x4469   :  { %v6822_v39 = vadd.f32 %v13021_v18, %v6820_v6 }
0x446a   :  { %v6816_v29 = vpop.f32.mrf.mxu0 }
0x446b   :  { %v6826_v31 = vsel %vm1112_vm6, %v6822_v39, -inf }
0x446c   :  { %6827 = vmax.xlane.f32.xlu0 %v6826_v31  ;;  %v9918_v32 = vpop.f32.mrf.mxu0 }
0x4479   :  { %6895 = vrot.lane.b32.xlu1 %v12999_v60, %s11512_s16 }
0x4482   :  { %6847 = vrot.lane.b32.xlu0 %v12995_v57, %s11512_s16  ;;  %s13589_s16 = sld [smem:[#allocation97_spill]] }
0x44f1   :  { %v6825_v4 = vpop.xlane.xlu1 %6824 }
0x44f2   :  { %v6829_v54 = vsub.f32 %v6821_v51, %v6825_v4 }
0x44f4   :  { %v6831_v43 = vmul.f32 1.442695, %v6829_v54 }
0x44f5   :  { %v6828_v17 = vpop.xlane.xlu0 %6827  ;;  %v6896_v16 = vpop.permute.xlu1 %6895 }
0x44f6   :  { %10565 = vpow2.f32 %v6831_v43  ;;  %v6830_v50 = vsub.f32 %v6822_v39, %v6828_v17  ;;  %v6901_v55 = vsel %vm1240_vm7, %v6896_v16, 0 }
0x44f7   :  { %9926 = vmatpush3.bf16.msra.mxu0 %v6901_v55 }
0x44f8   :  { %v6833_v53 = vmul.f32 1.442695, %v6830_v50  ;;  %9937 = vmatprep.subr.bf16.mxu0 %v11503_v1 }
0x44f9   :  { %v6848_v61 = vpop.permute.xlu0 %6847 }
0x44fa   :  { %10567 = vpow2.f32 %v6833_v53  ;;  %v6853_v13 = vsel %vm1240_vm7, %v6848_v61, 0 }
0x44fb   :  { %9920 = vmatpush3.bf16.msra.mxu1 %v6853_v13 }
0x44fc   :  { %9931 = vmatprep.subr.bf16.mxu1 %v11503_v1 }
0x4503   :  { %v10566_v11 = vpop.eup %10565 }
0x4504   :  { %v6835_v9 = vsel %vm1112_vm6, %v10566_v11, 0.0 }
0x4505   :  { %6836 = vadd.xlane.f32.xlu0 %v6835_v9 }
0x4507   :  { %v10568_v19 = vpop.eup %10567 }
0x4508   :  { %v6838_v35 = vsel %vm1112_vm6, %v10568_v19, 0.0 }
0x4509   :  { %6839 = vadd.xlane.f32.xlu1 %v6838_v35 }
0x451a   :  { %6945 = vrot.lane.b32.xlu1 %v12995_v57, %s11513_s18 }
0x451b   :  { %6995 = vrot.lane.b32.xlu0 %v12999_v60, %s11513_s18 }
0x451e   :  { %6943 = vrot.lane.b32.xlu1 %v12995_v57, %s11514_s8 }
0x451f   :  { %6993 = vrot.lane.b32.xlu0 %v12999_v60, %s11514_s8 }
0x458e   :  { %v6837_v14 = vpop.xlane.xlu0 %6836 }
0x458f   :  { %10569 = vrcp.f32 %v6837_v14 }
0x4592   :  { %v6840_v22 = vpop.xlane.xlu1 %6839  ;;  %v6996_v21 = vpop.permute.xlu0 %6995 }
0x4593   :  { %10571 = vrcp.f32 %v6840_v22  ;;  %v7001_v2 = vsel %vm1112_vm6, %v6996_v21, 0  ;;  %v10371_v22 = vld [vmem:[%s13587_s14 + $0x8] sm:$0xff]  }
0x4596   :  { %v6946_v26 = vpop.permute.xlu1 %6945  ;;  %v6994_v15 = vpop.permute.xlu0 %6993 }
0x4597   :  { %v6951_v27 = vsel %vm1112_vm6, %v6946_v26, 0 }
0x459a   :  { %v6944_v10 = vpop.permute.xlu1 %6943 }
0x459c   :  { %v10570_v23 = vpop.eup %10569 }
0x459d   :  { %v6843_v45 = vmul.f32 %v10570_v23, %v10566_v11  ;;  %v10372_v23 = vld [vmem:[%s13587_s14] sm:$0xff]  }
0x459f   :  { %v6845_v25 = vpack.c.bf16 %v6843_v45, %v6843_v45 }
0x45a0   :  { %v10572_v24 = vpop.eup %10571 }
0x45a1   :  { %v6844_v44 = vmul.f32 %v10572_v24, %v10568_v19  ;;  %9922 = vmatmul.mubr.msk.bf16.vlgmr.msra.gmra.mxu1 %vm1112_vm6, %v6845_v25 }
0x45a2   :  { %9932 = vmatpush3.bf16.xpose.msra.mxu1 %v6951_v27  ;;  %9933 = vmatprep.mubr.msk.bf16.mxu1 %vm11504_vm1, %v11503_v1 }
0x45a3   :  { %v6846_v28 = vpack.c.bf16 %v6844_v44, %v6844_v44  ;;  %9943 = vmatprep.subr.bf16.mxu1 %v11503_v1 }
0x45a5   :  { %9928 = vmatmul.mubr.msk.bf16.vlgmr.msra.gmra.mxu0 %vm1112_vm6, %v6846_v28 }
0x45a6   :  { %9938 = vmatpush3.bf16.xpose.msra.mxu0 %v7001_v2  ;;  %9939 = vmatprep.mubr.msk.bf16.mxu0 %vm11504_vm1, %v11503_v1 }
0x45a7   :  { %9949 = vmatprep.subr.bf16.mxu0 %v11503_v1 }
0x45a9   :  { %9934 = vmatmul.mubr.msk.bf16.vlgmr.msra.gmra.mxu1 %vm1112_vm6, %v6944_v10 }
0x45aa   :  { %9945 = vmatprep.mubr.msk.bf16.mxu1 %vm11504_vm1, %v11503_v1 }
0x45ad   :  { %9940 = vmatmul.mubr.msk.bf16.vlgmr.msra.gmra.mxu0 %vm1112_vm6, %v6994_v15 }
0x45ae   :  { %9951 = vmatprep.mubr.msk.bf16.mxu0 %vm11504_vm1, %v11503_v1 }
0x4661   :  { %v6889_v36 = vpop.f32.mrf.mxu1 }
0x4663   :  { %v9923_v5 = vpop.f32.mrf.mxu1 }
0x4665   :  { %v6892_v34 = vpop.f32.mrf.mxu1  ;;  %v6937_v12 = vpop.f32.mrf.mxu0 }
0x4666   :  { %v10300_v38 = vpack.i.bf16 %v6937_v12, %v6889_v36 }
0x4667   :  { %v9924_v41 = vpop.f32.mrf.mxu1  ;;  %v9929_v52 = vpop.f32.mrf.mxu0 }
0x4669   :  { %v6940_v49 = vpop.f32.mrf.mxu0  ;;  %v6987_v42 = vpop.f32.mrf.mxu1 }
0x466a   :  { %v7043_v56 = vmul.f32 0.35355338, %v6987_v42 }
0x466b   :  { %v9930_v3 = vpop.f32.mrf.mxu0  ;;  %v9935_v59 = vpop.f32.mrf.mxu1 }
0x466c   :  { %v7045_v51 = vadd.f32 %v13016_v30, %v7043_v56 }
0x466d   :  { %v6990_v7 = vpop.f32.mrf.mxu1  ;;  %v7037_v62 = vpop.f32.mrf.mxu0 }
0x466e   :  { %v7044_v6 = vmul.f32 0.35355338, %v7037_v62  ;;  %v7047_v20 = vsel %vm1112_vm6, %v7045_v51, -inf  ;;  %v10373_v7 = vld [vmem:[%s13588_s25 + $0x8] sm:$0xff]  }
0x466f   :  { %v9941_v63 = vpop.f32.mrf.mxu0  ;;  %7048 = vmax.xlane.f32.xlu1 %v7047_v20  ;;  %v9936_v0 = vpop.f32.mrf.mxu1 }
0x4670   :  { %v7046_v39 = vadd.f32 %v13021_v18, %v7044_v6 }
0x4671   :  { %v7040_v29 = vpop.f32.mrf.mxu0 }
0x4672   :  { %v7050_v31 = vsel %vm1112_vm6, %v7046_v39, -inf }
0x4673   :  { %7051 = vmax.xlane.f32.xlu0 %v7050_v31  ;;  %v9942_v32 = vpop.f32.mrf.mxu0 }
0x46f8   :  { %v7049_v4 = vpop.xlane.xlu1 %7048 }
0x46f9   :  { %v7053_v54 = vsub.f32 %v7045_v51, %v7049_v4 }
0x46fb   :  { %v7055_v43 = vmul.f32 1.442695, %v7053_v54 }
0x46fc   :  { %v7052_v17 = vpop.xlane.xlu0 %7051 }
0x46fd   :  { %10573 = vpow2.f32 %v7055_v43  ;;  %v7054_v30 = vsub.f32 %v7046_v39, %v7052_v17 }
0x46ff   :  { %v7057_v16 = vmul.f32 1.442695, %v7054_v30 }
0x4701   :  { %10575 = vpow2.f32 %v7057_v16 }
0x470a   :  { %v10574_v50 = vpop.eup %10573 }
0x470b   :  { %v7059_v55 = vsel %vm1112_vm6, %v10574_v50, 0.0 }
0x470c   :  { %7060 = vadd.xlane.f32.xlu0 %v7059_v55 }
0x470e   :  { %v10576_v53 = vpop.eup %10575 }
0x470f   :  { %v7062_v18 = vsel %vm1112_vm6, %v10576_v53, 0.0 }
0x4710   :  { %7063 = vadd.xlane.f32.xlu1 %v7062_v18 }
0x4721   :  { %7119 = vrot.lane.b32.xlu1 %v12999_v60, %s11515_s22 }
0x4722   :  { %7071 = vrot.lane.b32.xlu0 %v12995_v57, %s11515_s22  ;;  %s13590_s22 = sld [smem:[#allocation101_spill]] }
0x4725   :  { %10296 = vrot.lane.b32.xlu1 %v10295_v33, %s11517_s17 }
0x4726   :  { %10301 = vrot.lane.b32.xlu0 %v10300_v38, %s11516_s19 }
0x4728   :  { %v8972_v4 = vld [vmem:[%s13590_s22] ss:$0 sm:$0xff] }
0x4795   :  { %v7061_v61 = vpop.xlane.xlu0 %7060 }
0x4796   :  { %10577 = vrcp.f32 %v7061_v61 }
0x4799   :  { %v7072_v13 = vpop.permute.xlu0 %7071  ;;  %v7064_v11 = vpop.xlane.xlu1 %7063 }
0x479a   :  { %v7077_v9 = vsel %vm1240_vm7, %v7072_v13, 0  ;;  %10579 = vrcp.f32 %v7064_v11 }
0x479b   :  { %9944 = vmatpush3.bf16.msra.mxu1 %v7077_v9 }
0x479c   :  { %9955 = vmatprep.subr.bf16.mxu1 %v11503_v1 }
0x479d   :  { %v7120_v60 = vpop.permute.xlu1 %7119  ;;  %v10302_v5 = vpop.permute.xlu0 %10301 }
0x479e   :  { %v7125_v57 = vsel %vm1240_vm7, %v7120_v60, 0  ;;  %v10304_v38 = vunpack.i.h.bf16 %v10302_v5  ;;  %v10303_v41 = vunpack.i.l.bf16 %v10302_v5 }
0x479f   :  { %9950 = vmatpush3.bf16.msra.mxu0 %v7125_v57 }
0x47a0   :  { %9963 = vmatprep.subr.bf16.mxu0 %v11503_v1 }
0x47a1   :  { %v10297_v10 = vpop.permute.xlu1 %10296 }
0x47a2   :  { %v10299_v15 = vunpack.i.h.bf16 %v10297_v10  ;;  %v10298_v36 = vunpack.i.l.bf16 %v10297_v10 }
0x47a3   :  { %v10578_v58 = vpop.eup %10577 }
0x47a4   :  { %v7067_v40 = vmul.f32 %v10578_v58, %v10574_v50  ;;  %v7192_v34 = vsel %vm1112_vm6, %v13061_v48, %v10299_v15  ;;  %v7191_v12 = vsel %vm1112_vm6, %v13059_v47, %v10298_v36  ;;  %v10374_v47 = vld [vmem:[%s13588_s25] sm:$0xff]  }
0x47a5   :  { %v7193_v56 = vsel %vm2030_vm8, %v7191_v12, %v10303_v41  ;;  %v7194_v3 = vsel %vm2030_vm8, %v7192_v34, %v10304_v38  ;;  %v8959_v48 = vld [vmem:[%s13589_s16] ss:$0 sm:$0xff] }
0x47a6   :  { %v7069_v33 = vpack.c.bf16 %v7067_v40, %v7067_v40  ;;  %v8966_v38 = vld [vmem:[%s13592_s21] ss:$0 sm:$0xff] }
0x47a7   :  { %v10580_v19 = vpop.eup %10579 }
0x47a8   :  { %v7068_v35 = vmul.f32 %v10580_v19, %v10576_v53  ;;  %9946 = vmatmul.mubr.msk.bf16.vlgmr.msra.gmra.mxu1 %vm1112_vm6, %v7069_v33  ;;  %v10375_v33 = vld [vmem:[%s13591_s30 + $0x8] sm:$0xff]   ;;  %v10376_v19 = vld [vmem:[%s13591_s30] sm:$0xff]  }
0x47a9   :  { %9959 = vmatprep.mubr.msk.bf16.mxu1 %vm11504_vm1, %v11503_v1  ;;  %9956 = vmatpush3.bf16.msra.mxu1 %v10371_v22 }
0x47aa   :  { %v7070_v14 = vpack.c.bf16 %v7068_v35, %v7068_v35  ;;  %9957 = vmatprep.subr.bf16.mxu1 %v11503_v1 }
0x47ac   :  { %9952 = vmatmul.mubr.msk.bf16.vlgmr.msra.gmra.mxu0 %vm1112_vm6, %v7070_v14 }
0x47ad   :  { %9967 = vmatprep.mubr.msk.bf16.mxu0 %vm11504_vm1, %v11503_v1  ;;  %9958 = vmatpush3.bf16.msra.mxu1 %v10372_v23 }
0x47ae   :  { %9971 = vmatprep.subr.bf16.mxu1 %v11503_v1  ;;  %9964 = vmatpush3.bf16.msra.mxu0 %v10375_v33 }
0x47af   :  { %9965 = vmatprep.subr.bf16.mxu0 %v11503_v1 }
0x47b2   :  { %9966 = vmatpush3.bf16.msra.mxu0 %v10376_v19 }
0x47b3   :  { %9979 = vmatprep.subr.bf16.mxu0 %v11503_v1 }
0x4868   :  { %v7113_v45 = vpop.f32.mrf.mxu1 }
0x486a   :  { %v9947_v26 = vpop.f32.mrf.mxu1 }
0x486c   :  { %v7116_v25 = vpop.f32.mrf.mxu1  ;;  %v7161_v24 = vpop.f32.mrf.mxu0 }
0x486d   :  { %v10305_v44 = vpack.i.bf16 %v7161_v24, %v7113_v45 }
0x486e   :  { %v9948_v27 = vpop.f32.mrf.mxu1  ;;  %v9953_v21 = vpop.f32.mrf.mxu0 }
0x486f   :  { %10306 = vrot.lane.b32.xlu1 %v10305_v44, %s11518_s4  ;;  %v8964_v44 = vld [vmem:[#allocation30] ss:$0 sm:$0xff] }
0x4870   :  { %v7164_v28 = vpop.f32.mrf.mxu0 }
0x4872   :  { %v9954_v2 = vpop.f32.mrf.mxu0 }
0x4873   :  { %v8965_v2 = vld [vmem:[#allocation28] ss:$0 sm:$0xff] }
0x48e1   :  { %v10307_v52 = vpop.permute.xlu1 %10306 }
0x48e2   :  { %v10309_v49 = vunpack.i.h.bf16 %v10307_v52  ;;  %v10308_v42 = vunpack.i.l.bf16 %v10307_v52 }
0x48e4   :  { %v7196_v59 = vsel %vm2033_vm9, %v7194_v3, %v10309_v49  ;;  %v7195_v51 = vsel %vm2033_vm9, %v7193_v56, %v10308_v42 }
0x48e5   :  { %v9029_v62 = vpack.c.bf16 %v7196_v59, %v7195_v51 }
0x48e7   :  { %9960 = vmatmul.mubr.msk.bf16.vlgmr.msra.gmra.mxu1 %vm997_vm5, %v9029_v62 }
0x48e8   :  { %9972 = vmatpush3.bf16.msra.mxu1 %v10373_v7  ;;  %9975 = vmatprep.mubr.msk.bf16.mxu1 %vm11504_vm1, %v11503_v1 }
0x48e9   :  { %9973 = vmatprep.subr.bf16.mxu1 %v11503_v1 }
0x48ec   :  { %9974 = vmatpush3.bf16.msra.mxu1 %v10374_v47 }
0x48ed   :  { %9985 = vmatprep.subr.bf16.mxu1 %v11503_v1 }
0x48ef   :  { %9976 = vmatmul.mubr.msk.bf16.vlgmr.msra.gmra.mxu1 %vm997_vm5, %v12735_v46 }
0x48f0   :  { %9987 = vmatprep.mubr.msk.bf16.mxu1 %vm11504_vm1, %v11503_v1 }
0x49a7   :  { %v7259_v6 = vpop.f32.mrf.mxu1 }
0x49a8   :  { %v7260_v20 = vadd.f32 %v8959_v48, %v7259_v6 }
0x49a9   :  { %v9961_v63 = vpop.f32.mrf.mxu1 }
0x49aa   :  { %v13196_v0 = vadd.f32 %v7260_v20, %v12974_v37 }
0x49ab   :  { %v7262_v39 = vpop.f32.mrf.mxu1 }
0x49ac   :  { %v7263_v29 = vadd.f32 %v8959_v48, %v7262_v39  ;;  %v7268_v31 = vsel %vm997_vm5, %v13196_v0, 0.0  ;;  %v13241_v48 = vld [vmem:[%s13581_s10] sm:$0xff] }
0x49ad   :  { %7269 = vadd.xlane.f32.xlu0 %v7268_v31  ;;  %v9962_v32 = vpop.f32.mrf.mxu1 }
0x49ae   :  { %v13202_v46 = vadd.f32 %v7263_v29, %v12979_v8 }
0x49af   :  { %v7431_v54 = vpop.f32.mrf.mxu1 }
0x49b0   :  { %v7432_v43 = vadd.f32 %v8972_v4, %v7431_v54  ;;  %v7271_v17 = vsel %vm997_vm5, %v13202_v46, 0.0 }
0x49b1   :  { %7272 = vadd.xlane.f32.xlu1 %v7271_v17  ;;  %v9977_v30 = vpop.f32.mrf.mxu1 }
0x49b2   :  { %v13219_v15 = vpack.c.bf16 %v7432_v43, %v7432_v43 }
0x49b3   :  { %v7434_v37 = vpop.f32.mrf.mxu1 }
0x49b4   :  { %v7435_v16 = vadd.f32 %v8972_v4, %v7434_v37  ;;  %v7448_v12 = vsel %vm1112_vm6, %v13219_v15, 0  ;;  %v13246_v4 = vld [vmem:[%s13581_s10 + $0x8] sm:$0xff] }
0x49b5   :  { %v9978_v50 = vpop.f32.mrf.mxu1 }
0x49b6   :  { %v13206_v55 = vpack.c.bf16 %v7435_v16, %v7435_v16 }
0x49b8   :  { %v7494_v53 = vsel %vm1112_vm6, %v13206_v55, 0 }
0x49b9   :  { %9986 = vmatpush3.bf16.xpose.msra.mxu1 %v7494_v53 }
0x49ba   :  { %9997 = vmatprep.subr.bf16.mxu1 %v11503_v1 }
0x4a36   :  { %v7270_v8 = vpop.xlane.xlu0 %7269 }
0x4a37   :  { %v7274_v18 = vmul.f32 0.03125, %v7270_v8 }
0x4a39   :  { %v7276_v61 = vsub.f32 %v13196_v0, %v7274_v18 }
0x4a3a   :  { %v7273_v13 = vpop.xlane.xlu1 %7272 }
0x4a3b   :  { %v7275_v11 = vmul.f32 0.03125, %v7273_v13  ;;  %v7278_v9 = vmul.f32 %v7276_v61, %v7276_v61 }
0x4a3d   :  { %v7277_v60 = vsub.f32 %v13202_v46, %v7275_v11  ;;  %v7280_v57 = vsel %vm997_vm5, %v7278_v9, 0.0 }
0x4a3e   :  { %7281 = vadd.xlane.f32.xlu0 %v7280_v57 }
0x4a3f   :  { %v7279_v58 = vmul.f32 %v7277_v60, %v7277_v60 }
0x4a41   :  { %v7283_v40 = vsel %vm997_vm5, %v7279_v58, 0.0 }
0x4a42   :  { %7284 = vadd.xlane.f32.xlu0 %v7283_v40 }
0x4ac7   :  { %v7282_v35 = vpop.xlane.xlu0 %7281 }
0x4ac8   :  { %v7286_v14 = vmul.f32 0.03125, %v7282_v35 }
0x4aca   :  { %v7288_v22 = vadd.f32 1e-05, %v7286_v14 }
0x4acb   :  { %v7285_v23 = vpop.xlane.xlu0 %7284 }
0x4acc   :  { %10581 = vrsqrt.f32 %v7288_v22  ;;  %v7287_v45 = vmul.f32 0.03125, %v7285_v23 }
0x4ace   :  { %v7289_v26 = vadd.f32 1e-05, %v7287_v45 }
0x4ad0   :  { %10583 = vrsqrt.f32 %v7289_v26 }
0x4ad9   :  { %v10582_v25 = vpop.eup %10581 }
0x4ada   :  { %v7292_v24 = vmul.f32 %v10582_v25, %v7276_v61 }
0x4adc   :  { %v7300_v21 = vmul.f32 %v8964_v44, %v7292_v24 }
0x4add   :  { %v10584_v27 = vpop.eup %10583 }
0x4ade   :  { %v7293_v28 = vmul.f32 %v10584_v27, %v7277_v60  ;;  %v7308_v36 = vadd.f32 %v8965_v2, %v7300_v21 }
0x4ae0   :  { %v7301_v10 = vmul.f32 %v8964_v44, %v7293_v28 }
0x4ae2   :  { %v7309_v5 = vadd.f32 %v8965_v2, %v7301_v10 }
0x4ae4   :  { %v7310_v34 = vpack.c.bf16 %v7309_v5, %v7308_v36 }
0x4ae6   :  { %9968 = vmatmul.mubr.msk.bf16.vlgmr.msra.gmra.mxu0 %vm997_vm5, %v7310_v34 }
0x4ae7   :  { %9980 = vmatpush3.bf16.xpose.msra.mxu0 %v7448_v12  ;;  %9981 = vmatprep.mubr.msk.bf16.mxu0 %vm11504_vm1, %v11503_v1 }
0x4ae8   :  { %9991 = vmatprep.subr.bf16.mxu0 %v11503_v1 }
0x4ba6   :  { %v7366_v41 = vpop.f32.mrf.mxu0 }
0x4ba7   :  { %v7367_v52 = vadd.f32 %v8966_v38, %v7366_v41 }
0x4ba8   :  { %v9969_v49 = vpop.f32.mrf.mxu0 }
0x4ba9   :  { %v13228_v42 = vpack.c.bf16 %v7367_v52, %v7367_v52 }
0x4baa   :  { %v7369_v56 = vpop.f32.mrf.mxu0 }
0x4bab   :  { %v7370_v3 = vadd.f32 %v8966_v38, %v7369_v56  ;;  %9982 = vmatmul.mubr.msk.bf16.vlgmr.msra.gmra.mxu0 %vm1112_vm6, %v13228_v42 }
0x4bac   :  { %v9970_v59 = vpop.f32.mrf.mxu0  ;;  %9993 = vmatprep.mubr.msk.bf16.mxu0 %vm11504_vm1, %v11503_v1 }
0x4bad   :  { %v13234_v51 = vpack.c.bf16 %v7370_v3, %v7370_v3 }
0x4baf   :  { %9988 = vmatmul.mubr.msk.bf16.vlgmr.msra.gmra.mxu1 %vm1112_vm6, %v13234_v51 }
0x4bb0   :  { %9999 = vmatprep.mubr.msk.bf16.mxu1 %vm11504_vm1, %v11503_v1 }
0x4c6b   :  { %v7484_v7 = vpop.f32.mrf.mxu0 }
0x4c6c   :  { %v7536_v62 = vmul.f32 0.35355338, %v7484_v7 }
0x4c6d   :  { %v9983_v47 = vpop.f32.mrf.mxu0 }
0x4c6e   :  { %v7538_v6 = vadd.f32 %v13241_v48, %v7536_v62 }
0x4c6f   :  { %v7487_v20 = vpop.f32.mrf.mxu0  ;;  %v7530_v63 = vpop.f32.mrf.mxu1 }
0x4c70   :  { %v7537_v39 = vmul.f32 0.35355338, %v7530_v63  ;;  %v7540_v29 = vsel %vm1112_vm6, %v7538_v6, -inf }
0x4c71   :  { %7541 = vmax.xlane.f32.xlu1 %v7540_v29  ;;  %v9984_v31 = vpop.f32.mrf.mxu0  ;;  %v9989_v32 = vpop.f32.mrf.mxu1 }
0x4c72   :  { %v7539_v54 = vadd.f32 %v13246_v4, %v7537_v39 }
0x4c73   :  { %v7533_v43 = vpop.f32.mrf.mxu1 }
0x4c74   :  { %v7543_v17 = vsel %vm1112_vm6, %v7539_v54, -inf }
0x4c75   :  { %7544 = vmax.xlane.f32.xlu0 %v7543_v17  ;;  %v9990_v30 = vpop.f32.mrf.mxu1 }
0x4c82   :  { %7564 = vrot.lane.b32.xlu1 %v13219_v15, %s11505_s29 }
0x4cfa   :  { %v7542_v37 = vpop.xlane.xlu1 %7541 }
0x4cfb   :  { %v7546_v16 = vsub.f32 %v7538_v6, %v7542_v37 }
0x4cfd   :  { %v7548_v50 = vmul.f32 1.442695, %v7546_v16 }
0x4cfe   :  { %v7565_v53 = vpop.permute.xlu1 %7564  ;;  %v7545_v8 = vpop.xlane.xlu0 %7544 }
0x4cff   :  { %10585 = vpow2.f32 %v7548_v50  ;;  %v7570_v18 = vsel %vm1240_vm7, %v7565_v53, 0  ;;  %v7547_v61 = vsub.f32 %v7539_v54, %v7545_v8 }
0x4d00   :  { %9992 = vmatpush3.bf16.msra.mxu0 %v7570_v18 }
0x4d01   :  { %v7550_v13 = vmul.f32 1.442695, %v7547_v61  ;;  %10003 = vmatprep.subr.bf16.mxu0 %v11503_v1 }
0x4d03   :  { %10587 = vpow2.f32 %v7550_v13 }
0x4d0c   :  { %v10586_v11 = vpop.eup %10585 }
0x4d0d   :  { %v7552_v9 = vsel %vm1112_vm6, %v10586_v11, 0.0 }
0x4d0e   :  { %7553 = vadd.xlane.f32.xlu1 %v7552_v9 }
0x4d10   :  { %v10588_v60 = vpop.eup %10587 }
0x4d11   :  { %v7555_v57 = vsel %vm1112_vm6, %v10588_v60, 0.0 }
0x4d12   :  { %7556 = vadd.xlane.f32.xlu0 %v7555_v57 }
0x4d1f   :  { %7662 = vrot.lane.b32.xlu1 %v13219_v15, %s11508_s6 }
0x4d23   :  { %7712 = vrot.lane.b32.xlu1 %v13206_v55, %s11508_s6 }
0x4d27   :  { %7710 = vrot.lane.b32.xlu1 %v13234_v51, %s11508_s6 }
0x4d28   :  { %7612 = vrot.lane.b32.xlu0 %v13206_v55, %s11505_s29  ;;  %s13593_s29 = sld [smem:[#allocation105_spill]] }
0x4d2c   :  { %7660 = vrot.lane.b32.xlu0 %v13228_v42, %s11508_s6  ;;  %s13595_s6 = sld [smem:[#allocation92_spill]] }
0x4d97   :  { %v7554_v58 = vpop.xlane.xlu1 %7553 }
0x4d98   :  { %10589 = vrcp.f32 %v7554_v58 }
0x4d9b   :  { %v7557_v40 = vpop.xlane.xlu0 %7556  ;;  %v7663_v14 = vpop.permute.xlu1 %7662 }
0x4d9c   :  { %10591 = vrcp.f32 %v7557_v40  ;;  %v7668_v26 = vsel %vm1112_vm6, %v7663_v14, 0 }
0x4d9f   :  { %v7613_v33 = vpop.permute.xlu0 %7612  ;;  %v7713_v24 = vpop.permute.xlu1 %7712 }
0x4da0   :  { %v7618_v19 = vsel %vm1240_vm7, %v7613_v33, 0  ;;  %v7718_v27 = vsel %vm1112_vm6, %v7713_v24, 0 }
0x4da1   :  { %9998 = vmatpush3.bf16.msra.mxu1 %v7618_v19 }
0x4da2   :  { %10009 = vmatprep.subr.bf16.mxu1 %v11503_v1 }
0x4da3   :  { %v7661_v21 = vpop.permute.xlu0 %7660  ;;  %v7711_v28 = vpop.permute.xlu1 %7710 }
0x4da5   :  { %v10590_v35 = vpop.eup %10589 }
0x4da6   :  { %v7560_v22 = vmul.f32 %v10590_v35, %v10586_v11 }
0x4da8   :  { %v7562_v23 = vpack.c.bf16 %v7560_v22, %v7560_v22 }
0x4da9   :  { %v10592_v45 = vpop.eup %10591 }
0x4daa   :  { %v7561_v25 = vmul.f32 %v10592_v45, %v10588_v60  ;;  %9994 = vmatmul.mubr.msk.bf16.vlgmr.msra.gmra.mxu0 %vm1112_vm6, %v7562_v23 }
0x4dab   :  { %10004 = vmatpush3.bf16.xpose.msra.mxu0 %v7668_v26  ;;  %10005 = vmatprep.mubr.msk.bf16.mxu0 %vm11504_vm1, %v11503_v1 }
0x4dac   :  { %v7563_v44 = vpack.c.bf16 %v7561_v25, %v7561_v25  ;;  %10015 = vmatprep.subr.bf16.mxu0 %v11503_v1 }
0x4dae   :  { %10000 = vmatmul.mubr.msk.bf16.vlgmr.msra.gmra.mxu1 %vm1112_vm6, %v7563_v44 }
0x4daf   :  { %10010 = vmatpush3.bf16.xpose.msra.mxu1 %v7718_v27  ;;  %10011 = vmatprep.mubr.msk.bf16.mxu1 %vm11504_vm1, %v11503_v1 }
0x4db0   :  { %10021 = vmatprep.subr.bf16.mxu1 %v11503_v1 }
0x4db2   :  { %10006 = vmatmul.mubr.msk.bf16.vlgmr.msra.gmra.mxu0 %vm1112_vm6, %v7661_v21 }
0x4db3   :  { %10017 = vmatprep.mubr.msk.bf16.mxu0 %vm11504_vm1, %v11503_v1 }
0x4db6   :  { %10012 = vmatmul.mubr.msk.bf16.vlgmr.msra.gmra.mxu1 %vm1112_vm6, %v7711_v28 }
0x4db7   :  { %10023 = vmatprep.mubr.msk.bf16.mxu1 %vm11504_vm1, %v11503_v1 }
0x4e6a   :  { %v13284_v2 = vpop.f32.mrf.mxu0 }
0x4e6c   :  { %v9995_v10 = vpop.f32.mrf.mxu0 }
0x4e6e   :  { %v7609_v36 = vpop.f32.mrf.mxu0  ;;  %v13286_v5 = vpop.f32.mrf.mxu1 }
0x4e70   :  { %v9996_v34 = vpop.f32.mrf.mxu0  ;;  %v10001_v12 = vpop.f32.mrf.mxu1 }
0x4e72   :  { %v7657_v38 = vpop.f32.mrf.mxu1  ;;  %v7704_v41 = vpop.f32.mrf.mxu0 }
0x4e73   :  { %v7760_v52 = vmul.f32 0.35355338, %v7704_v41 }
0x4e74   :  { %v10002_v49 = vpop.f32.mrf.mxu1  ;;  %v10007_v56 = vpop.f32.mrf.mxu0 }
0x4e75   :  { %v7762_v3 = vadd.f32 %v13241_v48, %v7760_v52 }
0x4e76   :  { %v7707_v59 = vpop.f32.mrf.mxu0  ;;  %v7754_v7 = vpop.f32.mrf.mxu1 }
0x4e77   :  { %v7761_v62 = vmul.f32 0.35355338, %v7754_v7  ;;  %v7764_v47 = vsel %vm1112_vm6, %v7762_v3, -inf }
0x4e78   :  { %7765 = vmax.xlane.f32.xlu0 %v7764_v47  ;;  %v10008_v6 = vpop.f32.mrf.mxu0  ;;  %v10013_v20 = vpop.f32.mrf.mxu1 }
0x4e79   :  { %v7763_v63 = vadd.f32 %v13246_v4, %v7761_v62 }
0x4e7a   :  { %v7757_v39 = vpop.f32.mrf.mxu1 }
0x4e7b   :  { %v7767_v29 = vsel %vm1112_vm6, %v7763_v63, -inf }
0x4e7c   :  { %7768 = vmax.xlane.f32.xlu1 %v7767_v29  ;;  %v10014_v31 = vpop.f32.mrf.mxu1 }
0x4e8d   :  { %7788 = vrot.lane.b32.xlu1 %v13219_v15, %s11507_s11 }
0x4e91   :  { %7886 = vrot.lane.b32.xlu1 %v13219_v15, %s11511_s12 }
0x4e95   :  { %7936 = vrot.lane.b32.xlu1 %v13206_v55, %s11511_s12 }
0x4e99   :  { %7934 = vrot.lane.b32.xlu1 %v13234_v51, %s11511_s12 }
0x4f01   :  { %v7766_v32 = vpop.xlane.xlu0 %7765 }
0x4f02   :  { %v7770_v54 = vsub.f32 %v7762_v3, %v7766_v32 }
0x4f04   :  { %v7772_v43 = vmul.f32 1.442695, %v7770_v54 }
0x4f05   :  { %v7769_v17 = vpop.xlane.xlu1 %7768 }
0x4f06   :  { %10593 = vpow2.f32 %v7772_v43  ;;  %v7771_v30 = vsub.f32 %v7763_v63, %v7769_v17 }
0x4f08   :  { %v7774_v37 = vmul.f32 1.442695, %v7771_v30 }
0x4f09   :  { %v7789_v16 = vpop.permute.xlu1 %7788 }
0x4f0a   :  { %10595 = vpow2.f32 %v7774_v37  ;;  %v7794_v50 = vsel %vm1240_vm7, %v7789_v16, 0 }
0x4f0b   :  { %10016 = vmatpush3.bf16.msra.mxu0 %v7794_v50 }
0x4f0c   :  { %10027 = vmatprep.subr.bf16.mxu0 %v11503_v1 }
0x4f0d   :  { %v7887_v58 = vpop.permute.xlu1 %7886 }
0x4f0e   :  { %v7892_v35 = vsel %vm1112_vm6, %v7887_v58, 0 }
0x4f11   :  { %v7937_v22 = vpop.permute.xlu1 %7936 }
0x4f12   :  { %v7942_v45 = vsel %vm1112_vm6, %v7937_v22, 0 }
0x4f13   :  { %v10594_v53 = vpop.eup %10593 }
0x4f14   :  { %v7776_v8 = vsel %vm1112_vm6, %v10594_v53, 0.0 }
0x4f15   :  { %7777 = vadd.xlane.f32.xlu0 %v7776_v8  ;;  %v7935_v25 = vpop.permute.xlu1 %7934 }
0x4f17   :  { %v10596_v18 = vpop.eup %10595 }
0x4f18   :  { %v7779_v61 = vsel %vm1112_vm6, %v10596_v18, 0.0 }
0x4f19   :  { %7780 = vadd.xlane.f32.xlu0 %v7779_v61 }
0x4f2f   :  { %7836 = vrot.lane.b32.xlu0 %v13206_v55, %s11507_s11  ;;  %s13594_s11 = sld [smem:[#allocation102_spill]] }
0x4f33   :  { %7884 = vrot.lane.b32.xlu0 %v13228_v42, %s11511_s12  ;;  %s13597_s12 = sld [smem:[#allocation96_spill]] }
0x4f9e   :  { %v7778_v13 = vpop.xlane.xlu0 %7777 }
0x4f9f   :  { %10597 = vrcp.f32 %v7778_v13 }
0x4fa2   :  { %v7781_v11 = vpop.xlane.xlu0 %7780 }
0x4fa3   :  { %10599 = vrcp.f32 %v7781_v11 }
0x4fa6   :  { %v7837_v9 = vpop.permute.xlu0 %7836 }
0x4fa7   :  { %v7842_v60 = vsel %vm1240_vm7, %v7837_v9, 0 }
0x4fa8   :  { %10022 = vmatpush3.bf16.msra.mxu1 %v7842_v60 }
0x4fa9   :  { %10033 = vmatprep.subr.bf16.mxu1 %v11503_v1 }
0x4faa   :  { %v7885_v26 = vpop.permute.xlu0 %7884 }
0x4fac   :  { %v10598_v57 = vpop.eup %10597 }
0x4fad   :  { %v7784_v40 = vmul.f32 %v10598_v57, %v10594_v53 }
0x4faf   :  { %v7786_v33 = vpack.c.bf16 %v7784_v40, %v7784_v40 }
0x4fb0   :  { %v10600_v19 = vpop.eup %10599 }
0x4fb1   :  { %v7785_v14 = vmul.f32 %v10600_v19, %v10596_v18  ;;  %10018 = vmatmul.mubr.msk.bf16.vlgmr.msra.gmra.mxu0 %vm1112_vm6, %v7786_v33 }
0x4fb2   :  { %10028 = vmatpush3.bf16.xpose.msra.mxu0 %v7892_v35  ;;  %10029 = vmatprep.mubr.msk.bf16.mxu0 %vm11504_vm1, %v11503_v1 }
0x4fb3   :  { %v7787_v23 = vpack.c.bf16 %v7785_v14, %v7785_v14  ;;  %10039 = vmatprep.subr.bf16.mxu0 %v11503_v1 }
0x4fb5   :  { %10024 = vmatmul.mubr.msk.bf16.vlgmr.msra.gmra.mxu1 %vm1112_vm6, %v7787_v23 }
0x4fb6   :  { %10034 = vmatpush3.bf16.xpose.msra.mxu1 %v7942_v45  ;;  %10035 = vmatprep.mubr.msk.bf16.mxu1 %vm11504_vm1, %v11503_v1 }
0x4fb7   :  { %10045 = vmatprep.subr.bf16.mxu1 %v11503_v1 }
0x4fb9   :  { %10030 = vmatmul.mubr.msk.bf16.vlgmr.msra.gmra.mxu0 %vm1112_vm6, %v7885_v26 }
0x4fba   :  { %10041 = vmatprep.mubr.msk.bf16.mxu0 %vm11504_vm1, %v11503_v1 }
0x4fbd   :  { %10036 = vmatmul.mubr.msk.bf16.vlgmr.msra.gmra.mxu1 %vm1112_vm6, %v7935_v25 }
0x4fbe   :  { %10047 = vmatprep.mubr.msk.bf16.mxu1 %vm11504_vm1, %v11503_v1 }
0x5071   :  { %v13326_v24 = vpop.f32.mrf.mxu0 }
0x5073   :  { %v10019_v44 = vpop.f32.mrf.mxu0 }
0x5075   :  { %v7833_v27 = vpop.f32.mrf.mxu0  ;;  %v13328_v21 = vpop.f32.mrf.mxu1 }
0x5076   :  { %v10310_v28 = vpack.i.bf16 %v13328_v21, %v13326_v24 }
0x5077   :  { %v10020_v10 = vpop.f32.mrf.mxu0  ;;  %v10025_v36 = vpop.f32.mrf.mxu1 }
0x5079   :  { %v7881_v34 = vpop.f32.mrf.mxu1  ;;  %v7928_v12 = vpop.f32.mrf.mxu0 }
0x507a   :  { %v7984_v38 = vmul.f32 0.35355338, %v7928_v12 }
0x507b   :  { %v10026_v41 = vpop.f32.mrf.mxu1  ;;  %v10031_v52 = vpop.f32.mrf.mxu0 }
0x507c   :  { %v7986_v49 = vadd.f32 %v13241_v48, %v7984_v38 }
0x507d   :  { %v7931_v56 = vpop.f32.mrf.mxu0  ;;  %v7978_v3 = vpop.f32.mrf.mxu1 }
0x507e   :  { %v7985_v59 = vmul.f32 0.35355338, %v7978_v3  ;;  %v7988_v7 = vsel %vm1112_vm6, %v7986_v49, -inf }
0x507f   :  { %7989 = vmax.xlane.f32.xlu0 %v7988_v7  ;;  %v10032_v62 = vpop.f32.mrf.mxu0  ;;  %v10037_v47 = vpop.f32.mrf.mxu1 }
0x5080   :  { %v7987_v6 = vadd.f32 %v13246_v4, %v7985_v59 }
0x5081   :  { %v7981_v20 = vpop.f32.mrf.mxu1 }
0x5082   :  { %v7991_v63 = vsel %vm1112_vm6, %v7987_v6, -inf }
0x5083   :  { %7992 = vmax.xlane.f32.xlu1 %v7991_v63  ;;  %v10038_v39 = vpop.f32.mrf.mxu1 }
0x5094   :  { %8012 = vrot.lane.b32.xlu1 %v13219_v15, %s11510_s15 }
0x5098   :  { %8110 = vrot.lane.b32.xlu1 %v13219_v15, %s11514_s8 }
0x509c   :  { %8160 = vrot.lane.b32.xlu1 %v13206_v55, %s11514_s8 }
0x50a0   :  { %8158 = vrot.lane.b32.xlu1 %v13234_v51, %s11514_s8 }
0x5108   :  { %v7990_v29 = vpop.xlane.xlu0 %7989 }
0x5109   :  { %v7994_v31 = vsub.f32 %v7986_v49, %v7990_v29 }
0x510b   :  { %v7996_v32 = vmul.f32 1.442695, %v7994_v31 }
0x510c   :  { %v7993_v54 = vpop.xlane.xlu1 %7992 }
0x510d   :  { %10601 = vpow2.f32 %v7996_v32  ;;  %v7995_v43 = vsub.f32 %v7987_v6, %v7993_v54 }
0x510f   :  { %v7998_v17 = vmul.f32 1.442695, %v7995_v43 }
0x5110   :  { %v8013_v30 = vpop.permute.xlu1 %8012 }
0x5111   :  { %10603 = vpow2.f32 %v7998_v17  ;;  %v8018_v37 = vsel %vm1240_vm7, %v8013_v30, 0 }
0x5112   :  { %10040 = vmatpush3.bf16.msra.mxu0 %v8018_v37 }
0x5113   :  { %10051 = vmatprep.subr.bf16.mxu0 %v11503_v1 }
0x5114   :  { %v8111_v9 = vpop.permute.xlu1 %8110 }
0x5115   :  { %v8116_v40 = vsel %vm1112_vm6, %v8111_v9, 0 }
0x511a   :  { %v10602_v16 = vpop.eup %10601 }
0x511b   :  { %v8000_v50 = vsel %vm1112_vm6, %v10602_v16, 0.0 }
0x511c   :  { %8001 = vadd.xlane.f32.xlu0 %v8000_v50 }
0x511e   :  { %v10604_v53 = vpop.eup %10603 }
0x511f   :  { %v8003_v51 = vsel %vm1112_vm6, %v10604_v53, 0.0 }
0x5120   :  { %8004 = vadd.xlane.f32.xlu0 %v8003_v51 }
0x5136   :  { %8060 = vrot.lane.b32.xlu0 %v13206_v55, %s11510_s15  ;;  %s13596_s15 = sld [smem:[#allocation93_spill]] }
0x513a   :  { %8108 = vrot.lane.b32.xlu0 %v13228_v42, %s11514_s8  ;;  %v8161_v42 = vpop.permute.xlu1 %8160  ;;  %s13599_s8 = sld [smem:[#allocation107_spill]] }
0x513b   :  { %v8166_v35 = vsel %vm1112_vm6, %v8161_v42, 0 }
0x513e   :  { %v8159_v22 = vpop.permute.xlu1 %8158 }
0x51a5   :  { %v8002_v8 = vpop.xlane.xlu0 %8001 }
0x51a6   :  { %10605 = vrcp.f32 %v8002_v8 }
0x51a9   :  { %v8005_v18 = vpop.xlane.xlu0 %8004 }
0x51aa   :  { %10607 = vrcp.f32 %v8005_v18 }
0x51ad   :  { %v8061_v61 = vpop.permute.xlu0 %8060 }
0x51ae   :  { %v8066_v13 = vsel %vm1240_vm7, %v8061_v61, 0  ;;  %v10377_v61 = vld [vmem:[%s13593_s29 + $0x8] sm:$0xff]  }
0x51af   :  { %10046 = vmatpush3.bf16.msra.mxu1 %v8066_v13  ;;  %v10378_v13 = vld [vmem:[%s13593_s29] sm:$0xff]  }
0x51b0   :  { %10057 = vmatprep.subr.bf16.mxu1 %v11503_v1 }
0x51b1   :  { %v8109_v14 = vpop.permute.xlu0 %8108 }
0x51b3   :  { %v10606_v11 = vpop.eup %10605 }
0x51b4   :  { %v8008_v60 = vmul.f32 %v10606_v11, %v10602_v16 }
0x51b6   :  { %v8010_v57 = vpack.c.bf16 %v8008_v60, %v8008_v60 }
0x51b7   :  { %v10608_v58 = vpop.eup %10607 }
0x51b8   :  { %v8009_v33 = vmul.f32 %v10608_v58, %v10604_v53  ;;  %10042 = vmatmul.mubr.msk.bf16.vlgmr.msra.gmra.mxu0 %vm1112_vm6, %v8010_v57 }
0x51b9   :  { %10052 = vmatpush3.bf16.xpose.msra.mxu0 %v8116_v40  ;;  %10053 = vmatprep.mubr.msk.bf16.mxu0 %vm11504_vm1, %v11503_v1 }
0x51ba   :  { %v8011_v19 = vpack.c.bf16 %v8009_v33, %v8009_v33  ;;  %10063 = vmatprep.subr.bf16.mxu0 %v11503_v1 }
0x51bc   :  { %10048 = vmatmul.mubr.msk.bf16.vlgmr.msra.gmra.mxu1 %vm1112_vm6, %v8011_v19 }
0x51bd   :  { %10058 = vmatpush3.bf16.xpose.msra.mxu1 %v8166_v35  ;;  %10059 = vmatprep.mubr.msk.bf16.mxu1 %vm11504_vm1, %v11503_v1 }
0x51be   :  { %10069 = vmatprep.subr.bf16.mxu1 %v11503_v1 }
0x51c0   :  { %10054 = vmatmul.mubr.msk.bf16.vlgmr.msra.gmra.mxu0 %vm1112_vm6, %v8109_v14 }
0x51c1   :  { %10065 = vmatprep.mubr.msk.bf16.mxu0 %vm11504_vm1, %v11503_v1 }
0x51c4   :  { %10060 = vmatmul.mubr.msk.bf16.vlgmr.msra.gmra.mxu1 %vm1112_vm6, %v8159_v22 }
0x51c5   :  { %10071 = vmatprep.mubr.msk.bf16.mxu1 %vm11504_vm1, %v11503_v1 }
0x5278   :  { %v8054_v23 = vpop.f32.mrf.mxu0 }
0x527a   :  { %v10043_v45 = vpop.f32.mrf.mxu0 }
0x527c   :  { %v8057_v26 = vpop.f32.mrf.mxu0  ;;  %v8102_v25 = vpop.f32.mrf.mxu1 }
0x527e   :  { %v10044_v44 = vpop.f32.mrf.mxu0  ;;  %v10049_v27 = vpop.f32.mrf.mxu1 }
0x5280   :  { %v8105_v10 = vpop.f32.mrf.mxu1  ;;  %v8152_v36 = vpop.f32.mrf.mxu0 }
0x5281   :  { %v8208_v34 = vmul.f32 0.35355338, %v8152_v36 }
0x5282   :  { %v10050_v12 = vpop.f32.mrf.mxu1  ;;  %v10055_v38 = vpop.f32.mrf.mxu0 }
0x5283   :  { %v8210_v41 = vadd.f32 %v13241_v48, %v8208_v34  ;;  %v10315_v48 = vpack.i.bf16 %v8102_v25, %v8054_v23 }
0x5284   :  { %v8155_v52 = vpop.f32.mrf.mxu0  ;;  %v8202_v49 = vpop.f32.mrf.mxu1 }
0x5285   :  { %v8209_v56 = vmul.f32 0.35355338, %v8202_v49  ;;  %v8212_v3 = vsel %vm1112_vm6, %v8210_v41, -inf }
0x5286   :  { %8213 = vmax.xlane.f32.xlu0 %v8212_v3  ;;  %v10056_v59 = vpop.f32.mrf.mxu0  ;;  %v10061_v7 = vpop.f32.mrf.mxu1 }
0x5287   :  { %v8211_v62 = vadd.f32 %v13246_v4, %v8209_v56 }
0x5288   :  { %v8205_v47 = vpop.f32.mrf.mxu1 }
0x5289   :  { %v8215_v6 = vsel %vm1112_vm6, %v8211_v62, -inf }
0x528a   :  { %8216 = vmax.xlane.f32.xlu1 %v8215_v6  ;;  %v10062_v20 = vpop.f32.mrf.mxu1 }
0x529b   :  { %8236 = vrot.lane.b32.xlu1 %v13219_v15, %s11513_s18 }
0x529f   :  { %10311 = vrot.lane.b32.xlu1 %v10310_v28, %s11517_s17 }
0x52a3   :  { %10316 = vrot.lane.b32.xlu1 %v10315_v48, %s11516_s19 }
0x530f   :  { %v8214_v63 = vpop.xlane.xlu0 %8213 }
0x5310   :  { %v8218_v39 = vsub.f32 %v8210_v41, %v8214_v63 }
0x5312   :  { %v8220_v29 = vmul.f32 1.442695, %v8218_v39 }
0x5313   :  { %v8217_v4 = vpop.xlane.xlu1 %8216 }
0x5314   :  { %10609 = vpow2.f32 %v8220_v29  ;;  %v8219_v31 = vsub.f32 %v8211_v62, %v8217_v4 }
0x5316   :  { %v8222_v32 = vmul.f32 1.442695, %v8219_v31 }
0x5317   :  { %v8237_v54 = vpop.permute.xlu1 %8236 }
0x5318   :  { %10611 = vpow2.f32 %v8222_v32  ;;  %v8242_v43 = vsel %vm1240_vm7, %v8237_v54, 0 }
0x5319   :  { %10064 = vmatpush3.bf16.msra.mxu0 %v8242_v43  ;;  %v10379_v43 = vld [vmem:[%s13595_s6 + $0x8] sm:$0xff]  }
0x531a   :  { %10075 = vmatprep.subr.bf16.mxu0 %v11503_v1 }
0x531b   :  { %v10312_v35 = vpop.permute.xlu1 %10311 }
0x531c   :  { %v10314_v22 = vunpack.i.h.bf16 %v10312_v35  ;;  %v10313_v23 = vunpack.i.l.bf16 %v10312_v35 }
0x531e   :  { %v8357_v44 = vsel %vm1112_vm6, %v13286_v5, %v10314_v22  ;;  %v8356_v27 = vsel %vm1112_vm6, %v13284_v2, %v10313_v23  ;;  %v8994_v5 = vld [vmem:[%s13594_s11] ss:$0 sm:$0xff] }
0x531f   :  { %v10317_v14 = vpop.permute.xlu1 %10316 }
0x5320   :  { %v10319_v45 = vunpack.i.h.bf16 %v10317_v14  ;;  %v10318_v26 = vunpack.i.l.bf16 %v10317_v14 }
0x5321   :  { %v10610_v15 = vpop.eup %10609 }
0x5322   :  { %v8224_v24 = vsel %vm1112_vm6, %v10610_v15, 0.0  ;;  %v8358_v34 = vsel %vm2030_vm8, %v8356_v27, %v10318_v26  ;;  %v8359_v12 = vsel %vm2030_vm8, %v8357_v44, %v10319_v45  ;;  %v9005_v44 = vld [vmem:[#allocation24] ss:$0 sm:$0xff] }
0x5323   :  { %8225 = vadd.xlane.f32.xlu0 %v8224_v24  ;;  %v10381_v24 = vld [vmem:[%s13596_s15 + $0x18] sm:$0xff]  }
0x5325   :  { %v10612_v21 = vpop.eup %10611 }
0x5326   :  { %v8227_v28 = vsel %vm1112_vm6, %v10612_v21, 0.0 }
0x5327   :  { %8228 = vadd.xlane.f32.xlu0 %v8227_v28 }
0x533d   :  { %8284 = vrot.lane.b32.xlu0 %v13206_v55, %s11513_s18  ;;  %s13598_s18 = sld [smem:[#allocation108_spill]] }
0x53ac   :  { %v8226_v17 = vpop.xlane.xlu0 %8225 }
0x53ad   :  { %10613 = vrcp.f32 %v8226_v17 }
0x53b0   :  { %v8229_v30 = vpop.xlane.xlu0 %8228 }
0x53b1   :  { %10615 = vrcp.f32 %v8229_v30 }
0x53b4   :  { %v8285_v37 = vpop.permute.xlu0 %8284 }
0x53b5   :  { %v8290_v16 = vsel %vm1240_vm7, %v8285_v37, 0 }
0x53b6   :  { %10070 = vmatpush3.bf16.msra.mxu1 %v8290_v16 }
0x53b7   :  { %10083 = vmatprep.subr.bf16.mxu1 %v11503_v1 }
0x53ba   :  { %v10614_v50 = vpop.eup %10613 }
0x53bb   :  { %v8232_v53 = vmul.f32 %v10614_v50, %v10610_v15  ;;  %v10380_v15 = vld [vmem:[%s13595_s6] sm:$0xff]  }
0x53bd   :  { %v8234_v51 = vpack.c.bf16 %v8232_v53, %v8232_v53 }
0x53be   :  { %v10616_v8 = vpop.eup %10615 }
0x53bf   :  { %v8233_v18 = vmul.f32 %v10616_v8, %v10612_v21  ;;  %10066 = vmatmul.mubr.msk.bf16.vlgmr.msra.gmra.mxu0 %vm1112_vm6, %v8234_v51  ;;  %v8999_v51 = vld [vmem:[%s13597_s12] ss:$0 sm:$0xff] }
0x53c0   :  { %10079 = vmatprep.mubr.msk.bf16.mxu0 %vm11504_vm1, %v11503_v1  ;;  %10076 = vmatpush3.bf16.msra.mxu0 %v10377_v61  ;;  %v9000_v61 = vld [vmem:[#allocation31] ss:$0 sm:$0xff] }
0x53c1   :  { %v8235_v55 = vpack.c.bf16 %v8233_v18, %v8233_v18  ;;  %10077 = vmatprep.subr.bf16.mxu0 %v11503_v1 }
0x53c3   :  { %10072 = vmatmul.mubr.msk.bf16.vlgmr.msra.gmra.mxu1 %vm1112_vm6, %v8235_v55 }
0x53c4   :  { %10087 = vmatprep.mubr.msk.bf16.mxu1 %vm11504_vm1, %v11503_v1  ;;  %10078 = vmatpush3.bf16.msra.mxu0 %v10378_v13 }
0x53c5   :  { %10091 = vmatprep.subr.bf16.mxu0 %v11503_v1  ;;  %10084 = vmatpush3.bf16.msra.mxu1 %v10379_v43 }
0x53c6   :  { %10085 = vmatprep.subr.bf16.mxu1 %v11503_v1 }
0x53c9   :  { %10086 = vmatpush3.bf16.msra.mxu1 %v10380_v15 }
0x547f   :  { %v8278_v11 = vpop.f32.mrf.mxu0 }
0x5481   :  { %v10067_v9 = vpop.f32.mrf.mxu0 }
0x5483   :  { %v8281_v60 = vpop.f32.mrf.mxu0  ;;  %v8326_v57 = vpop.f32.mrf.mxu1 }
0x5484   :  { %v10320_v58 = vpack.i.bf16 %v8326_v57, %v8278_v11  ;;  %v10382_v57 = vld [vmem:[%s13596_s15 + $0x10] sm:$0xff]  }
0x5485   :  { %v10068_v40 = vpop.f32.mrf.mxu0  ;;  %v10073_v33 = vpop.f32.mrf.mxu1 }
0x5486   :  { %10321 = vrot.lane.b32.xlu0 %v10320_v58, %s11518_s4  ;;  %v10383_v58 = vld [vmem:[%s13596_s15 + $0x8] sm:$0xff]   ;;  %v10384_v40 = vld [vmem:[%s13596_s15] sm:$0xff]   ;;  %v9001_v33 = vld [vmem:[#allocation22] ss:$0 sm:$0xff] }
0x5487   :  { %v8329_v42 = vpop.f32.mrf.mxu1 }
0x5489   :  { %v10074_v19 = vpop.f32.mrf.mxu1 }
0x54f8   :  { %v10322_v25 = vpop.permute.xlu0 %10321 }
0x54f9   :  { %v10324_v10 = vunpack.i.h.bf16 %v10322_v25  ;;  %v10323_v36 = vunpack.i.l.bf16 %v10322_v25 }
0x54fb   :  { %v8361_v38 = vsel %vm2033_vm9, %v8359_v12, %v10324_v10  ;;  %v8360_v41 = vsel %vm2033_vm9, %v8358_v34, %v10323_v36 }
0x54fc   :  { %v9034_v52 = vpack.c.bf16 %v8361_v38, %v8360_v41 }
0x54fe   :  { %10080 = vmatmul.mubr.msk.bf16.vlgmr.msra.gmra.mxu0 %vm997_vm5, %v9034_v52 }
0x54ff   :  { %10099 = vmatprep.mubr.msk.bf16.mxu0 %vm11504_vm1, %v11503_v1  ;;  %10092 = vmatpush3.bf16.msra.mxu0 %v10381_v24 }
0x5500   :  { %10093 = vmatprep.subr.bf16.mxu0 %v11503_v1 }
0x5503   :  { %10094 = vmatpush3.bf16.msra.mxu0 %v10382_v57 }
0x5504   :  { %10095 = vmatprep.subr.bf16.mxu0 %v11503_v1 }
0x5507   :  { %10096 = vmatpush3.bf16.msra.mxu0 %v10383_v58 }
0x5508   :  { %10097 = vmatprep.subr.bf16.mxu0 %v11503_v1 }
0x550b   :  { %10098 = vmatpush3.bf16.msra.mxu0 %v10384_v40 }
0x55be   :  { %v8424_v49 = vpop.f32.mrf.mxu0 }
0x55bf   :  { %v8425_v56 = vadd.f32 %v8994_v5, %v8424_v49 }
0x55c0   :  { %v10081_v2 = vpop.f32.mrf.mxu0 }
0x55c1   :  { %v13413_v3 = vadd.f32 %v8425_v56, %v13196_v0 }
0x55c2   :  { %v8427_v59 = vpop.f32.mrf.mxu0 }
0x55c3   :  { %v8428_v7 = vadd.f32 %v8994_v5, %v8427_v59  ;;  %v8433_v62 = vsel %vm997_vm5, %v13413_v3, 0.0 }
0x55c4   :  { %8434 = vadd.xlane.f32.xlu1 %v8433_v62  ;;  %v10082_v47 = vpop.f32.mrf.mxu0 }
0x55c5   :  { %v13418_v6 = vadd.f32 %v8428_v7, %v13202_v46 }
0x55c7   :  { %v8436_v20 = vsel %vm997_vm5, %v13418_v6, 0.0 }
0x55c8   :  { %8437 = vadd.xlane.f32.xlu0 %v8436_v20 }
0x564d   :  { %v8435_v48 = vpop.xlane.xlu1 %8434 }
0x564e   :  { %v8439_v63 = vmul.f32 0.03125, %v8435_v48 }
0x5650   :  { %v8441_v0 = vsub.f32 %v13413_v3, %v8439_v63 }
0x5651   :  { %v8438_v39 = vpop.xlane.xlu0 %8437 }
0x5652   :  { %v8440_v29 = vmul.f32 0.03125, %v8438_v39  ;;  %v8443_v4 = vmul.f32 %v8441_v0, %v8441_v0 }
0x5654   :  { %v8442_v31 = vsub.f32 %v13418_v6, %v8440_v29  ;;  %v8445_v32 = vsel %vm997_vm5, %v8443_v4, 0.0 }
0x5655   :  { %8446 = vadd.xlane.f32.xlu0 %v8445_v32  ;;  %v9011_v32 = vld [vmem:[%s13598_s18] ss:$0 sm:$0xff] }
0x5656   :  { %v8444_v46 = vmul.f32 %v8442_v31, %v8442_v31 }
0x5658   :  { %v8448_v54 = vsel %vm997_vm5, %v8444_v46, 0.0 }
0x5659   :  { %8449 = vadd.xlane.f32.xlu1 %v8448_v54  ;;  %v9012_v54 = vld [vmem:[%s13599_s8] ss:$0 sm:$0xff] }
0x56de   :  { %v8447_v21 = vpop.xlane.xlu0 %8446 }
0x56df   :  { %v8451_v28 = vmul.f32 0.03125, %v8447_v21 }
0x56e1   :  { %v8453_v17 = vadd.f32 1e-05, %v8451_v28 }
0x56e2   :  { %v8450_v30 = vpop.xlane.xlu1 %8449 }
0x56e3   :  { %10617 = vrsqrt.f32 %v8453_v17  ;;  %v8452_v37 = vmul.f32 0.03125, %v8450_v30 }
0x56e5   :  { %v8454_v16 = vadd.f32 1e-05, %v8452_v37 }
0x56e7   :  { %10619 = vrsqrt.f32 %v8454_v16 }
0x56f0   :  { %v10618_v50 = vpop.eup %10617 }
0x56f1   :  { %v8457_v53 = vmul.f32 %v10618_v50, %v8441_v0 }
0x56f3   :  { %v8465_v18 = vmul.f32 %v8999_v51, %v8457_v53 }
0x56f4   :  { %v10620_v8 = vpop.eup %10619 }
0x56f5   :  { %v8458_v55 = vmul.f32 %v10620_v8, %v8442_v31  ;;  %v8473_v11 = vadd.f32 %v9000_v61, %v8465_v18 }
0x56f7   :  { %v8466_v13 = vmul.f32 %v8999_v51, %v8458_v55 }
0x56f9   :  { %v8474_v9 = vadd.f32 %v9000_v61, %v8466_v13 }
0x56fb   :  { %v8475_v60 = vpack.c.bf16 %v8474_v9, %v8473_v11 }
0x56fd   :  { %10088 = vmatmul.mubr.msk.bf16.vlgmr.msra.gmra.mxu1 %vm997_vm5, %v8475_v60 }
0x57bd   :  { %v8531_v42 = vpop.f32.mrf.mxu1 }
0x57be   :  { %v8532_v35 = vadd.f32 %v9001_v33, %v8531_v42 }
0x57bf   :  { %v10089_v19 = vpop.f32.mrf.mxu1 }
0x57c0   :  { %v8538_v45 = vmax.f32 %v8532_v35, 0.0 }
0x57c1   :  { %v8534_v14 = vpop.f32.mrf.mxu1 }
0x57c2   :  { %v8535_v22 = vadd.f32 %v9001_v33, %v8534_v14 }
0x57c3   :  { %v10090_v23 = vpop.f32.mrf.mxu1 }
0x57c4   :  { %v8539_v26 = vmax.f32 %v8535_v22, 0.0 }
0x57c6   :  { %v8540_v25 = vpack.c.bf16 %v8539_v26, %v8538_v45 }
0x57c8   :  { %10100 = vmatmul.mubr.msk.bf16.vlgmr.msra.gmra.mxu0 %vm2245_vm10, %v8540_v25 }
0x5888   :  { %v8608_v27 = vpop.f32.mrf.mxu0 }
0x5889   :  { %v8609_v10 = vadd.f32 %v9005_v44, %v8608_v27 }
0x588a   :  { %v10101_v36 = vpop.f32.mrf.mxu0 }
0x588b   :  { %v8615_v1 = vadd.f32 %v8609_v10, %v13413_v3 }
0x588c   :  { %v8611_v34 = vpop.f32.mrf.mxu0 }
0x588d   :  { %v8612_v12 = vadd.f32 %v9005_v44, %v8611_v34  ;;  %v8617_v38 = vsel %vm997_vm5, %v8615_v1, 0.0 }
0x588e   :  { %8618 = vadd.xlane.f32.xlu0 %v8617_v38  ;;  %v10102_v41 = vpop.f32.mrf.mxu0 }
0x588f   :  { %v8616_v52 = vadd.f32 %v8612_v12, %v13418_v6 }
0x5891   :  { %v8620_v5 = vsel %vm997_vm5, %v8616_v52, 0.0 }
0x5892   :  { %8621 = vadd.xlane.f32.xlu1 %v8620_v5 }
0x5917   :  { %v8619_v49 = vpop.xlane.xlu0 %8618 }
0x5918   :  { %v8623_v56 = vmul.f32 0.03125, %v8619_v49 }
0x591a   :  { %v8625_v2 = vsub.f32 %v8615_v1, %v8623_v56 }
0x591b   :  { %v8622_v59 = vpop.xlane.xlu1 %8621 }
0x591c   :  { %v8624_v7 = vmul.f32 0.03125, %v8622_v59  ;;  %v8627_v62 = vmul.f32 %v8625_v2, %v8625_v2 }
0x591e   :  { %v8626_v47 = vsub.f32 %v8616_v52, %v8624_v7  ;;  %v8629_v3 = vsel %vm997_vm5, %v8627_v62, 0.0 }
0x591f   :  { %8630 = vadd.xlane.f32.xlu0 %v8629_v3 }
0x5920   :  { %v8628_v20 = vmul.f32 %v8626_v47, %v8626_v47 }
0x5922   :  { %v8632_v48 = vsel %vm997_vm5, %v8628_v20, 0.0 }
0x5923   :  { %8633 = vadd.xlane.f32.xlu1 %v8632_v48 }
0x59a8   :  { %v8631_v6 = vpop.xlane.xlu0 %8630 }
0x59a9   :  { %v8635_v63 = vmul.f32 0.03125, %v8631_v6 }
0x59ab   :  { %v8637_v0 = vadd.f32 1e-05, %v8635_v63 }
0x59ac   :  { %v8634_v39 = vpop.xlane.xlu1 %8633 }
0x59ad   :  { %10621 = vrsqrt.f32 %v8637_v0  ;;  %v8636_v29 = vmul.f32 0.03125, %v8634_v39 }
0x59af   :  { %v8638_v4 = vadd.f32 1e-05, %v8636_v29 }
0x59b1   :  { %10623 = vrsqrt.f32 %v8638_v4 }
0x59ba   :  { %v10622_v31 = vpop.eup %10621 }
0x59bb   :  { %v8641_v46 = vmul.f32 %v10622_v31, %v8625_v2 }
0x59bd   :  { %v8649_v43 = vmul.f32 %v9011_v32, %v8641_v46 }
0x59be   :  { %v10624_v15 = vpop.eup %10623 }
0x59bf   :  { %v8657_v24 = vadd.f32 %v9012_v54, %v8649_v43  ;;  %v8642_v21 = vmul.f32 %v10624_v15, %v8626_v47 }
0x59c1   :  { %8659 = vst.msk [vmem:[%s11912_s24] sm:$0xff] %vm997_vm5, %v8657_v24  ;;  %v8650_v28 = vmul.f32 %v9011_v32, %v8642_v21 }
0x59c3   :  { %v8658_v17 = vadd.f32 %v9012_v54, %v8650_v28 }
0x59c5   :  { %8660 = vst.msk [vmem:[%s11912_s24 + $0x8] sm:$0xff] %vm997_vm5, %v8658_v17 }
0x59c6   :  { %8665 = vsyncpa [#allocation3], 1 }
0x59c7   :  { %8666 = vsyncpa [#allocation5], 1 }
0x59c8   :  { %8667 = vsyncpa [#allocation8], 1 }
0x59c9   :  { %8668 = vsyncpa [#allocation11], 1 }
0x59ca   :  { %8669 = vsyncpa [#allocation14], 1 }
0x59cb   :  { %8670 = vsyncpa [#allocation17], 1 }
0x59cc   :  { %8671 = vsyncpa [#allocation20], 1 }
0x59cd   :  { %8672 = vsyncpa [#allocation23], 1 }
0x59ce   :  { %8673 = vsyncpa [#allocation26], 1 }
0x59cf   :  { %8674 = vsyncpa [#allocation29], 1 }
0x59d0   :  { %8675 = vsyncpa [#allocation32], 1 }
0x59d1   :  { %8676 = vsyncpa [#allocation35], 1 }
0x59d2   :  { %8677 = vsyncpa [#allocation38], 1 }
0x59d3   :  { %8678 = vsyncpa [#allocation41], 1 }
0x59d4   :  { %8679 = vsyncpa [#allocation44], 1 }
0x59d5   :  { %8680 = vsyncpa [#allocation47], 1 }
0x59d6   :  { %8681 = vsyncpa [#allocation50], 1 }
0x59d7   :  { %8682 = vsyncpa [#allocation53], 1 }
0x59d8   :  { %8683 = vsyncpa [#allocation56], 1 }

</bundles_post_ra>
